<compile_context>
chip_gen: v7x
topology: tpu7x:2x2x1
jax: 0.10.0
libtpu: 0.0.40
codegen_flags: <defaults>
</compile_context>

<pallas_src>
import jax
import jax.numpy as jnp
from jax.experimental import pallas as pl
from jax.experimental.pallas import tpu as pltpu

INPUT_SIZE = 2048
HIDDEN1 = 1024
HIDDEN2 = 512
OUTPUT_SIZE = 9
OUT_PAD = 128           # lane-dense padded fc3 width (sliced back to 9 in wrapper)
MAX_BATCH_TILE = 512    # large tile: grid-step overhead < ~8% of MXU work
SUBLANE = 16            # batch-tile rounding (valid for f32 and bf16 blocks)


def _round_up(n, m):
    return ((n + m - 1) // m) * m


def _cdiv(a, b):
    return -(-a // b)


def _batch_tiling(B):
    """Balanced batch tiles.

    - >= 2 grid steps whenever B > SUBLANE (so v7x's two TensorCores both get
      work and the x DMA pipelines),
    - tiles capped at MAX_BATCH_TILE,
    - tile rounded to SUBLANE and sized from cdiv(B, steps) so the tail is
      balanced instead of padding B up to a fixed tile.
    """
    min_steps = 2 if B > SUBLANE else 1
    steps = max(min_steps, _cdiv(B, MAX_BATCH_TILE))
    tb = _round_up(_cdiv(B, steps), SUBLANE)
    steps = _cdiv(B, tb)
    b_pad = steps * tb
    return tb, b_pad


def _vmem_limit_bytes():
    """Per-generation scoped VMEM limit (~3/4 of physical, capped at 96 MiB)."""
    cap = None
    try:
        cap = pltpu.get_tpu_info().vmem_capacity_bytes
    except Exception:
        cap = None
    if not cap:
        cap = 64 << 20  # conservative (v7x-sized) fallback
    return int(max(32 << 20, min((cap * 3) // 4, 96 << 20)))


def mlp_kernel(x_ref, w1_ref, b1_ref, w2_ref, b2_ref, w3_ref, b3_ref, o_ref):
    # fc1 + ReLU  (bf16 MXU matmul, f32 accumulation)
    x = x_ref[...].astype(jnp.bfloat16)
    h1 = jnp.dot(x, w1_ref[...], preferred_element_type=jnp.float32)
    h1 = jnp.maximum(h1 + b1_ref[...], 0.0)
    # dropout (eval mode) -> identity
    # fc2 + ReLU
    h2 = jnp.dot(h1.astype(jnp.bfloat16), w2_ref[...],
                 preferred_element_type=jnp.float32)
    h2 = jnp.maximum(h2 + b2_ref[...], 0.0)
    # dropout (eval mode) -> identity
    # fc3 + Sigmoid; bf16 writeback halves the padded-slab HBM traffic.
    h3 = jnp.dot(h2.astype(jnp.bfloat16), w3_ref[...],
                 preferred_element_type=jnp.float32) + b3_ref[...]
    o_ref[...] = jax.nn.sigmoid(h3).astype(o_ref.dtype)


def prepare_params(params):
    """One-time param prep (hoisted out of the per-call forward):
    cast weights to bf16, pad fc3 to a lane-dense 128-wide output,
    reshape biases to (1, N) f32 rows."""
    w1, b1, w2, b2, w3, b3 = params
    w3_p = jnp.zeros((HIDDEN2, OUT_PAD), jnp.float32).at[:, :OUTPUT_SIZE].set(w3)
    b3_p = jnp.zeros((1, OUT_PAD), jnp.float32).at[:, :OUTPUT_SIZE].set(b3)
    return (
        w1.astype(jnp.bfloat16), b1.reshape(1, -1).astype(jnp.float32),
        w2.astype(jnp.bfloat16), b2.reshape(1, -1).astype(jnp.float32),
        w3_p.astype(jnp.bfloat16), b3_p,
    )


@jax.jit
def multitask_nn_forward(x, prep):
    """x: (B, 2048) float32 (or bfloat16).  prep: output of prepare_params.
    Returns (B, 9) float32 probabilities."""
    w1, b1, w2, b2, w3, b3 = prep
    B = x.shape[0]

    tb, b_pad = _batch_tiling(B)
    if b_pad != B:
        x = jnp.pad(x, ((0, b_pad - B), (0, 0)))
    grid = (b_pad // tb,)

    const = lambda i: (0, 0)
    weight_bytes = (w1.size + w2.size + w3.size) * 2 \
                   + (b1.size + b2.size + b3.size) * 4
    cost = pl.CostEstimate(
        flops=2 * b_pad * (INPUT_SIZE * HIDDEN1
                           + HIDDEN1 * HIDDEN2
                           + HIDDEN2 * OUT_PAD),
        transcendentals=b_pad * OUT_PAD,
        bytes_accessed=(weight_bytes
                        + b_pad * INPUT_SIZE * x.dtype.itemsize
                        + b_pad * OUT_PAD * 2),
    )

    out = pl.pallas_call(
        mlp_kernel,
        out_shape=jax.ShapeDtypeStruct((b_pad, OUT_PAD), jnp.bfloat16),
        grid=grid,
        in_specs=[
            pl.BlockSpec((tb, INPUT_SIZE), lambda i: (i, 0)),  # x: batch tiled
            pl.BlockSpec((INPUT_SIZE, HIDDEN1), const),        # weights/biases:
            pl.BlockSpec((1, HIDDEN1), const),                 # constant index_map
            pl.BlockSpec((HIDDEN1, HIDDEN2), const),           # -> fetched once,
            pl.BlockSpec((1, HIDDEN2), const),                 #    stay resident
            pl.BlockSpec((HIDDEN2, OUT_PAD), const),
            pl.BlockSpec((1, OUT_PAD), const),
        ],
        out_specs=pl.BlockSpec((tb, OUT_PAD), lambda i: (i, 0)),
        compiler_params=pltpu.CompilerParams(
            dimension_semantics=("parallel",),     # batch axis across v7x's 2 TCs
            vmem_limit_bytes=_vmem_limit_bytes(),  # per-generation scoped limit
        ),
        cost_estimate=cost,
    )(x, w1, b1, w2, b2, w3, b3)
    return out[:B, :OUTPUT_SIZE].astype(jnp.float32)


def init_params(key):
    """Deterministic init mimicking torch.nn.Linear's U(-1/sqrt(fan_in), +)."""
    ks = jax.random.split(key, 6)

    def linear(kw, kb, fan_in, fan_out):
        bound = 1.0 / jnp.sqrt(fan_in)
        w = jax.random.uniform(kw, (fan_in, fan_out), jnp.float32, -bound, bound)
        b = jax.random.uniform(kb, (fan_out,), jnp.float32, -bound, bound)
        return w, b

    w1, b1 = linear(ks[0], ks[1], INPUT_SIZE, HIDDEN1)
    w2, b2 = linear(ks[2], ks[3], HIDDEN1, HIDDEN2)
    w3, b3 = linear(ks[4], ks[5], HIDDEN2, OUTPUT_SIZE)
    return (w1, b1, w2, b2, w3, b3)


def reference_forward_f32(x, params):
    w1, b1, w2, b2, w3, b3 = params
    h = jnp.maximum(x @ w1 + b1, 0.0)
    h = jnp.maximum(h @ w2 + b2, 0.0)
    return jax.nn.sigmoid(h @ w3 + b3)


def reference_forward_bf16(x, prep):
    """Pure-JAX reference matching the kernel's bf16-weight / f32-acc /
    bf16-output path."""
    w1, b1, w2, b2, w3, b3 = prep
    h = jnp.maximum(jnp.dot(x.astype(jnp.bfloat16), w1,
                            preferred_element_type=jnp.float32) + b1, 0.0)
    h = jnp.maximum(jnp.dot(h.astype(jnp.bfloat16), w2,
                            preferred_element_type=jnp.float32) + b2, 0.0)
    h = jnp.dot(h.astype(jnp.bfloat16), w3,
                preferred_element_type=jnp.float32) + b3
    y = jax.nn.sigmoid(h).astype(jnp.bfloat16).astype(jnp.float32)
    return y[:, :OUTPUT_SIZE]


if __name__ == "__main__":
    key = jax.random.PRNGKey(0)
    k_x, k_x2, k_p = jax.random.split(key, 3)

    params = init_params(k_p)
    prep = prepare_params(params)  # one-time prep, hoisted out of forward

    # --- Small batch (single grid step) ----------------------------------
    B = 8
    x = jax.random.normal(k_x, (B, INPUT_SIZE), jnp.float32)
    y = jax.block_until_ready(multitask_nn_forward(x, prep))
    assert y.shape == (B, OUTPUT_SIZE), y.shape
    y_ref_bf16 = reference_forward_bf16(x, prep)
    # bf16 output -> tolerance covers one bf16 ulp (~0.004 near 1.0).
    assert jnp.allclose(y, y_ref_bf16, atol=8e-3), \
        float(jnp.max(jnp.abs(y - y_ref_bf16)))
    y_ref_f32 = reference_forward_f32(x, params)
    assert jnp.allclose(y, y_ref_f32, atol=5e-2), \
        "mismatch vs f32 reference (bf16 quantization tolerance)"

    # --- Awkward mid-size batch: balanced tail + >=2 grid steps ----------
    B2 = 300
    x2 = jax.random.normal(k_x2, (B2, INPUT_SIZE), jnp.float32)
    y2 = jax.block_until_ready(multitask_nn_forward(x2, prep))
    assert y2.shape == (B2, OUTPUT_SIZE), y2.shape
    y2_ref_bf16 = reference_forward_bf16(x2, prep)
    assert jnp.allclose(y2, y2_ref_bf16, atol=8e-3), \
        float(jnp.max(jnp.abs(y2 - y2_ref_bf16)))

    print("KERNEL_OK")
</pallas_src>

<mosaic_0001>
module attributes {stable_mosaic.version = 11 : i64} {
  func.func @mlp_kernel(%arg0: i32, %arg1: memref<16x2048xf32, #tpu.memory_space<vmem>>, %arg2: memref<2048x1024xbf16, #tpu.memory_space<vmem>>, %arg3: memref<1x1024xf32, #tpu.memory_space<vmem>>, %arg4: memref<1024x512xbf16, #tpu.memory_space<vmem>>, %arg5: memref<1x512xf32, #tpu.memory_space<vmem>>, %arg6: memref<512x128xbf16, #tpu.memory_space<vmem>>, %arg7: memref<1x128xf32, #tpu.memory_space<vmem>>, %arg8: memref<16x128xbf16, #tpu.memory_space<vmem>>) attributes {dimension_semantics = [#tpu.dimension_semantics<parallel>], iteration_bounds = array<i64: 1>, scalar_prefetch = 0 : i64, scratch_operands = 0 : i64, tpu.core_type = #tpu.core_type<tc>, window_params = [{transform_indices = @transform_0, window_bounds = array<i64: 16, 2048>}, {pipeline_mode = #tpu.pipeline_mode<synchronous>, transform_indices = @transform_1, window_bounds = array<i64: 2048, 1024>}, {pipeline_mode = #tpu.pipeline_mode<synchronous>, transform_indices = @transform_2, window_bounds = array<i64: 1, 1024>}, {pipeline_mode = #tpu.pipeline_mode<synchronous>, transform_indices = @transform_3, window_bounds = array<i64: 1024, 512>}, {pipeline_mode = #tpu.pipeline_mode<synchronous>, transform_indices = @transform_4, window_bounds = array<i64: 1, 512>}, {pipeline_mode = #tpu.pipeline_mode<synchronous>, transform_indices = @transform_5, window_bounds = array<i64: 512, 128>}, {pipeline_mode = #tpu.pipeline_mode<synchronous>, transform_indices = @transform_6, window_bounds = array<i64: 1, 128>}, {transform_indices = @transform_7, window_bounds = array<i64: 16, 128>}]} {
    %c0 = arith.constant 0 : index
    %c0_0 = arith.constant 0 : index
    %0 = vector.load %arg1[%c0, %c0_0] : memref<16x2048xf32, #tpu.memory_space<vmem>>, vector<16x2048xf32>
    %1 = arith.truncf %0 : vector<16x2048xf32> to vector<16x2048xbf16>
    %c0_1 = arith.constant 0 : index
    %c0_2 = arith.constant 0 : index
    %2 = vector.load %arg2[%c0_1, %c0_2] : memref<2048x1024xbf16, #tpu.memory_space<vmem>>, vector<2048x1024xbf16>
    %cst = arith.constant dense<0.000000e+00> : vector<16x1024xf32>
    %3 = tpu.matmul %1, %2, %cst {dimension_numbers = #tpu.dot_dimension_numbers<[1], [0], [0], [1], [0, 0, 1, 1], [], []>} : vector<16x2048xbf16>, vector<2048x1024xbf16>, vector<16x1024xf32> -> vector<16x1024xf32>
    %c0_3 = arith.constant 0 : index
    %c0_4 = arith.constant 0 : index
    %4 = vector.load %arg3[%c0_3, %c0_4] : memref<1x1024xf32, #tpu.memory_space<vmem>>, vector<1x1024xf32>
    %5 = vector.broadcast %4 : vector<1x1024xf32> to vector<16x1024xf32>
    %6 = arith.addf %3, %5 : vector<16x1024xf32>
    %cst_5 = arith.constant 0.000000e+00 : f32
    %7 = vector.broadcast %cst_5 : f32 to vector<16x1024xf32>
    %8 = arith.maximumf %6, %7 : vector<16x1024xf32>
    %9 = arith.truncf %8 : vector<16x1024xf32> to vector<16x1024xbf16>
    %c0_6 = arith.constant 0 : index
    %c0_7 = arith.constant 0 : index
    %10 = vector.load %arg4[%c0_6, %c0_7] : memref<1024x512xbf16, #tpu.memory_space<vmem>>, vector<1024x512xbf16>
    %cst_8 = arith.constant dense<0.000000e+00> : vector<16x512xf32>
    %11 = tpu.matmul %9, %10, %cst_8 {dimension_numbers = #tpu.dot_dimension_numbers<[1], [0], [0], [1], [0, 0, 1, 1], [], []>} : vector<16x1024xbf16>, vector<1024x512xbf16>, vector<16x512xf32> -> vector<16x512xf32>
    %c0_9 = arith.constant 0 : index
    %c0_10 = arith.constant 0 : index
    %12 = vector.load %arg5[%c0_9, %c0_10] : memref<1x512xf32, #tpu.memory_space<vmem>>, vector<1x512xf32>
    %13 = vector.broadcast %12 : vector<1x512xf32> to vector<16x512xf32>
    %14 = arith.addf %11, %13 : vector<16x512xf32>
    %cst_11 = arith.constant 0.000000e+00 : f32
    %15 = vector.broadcast %cst_11 : f32 to vector<16x512xf32>
    %16 = arith.maximumf %14, %15 : vector<16x512xf32>
    %17 = arith.truncf %16 : vector<16x512xf32> to vector<16x512xbf16>
    %c0_12 = arith.constant 0 : index
    %c0_13 = arith.constant 0 : index
    %18 = vector.load %arg6[%c0_12, %c0_13] : memref<512x128xbf16, #tpu.memory_space<vmem>>, vector<512x128xbf16>
    %cst_14 = arith.constant dense<0.000000e+00> : vector<16x128xf32>
    %19 = tpu.matmul %17, %18, %cst_14 {dimension_numbers = #tpu.dot_dimension_numbers<[1], [0], [0], [1], [0, 0, 1, 1], [], []>} : vector<16x512xbf16>, vector<512x128xbf16>, vector<16x128xf32> -> vector<16x128xf32>
    %c0_15 = arith.constant 0 : index
    %c0_16 = arith.constant 0 : index
    %20 = vector.load %arg7[%c0_15, %c0_16] : memref<1x128xf32, #tpu.memory_space<vmem>>, vector<1x128xf32>
    %21 = vector.broadcast %20 : vector<1x128xf32> to vector<16x128xf32>
    %22 = arith.addf %19, %21 : vector<16x128xf32>
    %23 = arith.negf %22 : vector<16x128xf32>
    %24 = math.exp %23 : vector<16x128xf32>
    %cst_17 = arith.constant 1.000000e+00 : f32
    %25 = vector.broadcast %cst_17 : f32 to vector<16x128xf32>
    %26 = arith.addf %25, %24 : vector<16x128xf32>
    %27 = arith.divf %25, %26 : vector<16x128xf32>
    %28 = arith.truncf %27 : vector<16x128xf32> to vector<16x128xbf16>
    %c0_18 = arith.constant 0 : index
    %c0_19 = arith.constant 0 : index
    %29 = vector.load %arg8[%c0_18, %c0_19] : memref<16x128xbf16, #tpu.memory_space<vmem>>, vector<16x128xbf16>
    tpu.vector_store %arg8[%c0_18, %c0_19], %28 {strides = array<i32>} : memref<16x128xbf16, #tpu.memory_space<vmem>>, vector<16x128xbf16>,
    return
  }
  func.func @transform_0(%arg0: i32) -> (i32, i32) {
    %c0_i32 = arith.constant 0 : i32
    %c0_i32_0 = arith.constant 0 : i32
    return %arg0, %c0_i32 : i32, i32
  }
  func.func @transform_1(%arg0: i32) -> (i32, i32) {
    %c0_i32 = arith.constant 0 : i32
    %c0_i32_0 = arith.constant 0 : i32
    %c0_i32_1 = arith.constant 0 : i32
    return %c0_i32, %c0_i32_0 : i32, i32
  }
  func.func @transform_2(%arg0: i32) -> (i32, i32) {
    %c0_i32 = arith.constant 0 : i32
    %c0_i32_0 = arith.constant 0 : i32
    %c0_i32_1 = arith.constant 0 : i32
    return %c0_i32, %c0_i32_0 : i32, i32
  }
  func.func @transform_3(%arg0: i32) -> (i32, i32) {
    %c0_i32 = arith.constant 0 : i32
    %c0_i32_0 = arith.constant 0 : i32
    %c0_i32_1 = arith.constant 0 : i32
    return %c0_i32, %c0_i32_0 : i32, i32
  }
  func.func @transform_4(%arg0: i32) -> (i32, i32) {
    %c0_i32 = arith.constant 0 : i32
    %c0_i32_0 = arith.constant 0 : i32
    %c0_i32_1 = arith.constant 0 : i32
    return %c0_i32, %c0_i32_0 : i32, i32
  }
  func.func @transform_5(%arg0: i32) -> (i32, i32) {
    %c0_i32 = arith.constant 0 : i32
    %c0_i32_0 = arith.constant 0 : i32
    %c0_i32_1 = arith.constant 0 : i32
    return %c0_i32, %c0_i32_0 : i32, i32
  }
  func.func @transform_6(%arg0: i32) -> (i32, i32) {
    %c0_i32 = arith.constant 0 : i32
    %c0_i32_0 = arith.constant 0 : i32
    %c0_i32_1 = arith.constant 0 : i32
    return %c0_i32, %c0_i32_0 : i32, i32
  }
  func.func @transform_7(%arg0: i32) -> (i32, i32) {
    %c0_i32 = arith.constant 0 : i32
    %c0_i32_0 = arith.constant 0 : i32
    return %arg0, %c0_i32 : i32, i32
  }
}

</mosaic_0001>

<bundles_post_ra>
// kernel: multitask_nn_forward.1
= control target key start
LH: loop header
LB: loop body
LE: loop exit
PB: predicated region body
PF: predicated region fallthrough
CT: control target
= control target key end

     0   :  { %12 = vsyncpa [#allocation3], 0  ;;  %s12496_s0 = inlined_call_operand.vmem [shape: f32[16,2048], index: 0, kind: input, shape index: {}]   ;;  %s12497_s1 = inlined_call_operand.hbm [shape: bf16[2048,1024], index: 1, kind: input, shape index: {}]   ;;  %s12498_s2 = inlined_call_operand.hbm [shape: f32[1,1024], index: 2, kind: input, shape index: {}]   ;;  %s12499_s3 = inlined_call_operand.hbm [shape: bf16[1024,512], index: 3, kind: input, shape index: {}]   ;;  %s12500_s4 = inlined_call_operand.hbm [shape: f32[1,512], index: 4, kind: input, shape index: {}]   ;;  %s12501_s5 = inlined_call_operand.hbm [shape: bf16[512,128], index: 5, kind: input, shape index: {}]   ;;  %s12502_s6 = inlined_call_operand.hbm [shape: f32[1,128], index: 6, kind: input, shape index: {}]   ;;  %s12503_s7 = inlined_call_operand.vmem [shape: bf16[16,128], index: 7, kind: output, shape index: {}]  }
   0x1   :  { %13 = vsyncpa [#allocation5], 0 }
   0x2   :  { %14 = vsyncpa [#allocation8], 0 }
   0x3   :  { %15 = vsyncpa [#allocation11], 0  ;;  %s12131_s24 = smov [#allocation4]   ;;  %s12132_s26 = smov [#allocation7]  }
   0x4   :  { %s36_s25 = sshll.u32 %s12131_s24, 4  ;;  %s58_s27 = sshll.u32 %s12132_s26, 4  ;;  %s37_s25 = int_to_ptr.vmem [resolvable:$true] %s36_s25  ;;  %s59_s27 = int_to_ptr.vmem [resolvable:$true] %s58_s27 }
   0x5   :  { %s11991_s30 = scalar_lea.hbm %s12498_s2, 128 }
   0x6   :  { %p11992_p0 = scmp.ne.s32.totalorder %s12498_s2, %s11991_s30  ;;  %p11995_p1 = scmp.lt.u32.totalorder %s11991_s30, %s12498_s2 }
   0x8   :  { %p11997_p2 = pnand %p11995_p1, %p11992_p0 }
   0xa   :  { %12000 = shalt.err (!%p11997_p2)
}
   0xb   :  { %s12001_s12 = scalar_lea.vmem %s37_s25, 128  ;;  %p12006_p4 = scmp.lt.s32.totalorder %s37_s25, %s37_s25 }
   0xc   :  { %p12002_p3 = scmp.ne.s32.totalorder %s37_s25, %s12001_s12  ;;  %p12007_p5 = scmp.lt.s32.totalorder %s12001_s12, %s12001_s12 }
   0xe   :  { %p12008_p6 = por %p12007_p5, %p12006_p4 }
  0x10   :  { %p12009_p7 = pnand %p12008_p6, %p12002_p3 }
  0x12   :  { %12012 = shalt.err (!%p12009_p7)
}
  0x13   :  { %39 = dma.hbm_to_vmem [thread:$0]  %s12498_s2, 128, %s37_s25, [#allocation5]  }
  0x14   :  { %s12013_s17 = scalar_lea.hbm %s12500_s4, 64 }
  0x15   :  { %p12014_p8 = scmp.ne.s32.totalorder %s12500_s4, %s12013_s17  ;;  %p12017_p9 = scmp.lt.u32.totalorder %s12013_s17, %s12500_s4 }
  0x17   :  { %p12019_p10 = pnand %p12017_p9, %p12014_p8 }
  0x19   :  { %12022 = shalt.err (!%p12019_p10)
}
  0x1a   :  { %s12023_s22 = scalar_lea.vmem %s59_s27, 64  ;;  %p12028_p12 = scmp.lt.s32.totalorder %s59_s27, %s59_s27 }
  0x1b   :  { %p12024_p11 = scmp.ne.s32.totalorder %s59_s27, %s12023_s22  ;;  %p12029_p13 = scmp.lt.s32.totalorder %s12023_s22, %s12023_s22 }
  0x1d   :  { %p12030_p0 = por %p12029_p13, %p12028_p12 }
  0x1f   :  { %p12031_p1 = pnand %p12030_p0, %p12024_p11 }
  0x21   :  { %12034 = shalt.err (!%p12031_p1)
}
  0x22   :  { %61 = dma.hbm_to_vmem [thread:$0]  %s12500_s4, 64, %s59_s27, [#allocation8]  }
  0x23   :  { %s12133_s24 = smov [#allocation2]   ;;  %s12035_s29 = scalar_lea.hbm %s12497_s1, 131072 }
  0x24   :  { %s23_s25 = sshll.u32 %s12133_s24, 4  ;;  %p12036_p2 = scmp.ne.s32.totalorder %s12497_s1, %s12035_s29  ;;  %s24_s25 = int_to_ptr.vmem [resolvable:$true] %s23_s25 }
  0x25   :  { %p12039_p3 = scmp.lt.u32.totalorder %s12035_s29, %s12497_s1 }
  0x27   :  { %p12041_p4 = pnand %p12039_p3, %p12036_p2 }
  0x29   :  { %12044 = shalt.err (!%p12041_p4)
}
  0x2a   :  { %s12045_s11 = scalar_lea.vmem %s24_s25, 131072  ;;  %p12050_p6 = scmp.lt.s32.totalorder %s24_s25, %s24_s25 }
  0x2b   :  { %p12046_p5 = scmp.ne.s32.totalorder %s24_s25, %s12045_s11  ;;  %p12051_p7 = scmp.lt.s32.totalorder %s12045_s11, %s12045_s11 }
  0x2d   :  { %p12052_p8 = por %p12051_p7, %p12050_p6 }
  0x2f   :  { %p12053_p9 = pnand %p12052_p8, %p12046_p5 }
  0x31   :  { %12056 = shalt.err (!%p12053_p9)
}
  0x32   :  { %s12134_s4 = smov 512   ;;  %s12135_s27 = smov 32  }
  0x33   :  { %29 = dma.hbm_to_vmem [thread:$0]  %s12497_s1, 131072, %s24_s25, [#allocation3], %s12134_s4, %s12134_s4, %s12135_s27  }
  0x34   :  { %s12136_s14 = smov [#allocation6]   ;;  %s12057_s18 = scalar_lea.hbm %s12499_s3, 32768 }
  0x35   :  { %s45_s15 = sshll.u32 %s12136_s14, 4  ;;  %p12058_p10 = scmp.ne.s32.totalorder %s12499_s3, %s12057_s18  ;;  %s46_s15 = int_to_ptr.vmem [resolvable:$true] %s45_s15 }
  0x36   :  { %p12061_p11 = scmp.lt.u32.totalorder %s12057_s18, %s12499_s3 }
  0x38   :  { %p12063_p12 = pnand %p12061_p11, %p12058_p10 }
  0x3a   :  { %12066 = shalt.err (!%p12063_p12)
}
  0x3b   :  { %s12067_s2 = scalar_lea.vmem %s46_s15, 32768  ;;  %p12072_p0 = scmp.lt.s32.totalorder %s46_s15, %s46_s15 }
  0x3c   :  { %p12068_p13 = scmp.ne.s32.totalorder %s46_s15, %s12067_s2  ;;  %p12073_p1 = scmp.lt.s32.totalorder %s12067_s2, %s12067_s2 }
  0x3e   :  { %p12074_p2 = por %p12073_p1, %p12072_p0 }
  0x40   :  { %p12075_p3 = pnand %p12074_p2, %p12068_p13 }
  0x42   :  { %12078 = shalt.err (!%p12075_p3)
}
  0x43   :  { %s12137_s1 = smov 256   ;;  %s12138_s23 = smov 16  }
  0x44   :  { %51 = dma.hbm_to_vmem [thread:$0]  %s12499_s3, 32768, %s46_s15, [#allocation5], %s12137_s1, %s12137_s1, %s12138_s23  }
  0x45   :  { %s12139_s26 = smov [#allocation9]   ;;  %s12079_s8 = scalar_lea.hbm %s12501_s5, 4096 }
  0x46   :  { %s67_s28 = sshll.u32 %s12139_s26, 4  ;;  %p12080_p4 = scmp.ne.s32.totalorder %s12501_s5, %s12079_s8  ;;  %s68_s28 = int_to_ptr.vmem [resolvable:$true] %s67_s28 }
  0x47   :  { %p12083_p5 = scmp.lt.u32.totalorder %s12079_s8, %s12501_s5 }
  0x49   :  { %p12085_p6 = pnand %p12083_p5, %p12080_p4 }
  0x4b   :  { %12088 = shalt.err (!%p12085_p6)
}
  0x4c   :  { %s12089_s27 = scalar_lea.vmem %s68_s28, 4096  ;;  %p12094_p8 = scmp.lt.s32.totalorder %s68_s28, %s68_s28 }
  0x4d   :  { %p12090_p7 = scmp.ne.s32.totalorder %s68_s28, %s12089_s27  ;;  %p12095_p9 = scmp.lt.s32.totalorder %s12089_s27, %s12089_s27 }
  0x4f   :  { %p12096_p10 = por %p12095_p9, %p12094_p8 }
  0x51   :  { %p12097_p11 = pnand %p12096_p10, %p12090_p7 }
  0x53   :  { %12100 = shalt.err (!%p12097_p11)
}
  0x54   :  { %s12140_s3 = smov 64   ;;  %s12141_s12 = smov 4  }
  0x55   :  { %73 = dma.hbm_to_vmem [thread:$0]  %s12501_s5, 4096, %s68_s28, [#allocation8], %s12140_s3, %s12140_s3, %s12141_s12  }
  0x56   :  { %s12142_s15 = smov [#allocation10]   ;;  %s12101_s19 = scalar_lea.hbm %s12502_s6, 16 }
  0x57   :  { %s80_s16 = sshll.u32 %s12142_s15, 4  ;;  %p12102_p12 = scmp.ne.s32.totalorder %s12502_s6, %s12101_s19  ;;  %s81_s16 = int_to_ptr.vmem [resolvable:$true] %s80_s16 }
  0x58   :  { %p12105_p13 = scmp.lt.u32.totalorder %s12101_s19, %s12502_s6 }
  0x5a   :  { %p12107_p0 = pnand %p12105_p13, %p12102_p12 }
  0x5c   :  { %12110 = shalt.err (!%p12107_p0)
}
  0x5d   :  { %s12111_s1 = scalar_lea.vmem %s81_s16, 16  ;;  %s12115_s5 = scalar_lea.vmem %s81_s16, 32 }
  0x5e   :  { %p12112_p1 = scmp.ne.s32.totalorder %s81_s16, %s12111_s1  ;;  %p12116_p2 = scmp.lt.s32.totalorder %s81_s16, %s81_s16 }
  0x5f   :  { %p12117_p3 = scmp.lt.s32.totalorder %s12115_s5, %s12111_s1 }
  0x61   :  { %p12118_p4 = por %p12117_p3, %p12116_p2 }
  0x63   :  { %p12119_p5 = pnand %p12118_p4, %p12112_p1 }
  0x65   :  { %12122 = shalt.err (!%p12119_p5)
}
  0x66   :  { %83 = dma.hbm_to_vmem [thread:$0]  %s12502_s6, 16, %s81_s16, [#allocation11]  }
  0x67   :  { %12123 = dma.done.wait [#allocation3], 131072  }
  0x68   :  { %12124 = vsyncadd [#allocation3], 4294836224 }
  0x69   :  { %12125 = dma.done.wait [#allocation5], 32896  }
  0x6a   :  { %12126 = vsyncadd [#allocation5], 4294934400 }
  0x6b   :  { %12127 = dma.done.wait [#allocation8], 4160  }
  0x6c   :  { %12128 = vsyncadd [#allocation8], 4294963136 }
  0x6d   :  { %12129 = dma.done.wait [#allocation11], 16  }
  0x6e   :  { %12130 = vsyncadd [#allocation11], 4294967280  ;;  %v151_v0 = vld [vmem:[#allocation2] sm:$0xff]  ;;  %v152_v2 = vld [vmem:[#allocation2 + $0x8] sm:$0xff] }
  0x6f   :  { %v155_v1 = vld [vmem:[#allocation2 + $0x20] sm:$0xff]  ;;  %v156_v4 = vld [vmem:[#allocation2 + $0x28] sm:$0xff] }
  0x70   :  { %v10027_v3 = vcombine.high %v151_v0, %v155_v1  ;;  %v10026_v5 = vcombine.low %v151_v0, %v155_v1  ;;  %v159_v6 = vld [vmem:[#allocation2 + $0x40] sm:$0xff]  ;;  %v10029_v8 = vcombine.high %v152_v2, %v156_v4  ;;  %v10028_v9 = vcombine.low %v152_v2, %v156_v4  ;;  %v160_v11 = vld [vmem:[#allocation2 + $0x48] sm:$0xff] }
  0x71   :  { %v163_v7 = vld [vmem:[#allocation2 + $0x60] sm:$0xff]  ;;  %v164_v12 = vld [vmem:[#allocation2 + $0x68] sm:$0xff] }
  0x72   :  { %v10035_v10 = vcombine.high %v159_v6, %v163_v7  ;;  %v167_v13 = vld [vmem:[#allocation2 + $0x80] sm:$0xff]  ;;  %6337 = vmatprep.subr.bf16.mxu0 %v10027_v3  ;;  %v10037_v14 = vcombine.high %v160_v11, %v164_v12  ;;  %v168_v16 = vld [vmem:[#allocation2 + $0x88] sm:$0xff]  ;;  %6681 = vmatprep.subr.bf16.mxu1 %v10029_v8  ;;  %v10034_v18 = vcombine.low %v159_v6, %v163_v7 }
  0x73   :  { %v171_v15 = vld [vmem:[#allocation2 + $0xa0] sm:$0xff]  ;;  %v172_v17 = vld [vmem:[#allocation2 + $0xa8] sm:$0xff]  ;;  %6338 = vmatpush1.bf16.msra.mxu0 %v10026_v5  ;;  %6682 = vmatpush1.bf16.msra.mxu1 %v10028_v9  ;;  %v10036_v19 = vcombine.low %v160_v11, %v164_v12 }
  0x74   :  { %6339 = vmatprep.subr.bf16.mxu0 %v10035_v10  ;;  %v10043_v20 = vcombine.high %v167_v13, %v171_v15  ;;  %6683 = vmatprep.subr.bf16.mxu1 %v10037_v14  ;;  %v10045_v21 = vcombine.high %v168_v16, %v172_v17  ;;  %v175_v22 = vld [vmem:[#allocation2 + $0xc0] sm:$0xff]  ;;  %v176_v24 = vld [vmem:[#allocation2 + $0xc8] sm:$0xff]  ;;  %v10042_v26 = vcombine.low %v167_v13, %v171_v15 }
  0x75   :  { %v179_v23 = vld [vmem:[#allocation2 + $0xe0] sm:$0xff]  ;;  %v180_v25 = vld [vmem:[#allocation2 + $0xe8] sm:$0xff]  ;;  %v10044_v27 = vcombine.low %v168_v16, %v172_v17 }
  0x76   :  { %v10051_v28 = vcombine.high %v175_v22, %v179_v23  ;;  %v10053_v29 = vcombine.high %v176_v24, %v180_v25  ;;  %v183_v30 = vld [vmem:[#allocation2 + $0x100] sm:$0xff]  ;;  %v184_v32 = vld [vmem:[#allocation2 + $0x108] sm:$0xff]  ;;  %v10050_v34 = vcombine.low %v175_v22, %v179_v23  ;;  %v10052_v35 = vcombine.low %v176_v24, %v180_v25 }
  0x77   :  { %6340 = vmatpush1.bf16.msra.mxu0 %v10034_v18  ;;  %6684 = vmatpush1.bf16.msra.mxu1 %v10036_v19  ;;  %v187_v31 = vld [vmem:[#allocation2 + $0x120] sm:$0xff]  ;;  %v188_v33 = vld [vmem:[#allocation2 + $0x128] sm:$0xff] }
  0x78   :  { %6341 = vmatprep.subr.bf16.mxu0 %v10043_v20  ;;  %6685 = vmatprep.subr.bf16.mxu1 %v10045_v21  ;;  %v10059_v36 = vcombine.high %v183_v30, %v187_v31  ;;  %v10061_v37 = vcombine.high %v184_v32, %v188_v33  ;;  %v191_v38 = vld [vmem:[#allocation2 + $0x140] sm:$0xff]  ;;  %v192_v40 = vld [vmem:[#allocation2 + $0x148] sm:$0xff]  ;;  %v10058_v42 = vcombine.low %v183_v30, %v187_v31 }
  0x79   :  { %v195_v39 = vld [vmem:[#allocation2 + $0x160] sm:$0xff]  ;;  %v196_v41 = vld [vmem:[#allocation2 + $0x168] sm:$0xff]  ;;  %v10060_v43 = vcombine.low %v184_v32, %v188_v33 }
  0x7a   :  { %v10067_v44 = vcombine.high %v191_v38, %v195_v39  ;;  %v10069_v45 = vcombine.high %v192_v40, %v196_v41  ;;  %v199_v46 = vld [vmem:[#allocation2 + $0x180] sm:$0xff]  ;;  %v200_v48 = vld [vmem:[#allocation2 + $0x188] sm:$0xff]  ;;  %v10066_v50 = vcombine.low %v191_v38, %v195_v39  ;;  %v10068_v51 = vcombine.low %v192_v40, %v196_v41 }
  0x7b   :  { %6342 = vmatpush1.bf16.msra.mxu0 %v10042_v26  ;;  %6686 = vmatpush1.bf16.msra.mxu1 %v10044_v27  ;;  %v203_v47 = vld [vmem:[#allocation2 + $0x1a0] sm:$0xff]  ;;  %v204_v49 = vld [vmem:[#allocation2 + $0x1a8] sm:$0xff] }
  0x7c   :  { %6343 = vmatprep.subr.bf16.mxu0 %v10051_v28  ;;  %6687 = vmatprep.subr.bf16.mxu1 %v10053_v29  ;;  %v10075_v52 = vcombine.high %v199_v46, %v203_v47  ;;  %v104_v53 = vld [vmem:[%s12496_s0 + $0x8] sm:$0xff]  ;;  %v10077_v55 = vcombine.high %v200_v48, %v204_v49  ;;  %v207_v56 = vld [vmem:[#allocation2 + $0x1c0] sm:$0xff]  ;;  %v10074_v61 = vcombine.low %v199_v46, %v203_v47 }
  0x7d   :  { %v120_v54 = vld [vmem:[%s12496_s0 + $0x88] sm:$0xff]  ;;  %v211_v57 = vld [vmem:[#allocation2 + $0x1e0] sm:$0xff]  ;;  %v10076_v62 = vcombine.low %v200_v48, %v204_v49 }
  0x7e   :  { %v12261_v58 = vpack.c.bf16 %v120_v54, %v104_v53  ;;  %v208_v59 = vld [vmem:[#allocation2 + $0x1c8] sm:$0xff]  ;;  %v10083_v63 = vcombine.high %v207_v56, %v211_v57  ;;  %v215_v1 = vld [vmem:[#allocation2 + $0x200] sm:$0xff]  ;;  %v10082_v5 = vcombine.low %v207_v56, %v211_v57 }
  0x7f   :  { %6344 = vmatpush1.bf16.msra.mxu0 %v10050_v34  ;;  %6688 = vmatpush1.bf16.msra.mxu1 %v10052_v35  ;;  %v212_v60 = vld [vmem:[#allocation2 + $0x1e8] sm:$0xff]  ;;  %v219_v2 = vld [vmem:[#allocation2 + $0x220] sm:$0xff] }
  0x80   :  { %6345 = vmatprep.subr.bf16.mxu0 %v10059_v36  ;;  %6689 = vmatprep.subr.bf16.mxu1 %v10061_v37  ;;  %v10085_v0 = vcombine.high %v208_v59, %v212_v60  ;;  %v216_v3 = vld [vmem:[#allocation2 + $0x208] sm:$0xff]  ;;  %v10084_v6 = vcombine.low %v208_v59, %v212_v60  ;;  %v10091_v7 = vcombine.high %v215_v1, %v219_v2  ;;  %v223_v9 = vld [vmem:[#allocation2 + $0x240] sm:$0xff] }
  0x81   :  { %6369 = vmatprep.mubr.bf16.mxu0 %v12261_v58  ;;  %6713 = vmatprep.mubr.bf16.mxu1 %v12261_v58  ;;  %v220_v4 = vld [vmem:[#allocation2 + $0x228] sm:$0xff]  ;;  %v227_v10 = vld [vmem:[#allocation2 + $0x260] sm:$0xff]  ;;  %v10090_v13 = vcombine.low %v215_v1, %v219_v2 }
  0x82   :  { %v10093_v8 = vcombine.high %v216_v3, %v220_v4  ;;  %v224_v11 = vld [vmem:[#allocation2 + $0x248] sm:$0xff]  ;;  %v10092_v14 = vcombine.low %v216_v3, %v220_v4  ;;  %v10099_v15 = vcombine.high %v223_v9, %v227_v10  ;;  %v231_v17 = vld [vmem:[#allocation2 + $0x280] sm:$0xff]  ;;  %v10098_v21 = vcombine.low %v223_v9, %v227_v10 }
  0x83   :  { %6346 = vmatpush1.bf16.msra.mxu0 %v10058_v42  ;;  %6690 = vmatpush1.bf16.msra.mxu1 %v10060_v43  ;;  %v228_v12 = vld [vmem:[#allocation2 + $0x268] sm:$0xff]  ;;  %v235_v18 = vld [vmem:[#allocation2 + $0x2a0] sm:$0xff] }
  0x84   :  { %6347 = vmatprep.subr.bf16.mxu0 %v10067_v44  ;;  %6691 = vmatprep.subr.bf16.mxu1 %v10069_v45  ;;  %v10101_v16 = vcombine.high %v224_v11, %v228_v12  ;;  %v232_v19 = vld [vmem:[#allocation2 + $0x288] sm:$0xff]  ;;  %v10100_v22 = vcombine.low %v224_v11, %v228_v12  ;;  %v10107_v23 = vcombine.high %v231_v17, %v235_v18  ;;  %v239_v25 = vld [vmem:[#allocation2 + $0x2c0] sm:$0xff] }
  0x85   :  { %v236_v20 = vld [vmem:[#allocation2 + $0x2a8] sm:$0xff]  ;;  %v243_v26 = vld [vmem:[#allocation2 + $0x2e0] sm:$0xff]  ;;  %v10106_v29 = vcombine.low %v231_v17, %v235_v18  ;;  %v106_v17 = vld [vmem:[%s12496_s0 + $0x18] sm:$0xff] }
  0x86   :  { %v10109_v24 = vcombine.high %v232_v19, %v236_v20  ;;  %v240_v27 = vld [vmem:[#allocation2 + $0x2c8] sm:$0xff]  ;;  %v10108_v30 = vcombine.low %v232_v19, %v236_v20  ;;  %v10115_v31 = vcombine.high %v239_v25, %v243_v26  ;;  %v247_v33 = vld [vmem:[#allocation2 + $0x300] sm:$0xff]  ;;  %v10114_v37 = vcombine.low %v239_v25, %v243_v26  ;;  %v122_v18 = vld [vmem:[%s12496_s0 + $0x98] sm:$0xff] }
  0x87   :  { %6348 = vmatpush1.bf16.msra.mxu0 %v10066_v50  ;;  %6692 = vmatpush1.bf16.msra.mxu1 %v10068_v51  ;;  %v244_v28 = vld [vmem:[#allocation2 + $0x2e8] sm:$0xff]  ;;  %v251_v34 = vld [vmem:[#allocation2 + $0x320] sm:$0xff]  ;;  %v12279_v25 = vpack.c.bf16 %v122_v18, %v106_v17 }
  0x88   :  { %6349 = vmatprep.subr.bf16.mxu0 %v10075_v52  ;;  %6693 = vmatprep.subr.bf16.mxu1 %v10077_v55  ;;  %v10117_v32 = vcombine.high %v240_v27, %v244_v28  ;;  %v248_v35 = vld [vmem:[#allocation2 + $0x308] sm:$0xff]  ;;  %v10116_v38 = vcombine.low %v240_v27, %v244_v28  ;;  %v10123_v39 = vcombine.high %v247_v33, %v251_v34  ;;  %v255_v41 = vld [vmem:[#allocation2 + $0x340] sm:$0xff] }
  0x89   :  { %v252_v36 = vld [vmem:[#allocation2 + $0x328] sm:$0xff]  ;;  %v259_v42 = vld [vmem:[#allocation2 + $0x360] sm:$0xff]  ;;  %v10122_v45 = vcombine.low %v247_v33, %v251_v34 }
  0x8a   :  { %v10125_v40 = vcombine.high %v248_v35, %v252_v36  ;;  %v256_v43 = vld [vmem:[#allocation2 + $0x348] sm:$0xff]  ;;  %v10124_v46 = vcombine.low %v248_v35, %v252_v36  ;;  %v10131_v47 = vcombine.high %v255_v41, %v259_v42  ;;  %v263_v49 = vld [vmem:[#allocation2 + $0x380] sm:$0xff]  ;;  %v10130_v53 = vcombine.low %v255_v41, %v259_v42 }
  0x8b   :  { %6350 = vmatpush1.bf16.msra.mxu0 %v10074_v61  ;;  %6694 = vmatpush1.bf16.msra.mxu1 %v10076_v62  ;;  %v260_v44 = vld [vmem:[#allocation2 + $0x368] sm:$0xff]  ;;  %v267_v50 = vld [vmem:[#allocation2 + $0x3a0] sm:$0xff] }
  0x8c   :  { %6351 = vmatprep.subr.bf16.mxu0 %v10083_v63  ;;  %6695 = vmatprep.subr.bf16.mxu1 %v10085_v0  ;;  %v10133_v48 = vcombine.high %v256_v43, %v260_v44  ;;  %v264_v51 = vld [vmem:[#allocation2 + $0x388] sm:$0xff]  ;;  %v10132_v54 = vcombine.low %v256_v43, %v260_v44  ;;  %v10139_v55 = vcombine.high %v263_v49, %v267_v50  ;;  %v271_v57 = vld [vmem:[#allocation2 + $0x3c0] sm:$0xff] }
  0x8d   :  { %v268_v52 = vld [vmem:[#allocation2 + $0x3a8] sm:$0xff]  ;;  %v275_v59 = vld [vmem:[#allocation2 + $0x3e0] sm:$0xff]  ;;  %v10138_v62 = vcombine.low %v263_v49, %v267_v50 }
  0x8e   :  { %v10141_v56 = vcombine.high %v264_v51, %v268_v52  ;;  %v272_v60 = vld [vmem:[#allocation2 + $0x3c8] sm:$0xff]  ;;  %v10140_v63 = vcombine.low %v264_v51, %v268_v52  ;;  %v10147_v0 = vcombine.high %v271_v57, %v275_v59  ;;  %v279_v2 = vld [vmem:[#allocation2 + $0x400] sm:$0xff] }
  0x8f   :  { %6352 = vmatpush1.bf16.msra.mxu0 %v10082_v5  ;;  %6696 = vmatpush1.bf16.msra.mxu1 %v10084_v6  ;;  %v276_v61 = vld [vmem:[#allocation2 + $0x3e8] sm:$0xff]  ;;  %v283_v3 = vld [vmem:[#allocation2 + $0x420] sm:$0xff]  ;;  %v10146_v6 = vcombine.low %v271_v57, %v275_v59 }
  0x90   :  { %6353 = vmatprep.subr.bf16.mxu0 %v10091_v7  ;;  %6697 = vmatprep.subr.bf16.mxu1 %v10093_v8  ;;  %v10149_v1 = vcombine.high %v272_v60, %v276_v61  ;;  %v280_v4 = vld [vmem:[#allocation2 + $0x408] sm:$0xff]  ;;  %v103_v7 = vld [vmem:[%s12496_s0] sm:$0xff]  ;;  %v10148_v9 = vcombine.low %v272_v60, %v276_v61  ;;  %v10155_v10 = vcombine.high %v279_v2, %v283_v3 }
  0x91   :  { %v284_v5 = vld [vmem:[#allocation2 + $0x428] sm:$0xff]  ;;  %v119_v8 = vld [vmem:[%s12496_s0 + $0x80] sm:$0xff]  ;;  %v10154_v19 = vcombine.low %v279_v2, %v283_v3 }
  0x92   :  { %v10157_v11 = vcombine.high %v280_v4, %v284_v5  ;;  %v287_v12 = vld [vmem:[#allocation2 + $0x440] sm:$0xff]  ;;  %v10156_v20 = vcombine.low %v280_v4, %v284_v5  ;;  %v296_v26 = vld [vmem:[#allocation2 + $0x488] sm:$0xff] }
  0x93   :  { %6354 = vmatpush1.bf16.msra.mxu0 %v10090_v13  ;;  %6698 = vmatpush1.bf16.msra.mxu1 %v10092_v14  ;;  %v291_v13 = vld [vmem:[#allocation2 + $0x460] sm:$0xff]  ;;  %v288_v14 = vld [vmem:[#allocation2 + $0x448] sm:$0xff] }
  0x94   :  { %6355 = vmatprep.subr.bf16.mxu0 %v10099_v15  ;;  %6699 = vmatprep.subr.bf16.mxu1 %v10101_v16  ;;  %v12271_v15 = vpack.c.bf16 %v119_v8, %v103_v7  ;;  %v292_v16 = vld [vmem:[#allocation2 + $0x468] sm:$0xff]  ;;  %v10162_v28 = vcombine.low %v287_v12, %v291_v13  ;;  %v343_v8 = vld [vmem:[#allocation2 + $0x600] sm:$0xff] }
  0x95   :  { %v300_v27 = vld [vmem:[#allocation2 + $0x4a8] sm:$0xff]  ;;  %v351_v17 = vld [vmem:[#allocation2 + $0x640] sm:$0xff] }
  0x96   :  { %v10173_v33 = vcombine.high %v296_v26, %v300_v27  ;;  %v304_v34 = vld [vmem:[#allocation2 + $0x4c8] sm:$0xff]  ;;  %v355_v18 = vld [vmem:[#allocation2 + $0x660] sm:$0xff] }
  0x97   :  { %6356 = vmatpush1.bf16.msra.mxu0 %v10098_v21  ;;  %6700 = vmatpush1.bf16.msra.mxu1 %v10100_v22  ;;  %v10163_v21 = vcombine.high %v287_v12, %v291_v13  ;;  %v10165_v22 = vcombine.high %v288_v14, %v292_v16  ;;  %v308_v35 = vld [vmem:[#allocation2 + $0x4e8] sm:$0xff] }
  0x98   :  { %6357 = vmatprep.subr.bf16.mxu0 %v10107_v23  ;;  %6701 = vmatprep.subr.bf16.mxu1 %v10109_v24  ;;  %v295_v23 = vld [vmem:[#allocation2 + $0x480] sm:$0xff]  ;;  %v312_v41 = vld [vmem:[#allocation2 + $0x508] sm:$0xff]  ;;  %v10181_v42 = vcombine.high %v304_v34, %v308_v35 }
  0x99   :  { %v299_v24 = vld [vmem:[#allocation2 + $0x4a0] sm:$0xff]  ;;  %v316_v43 = vld [vmem:[#allocation2 + $0x528] sm:$0xff] }
  0x9a   :  { %v10170_v36 = vcombine.low %v295_v23, %v299_v24  ;;  %v320_v49 = vld [vmem:[#allocation2 + $0x548] sm:$0xff]  ;;  %v10189_v50 = vcombine.high %v312_v41, %v316_v43 }
  0x9b   :  { %6358 = vmatpush1.bf16.msra.mxu0 %v10106_v29  ;;  %6702 = vmatpush1.bf16.msra.mxu1 %v10108_v30  ;;  %v10164_v29 = vcombine.low %v288_v14, %v292_v16  ;;  %v10171_v30 = vcombine.high %v295_v23, %v299_v24  ;;  %v324_v51 = vld [vmem:[#allocation2 + $0x568] sm:$0xff]  ;;  %v10227_v24 = vcombine.high %v351_v17, %v355_v18 }
  0x9c   :  { %6359 = vmatprep.subr.bf16.mxu0 %v10115_v31  ;;  %6703 = vmatprep.subr.bf16.mxu1 %v10117_v32  ;;  %v303_v31 = vld [vmem:[#allocation2 + $0x4c0] sm:$0xff]  ;;  %v328_v57 = vld [vmem:[#allocation2 + $0x588] sm:$0xff]  ;;  %v10197_v59 = vcombine.high %v320_v49, %v324_v51 }
  0x9d   :  { %v307_v32 = vld [vmem:[#allocation2 + $0x4e0] sm:$0xff]  ;;  %v332_v60 = vld [vmem:[#allocation2 + $0x5a8] sm:$0xff] }
  0x9e   :  { %v10178_v44 = vcombine.low %v303_v31, %v307_v32  ;;  %v336_v2 = vld [vmem:[#allocation2 + $0x5c8] sm:$0xff]  ;;  %v10205_v3 = vcombine.high %v328_v57, %v332_v60 }
  0x9f   :  { %6360 = vmatpush1.bf16.msra.mxu0 %v10114_v37  ;;  %6704 = vmatpush1.bf16.msra.mxu1 %v10116_v38  ;;  %v10172_v37 = vcombine.low %v296_v26, %v300_v27  ;;  %v10179_v38 = vcombine.high %v303_v31, %v307_v32  ;;  %v340_v4 = vld [vmem:[#allocation2 + $0x5e8] sm:$0xff]  ;;  %v359_v26 = vld [vmem:[#allocation2 + $0x680] sm:$0xff]  ;;  %v10226_v31 = vcombine.low %v351_v17, %v355_v18  ;;  %v105_v17 = vld [vmem:[%s12496_s0 + $0x10] sm:$0xff] }
  0xa0   :  { %6361 = vmatprep.subr.bf16.mxu0 %v10123_v39  ;;  %6705 = vmatprep.subr.bf16.mxu1 %v10125_v40  ;;  %v311_v39 = vld [vmem:[#allocation2 + $0x500] sm:$0xff]  ;;  %v348_v12 = vld [vmem:[#allocation2 + $0x628] sm:$0xff]  ;;  %v10212_v14 = vcombine.low %v336_v2, %v340_v4  ;;  %v121_v18 = vld [vmem:[%s12496_s0 + $0x90] sm:$0xff] }
  0xa1   :  { %v315_v40 = vld [vmem:[#allocation2 + $0x520] sm:$0xff] }
  0xa2   :  { %v10186_v52 = vcombine.low %v311_v39, %v315_v40  ;;  %v363_v27 = vld [vmem:[#allocation2 + $0x6a0] sm:$0xff] }
  0xa3   :  { %6362 = vmatpush1.bf16.msra.mxu0 %v10122_v45  ;;  %6706 = vmatpush1.bf16.msra.mxu1 %v10124_v46  ;;  %v10180_v45 = vcombine.low %v304_v34, %v308_v35  ;;  %v10187_v46 = vcombine.high %v311_v39, %v315_v40  ;;  %v367_v34 = vld [vmem:[#allocation2 + $0x6c0] sm:$0xff]  ;;  %v10234_v39 = vcombine.low %v359_v26, %v363_v27 }
  0xa4   :  { %6363 = vmatprep.subr.bf16.mxu0 %v10131_v47  ;;  %6707 = vmatprep.subr.bf16.mxu1 %v10133_v48  ;;  %v319_v47 = vld [vmem:[#allocation2 + $0x540] sm:$0xff] }
  0xa5   :  { %v323_v48 = vld [vmem:[#allocation2 + $0x560] sm:$0xff] }
  0xa6   :  { %v10194_v61 = vcombine.low %v319_v47, %v323_v48  ;;  %v371_v35 = vld [vmem:[#allocation2 + $0x6e0] sm:$0xff] }
  0xa7   :  { %6364 = vmatpush1.bf16.msra.mxu0 %v10130_v53  ;;  %6708 = vmatpush1.bf16.msra.mxu1 %v10132_v54  ;;  %v10188_v53 = vcombine.low %v312_v41, %v316_v43  ;;  %v10195_v54 = vcombine.high %v319_v47, %v323_v48  ;;  %v10243_v41 = vcombine.high %v367_v34, %v371_v35  ;;  %v379_v43 = vld [vmem:[#allocation2 + $0x720] sm:$0xff] }
  0xa8   :  { %6365 = vmatprep.subr.bf16.mxu0 %v10139_v55  ;;  %6709 = vmatprep.subr.bf16.mxu1 %v10141_v56  ;;  %v327_v55 = vld [vmem:[#allocation2 + $0x580] sm:$0xff]  ;;  %v10242_v47 = vcombine.low %v367_v34, %v371_v35 }
  0xa9   :  { %v331_v56 = vld [vmem:[#allocation2 + $0x5a0] sm:$0xff] }
  0xaa   :  { %v10202_v5 = vcombine.low %v327_v55, %v331_v56  ;;  %v423_v35 = vld [vmem:[#allocation2 + $0x880] sm:$0xff] }
  0xab   :  { %6366 = vmatpush1.bf16.msra.mxu0 %v10138_v62  ;;  %6710 = vmatpush1.bf16.msra.mxu1 %v10140_v63  ;;  %v10196_v62 = vcombine.low %v320_v49, %v324_v51  ;;  %v10203_v63 = vcombine.high %v327_v55, %v331_v56  ;;  %v387_v51 = vld [vmem:[#allocation2 + $0x760] sm:$0xff] }
  0xac   :  { %6367 = vmatprep.subr.bf16.mxu0 %v10147_v0  ;;  %6711 = vmatprep.subr.bf16.mxu1 %v10149_v1  ;;  %v335_v0 = vld [vmem:[#allocation2 + $0x5c0] sm:$0xff] }
  0xad   :  { %v339_v1 = vld [vmem:[#allocation2 + $0x5e0] sm:$0xff] }
  0xae   :  { %v10211_v7 = vcombine.high %v335_v0, %v339_v1  ;;  %v10210_v13 = vcombine.low %v335_v0, %v339_v1 }
  0xaf   :  { %6368 = vmatpush1.bf16.msra.mxu0 %v10146_v6  ;;  %6712 = vmatpush1.bf16.msra.mxu1 %v10148_v9  ;;  %v10204_v6 = vcombine.low %v328_v57, %v332_v60  ;;  %v347_v9 = vld [vmem:[#allocation2 + $0x620] sm:$0xff] }
  0xb0   :  { %6380 = vmatprep.subr.bf16.mxu0 %v10155_v10  ;;  %6724 = vmatprep.subr.bf16.mxu1 %v10157_v11  ;;  %v344_v10 = vld [vmem:[#allocation2 + $0x608] sm:$0xff]  ;;  %v10213_v11 = vcombine.high %v336_v2, %v340_v4  ;;  %v10219_v16 = vcombine.high %v343_v8, %v347_v9  ;;  %v395_v60 = vld [vmem:[#allocation2 + $0x7a0] sm:$0xff] }
  0xb1   :  { %v10220_v23 = vcombine.low %v344_v10, %v348_v12  ;;  %v403_v4 = vld [vmem:[#allocation2 + $0x7e0] sm:$0xff] }
  0xb2   :  { %6370 = vmatmul.mubr.bf16.vlgmr.msra.gmra.mrb[0].mxu0 %v12271_v15  ;;  %6714 = vmatmul.mubr.bf16.vlgmr.msra.gmra.mrb[0].mxu1 %v12271_v15 }
  0xb3   :  { %6381 = vmatpush1.bf16.msra.mxu0 %v10154_v19  ;;  %6725 = vmatpush1.bf16.msra.mxu1 %v10156_v20  ;;  %v352_v19 = vld [vmem:[#allocation2 + $0x648] sm:$0xff]  ;;  %v10221_v20 = vcombine.high %v344_v10, %v348_v12  ;;  %v411_v12 = vld [vmem:[#allocation2 + $0x820] sm:$0xff] }
  0xb4   :  { %6382 = vmatprep.subr.bf16.mxu0 %v10163_v21  ;;  %6726 = vmatprep.subr.bf16.mxu1 %v10165_v22  ;;  %v356_v21 = vld [vmem:[#allocation2 + $0x668] sm:$0xff]  ;;  %v10218_v22 = vcombine.low %v343_v8, %v347_v9  ;;  %v407_v9 = vld [vmem:[#allocation2 + $0x800] sm:$0xff] }
  0xb5   :  { %6412 = vmatprep.mubr.bf16.mxu0 %v12279_v25  ;;  %6756 = vmatprep.mubr.bf16.mxu1 %v12279_v25  ;;  %v10228_v32 = vcombine.low %v352_v19, %v356_v21 }
  0xb7   :  { %6383 = vmatpush1.bf16.msra.mxu0 %v10162_v28  ;;  %6727 = vmatpush1.bf16.msra.mxu1 %v10164_v29  ;;  %v360_v28 = vld [vmem:[#allocation2 + $0x688] sm:$0xff]  ;;  %v10229_v29 = vcombine.high %v352_v19, %v356_v21  ;;  %v419_v21 = vld [vmem:[#allocation2 + $0x860] sm:$0xff] }
  0xb8   :  { %6384 = vmatprep.subr.bf16.mxu0 %v10171_v30  ;;  %6728 = vmatprep.subr.bf16.mxu1 %v10173_v33  ;;  %v364_v30 = vld [vmem:[#allocation2 + $0x6a8] sm:$0xff]  ;;  %v10235_v33 = vcombine.high %v359_v26, %v363_v27 }
  0xb9   :  { %v10236_v40 = vcombine.low %v360_v28, %v364_v30  ;;  %v420_v26 = vld [vmem:[#allocation2 + $0x868] sm:$0xff] }
  0xba   :  { %v108_v27 = vld [vmem:[%s12496_s0 + $0x28] sm:$0xff] }
  0xbb   :  { %6385 = vmatpush1.bf16.msra.mxu0 %v10170_v36  ;;  %6729 = vmatpush1.bf16.msra.mxu1 %v10172_v37  ;;  %v368_v36 = vld [vmem:[#allocation2 + $0x6c8] sm:$0xff]  ;;  %v10237_v37 = vcombine.high %v360_v28, %v364_v30  ;;  %v12297_v30 = vpack.c.bf16 %v121_v18, %v105_v17 }
  0xbc   :  { %6386 = vmatprep.subr.bf16.mxu0 %v10179_v38  ;;  %6730 = vmatprep.subr.bf16.mxu1 %v10181_v42  ;;  %v372_v38 = vld [vmem:[#allocation2 + $0x6e8] sm:$0xff]  ;;  %v375_v42 = vld [vmem:[#allocation2 + $0x700] sm:$0xff] }
  0xbd   :  { %v10244_v48 = vcombine.low %v368_v36, %v372_v38  ;;  %v10251_v49 = vcombine.high %v375_v42, %v379_v43  ;;  %v10250_v55 = vcombine.low %v375_v42, %v379_v43  ;;  %v431_v43 = vld [vmem:[#allocation2 + $0x8c0] sm:$0xff]  ;;  %v468_v17 = vld [vmem:[#allocation2 + $0x9e8] sm:$0xff] }
  0xbf   :  { %6387 = vmatpush1.bf16.msra.mxu0 %v10178_v44  ;;  %6731 = vmatpush1.bf16.msra.mxu1 %v10180_v45  ;;  %v376_v44 = vld [vmem:[#allocation2 + $0x708] sm:$0xff]  ;;  %v10245_v45 = vcombine.high %v368_v36, %v372_v38  ;;  %v427_v36 = vld [vmem:[#allocation2 + $0x8a0] sm:$0xff] }
  0xc0   :  { %6388 = vmatprep.subr.bf16.mxu0 %v10187_v46  ;;  %6732 = vmatprep.subr.bf16.mxu1 %v10189_v50  ;;  %v380_v46 = vld [vmem:[#allocation2 + $0x728] sm:$0xff]  ;;  %v383_v50 = vld [vmem:[#allocation2 + $0x740] sm:$0xff]  ;;  %v10299_v42 = vcombine.high %v423_v35, %v427_v36 }
  0xc1   :  { %v10252_v56 = vcombine.low %v376_v44, %v380_v46  ;;  %v10259_v57 = vcombine.high %v383_v50, %v387_v51  ;;  %v10258_v0 = vcombine.low %v383_v50, %v387_v51  ;;  %v424_v38 = vld [vmem:[#allocation2 + $0x888] sm:$0xff]  ;;  %v439_v51 = vld [vmem:[#allocation2 + $0x900] sm:$0xff] }
  0xc3   :  { %6389 = vmatpush1.bf16.msra.mxu0 %v10186_v52  ;;  %6733 = vmatpush1.bf16.msra.mxu1 %v10188_v53  ;;  %v384_v52 = vld [vmem:[#allocation2 + $0x748] sm:$0xff]  ;;  %v10253_v53 = vcombine.high %v376_v44, %v380_v46  ;;  %v435_v44 = vld [vmem:[#allocation2 + $0x8e0] sm:$0xff] }
  0xc4   :  { %6390 = vmatprep.subr.bf16.mxu0 %v10195_v54  ;;  %6734 = vmatprep.subr.bf16.mxu1 %v10197_v59  ;;  %v388_v54 = vld [vmem:[#allocation2 + $0x768] sm:$0xff]  ;;  %v391_v59 = vld [vmem:[#allocation2 + $0x780] sm:$0xff]  ;;  %v10307_v50 = vcombine.high %v431_v43, %v435_v44 }
  0xc5   :  { %v10260_v1 = vcombine.low %v384_v52, %v388_v54  ;;  %v10267_v2 = vcombine.high %v391_v59, %v395_v60  ;;  %v10266_v8 = vcombine.low %v391_v59, %v395_v60  ;;  %v447_v60 = vld [vmem:[#allocation2 + $0x940] sm:$0xff] }
  0xc7   :  { %6391 = vmatpush1.bf16.msra.mxu0 %v10194_v61  ;;  %6735 = vmatpush1.bf16.msra.mxu1 %v10196_v62  ;;  %v392_v61 = vld [vmem:[#allocation2 + $0x788] sm:$0xff]  ;;  %v10261_v62 = vcombine.high %v384_v52, %v388_v54  ;;  %v443_v52 = vld [vmem:[#allocation2 + $0x920] sm:$0xff] }
  0xc8   :  { %6392 = vmatprep.subr.bf16.mxu0 %v10203_v63  ;;  %6736 = vmatprep.subr.bf16.mxu1 %v10205_v3  ;;  %v396_v63 = vld [vmem:[#allocation2 + $0x7a8] sm:$0xff]  ;;  %v399_v3 = vld [vmem:[#allocation2 + $0x7c0] sm:$0xff]  ;;  %v10315_v59 = vcombine.high %v439_v51, %v443_v52 }
  0xc9   :  { %v10268_v10 = vcombine.low %v392_v61, %v396_v63  ;;  %v10274_v19 = vcombine.low %v399_v3, %v403_v4 }
  0xcb   :  { %6393 = vmatpush1.bf16.msra.mxu0 %v10202_v5  ;;  %6737 = vmatpush1.bf16.msra.mxu1 %v10204_v6  ;;  %v400_v5 = vld [vmem:[#allocation2 + $0x7c8] sm:$0xff]  ;;  %v10269_v6 = vcombine.high %v392_v61, %v396_v63  ;;  %v451_v61 = vld [vmem:[#allocation2 + $0x960] sm:$0xff] }
  0xcc   :  { %6394 = vmatprep.subr.bf16.mxu0 %v10211_v7  ;;  %6738 = vmatprep.subr.bf16.mxu1 %v10213_v11  ;;  %v404_v7 = vld [vmem:[#allocation2 + $0x7e8] sm:$0xff]  ;;  %v10275_v11 = vcombine.high %v399_v3, %v403_v4  ;;  %v10323_v3 = vcombine.high %v447_v60, %v451_v61  ;;  %v455_v4 = vld [vmem:[#allocation2 + $0x980] sm:$0xff] }
  0xcf   :  { %6395 = vmatpush1.bf16.msra.mxu0 %v10210_v13  ;;  %6739 = vmatpush1.bf16.msra.mxu1 %v10212_v14  ;;  %v408_v13 = vld [vmem:[#allocation2 + $0x808] sm:$0xff] }
  0xd0   :  { %6396 = vmatprep.subr.bf16.mxu0 %v10219_v16  ;;  %6740 = vmatprep.subr.bf16.mxu1 %v10221_v20  ;;  %v412_v14 = vld [vmem:[#allocation2 + $0x828] sm:$0xff]  ;;  %v10277_v16 = vcombine.high %v400_v5, %v404_v7  ;;  %v415_v20 = vld [vmem:[#allocation2 + $0x840] sm:$0xff] }
  0xd1   :  { %v10285_v28 = vcombine.high %v408_v13, %v412_v14 }
  0xd3   :  { %6397 = vmatpush1.bf16.msra.mxu0 %v10218_v22  ;;  %6741 = vmatpush1.bf16.msra.mxu1 %v10220_v23  ;;  %v10276_v22 = vcombine.low %v400_v5, %v404_v7  ;;  %v10283_v23 = vcombine.high %v407_v9, %v411_v12  ;;  %v459_v5 = vld [vmem:[#allocation2 + $0x9a0] sm:$0xff] }
  0xd4   :  { %6398 = vmatprep.subr.bf16.mxu0 %v10227_v24  ;;  %6742 = vmatprep.subr.bf16.mxu1 %v10229_v29  ;;  %v416_v24 = vld [vmem:[#allocation2 + $0x848] sm:$0xff]  ;;  %v10330_v18 = vcombine.low %v455_v4, %v459_v5 }
  0xd5   :  { %v124_v29 = vld [vmem:[%s12496_s0 + $0xa8] sm:$0xff]  ;;  %v10293_v34 = vcombine.high %v416_v24, %v420_v26 }
  0xd7   :  { %6399 = vmatpush1.bf16.msra.mxu0 %v10226_v31  ;;  %6743 = vmatpush1.bf16.msra.mxu1 %v10228_v32  ;;  %v10282_v31 = vcombine.low %v407_v9, %v411_v12  ;;  %v10284_v32 = vcombine.low %v408_v13, %v412_v14  ;;  %v10322_v9 = vcombine.low %v447_v60, %v451_v61  ;;  %v463_v12 = vld [vmem:[#allocation2 + $0x9c0] sm:$0xff]  ;;  %v464_v14 = vld [vmem:[#allocation2 + $0x9c8] sm:$0xff] }
  0xd8   :  { %6400 = vmatprep.subr.bf16.mxu0 %v10235_v33  ;;  %6744 = vmatprep.subr.bf16.mxu1 %v10237_v37  ;;  %v10291_v33 = vcombine.high %v415_v20, %v419_v21  ;;  %v12299_v37 = vpack.c.bf16 %v124_v29, %v108_v27  ;;  %v467_v13 = vld [vmem:[#allocation2 + $0x9e0] sm:$0xff]  ;;  %v508_v61 = vld [vmem:[#allocation2 + $0xb28] sm:$0xff] }
  0xd9   :  { %v10338_v27 = vcombine.low %v463_v12, %v467_v13 }
  0xdb   :  { %6401 = vmatpush1.bf16.msra.mxu0 %v10234_v39  ;;  %6745 = vmatpush1.bf16.msra.mxu1 %v10236_v40  ;;  %v428_v39 = vld [vmem:[#allocation2 + $0x8a8] sm:$0xff]  ;;  %v10290_v40 = vcombine.low %v415_v20, %v419_v21  ;;  %v10339_v20 = vcombine.high %v463_v12, %v467_v13  ;;  %v471_v21 = vld [vmem:[#allocation2 + $0xa00] sm:$0xff] }
  0xdc   :  { %6402 = vmatprep.subr.bf16.mxu0 %v10243_v41  ;;  %6746 = vmatprep.subr.bf16.mxu1 %v10245_v45  ;;  %v10292_v41 = vcombine.low %v416_v24, %v420_v26  ;;  %v432_v45 = vld [vmem:[#allocation2 + $0x8c8] sm:$0xff]  ;;  %v10301_v46 = vcombine.high %v424_v38, %v428_v39  ;;  %v10341_v24 = vcombine.high %v464_v14, %v468_v17 }
  0xdd   :  { %v476_v26 = vld [vmem:[#allocation2 + $0xa28] sm:$0xff] }
  0xde   :  { %v524_v13 = vld [vmem:[#allocation2 + $0xba8] sm:$0xff] }
  0xdf   :  { %6403 = vmatpush1.bf16.msra.mxu0 %v10242_v47  ;;  %6747 = vmatpush1.bf16.msra.mxu1 %v10244_v48  ;;  %v436_v47 = vld [vmem:[#allocation2 + $0x8e8] sm:$0xff]  ;;  %v10298_v48 = vcombine.low %v423_v35, %v427_v36 }
  0xe0   :  { %6404 = vmatprep.subr.bf16.mxu0 %v10251_v49  ;;  %6748 = vmatprep.subr.bf16.mxu1 %v10253_v53  ;;  %v10300_v49 = vcombine.low %v424_v38, %v428_v39  ;;  %v440_v53 = vld [vmem:[#allocation2 + $0x908] sm:$0xff]  ;;  %v10309_v54 = vcombine.high %v432_v45, %v436_v47 }
  0xe1   :  { %v484_v35 = vld [vmem:[#allocation2 + $0xa68] sm:$0xff] }
  0xe3   :  { %6405 = vmatpush1.bf16.msra.mxu0 %v10250_v55  ;;  %6749 = vmatpush1.bf16.msra.mxu1 %v10252_v56  ;;  %v444_v55 = vld [vmem:[#allocation2 + $0x928] sm:$0xff]  ;;  %v10306_v56 = vcombine.low %v431_v43, %v435_v44 }
  0xe4   :  { %6406 = vmatprep.subr.bf16.mxu0 %v10259_v57  ;;  %6750 = vmatprep.subr.bf16.mxu1 %v10261_v62  ;;  %v10308_v57 = vcombine.low %v432_v45, %v436_v47  ;;  %v448_v62 = vld [vmem:[#allocation2 + $0x948] sm:$0xff]  ;;  %v10317_v63 = vcombine.high %v440_v53, %v444_v55 }
  0xe5   :  { %v492_v44 = vld [vmem:[#allocation2 + $0xaa8] sm:$0xff] }
  0xe7   :  { %6407 = vmatpush1.bf16.msra.mxu0 %v10258_v0  ;;  %6751 = vmatpush1.bf16.msra.mxu1 %v10260_v1  ;;  %v452_v0 = vld [vmem:[#allocation2 + $0x968] sm:$0xff]  ;;  %v10314_v1 = vcombine.low %v439_v51, %v443_v52 }
  0xe8   :  { %6408 = vmatprep.subr.bf16.mxu0 %v10267_v2  ;;  %6752 = vmatprep.subr.bf16.mxu1 %v10269_v6  ;;  %v10316_v2 = vcombine.low %v440_v53, %v444_v55  ;;  %v456_v6 = vld [vmem:[#allocation2 + $0x988] sm:$0xff]  ;;  %v10325_v7 = vcombine.high %v448_v62, %v452_v0 }
  0xe9   :  { %v500_v52 = vld [vmem:[#allocation2 + $0xae8] sm:$0xff] }
  0xeb   :  { %6409 = vmatpush1.bf16.msra.mxu0 %v10266_v8  ;;  %6753 = vmatpush1.bf16.msra.mxu1 %v10268_v10  ;;  %v460_v8 = vld [vmem:[#allocation2 + $0x9a8] sm:$0xff]  ;;  %v10324_v10 = vcombine.low %v448_v62, %v452_v0 }
  0xec   :  { %6410 = vmatprep.subr.bf16.mxu0 %v10275_v11  ;;  %6754 = vmatprep.subr.bf16.mxu1 %v10277_v16  ;;  %v10331_v11 = vcombine.high %v455_v4, %v459_v5  ;;  %v10333_v16 = vcombine.high %v456_v6, %v460_v8  ;;  %v516_v5 = vld [vmem:[#allocation2 + $0xb68] sm:$0xff] }
  0xef   :  { %6411 = vmatpush1.bf16.msra.mxu0 %v10274_v19  ;;  %6755 = vmatpush1.bf16.msra.mxu1 %v10276_v22  ;;  %v10332_v19 = vcombine.low %v456_v6, %v460_v8  ;;  %v475_v22 = vld [vmem:[#allocation2 + $0xa20] sm:$0xff] }
  0xf0   :  { %6423 = vmatprep.subr.bf16.mxu0 %v10283_v23  ;;  %6767 = vmatprep.subr.bf16.mxu1 %v10285_v28  ;;  %v472_v23 = vld [vmem:[#allocation2 + $0xa08] sm:$0xff]  ;;  %v10340_v28 = vcombine.low %v464_v14, %v468_v17  ;;  %v10347_v29 = vcombine.high %v471_v21, %v475_v22  ;;  %v10346_v36 = vcombine.low %v471_v21, %v475_v22 }
  0xf1   :  { %v10348_v38 = vcombine.low %v472_v23, %v476_v26  ;;  %v532_v22 = vld [vmem:[#allocation2 + $0xbe8] sm:$0xff] }
  0xf2   :  { %6413 = vmatmul.mubr.bf16.vlgmr.msra.gmra.mrb[0].mxu0 %v12297_v30  ;;  %6757 = vmatmul.mubr.bf16.vlgmr.msra.gmra.mrb[0].mxu1 %v12297_v30 }
  0xf3   :  { %6424 = vmatpush1.bf16.msra.mxu0 %v10282_v31  ;;  %6768 = vmatpush1.bf16.msra.mxu1 %v10284_v32  ;;  %v479_v31 = vld [vmem:[#allocation2 + $0xa40] sm:$0xff] }
  0xf4   :  { %6425 = vmatprep.subr.bf16.mxu0 %v10291_v33  ;;  %6769 = vmatprep.subr.bf16.mxu1 %v10293_v34  ;;  %v483_v32 = vld [vmem:[#allocation2 + $0xa60] sm:$0xff]  ;;  %v480_v33 = vld [vmem:[#allocation2 + $0xa48] sm:$0xff]  ;;  %v10349_v34 = vcombine.high %v472_v23, %v476_v26 }
  0xf5   :  { %6455 = vmatprep.mubr.bf16.mxu0 %v12299_v37  ;;  %6799 = vmatprep.mubr.bf16.mxu1 %v12299_v37  ;;  %v10355_v39 = vcombine.high %v479_v31, %v483_v32  ;;  %v10357_v43 = vcombine.high %v480_v33, %v484_v35  ;;  %v10354_v45 = vcombine.low %v479_v31, %v483_v32  ;;  %v540_v31 = vld [vmem:[#allocation2 + $0xc28] sm:$0xff] }
  0xf7   :  { %6426 = vmatpush1.bf16.msra.mxu0 %v10290_v40  ;;  %6770 = vmatpush1.bf16.msra.mxu1 %v10292_v41  ;;  %v487_v40 = vld [vmem:[#allocation2 + $0xa80] sm:$0xff] }
  0xf8   :  { %6427 = vmatprep.subr.bf16.mxu0 %v10299_v42  ;;  %6771 = vmatprep.subr.bf16.mxu1 %v10301_v46  ;;  %v491_v41 = vld [vmem:[#allocation2 + $0xaa0] sm:$0xff]  ;;  %v488_v42 = vld [vmem:[#allocation2 + $0xa88] sm:$0xff]  ;;  %v10356_v46 = vcombine.low %v480_v33, %v484_v35 }
  0xf9   :  { %v10363_v47 = vcombine.high %v487_v40, %v491_v41  ;;  %v10365_v51 = vcombine.high %v488_v42, %v492_v44  ;;  %v10362_v53 = vcombine.low %v487_v40, %v491_v41  ;;  %v107_v33 = vld [vmem:[%s12496_s0 + $0x20] sm:$0xff]  ;;  %v544_v41 = vld [vmem:[#allocation2 + $0xc48] sm:$0xff] }
  0xfb   :  { %6428 = vmatpush1.bf16.msra.mxu0 %v10298_v48  ;;  %6772 = vmatpush1.bf16.msra.mxu1 %v10300_v49  ;;  %v495_v48 = vld [vmem:[#allocation2 + $0xac0] sm:$0xff] }
  0xfc   :  { %6429 = vmatprep.subr.bf16.mxu0 %v10307_v50  ;;  %6773 = vmatprep.subr.bf16.mxu1 %v10309_v54  ;;  %v499_v49 = vld [vmem:[#allocation2 + $0xae0] sm:$0xff]  ;;  %v496_v50 = vld [vmem:[#allocation2 + $0xac8] sm:$0xff]  ;;  %v10364_v54 = vcombine.low %v488_v42, %v492_v44 }
  0xfd   :  { %v10371_v55 = vcombine.high %v495_v48, %v499_v49  ;;  %v10373_v60 = vcombine.high %v496_v50, %v500_v52  ;;  %v10370_v62 = vcombine.low %v495_v48, %v499_v49  ;;  %v548_v42 = vld [vmem:[#allocation2 + $0xc68] sm:$0xff] }
  0xff   :  { %6430 = vmatpush1.bf16.msra.mxu0 %v10306_v56  ;;  %6774 = vmatpush1.bf16.msra.mxu1 %v10308_v57  ;;  %v503_v56 = vld [vmem:[#allocation2 + $0xb00] sm:$0xff] }
 0x100   :  { %6431 = vmatprep.subr.bf16.mxu0 %v10315_v59  ;;  %6775 = vmatprep.subr.bf16.mxu1 %v10317_v63  ;;  %v507_v57 = vld [vmem:[#allocation2 + $0xb20] sm:$0xff]  ;;  %v504_v59 = vld [vmem:[#allocation2 + $0xb08] sm:$0xff]  ;;  %v10372_v63 = vcombine.low %v496_v50, %v500_v52  ;;  %v10421_v50 = vcombine.high %v544_v41, %v548_v42 }
 0x101   :  { %v10379_v0 = vcombine.high %v503_v56, %v507_v57  ;;  %v10381_v4 = vcombine.high %v504_v59, %v508_v61  ;;  %v10378_v6 = vcombine.low %v503_v56, %v507_v57  ;;  %v555_v52 = vld [vmem:[#allocation2 + $0xca0] sm:$0xff]  ;;  %v10420_v57 = vcombine.low %v544_v41, %v548_v42  ;;  %v600_v42 = vld [vmem:[#allocation2 + $0xe08] sm:$0xff] }
 0x102   :  { %v603_v41 = vld [vmem:[#allocation2 + $0xe20] sm:$0xff] }
 0x103   :  { %6432 = vmatpush1.bf16.msra.mxu0 %v10314_v1  ;;  %6776 = vmatpush1.bf16.msra.mxu1 %v10316_v2  ;;  %v511_v1 = vld [vmem:[#allocation2 + $0xb40] sm:$0xff] }
 0x104   :  { %6433 = vmatprep.subr.bf16.mxu0 %v10323_v3  ;;  %6777 = vmatprep.subr.bf16.mxu1 %v10325_v7  ;;  %v515_v2 = vld [vmem:[#allocation2 + $0xb60] sm:$0xff]  ;;  %v512_v3 = vld [vmem:[#allocation2 + $0xb48] sm:$0xff]  ;;  %v10380_v7 = vcombine.low %v504_v59, %v508_v61 }
 0x105   :  { %v10387_v8 = vcombine.high %v511_v1, %v515_v2  ;;  %v10389_v12 = vcombine.high %v512_v3, %v516_v5  ;;  %v10386_v14 = vcombine.low %v511_v1, %v515_v2  ;;  %v563_v61 = vld [vmem:[#allocation2 + $0xce0] sm:$0xff] }
 0x107   :  { %6434 = vmatpush1.bf16.msra.mxu0 %v10322_v9  ;;  %6778 = vmatpush1.bf16.msra.mxu1 %v10324_v10  ;;  %v519_v9 = vld [vmem:[#allocation2 + $0xb80] sm:$0xff] }
 0x108   :  { %6435 = vmatprep.subr.bf16.mxu0 %v10331_v11  ;;  %6779 = vmatprep.subr.bf16.mxu1 %v10333_v16  ;;  %v523_v10 = vld [vmem:[#allocation2 + $0xba0] sm:$0xff]  ;;  %v520_v11 = vld [vmem:[#allocation2 + $0xb88] sm:$0xff]  ;;  %v10388_v16 = vcombine.low %v512_v3, %v516_v5 }
 0x109   :  { %v10395_v17 = vcombine.high %v519_v9, %v523_v10  ;;  %v10397_v21 = vcombine.high %v520_v11, %v524_v13  ;;  %v10394_v23 = vcombine.low %v519_v9, %v523_v10  ;;  %v10396_v26 = vcombine.low %v520_v11, %v524_v13  ;;  %v571_v5 = vld [vmem:[#allocation2 + $0xd20] sm:$0xff] }
 0x10a   :  { %v579_v13 = vld [vmem:[#allocation2 + $0xd60] sm:$0xff] }
 0x10b   :  { %6436 = vmatpush1.bf16.msra.mxu0 %v10330_v18  ;;  %6780 = vmatpush1.bf16.msra.mxu1 %v10332_v19  ;;  %v527_v18 = vld [vmem:[#allocation2 + $0xbc0] sm:$0xff] }
 0x10c   :  { %6437 = vmatprep.subr.bf16.mxu0 %v10339_v20  ;;  %6781 = vmatprep.subr.bf16.mxu1 %v10341_v24  ;;  %v531_v19 = vld [vmem:[#allocation2 + $0xbe0] sm:$0xff]  ;;  %v528_v20 = vld [vmem:[#allocation2 + $0xbc8] sm:$0xff] }
 0x10d   :  { %v535_v24 = vld [vmem:[#allocation2 + $0xc00] sm:$0xff]  ;;  %v10405_v32 = vcombine.high %v528_v20, %v532_v22  ;;  %v10402_v35 = vcombine.low %v527_v18, %v531_v19 }
 0x10f   :  { %6438 = vmatpush1.bf16.msra.mxu0 %v10338_v27  ;;  %6782 = vmatpush1.bf16.msra.mxu1 %v10340_v28  ;;  %v10403_v27 = vcombine.high %v527_v18, %v531_v19  ;;  %v539_v28 = vld [vmem:[#allocation2 + $0xc20] sm:$0xff] }
 0x110   :  { %6439 = vmatprep.subr.bf16.mxu0 %v10347_v29  ;;  %6783 = vmatprep.subr.bf16.mxu1 %v10349_v34  ;;  %v536_v29 = vld [vmem:[#allocation2 + $0xc08] sm:$0xff]  ;;  %v123_v34 = vld [vmem:[%s12496_s0 + $0xa0] sm:$0xff]  ;;  %v10411_v40 = vcombine.high %v535_v24, %v539_v28 }
 0x111   :  { %v10413_v44 = vcombine.high %v536_v29, %v540_v31  ;;  %v10412_v48 = vcombine.low %v536_v29, %v540_v31  ;;  %v591_v31 = vld [vmem:[#allocation2 + $0xdc0] sm:$0xff] }
 0x113   :  { %6440 = vmatpush1.bf16.msra.mxu0 %v10346_v36  ;;  %6784 = vmatpush1.bf16.msra.mxu1 %v10348_v38  ;;  %v543_v36 = vld [vmem:[#allocation2 + $0xc40] sm:$0xff] }
 0x114   :  { %6441 = vmatprep.subr.bf16.mxu0 %v10355_v39  ;;  %6785 = vmatprep.subr.bf16.mxu1 %v10357_v43  ;;  %v547_v38 = vld [vmem:[#allocation2 + $0xc60] sm:$0xff]  ;;  %v10404_v39 = vcombine.low %v528_v20, %v532_v22  ;;  %v110_v43 = vld [vmem:[%s12496_s0 + $0x38] sm:$0xff] }
 0x115   :  { %v10419_v49 = vcombine.high %v543_v36, %v547_v38  ;;  %v10418_v56 = vcombine.low %v543_v36, %v547_v38  ;;  %v587_v22 = vld [vmem:[#allocation2 + $0xda0] sm:$0xff] }
 0x117   :  { %6442 = vmatpush1.bf16.msra.mxu0 %v10354_v45  ;;  %6786 = vmatpush1.bf16.msra.mxu1 %v10356_v46  ;;  %v126_v45 = vld [vmem:[%s12496_s0 + $0xb8] sm:$0xff]  ;;  %v12317_v46 = vpack.c.bf16 %v123_v34, %v107_v33  ;;  %v592_v33 = vld [vmem:[#allocation2 + $0xdc8] sm:$0xff] }
 0x118   :  { %6443 = vmatprep.subr.bf16.mxu0 %v10363_v47  ;;  %6787 = vmatprep.subr.bf16.mxu1 %v10365_v51  ;;  %v10410_v47 = vcombine.low %v535_v24, %v539_v28  ;;  %v551_v51 = vld [vmem:[#allocation2 + $0xc80] sm:$0xff] }
 0x119   :  { %v10427_v59 = vcombine.high %v551_v51, %v555_v52  ;;  %v10426_v1 = vcombine.low %v551_v51, %v555_v52  ;;  %v608_v51 = vld [vmem:[#allocation2 + $0xe48] sm:$0xff] }
 0x11b   :  { %6444 = vmatpush1.bf16.msra.mxu0 %v10362_v53  ;;  %6788 = vmatpush1.bf16.msra.mxu1 %v10364_v54  ;;  %v12319_v53 = vpack.c.bf16 %v126_v45, %v110_v43  ;;  %v552_v54 = vld [vmem:[#allocation2 + $0xc88] sm:$0xff] }
 0x11c   :  { %6445 = vmatprep.subr.bf16.mxu0 %v10371_v55  ;;  %6789 = vmatprep.subr.bf16.mxu1 %v10373_v60  ;;  %v556_v55 = vld [vmem:[#allocation2 + $0xca8] sm:$0xff]  ;;  %v559_v60 = vld [vmem:[#allocation2 + $0xcc0] sm:$0xff] }
 0x11d   :  { %v10428_v2 = vcombine.low %v552_v54, %v556_v55  ;;  %v10435_v3 = vcombine.high %v559_v60, %v563_v61  ;;  %v10434_v9 = vcombine.low %v559_v60, %v563_v61  ;;  %v619_v60 = vld [vmem:[#allocation2 + $0xea0] sm:$0xff]  ;;  %v616_v61 = vld [vmem:[#allocation2 + $0xe88] sm:$0xff] }
 0x11f   :  { %6446 = vmatpush1.bf16.msra.mxu0 %v10370_v62  ;;  %6790 = vmatpush1.bf16.msra.mxu1 %v10372_v63  ;;  %v560_v62 = vld [vmem:[#allocation2 + $0xcc8] sm:$0xff]  ;;  %v10429_v63 = vcombine.high %v552_v54, %v556_v55 }
 0x120   :  { %6447 = vmatprep.subr.bf16.mxu0 %v10379_v0  ;;  %6791 = vmatprep.subr.bf16.mxu1 %v10381_v4  ;;  %v564_v0 = vld [vmem:[#allocation2 + $0xce8] sm:$0xff]  ;;  %v567_v4 = vld [vmem:[#allocation2 + $0xd00] sm:$0xff] }
 0x121   :  { %v10436_v10 = vcombine.low %v560_v62, %v564_v0  ;;  %v10443_v11 = vcombine.high %v567_v4, %v571_v5  ;;  %v10442_v18 = vcombine.low %v567_v4, %v571_v5  ;;  %v612_v54 = vld [vmem:[#allocation2 + $0xe68] sm:$0xff]  ;;  %v627_v4 = vld [vmem:[#allocation2 + $0xee0] sm:$0xff] }
 0x122   :  { %v624_v5 = vld [vmem:[#allocation2 + $0xec8] sm:$0xff] }
 0x123   :  { %6448 = vmatpush1.bf16.msra.mxu0 %v10378_v6  ;;  %6792 = vmatpush1.bf16.msra.mxu1 %v10380_v7  ;;  %v568_v6 = vld [vmem:[#allocation2 + $0xd08] sm:$0xff]  ;;  %v10437_v7 = vcombine.high %v560_v62, %v564_v0  ;;  %v10485_v62 = vcombine.high %v608_v51, %v612_v54 }
 0x124   :  { %6449 = vmatprep.subr.bf16.mxu0 %v10387_v8  ;;  %6793 = vmatprep.subr.bf16.mxu1 %v10389_v12  ;;  %v572_v8 = vld [vmem:[#allocation2 + $0xd28] sm:$0xff]  ;;  %v575_v12 = vld [vmem:[#allocation2 + $0xd40] sm:$0xff] }
 0x125   :  { %v10444_v19 = vcombine.low %v568_v6, %v572_v8  ;;  %v10451_v20 = vcombine.high %v575_v12, %v579_v13 }
 0x127   :  { %6450 = vmatpush1.bf16.msra.mxu0 %v10386_v14  ;;  %6794 = vmatpush1.bf16.msra.mxu1 %v10388_v16  ;;  %v576_v14 = vld [vmem:[#allocation2 + $0xd48] sm:$0xff]  ;;  %v10445_v16 = vcombine.high %v568_v6, %v572_v8 }
 0x128   :  { %6451 = vmatprep.subr.bf16.mxu0 %v10395_v17  ;;  %6795 = vmatprep.subr.bf16.mxu1 %v10397_v21  ;;  %v580_v17 = vld [vmem:[#allocation2 + $0xd68] sm:$0xff]  ;;  %v583_v21 = vld [vmem:[#allocation2 + $0xd80] sm:$0xff] }
 0x129   :  { %v10453_v24 = vcombine.high %v576_v14, %v580_v17  ;;  %v10452_v28 = vcombine.low %v576_v14, %v580_v17  ;;  %v10459_v29 = vcombine.high %v583_v21, %v587_v22  ;;  %v10458_v36 = vcombine.low %v583_v21, %v587_v22  ;;  %v632_v14 = vld [vmem:[#allocation2 + $0xf08] sm:$0xff]  ;;  %v639_v21 = vld [vmem:[#allocation2 + $0xf40] sm:$0xff] }
 0x12a   :  { %v643_v22 = vld [vmem:[#allocation2 + $0xf60] sm:$0xff] }
 0x12b   :  { %6452 = vmatpush1.bf16.msra.mxu0 %v10394_v23  ;;  %6796 = vmatpush1.bf16.msra.mxu1 %v10396_v26  ;;  %v584_v23 = vld [vmem:[#allocation2 + $0xd88] sm:$0xff] }
 0x12c   :  { %6453 = vmatprep.subr.bf16.mxu0 %v10403_v27  ;;  %6797 = vmatprep.subr.bf16.mxu1 %v10405_v32  ;;  %v588_v26 = vld [vmem:[#allocation2 + $0xda8] sm:$0xff]  ;;  %v10450_v27 = vcombine.low %v575_v12, %v579_v13  ;;  %v595_v32 = vld [vmem:[#allocation2 + $0xde0] sm:$0xff] }
 0x12d   :  { %v10461_v34 = vcombine.high %v584_v23, %v588_v26  ;;  %v10460_v38 = vcombine.low %v584_v23, %v588_v26  ;;  %v10466_v45 = vcombine.low %v591_v31, %v595_v32  ;;  %v631_v12 = vld [vmem:[#allocation2 + $0xf00] sm:$0xff]  ;;  %v640_v23 = vld [vmem:[#allocation2 + $0xf48] sm:$0xff] }
 0x12e   :  { %v635_v13 = vld [vmem:[#allocation2 + $0xf20] sm:$0xff] }
 0x12f   :  { %6454 = vmatpush1.bf16.msra.mxu0 %v10402_v35  ;;  %6798 = vmatpush1.bf16.msra.mxu1 %v10404_v39  ;;  %v596_v35 = vld [vmem:[#allocation2 + $0xde8] sm:$0xff]  ;;  %v10467_v39 = vcombine.high %v591_v31, %v595_v32  ;;  %v10506_v26 = vcombine.low %v631_v12, %v635_v13  ;;  %v647_v31 = vld [vmem:[#allocation2 + $0xf80] sm:$0xff] }
 0x130   :  { %6466 = vmatprep.subr.bf16.mxu0 %v10411_v40  ;;  %6810 = vmatprep.subr.bf16.mxu1 %v10413_v44  ;;  %v599_v40 = vld [vmem:[#allocation2 + $0xe00] sm:$0xff]  ;;  %v10469_v43 = vcombine.high %v592_v33, %v596_v35  ;;  %v604_v44 = vld [vmem:[#allocation2 + $0xe28] sm:$0xff] }
 0x131   :  { %v10477_v52 = vcombine.high %v600_v42, %v604_v44  ;;  %v10474_v55 = vcombine.low %v599_v40, %v603_v41  ;;  %v651_v32 = vld [vmem:[#allocation2 + $0xfa0] sm:$0xff] }
 0x132   :  { %6456 = vmatmul.mubr.bf16.vlgmr.msra.gmra.mrb[0].mxu0 %v12317_v46  ;;  %6800 = vmatmul.mubr.bf16.vlgmr.msra.gmra.mrb[0].mxu1 %v12317_v46 }
 0x133   :  { %6467 = vmatpush1.bf16.msra.mxu0 %v10410_v47  ;;  %6811 = vmatpush1.bf16.msra.mxu1 %v10412_v48  ;;  %v10468_v47 = vcombine.low %v592_v33, %v596_v35  ;;  %v10475_v48 = vcombine.high %v599_v40, %v603_v41  ;;  %v648_v33 = vld [vmem:[#allocation2 + $0xf88] sm:$0xff]  ;;  %v10514_v35 = vcombine.low %v639_v21, %v643_v22  ;;  %v655_v40 = vld [vmem:[#allocation2 + $0xfc0] sm:$0xff] }
 0x134   :  { %6468 = vmatprep.subr.bf16.mxu0 %v10419_v49  ;;  %6812 = vmatprep.subr.bf16.mxu1 %v10421_v50  ;;  %v607_v49 = vld [vmem:[#allocation2 + $0xe40] sm:$0xff] }
 0x135   :  { %6498 = vmatprep.mubr.bf16.mxu0 %v12319_v53  ;;  %6842 = vmatprep.mubr.bf16.mxu1 %v12319_v53  ;;  %v611_v50 = vld [vmem:[#allocation2 + $0xe60] sm:$0xff] }
 0x136   :  { %v10482_v0 = vcombine.low %v607_v49, %v611_v50  ;;  %v659_v41 = vld [vmem:[#allocation2 + $0xfe0] sm:$0xff] }
 0x137   :  { %6469 = vmatpush1.bf16.msra.mxu0 %v10418_v56  ;;  %6813 = vmatpush1.bf16.msra.mxu1 %v10420_v57  ;;  %v10476_v56 = vcombine.low %v600_v42, %v604_v44  ;;  %v10483_v57 = vcombine.high %v607_v49, %v611_v50  ;;  %v656_v42 = vld [vmem:[#allocation2 + $0xfc8] sm:$0xff]  ;;  %v10522_v44 = vcombine.low %v647_v31, %v651_v32  ;;  %v663_v49 = vld [vmem:[#allocation2 + $0x1000] sm:$0xff] }
 0x138   :  { %6470 = vmatprep.subr.bf16.mxu0 %v10427_v59  ;;  %6814 = vmatprep.subr.bf16.mxu1 %v10429_v63  ;;  %v615_v59 = vld [vmem:[#allocation2 + $0xe80] sm:$0xff]  ;;  %v620_v63 = vld [vmem:[#allocation2 + $0xea8] sm:$0xff] }
 0x139   :  { %v10493_v6 = vcombine.high %v616_v61, %v620_v63  ;;  %v10490_v8 = vcombine.low %v615_v59, %v619_v60  ;;  %v667_v50 = vld [vmem:[#allocation2 + $0x1020] sm:$0xff] }
 0x13b   :  { %6471 = vmatpush1.bf16.msra.mxu0 %v10426_v1  ;;  %6815 = vmatpush1.bf16.msra.mxu1 %v10428_v2  ;;  %v10484_v1 = vcombine.low %v608_v51, %v612_v54  ;;  %v10491_v2 = vcombine.high %v615_v59, %v619_v60  ;;  %v664_v51 = vld [vmem:[#allocation2 + $0x1008] sm:$0xff]  ;;  %v10530_v54 = vcombine.low %v655_v40, %v659_v41 }
 0x13c   :  { %6472 = vmatprep.subr.bf16.mxu0 %v10435_v3  ;;  %6816 = vmatprep.subr.bf16.mxu1 %v10437_v7  ;;  %v623_v3 = vld [vmem:[#allocation2 + $0xec0] sm:$0xff]  ;;  %v628_v7 = vld [vmem:[#allocation2 + $0xee8] sm:$0xff]  ;;  %v10539_v59 = vcombine.high %v663_v49, %v667_v50 }
 0x13d   :  { %v10498_v17 = vcombine.low %v623_v3, %v627_v4 }
 0x13f   :  { %6473 = vmatpush1.bf16.msra.mxu0 %v10434_v9  ;;  %6817 = vmatpush1.bf16.msra.mxu1 %v10436_v10  ;;  %v10492_v9 = vcombine.low %v616_v61, %v620_v63  ;;  %v10499_v10 = vcombine.high %v623_v3, %v627_v4  ;;  %v671_v61 = vld [vmem:[#allocation2 + $0x1040] sm:$0xff]  ;;  %v672_v63 = vld [vmem:[#allocation2 + $0x1048] sm:$0xff]  ;;  %v10538_v4 = vcombine.low %v663_v49, %v667_v50 }
 0x140   :  { %6474 = vmatprep.subr.bf16.mxu0 %v10443_v11  ;;  %6818 = vmatprep.subr.bf16.mxu1 %v10445_v16  ;;  %v10501_v11 = vcombine.high %v624_v5, %v628_v7  ;;  %v636_v16 = vld [vmem:[#allocation2 + $0xf28] sm:$0xff] }
 0x141   :  { %v128_v3 = vld [vmem:[%s12496_s0 + $0xc8] sm:$0xff] }
 0x142   :  { %v716_v49 = vld [vmem:[#allocation2 + $0x11a8] sm:$0xff] }
 0x143   :  { %6475 = vmatpush1.bf16.msra.mxu0 %v10442_v18  ;;  %6819 = vmatpush1.bf16.msra.mxu1 %v10444_v19  ;;  %v10500_v18 = vcombine.low %v624_v5, %v628_v7  ;;  %v10507_v19 = vcombine.high %v631_v12, %v635_v13  ;;  %v684_v12 = vld [vmem:[#allocation2 + $0x10a8] sm:$0xff] }
 0x144   :  { %6476 = vmatprep.subr.bf16.mxu0 %v10451_v20  ;;  %6820 = vmatprep.subr.bf16.mxu1 %v10453_v24  ;;  %v10509_v20 = vcombine.high %v632_v14, %v636_v16  ;;  %v644_v24 = vld [vmem:[#allocation2 + $0xf68] sm:$0xff] }
 0x147   :  { %6477 = vmatpush1.bf16.msra.mxu0 %v10450_v27  ;;  %6821 = vmatpush1.bf16.msra.mxu1 %v10452_v28  ;;  %v10508_v27 = vcombine.low %v632_v14, %v636_v16  ;;  %v10515_v28 = vcombine.high %v639_v21, %v643_v22  ;;  %v692_v21 = vld [vmem:[#allocation2 + $0x10e8] sm:$0xff] }
 0x148   :  { %6478 = vmatprep.subr.bf16.mxu0 %v10459_v29  ;;  %6822 = vmatprep.subr.bf16.mxu1 %v10461_v34  ;;  %v10517_v29 = vcombine.high %v640_v23, %v644_v24  ;;  %v652_v34 = vld [vmem:[#allocation2 + $0xfa8] sm:$0xff] }
 0x14b   :  { %6479 = vmatpush1.bf16.msra.mxu0 %v10458_v36  ;;  %6823 = vmatpush1.bf16.msra.mxu1 %v10460_v38  ;;  %v10516_v36 = vcombine.low %v640_v23, %v644_v24  ;;  %v10523_v38 = vcombine.high %v647_v31, %v651_v32  ;;  %v700_v31 = vld [vmem:[#allocation2 + $0x1128] sm:$0xff] }
 0x14c   :  { %6480 = vmatprep.subr.bf16.mxu0 %v10467_v39  ;;  %6824 = vmatprep.subr.bf16.mxu1 %v10469_v43  ;;  %v10525_v39 = vcombine.high %v648_v33, %v652_v34  ;;  %v660_v43 = vld [vmem:[#allocation2 + $0xfe8] sm:$0xff] }
 0x14f   :  { %6481 = vmatpush1.bf16.msra.mxu0 %v10466_v45  ;;  %6825 = vmatpush1.bf16.msra.mxu1 %v10468_v47  ;;  %v10524_v45 = vcombine.low %v648_v33, %v652_v34  ;;  %v10531_v47 = vcombine.high %v655_v40, %v659_v41  ;;  %v708_v40 = vld [vmem:[#allocation2 + $0x1168] sm:$0xff] }
 0x150   :  { %6482 = vmatprep.subr.bf16.mxu0 %v10475_v48  ;;  %6826 = vmatprep.subr.bf16.mxu1 %v10477_v52  ;;  %v10533_v48 = vcombine.high %v656_v42, %v660_v43  ;;  %v668_v52 = vld [vmem:[#allocation2 + $0x1028] sm:$0xff] }
 0x151   :  { %v10541_v60 = vcombine.high %v664_v51, %v668_v52  ;;  %v10540_v5 = vcombine.low %v664_v51, %v668_v52 }
 0x153   :  { %6483 = vmatpush1.bf16.msra.mxu0 %v10474_v55  ;;  %6827 = vmatpush1.bf16.msra.mxu1 %v10476_v56  ;;  %v109_v55 = vld [vmem:[%s12496_s0 + $0x30] sm:$0xff] }
 0x154   :  { %6484 = vmatprep.subr.bf16.mxu0 %v10483_v57  ;;  %6828 = vmatprep.subr.bf16.mxu1 %v10485_v62  ;;  %v125_v56 = vld [vmem:[%s12496_s0 + $0xb0] sm:$0xff]  ;;  %v10532_v57 = vcombine.low %v656_v42, %v660_v43  ;;  %v675_v62 = vld [vmem:[#allocation2 + $0x1060] sm:$0xff] }
 0x155   :  { %v10546_v13 = vcombine.low %v671_v61, %v675_v62 }
 0x157   :  { %6485 = vmatpush1.bf16.msra.mxu0 %v10482_v0  ;;  %6829 = vmatpush1.bf16.msra.mxu1 %v10484_v1  ;;  %v12331_v0 = vpack.c.bf16 %v125_v56, %v109_v55  ;;  %v676_v1 = vld [vmem:[#allocation2 + $0x1068] sm:$0xff]  ;;  %v719_v55 = vld [vmem:[#allocation2 + $0x11c0] sm:$0xff] }
 0x158   :  { %6486 = vmatprep.subr.bf16.mxu0 %v10491_v2  ;;  %6830 = vmatprep.subr.bf16.mxu1 %v10493_v6  ;;  %v112_v2 = vld [vmem:[%s12496_s0 + $0x48] sm:$0xff]  ;;  %v10547_v6 = vcombine.high %v671_v61, %v675_v62  ;;  %v10549_v7 = vcombine.high %v672_v63, %v676_v1  ;;  %v10548_v14 = vcombine.low %v672_v63, %v676_v1  ;;  %v723_v56 = vld [vmem:[#allocation2 + $0x11e0] sm:$0xff] }
 0x159   :  { %v10595_v62 = vcombine.high %v719_v55, %v723_v56  ;;  %v727_v1 = vld [vmem:[#allocation2 + $0x1200] sm:$0xff] }
 0x15b   :  { %6487 = vmatpush1.bf16.msra.mxu0 %v10490_v8  ;;  %6831 = vmatpush1.bf16.msra.mxu1 %v10492_v9  ;;  %v679_v8 = vld [vmem:[#allocation2 + $0x1080] sm:$0xff] }
 0x15c   :  { %6488 = vmatprep.subr.bf16.mxu0 %v10499_v10  ;;  %6832 = vmatprep.subr.bf16.mxu1 %v10501_v11  ;;  %v683_v9 = vld [vmem:[#allocation2 + $0x10a0] sm:$0xff]  ;;  %v12339_v10 = vpack.c.bf16 %v128_v3, %v112_v2  ;;  %v680_v11 = vld [vmem:[#allocation2 + $0x1088] sm:$0xff] }
 0x15d   :  { %v10555_v16 = vcombine.high %v679_v8, %v683_v9  ;;  %v10554_v22 = vcombine.low %v679_v8, %v683_v9  ;;  %v10556_v23 = vcombine.low %v680_v11, %v684_v12  ;;  %v731_v2 = vld [vmem:[#allocation2 + $0x1220] sm:$0xff]  ;;  %v728_v3 = vld [vmem:[#allocation2 + $0x1208] sm:$0xff] }
 0x15e   :  { %v735_v9 = vld [vmem:[#allocation2 + $0x1240] sm:$0xff] }
 0x15f   :  { %6489 = vmatpush1.bf16.msra.mxu0 %v10498_v17  ;;  %6833 = vmatpush1.bf16.msra.mxu1 %v10500_v18  ;;  %v10557_v17 = vcombine.high %v680_v11, %v684_v12  ;;  %v687_v18 = vld [vmem:[#allocation2 + $0x10c0] sm:$0xff]  ;;  %v736_v12 = vld [vmem:[#allocation2 + $0x1248] sm:$0xff] }
 0x160   :  { %6490 = vmatprep.subr.bf16.mxu0 %v10507_v19  ;;  %6834 = vmatprep.subr.bf16.mxu1 %v10509_v20  ;;  %v691_v19 = vld [vmem:[#allocation2 + $0x10e0] sm:$0xff]  ;;  %v688_v20 = vld [vmem:[#allocation2 + $0x10c8] sm:$0xff] }
 0x161   :  { %v10563_v24 = vcombine.high %v687_v18, %v691_v19  ;;  %v10562_v32 = vcombine.low %v687_v18, %v691_v19  ;;  %v10564_v33 = vcombine.low %v688_v20, %v692_v21  ;;  %v739_v11 = vld [vmem:[#allocation2 + $0x1260] sm:$0xff] }
 0x162   :  { %v743_v19 = vld [vmem:[#allocation2 + $0x1280] sm:$0xff] }
 0x163   :  { %6491 = vmatpush1.bf16.msra.mxu0 %v10506_v26  ;;  %6835 = vmatpush1.bf16.msra.mxu1 %v10508_v27  ;;  %v10565_v26 = vcombine.high %v688_v20, %v692_v21  ;;  %v695_v27 = vld [vmem:[#allocation2 + $0x1100] sm:$0xff]  ;;  %v744_v21 = vld [vmem:[#allocation2 + $0x1288] sm:$0xff] }
 0x164   :  { %6492 = vmatprep.subr.bf16.mxu0 %v10515_v28  ;;  %6836 = vmatprep.subr.bf16.mxu1 %v10517_v29  ;;  %v699_v28 = vld [vmem:[#allocation2 + $0x1120] sm:$0xff]  ;;  %v696_v29 = vld [vmem:[#allocation2 + $0x1108] sm:$0xff] }
 0x165   :  { %v10571_v34 = vcombine.high %v695_v27, %v699_v28  ;;  %v10570_v41 = vcombine.low %v695_v27, %v699_v28  ;;  %v10572_v42 = vcombine.low %v696_v29, %v700_v31  ;;  %v747_v20 = vld [vmem:[#allocation2 + $0x12a0] sm:$0xff] }
 0x166   :  { %v751_v28 = vld [vmem:[#allocation2 + $0x12c0] sm:$0xff] }
 0x167   :  { %6493 = vmatpush1.bf16.msra.mxu0 %v10514_v35  ;;  %6837 = vmatpush1.bf16.msra.mxu1 %v10516_v36  ;;  %v10573_v35 = vcombine.high %v696_v29, %v700_v31  ;;  %v703_v36 = vld [vmem:[#allocation2 + $0x1140] sm:$0xff]  ;;  %v752_v31 = vld [vmem:[#allocation2 + $0x12c8] sm:$0xff] }
 0x168   :  { %6494 = vmatprep.subr.bf16.mxu0 %v10523_v38  ;;  %6838 = vmatprep.subr.bf16.mxu1 %v10525_v39  ;;  %v707_v38 = vld [vmem:[#allocation2 + $0x1160] sm:$0xff]  ;;  %v704_v39 = vld [vmem:[#allocation2 + $0x1148] sm:$0xff] }
 0x169   :  { %v10579_v43 = vcombine.high %v703_v36, %v707_v38  ;;  %v10578_v50 = vcombine.low %v703_v36, %v707_v38  ;;  %v10580_v51 = vcombine.low %v704_v39, %v708_v40  ;;  %v755_v29 = vld [vmem:[#allocation2 + $0x12e0] sm:$0xff] }
 0x16a   :  { %v759_v38 = vld [vmem:[#allocation2 + $0x1300] sm:$0xff] }
 0x16b   :  { %6495 = vmatpush1.bf16.msra.mxu0 %v10522_v44  ;;  %6839 = vmatpush1.bf16.msra.mxu1 %v10524_v45  ;;  %v10581_v44 = vcombine.high %v704_v39, %v708_v40  ;;  %v711_v45 = vld [vmem:[#allocation2 + $0x1180] sm:$0xff]  ;;  %v760_v40 = vld [vmem:[#allocation2 + $0x1308] sm:$0xff] }
 0x16c   :  { %6496 = vmatprep.subr.bf16.mxu0 %v10531_v47  ;;  %6840 = vmatprep.subr.bf16.mxu1 %v10533_v48  ;;  %v715_v47 = vld [vmem:[#allocation2 + $0x11a0] sm:$0xff]  ;;  %v712_v48 = vld [vmem:[#allocation2 + $0x1188] sm:$0xff] }
 0x16d   :  { %v10587_v52 = vcombine.high %v711_v45, %v715_v47  ;;  %v10588_v61 = vcombine.low %v712_v48, %v716_v49  ;;  %v763_v39 = vld [vmem:[#allocation2 + $0x1320] sm:$0xff] }
 0x16f   :  { %6497 = vmatpush1.bf16.msra.mxu0 %v10530_v54  ;;  %6841 = vmatpush1.bf16.msra.mxu1 %v10532_v57  ;;  %v10589_v54 = vcombine.high %v712_v48, %v716_v49  ;;  %v720_v57 = vld [vmem:[#allocation2 + $0x11c8] sm:$0xff]  ;;  %v771_v48 = vld [vmem:[#allocation2 + $0x1360] sm:$0xff] }
 0x170   :  { %6509 = vmatprep.subr.bf16.mxu0 %v10539_v59  ;;  %6853 = vmatprep.subr.bf16.mxu1 %v10541_v60  ;;  %v724_v59 = vld [vmem:[#allocation2 + $0x11e8] sm:$0xff]  ;;  %v10586_v60 = vcombine.low %v711_v45, %v715_v47  ;;  %v767_v47 = vld [vmem:[#allocation2 + $0x1340] sm:$0xff] }
 0x171   :  { %v10597_v63 = vcombine.high %v720_v57, %v724_v59  ;;  %v768_v49 = vld [vmem:[#allocation2 + $0x1348] sm:$0xff] }
 0x172   :  { %6499 = vmatmul.mubr.bf16.vlgmr.msra.gmra.mrb[0].mxu0 %v12331_v0  ;;  %6843 = vmatmul.mubr.bf16.vlgmr.msra.gmra.mrb[0].mxu1 %v12331_v0 }
 0x173   :  { %6510 = vmatpush1.bf16.msra.mxu0 %v10538_v4  ;;  %6854 = vmatpush1.bf16.msra.mxu1 %v10540_v5  ;;  %v732_v4 = vld [vmem:[#allocation2 + $0x1228] sm:$0xff]  ;;  %v10594_v5 = vcombine.low %v719_v55, %v723_v56  ;;  %v775_v56 = vld [vmem:[#allocation2 + $0x1380] sm:$0xff] }
 0x174   :  { %6511 = vmatprep.subr.bf16.mxu0 %v10547_v6  ;;  %6855 = vmatprep.subr.bf16.mxu1 %v10549_v7  ;;  %v10596_v6 = vcombine.low %v720_v57, %v724_v59  ;;  %v10603_v7 = vcombine.high %v727_v1, %v731_v2  ;;  %v10605_v8 = vcombine.high %v728_v3, %v732_v4  ;;  %v779_v57 = vld [vmem:[#allocation2 + $0x13a0] sm:$0xff]  ;;  %v776_v59 = vld [vmem:[#allocation2 + $0x1388] sm:$0xff] }
 0x175   :  { %6541 = vmatprep.mubr.bf16.mxu0 %v12339_v10  ;;  %6885 = vmatprep.mubr.bf16.mxu1 %v12339_v10 }
 0x177   :  { %6512 = vmatpush1.bf16.msra.mxu0 %v10546_v13  ;;  %6856 = vmatpush1.bf16.msra.mxu1 %v10548_v14  ;;  %v740_v13 = vld [vmem:[#allocation2 + $0x1268] sm:$0xff]  ;;  %v10602_v14 = vcombine.low %v727_v1, %v731_v2  ;;  %v783_v2 = vld [vmem:[#allocation2 + $0x13c0] sm:$0xff] }
 0x178   :  { %6513 = vmatprep.subr.bf16.mxu0 %v10555_v16  ;;  %6857 = vmatprep.subr.bf16.mxu1 %v10557_v17  ;;  %v10604_v16 = vcombine.low %v728_v3, %v732_v4  ;;  %v10611_v17 = vcombine.high %v735_v9, %v739_v11  ;;  %v10613_v18 = vcombine.high %v736_v12, %v740_v13  ;;  %v787_v3 = vld [vmem:[#allocation2 + $0x13e0] sm:$0xff]  ;;  %v784_v4 = vld [vmem:[#allocation2 + $0x13c8] sm:$0xff] }
 0x17b   :  { %6514 = vmatpush1.bf16.msra.mxu0 %v10554_v22  ;;  %6858 = vmatpush1.bf16.msra.mxu1 %v10556_v23  ;;  %v748_v22 = vld [vmem:[#allocation2 + $0x12a8] sm:$0xff]  ;;  %v10610_v23 = vcombine.low %v735_v9, %v739_v11  ;;  %v791_v11 = vld [vmem:[#allocation2 + $0x1400] sm:$0xff] }
 0x17c   :  { %6515 = vmatprep.subr.bf16.mxu0 %v10563_v24  ;;  %6859 = vmatprep.subr.bf16.mxu1 %v10565_v26  ;;  %v10612_v24 = vcombine.low %v736_v12, %v740_v13  ;;  %v10619_v26 = vcombine.high %v743_v19, %v747_v20  ;;  %v10621_v27 = vcombine.high %v744_v21, %v748_v22  ;;  %v795_v12 = vld [vmem:[#allocation2 + $0x1420] sm:$0xff]  ;;  %v792_v13 = vld [vmem:[#allocation2 + $0x1408] sm:$0xff] }
 0x17f   :  { %6516 = vmatpush1.bf16.msra.mxu0 %v10562_v32  ;;  %6860 = vmatpush1.bf16.msra.mxu1 %v10564_v33  ;;  %v756_v32 = vld [vmem:[#allocation2 + $0x12e8] sm:$0xff]  ;;  %v10618_v33 = vcombine.low %v743_v19, %v747_v20  ;;  %v10667_v20 = vcombine.high %v791_v11, %v795_v12 }
 0x180   :  { %6517 = vmatprep.subr.bf16.mxu0 %v10571_v34  ;;  %6861 = vmatprep.subr.bf16.mxu1 %v10573_v35  ;;  %v10620_v34 = vcombine.low %v744_v21, %v748_v22  ;;  %v10627_v35 = vcombine.high %v751_v28, %v755_v29  ;;  %v10629_v36 = vcombine.high %v752_v31, %v756_v32  ;;  %v799_v22 = vld [vmem:[#allocation2 + $0x1440] sm:$0xff] }
 0x183   :  { %6518 = vmatpush1.bf16.msra.mxu0 %v10570_v41  ;;  %6862 = vmatpush1.bf16.msra.mxu1 %v10572_v42  ;;  %v764_v41 = vld [vmem:[#allocation2 + $0x1328] sm:$0xff]  ;;  %v10626_v42 = vcombine.low %v751_v28, %v755_v29  ;;  %v114_v28 = vld [vmem:[%s12496_s0 + $0x58] sm:$0xff] }
 0x184   :  { %6519 = vmatprep.subr.bf16.mxu0 %v10579_v43  ;;  %6863 = vmatprep.subr.bf16.mxu1 %v10581_v44  ;;  %v10628_v43 = vcombine.low %v752_v31, %v756_v32  ;;  %v10635_v44 = vcombine.high %v759_v38, %v763_v39  ;;  %v10637_v45 = vcombine.high %v760_v40, %v764_v41  ;;  %v130_v29 = vld [vmem:[%s12496_s0 + $0xd8] sm:$0xff] }
 0x185   :  { %v10666_v31 = vcombine.low %v791_v11, %v795_v12  ;;  %v843_v11 = vld [vmem:[#allocation2 + $0x15a0] sm:$0xff]  ;;  %v840_v12 = vld [vmem:[#allocation2 + $0x1588] sm:$0xff] }
 0x187   :  { %6520 = vmatpush1.bf16.msra.mxu0 %v10578_v50  ;;  %6864 = vmatpush1.bf16.msra.mxu1 %v10580_v51  ;;  %v772_v50 = vld [vmem:[#allocation2 + $0x1368] sm:$0xff]  ;;  %v10634_v51 = vcombine.low %v759_v38, %v763_v39  ;;  %v12359_v38 = vpack.c.bf16 %v130_v29, %v114_v28  ;;  %v855_v29 = vld [vmem:[#allocation2 + $0x1600] sm:$0xff] }
 0x188   :  { %6521 = vmatprep.subr.bf16.mxu0 %v10587_v52  ;;  %6865 = vmatprep.subr.bf16.mxu1 %v10589_v54  ;;  %v10636_v52 = vcombine.low %v760_v40, %v764_v41  ;;  %v10643_v54 = vcombine.high %v767_v47, %v771_v48  ;;  %v10645_v55 = vcombine.high %v768_v49, %v772_v50  ;;  %v808_v39 = vld [vmem:[#allocation2 + $0x1488] sm:$0xff] }
 0x189   :  { %v812_v40 = vld [vmem:[#allocation2 + $0x14a8] sm:$0xff] }
 0x18b   :  { %6522 = vmatpush1.bf16.msra.mxu0 %v10586_v60  ;;  %6866 = vmatpush1.bf16.msra.mxu1 %v10588_v61  ;;  %v780_v60 = vld [vmem:[#allocation2 + $0x13a8] sm:$0xff]  ;;  %v10642_v61 = vcombine.low %v767_v47, %v771_v48  ;;  %v819_v47 = vld [vmem:[#allocation2 + $0x14e0] sm:$0xff] }
 0x18c   :  { %6523 = vmatprep.subr.bf16.mxu0 %v10595_v62  ;;  %6867 = vmatprep.subr.bf16.mxu1 %v10597_v63  ;;  %v10644_v62 = vcombine.low %v768_v49, %v772_v50  ;;  %v10651_v63 = vcombine.high %v775_v56, %v779_v57  ;;  %v10653_v1 = vcombine.high %v776_v59, %v780_v60  ;;  %v816_v48 = vld [vmem:[#allocation2 + $0x14c8] sm:$0xff] }
 0x18d   :  { %v820_v49 = vld [vmem:[#allocation2 + $0x14e8] sm:$0xff] }
 0x18f   :  { %6524 = vmatpush1.bf16.msra.mxu0 %v10594_v5  ;;  %6868 = vmatpush1.bf16.msra.mxu1 %v10596_v6  ;;  %v788_v5 = vld [vmem:[#allocation2 + $0x13e8] sm:$0xff]  ;;  %v10650_v6 = vcombine.low %v775_v56, %v779_v57  ;;  %v827_v56 = vld [vmem:[#allocation2 + $0x1520] sm:$0xff] }
 0x190   :  { %6525 = vmatprep.subr.bf16.mxu0 %v10603_v7  ;;  %6869 = vmatprep.subr.bf16.mxu1 %v10605_v8  ;;  %v10652_v7 = vcombine.low %v776_v59, %v780_v60  ;;  %v10659_v8 = vcombine.high %v783_v2, %v787_v3  ;;  %v10661_v9 = vcombine.high %v784_v4, %v788_v5  ;;  %v824_v57 = vld [vmem:[#allocation2 + $0x1508] sm:$0xff] }
 0x191   :  { %v10660_v19 = vcombine.low %v784_v4, %v788_v5  ;;  %v828_v59 = vld [vmem:[#allocation2 + $0x1528] sm:$0xff] }
 0x192   :  { %v836_v4 = vld [vmem:[#allocation2 + $0x1568] sm:$0xff] }
 0x193   :  { %6526 = vmatpush1.bf16.msra.mxu0 %v10602_v14  ;;  %6870 = vmatpush1.bf16.msra.mxu1 %v10604_v16  ;;  %v796_v14 = vld [vmem:[#allocation2 + $0x1428] sm:$0xff]  ;;  %v10658_v16 = vcombine.low %v783_v2, %v787_v3  ;;  %v835_v2 = vld [vmem:[#allocation2 + $0x1560] sm:$0xff] }
 0x194   :  { %6527 = vmatprep.subr.bf16.mxu0 %v10611_v17  ;;  %6871 = vmatprep.subr.bf16.mxu1 %v10613_v18  ;;  %v111_v17 = vld [vmem:[%s12496_s0 + $0x40] sm:$0xff]  ;;  %v10669_v21 = vcombine.high %v792_v13, %v796_v14  ;;  %v10668_v32 = vcombine.low %v792_v13, %v796_v14  ;;  %v832_v3 = vld [vmem:[#allocation2 + $0x1548] sm:$0xff] }
 0x195   :  { %v127_v18 = vld [vmem:[%s12496_s0 + $0xc0] sm:$0xff]  ;;  %v844_v13 = vld [vmem:[#allocation2 + $0x15a8] sm:$0xff] }
 0x197   :  { %6528 = vmatpush1.bf16.msra.mxu0 %v10610_v23  ;;  %6872 = vmatpush1.bf16.msra.mxu1 %v10612_v24  ;;  %v803_v23 = vld [vmem:[#allocation2 + $0x1460] sm:$0xff]  ;;  %v800_v24 = vld [vmem:[#allocation2 + $0x1448] sm:$0xff] }
 0x198   :  { %6529 = vmatprep.subr.bf16.mxu0 %v10619_v26  ;;  %6873 = vmatprep.subr.bf16.mxu1 %v10621_v27  ;;  %v12351_v26 = vpack.c.bf16 %v127_v18, %v111_v17  ;;  %v804_v27 = vld [vmem:[#allocation2 + $0x1468] sm:$0xff]  ;;  %v10674_v41 = vcombine.low %v799_v22, %v803_v23  ;;  %v10717_v18 = vcombine.high %v840_v12, %v844_v13 }
 0x19b   :  { %6530 = vmatpush1.bf16.msra.mxu0 %v10618_v33  ;;  %6874 = vmatpush1.bf16.msra.mxu1 %v10620_v34  ;;  %v10675_v33 = vcombine.high %v799_v22, %v803_v23  ;;  %v10677_v34 = vcombine.high %v800_v24, %v804_v27  ;;  %v852_v22 = vld [vmem:[#allocation2 + $0x15e8] sm:$0xff] }
 0x19c   :  { %6531 = vmatprep.subr.bf16.mxu0 %v10627_v35  ;;  %6875 = vmatprep.subr.bf16.mxu1 %v10629_v36  ;;  %v807_v35 = vld [vmem:[#allocation2 + $0x1480] sm:$0xff] }
 0x19d   :  { %v811_v36 = vld [vmem:[#allocation2 + $0x14a0] sm:$0xff] }
 0x19e   :  { %v10682_v50 = vcombine.low %v807_v35, %v811_v36 }
 0x19f   :  { %6532 = vmatpush1.bf16.msra.mxu0 %v10626_v42  ;;  %6876 = vmatpush1.bf16.msra.mxu1 %v10628_v43  ;;  %v10676_v42 = vcombine.low %v800_v24, %v804_v27  ;;  %v10683_v43 = vcombine.high %v807_v35, %v811_v36  ;;  %v10716_v24 = vcombine.low %v840_v12, %v844_v13  ;;  %v895_v13 = vld [vmem:[#allocation2 + $0x1740] sm:$0xff] }
 0x1a0   :  { %6533 = vmatprep.subr.bf16.mxu0 %v10635_v44  ;;  %6877 = vmatprep.subr.bf16.mxu1 %v10637_v45  ;;  %v10685_v44 = vcombine.high %v808_v39, %v812_v40  ;;  %v815_v45 = vld [vmem:[#allocation2 + $0x14c0] sm:$0xff] }
 0x1a1   :  { %v10690_v60 = vcombine.low %v815_v45, %v819_v47 }
 0x1a3   :  { %6534 = vmatpush1.bf16.msra.mxu0 %v10634_v51  ;;  %6878 = vmatpush1.bf16.msra.mxu1 %v10636_v52  ;;  %v10684_v51 = vcombine.low %v808_v39, %v812_v40  ;;  %v10691_v52 = vcombine.high %v815_v45, %v819_v47  ;;  %v863_v40 = vld [vmem:[#allocation2 + $0x1640] sm:$0xff] }
 0x1a4   :  { %6535 = vmatprep.subr.bf16.mxu0 %v10643_v54  ;;  %6879 = vmatprep.subr.bf16.mxu1 %v10645_v55  ;;  %v10693_v54 = vcombine.high %v816_v48, %v820_v49  ;;  %v823_v55 = vld [vmem:[#allocation2 + $0x1500] sm:$0xff] }
 0x1a5   :  { %v10698_v5 = vcombine.low %v823_v55, %v827_v56 }
 0x1a7   :  { %6536 = vmatpush1.bf16.msra.mxu0 %v10642_v61  ;;  %6880 = vmatpush1.bf16.msra.mxu1 %v10644_v62  ;;  %v10692_v61 = vcombine.low %v816_v48, %v820_v49  ;;  %v10699_v62 = vcombine.high %v823_v55, %v827_v56  ;;  %v871_v49 = vld [vmem:[#allocation2 + $0x1680] sm:$0xff] }
 0x1a8   :  { %6537 = vmatprep.subr.bf16.mxu0 %v10651_v63  ;;  %6881 = vmatprep.subr.bf16.mxu1 %v10653_v1  ;;  %v10701_v63 = vcombine.high %v824_v57, %v828_v59  ;;  %v831_v1 = vld [vmem:[#allocation2 + $0x1540] sm:$0xff] }
 0x1a9   :  { %v10706_v14 = vcombine.low %v831_v1, %v835_v2 }
 0x1ab   :  { %6538 = vmatpush1.bf16.msra.mxu0 %v10650_v6  ;;  %6882 = vmatpush1.bf16.msra.mxu1 %v10652_v7  ;;  %v10700_v6 = vcombine.low %v824_v57, %v828_v59  ;;  %v10707_v7 = vcombine.high %v831_v1, %v835_v2  ;;  %v879_v59 = vld [vmem:[#allocation2 + $0x16c0] sm:$0xff] }
 0x1ac   :  { %6539 = vmatprep.subr.bf16.mxu0 %v10659_v8  ;;  %6883 = vmatprep.subr.bf16.mxu1 %v10661_v9  ;;  %v10709_v8 = vcombine.high %v832_v3, %v836_v4  ;;  %v839_v9 = vld [vmem:[#allocation2 + $0x1580] sm:$0xff] }
 0x1ad   :  { %v10715_v17 = vcombine.high %v839_v9, %v843_v11  ;;  %v10714_v23 = vcombine.low %v839_v9, %v843_v11 }
 0x1af   :  { %6540 = vmatpush1.bf16.msra.mxu0 %v10658_v16  ;;  %6884 = vmatpush1.bf16.msra.mxu1 %v10660_v19  ;;  %v10708_v16 = vcombine.low %v832_v3, %v836_v4  ;;  %v847_v19 = vld [vmem:[#allocation2 + $0x15c0] sm:$0xff] }
 0x1b0   :  { %6552 = vmatprep.subr.bf16.mxu0 %v10667_v20  ;;  %6896 = vmatprep.subr.bf16.mxu1 %v10669_v21  ;;  %v851_v20 = vld [vmem:[#allocation2 + $0x15e0] sm:$0xff]  ;;  %v848_v21 = vld [vmem:[#allocation2 + $0x15c8] sm:$0xff] }
 0x1b1   :  { %v10723_v27 = vcombine.high %v847_v19, %v851_v20  ;;  %v10725_v28 = vcombine.high %v848_v21, %v852_v22  ;;  %v10724_v35 = vcombine.low %v848_v21, %v852_v22  ;;  %v887_v4 = vld [vmem:[#allocation2 + $0x1700] sm:$0xff] }
 0x1b2   :  { %6542 = vmatmul.mubr.bf16.vlgmr.msra.gmra.mrb[0].mxu0 %v12351_v26  ;;  %6886 = vmatmul.mubr.bf16.vlgmr.msra.gmra.mrb[0].mxu1 %v12351_v26  ;;  %v903_v22 = vld [vmem:[#allocation2 + $0x1780] sm:$0xff] }
 0x1b3   :  { %6553 = vmatpush1.bf16.msra.mxu0 %v10666_v31  ;;  %6897 = vmatpush1.bf16.msra.mxu1 %v10668_v32  ;;  %v859_v31 = vld [vmem:[#allocation2 + $0x1620] sm:$0xff]  ;;  %v856_v32 = vld [vmem:[#allocation2 + $0x1608] sm:$0xff] }
 0x1b4   :  { %6554 = vmatprep.subr.bf16.mxu0 %v10675_v33  ;;  %6898 = vmatprep.subr.bf16.mxu1 %v10677_v34  ;;  %v860_v33 = vld [vmem:[#allocation2 + $0x1628] sm:$0xff]  ;;  %v10722_v34 = vcombine.low %v847_v19, %v851_v20  ;;  %v10731_v36 = vcombine.high %v855_v29, %v859_v31 }
 0x1b5   :  { %6584 = vmatprep.mubr.bf16.mxu0 %v12359_v38  ;;  %6928 = vmatprep.mubr.bf16.mxu1 %v12359_v38  ;;  %v10733_v39 = vcombine.high %v856_v32, %v860_v33  ;;  %v10732_v45 = vcombine.low %v856_v32, %v860_v33  ;;  %v911_v33 = vld [vmem:[#allocation2 + $0x17c0] sm:$0xff] }
 0x1b7   :  { %6555 = vmatpush1.bf16.msra.mxu0 %v10674_v41  ;;  %6899 = vmatpush1.bf16.msra.mxu1 %v10676_v42  ;;  %v867_v41 = vld [vmem:[#allocation2 + $0x1660] sm:$0xff]  ;;  %v864_v42 = vld [vmem:[#allocation2 + $0x1648] sm:$0xff] }
 0x1b8   :  { %6556 = vmatprep.subr.bf16.mxu0 %v10683_v43  ;;  %6900 = vmatprep.subr.bf16.mxu1 %v10685_v44  ;;  %v868_v43 = vld [vmem:[#allocation2 + $0x1668] sm:$0xff]  ;;  %v10730_v44 = vcombine.low %v855_v29, %v859_v31  ;;  %v10739_v47 = vcombine.high %v863_v40, %v867_v41 }
 0x1b9   :  { %v10741_v48 = vcombine.high %v864_v42, %v868_v43  ;;  %v10740_v55 = vcombine.low %v864_v42, %v868_v43  ;;  %v919_v43 = vld [vmem:[#allocation2 + $0x1800] sm:$0xff] }
 0x1bb   :  { %6557 = vmatpush1.bf16.msra.mxu0 %v10682_v50  ;;  %6901 = vmatpush1.bf16.msra.mxu1 %v10684_v51  ;;  %v875_v50 = vld [vmem:[#allocation2 + $0x16a0] sm:$0xff]  ;;  %v872_v51 = vld [vmem:[#allocation2 + $0x1688] sm:$0xff] }
 0x1bc   :  { %6558 = vmatprep.subr.bf16.mxu0 %v10691_v52  ;;  %6902 = vmatprep.subr.bf16.mxu1 %v10693_v54  ;;  %v876_v52 = vld [vmem:[#allocation2 + $0x16a8] sm:$0xff]  ;;  %v10738_v54 = vcombine.low %v863_v40, %v867_v41  ;;  %v10747_v56 = vcombine.high %v871_v49, %v875_v50 }
 0x1bd   :  { %v10749_v57 = vcombine.high %v872_v51, %v876_v52  ;;  %v10748_v1 = vcombine.low %v872_v51, %v876_v52 }
 0x1bf   :  { %6559 = vmatpush1.bf16.msra.mxu0 %v10690_v60  ;;  %6903 = vmatpush1.bf16.msra.mxu1 %v10692_v61  ;;  %v883_v60 = vld [vmem:[#allocation2 + $0x16e0] sm:$0xff]  ;;  %v880_v61 = vld [vmem:[#allocation2 + $0x16c8] sm:$0xff] }
 0x1c0   :  { %6560 = vmatprep.subr.bf16.mxu0 %v10699_v62  ;;  %6904 = vmatprep.subr.bf16.mxu1 %v10701_v63  ;;  %v884_v62 = vld [vmem:[#allocation2 + $0x16e8] sm:$0xff]  ;;  %v10746_v63 = vcombine.low %v871_v49, %v875_v50  ;;  %v10755_v2 = vcombine.high %v879_v59, %v883_v60  ;;  %v113_v49 = vld [vmem:[%s12496_s0 + $0x50] sm:$0xff] }
 0x1c1   :  { %v10757_v3 = vcombine.high %v880_v61, %v884_v62  ;;  %v10756_v9 = vcombine.low %v880_v61, %v884_v62  ;;  %v129_v50 = vld [vmem:[%s12496_s0 + $0xd0] sm:$0xff]  ;;  %v116_v61 = vld [vmem:[%s12496_s0 + $0x68] sm:$0xff] }
 0x1c2   :  { %v132_v62 = vld [vmem:[%s12496_s0 + $0xe8] sm:$0xff] }
 0x1c3   :  { %6561 = vmatpush1.bf16.msra.mxu0 %v10698_v5  ;;  %6905 = vmatpush1.bf16.msra.mxu1 %v10700_v6  ;;  %v891_v5 = vld [vmem:[#allocation2 + $0x1720] sm:$0xff]  ;;  %v888_v6 = vld [vmem:[#allocation2 + $0x1708] sm:$0xff] }
 0x1c4   :  { %6562 = vmatprep.subr.bf16.mxu0 %v10707_v7  ;;  %6906 = vmatprep.subr.bf16.mxu1 %v10709_v8  ;;  %v892_v7 = vld [vmem:[#allocation2 + $0x1728] sm:$0xff]  ;;  %v10754_v8 = vcombine.low %v879_v59, %v883_v60  ;;  %v10763_v11 = vcombine.high %v887_v4, %v891_v5  ;;  %v12371_v59 = vpack.c.bf16 %v129_v50, %v113_v49 }
 0x1c5   :  { %v10765_v12 = vcombine.high %v888_v6, %v892_v7  ;;  %v10764_v19 = vcombine.low %v888_v6, %v892_v7  ;;  %v932_v60 = vld [vmem:[#allocation2 + $0x1868] sm:$0xff]  ;;  %v12379_v6 = vpack.c.bf16 %v132_v62, %v116_v61 }
 0x1c6   :  { %v936_v7 = vld [vmem:[#allocation2 + $0x1888] sm:$0xff] }
 0x1c7   :  { %6563 = vmatpush1.bf16.msra.mxu0 %v10706_v14  ;;  %6907 = vmatpush1.bf16.msra.mxu1 %v10708_v16  ;;  %v899_v14 = vld [vmem:[#allocation2 + $0x1760] sm:$0xff]  ;;  %v896_v16 = vld [vmem:[#allocation2 + $0x1748] sm:$0xff] }
 0x1c8   :  { %6564 = vmatprep.subr.bf16.mxu0 %v10715_v17  ;;  %6908 = vmatprep.subr.bf16.mxu1 %v10717_v18  ;;  %v900_v17 = vld [vmem:[#allocation2 + $0x1768] sm:$0xff]  ;;  %v10762_v18 = vcombine.low %v887_v4, %v891_v5  ;;  %v10771_v20 = vcombine.high %v895_v13, %v899_v14  ;;  %v935_v4 = vld [vmem:[#allocation2 + $0x1880] sm:$0xff] }
 0x1c9   :  { %v10773_v21 = vcombine.high %v896_v16, %v900_v17  ;;  %v10772_v29 = vcombine.low %v896_v16, %v900_v17  ;;  %v939_v5 = vld [vmem:[#allocation2 + $0x18a0] sm:$0xff]  ;;  %v944_v17 = vld [vmem:[#allocation2 + $0x18c8] sm:$0xff] }
 0x1ca   :  { %v947_v16 = vld [vmem:[#allocation2 + $0x18e0] sm:$0xff] }
 0x1cb   :  { %6565 = vmatpush1.bf16.msra.mxu0 %v10714_v23  ;;  %6909 = vmatpush1.bf16.msra.mxu1 %v10716_v24  ;;  %v907_v23 = vld [vmem:[#allocation2 + $0x17a0] sm:$0xff]  ;;  %v904_v24 = vld [vmem:[#allocation2 + $0x1788] sm:$0xff] }
 0x1cc   :  { %6566 = vmatprep.subr.bf16.mxu0 %v10723_v27  ;;  %6910 = vmatprep.subr.bf16.mxu1 %v10725_v28  ;;  %v908_v27 = vld [vmem:[#allocation2 + $0x17a8] sm:$0xff]  ;;  %v10770_v28 = vcombine.low %v895_v13, %v899_v14  ;;  %v10779_v31 = vcombine.high %v903_v22, %v907_v23  ;;  %v943_v14 = vld [vmem:[#allocation2 + $0x18c0] sm:$0xff] }
 0x1cd   :  { %v10781_v32 = vcombine.high %v904_v24, %v908_v27  ;;  %v10780_v40 = vcombine.low %v904_v24, %v908_v27  ;;  %v955_v24 = vld [vmem:[#allocation2 + $0x1920] sm:$0xff]  ;;  %v952_v27 = vld [vmem:[#allocation2 + $0x1908] sm:$0xff] }
 0x1cf   :  { %6567 = vmatpush1.bf16.msra.mxu0 %v10722_v34  ;;  %6911 = vmatpush1.bf16.msra.mxu1 %v10724_v35  ;;  %v915_v34 = vld [vmem:[#allocation2 + $0x17e0] sm:$0xff]  ;;  %v912_v35 = vld [vmem:[#allocation2 + $0x17c8] sm:$0xff] }
 0x1d0   :  { %6568 = vmatprep.subr.bf16.mxu0 %v10731_v36  ;;  %6912 = vmatprep.subr.bf16.mxu1 %v10733_v39  ;;  %v916_v36 = vld [vmem:[#allocation2 + $0x17e8] sm:$0xff]  ;;  %v10778_v39 = vcombine.low %v903_v22, %v907_v23  ;;  %v10787_v41 = vcombine.high %v911_v33, %v915_v34  ;;  %v951_v23 = vld [vmem:[#allocation2 + $0x1900] sm:$0xff] }
 0x1d1   :  { %v10789_v42 = vcombine.high %v912_v35, %v916_v36  ;;  %v10788_v51 = vcombine.low %v912_v35, %v916_v36  ;;  %v963_v35 = vld [vmem:[#allocation2 + $0x1960] sm:$0xff]  ;;  %v960_v36 = vld [vmem:[#allocation2 + $0x1948] sm:$0xff] }
 0x1d3   :  { %6569 = vmatpush1.bf16.msra.mxu0 %v10730_v44  ;;  %6913 = vmatpush1.bf16.msra.mxu1 %v10732_v45  ;;  %v923_v44 = vld [vmem:[#allocation2 + $0x1820] sm:$0xff]  ;;  %v920_v45 = vld [vmem:[#allocation2 + $0x1808] sm:$0xff] }
 0x1d4   :  { %6570 = vmatprep.subr.bf16.mxu0 %v10739_v47  ;;  %6914 = vmatprep.subr.bf16.mxu1 %v10741_v48  ;;  %v924_v47 = vld [vmem:[#allocation2 + $0x1828] sm:$0xff]  ;;  %v10786_v48 = vcombine.low %v911_v33, %v915_v34  ;;  %v10795_v52 = vcombine.high %v919_v43, %v923_v44  ;;  %v959_v34 = vld [vmem:[#allocation2 + $0x1940] sm:$0xff] }
 0x1d5   :  { %v10834_v49 = vcombine.low %v959_v34, %v963_v35 }
 0x1d7   :  { %6571 = vmatpush1.bf16.msra.mxu0 %v10738_v54  ;;  %6915 = vmatpush1.bf16.msra.mxu1 %v10740_v55  ;;  %v10797_v54 = vcombine.high %v920_v45, %v924_v47  ;;  %v927_v55 = vld [vmem:[#allocation2 + $0x1840] sm:$0xff] }
 0x1d8   :  { %6572 = vmatprep.subr.bf16.mxu0 %v10747_v56  ;;  %6916 = vmatprep.subr.bf16.mxu1 %v10749_v57  ;;  %v931_v56 = vld [vmem:[#allocation2 + $0x1860] sm:$0xff]  ;;  %v928_v57 = vld [vmem:[#allocation2 + $0x1848] sm:$0xff] }
 0x1db   :  { %6573 = vmatpush1.bf16.msra.mxu0 %v10746_v63  ;;  %6917 = vmatpush1.bf16.msra.mxu1 %v10748_v1  ;;  %v10794_v63 = vcombine.low %v919_v43, %v923_v44  ;;  %v10796_v1 = vcombine.low %v920_v45, %v924_v47  ;;  %v967_v44 = vld [vmem:[#allocation2 + $0x1980] sm:$0xff]  ;;  %v968_v47 = vld [vmem:[#allocation2 + $0x1988] sm:$0xff] }
 0x1dc   :  { %6574 = vmatprep.subr.bf16.mxu0 %v10755_v2  ;;  %6918 = vmatprep.subr.bf16.mxu1 %v10757_v3  ;;  %v10803_v2 = vcombine.high %v927_v55, %v931_v56  ;;  %v10805_v3 = vcombine.high %v928_v57, %v932_v60  ;;  %v971_v45 = vld [vmem:[#allocation2 + $0x19a0] sm:$0xff] }
 0x1df   :  { %6575 = vmatpush1.bf16.msra.mxu0 %v10754_v8  ;;  %6919 = vmatpush1.bf16.msra.mxu1 %v10756_v9  ;;  %v940_v8 = vld [vmem:[#allocation2 + $0x18a8] sm:$0xff]  ;;  %v10802_v9 = vcombine.low %v927_v55, %v931_v56  ;;  %v979_v55 = vld [vmem:[#allocation2 + $0x19e0] sm:$0xff] }
 0x1e0   :  { %6576 = vmatprep.subr.bf16.mxu0 %v10763_v11  ;;  %6920 = vmatprep.subr.bf16.mxu1 %v10765_v12  ;;  %v10804_v11 = vcombine.low %v928_v57, %v932_v60  ;;  %v10811_v12 = vcombine.high %v935_v4, %v939_v5  ;;  %v10813_v13 = vcombine.high %v936_v7, %v940_v8  ;;  %v976_v56 = vld [vmem:[#allocation2 + $0x19c8] sm:$0xff] }
 0x1e1   :  { %v980_v57 = vld [vmem:[#allocation2 + $0x19e8] sm:$0xff]  ;;  %v10842_v60 = vcombine.low %v967_v44, %v971_v45 }
 0x1e3   :  { %6577 = vmatpush1.bf16.msra.mxu0 %v10762_v18  ;;  %6921 = vmatpush1.bf16.msra.mxu1 %v10764_v19  ;;  %v948_v18 = vld [vmem:[#allocation2 + $0x18e8] sm:$0xff]  ;;  %v10810_v19 = vcombine.low %v935_v4, %v939_v5 }
 0x1e4   :  { %6578 = vmatprep.subr.bf16.mxu0 %v10771_v20  ;;  %6922 = vmatprep.subr.bf16.mxu1 %v10773_v21  ;;  %v10812_v20 = vcombine.low %v936_v7, %v940_v8  ;;  %v10819_v21 = vcombine.high %v943_v14, %v947_v16  ;;  %v10821_v22 = vcombine.high %v944_v17, %v948_v18  ;;  %v988_v4 = vld [vmem:[#allocation2 + $0x1a28] sm:$0xff] }
 0x1e5   :  { %v10852_v7 = vcombine.low %v976_v56, %v980_v57 }
 0x1e7   :  { %6579 = vmatpush1.bf16.msra.mxu0 %v10770_v28  ;;  %6923 = vmatpush1.bf16.msra.mxu1 %v10772_v29  ;;  %v956_v28 = vld [vmem:[#allocation2 + $0x1928] sm:$0xff]  ;;  %v10818_v29 = vcombine.low %v943_v14, %v947_v16 }
 0x1e8   :  { %6580 = vmatprep.subr.bf16.mxu0 %v10779_v31  ;;  %6924 = vmatprep.subr.bf16.mxu1 %v10781_v32  ;;  %v10820_v31 = vcombine.low %v944_v17, %v948_v18  ;;  %v10827_v32 = vcombine.high %v951_v23, %v955_v24  ;;  %v10829_v33 = vcombine.high %v952_v27, %v956_v28  ;;  %v996_v14 = vld [vmem:[#allocation2 + $0x1a68] sm:$0xff] }
 0x1eb   :  { %6581 = vmatpush1.bf16.msra.mxu0 %v10778_v39  ;;  %6925 = vmatpush1.bf16.msra.mxu1 %v10780_v40  ;;  %v964_v39 = vld [vmem:[#allocation2 + $0x1968] sm:$0xff]  ;;  %v10826_v40 = vcombine.low %v951_v23, %v955_v24 }
 0x1ec   :  { %6582 = vmatprep.subr.bf16.mxu0 %v10787_v41  ;;  %6926 = vmatprep.subr.bf16.mxu1 %v10789_v42  ;;  %v10828_v41 = vcombine.low %v952_v27, %v956_v28  ;;  %v10835_v42 = vcombine.high %v959_v34, %v963_v35  ;;  %v10837_v43 = vcombine.high %v960_v36, %v964_v39  ;;  %v1004_v23 = vld [vmem:[#allocation2 + $0x1aa8] sm:$0xff] }
 0x1ed   :  { %v10836_v50 = vcombine.low %v960_v36, %v964_v39  ;;  %v1012_v34 = vld [vmem:[#allocation2 + $0x1ae8] sm:$0xff] }
 0x1ef   :  { %6583 = vmatpush1.bf16.msra.mxu0 %v10786_v48  ;;  %6927 = vmatpush1.bf16.msra.mxu1 %v10788_v51  ;;  %v972_v48 = vld [vmem:[#allocation2 + $0x19a8] sm:$0xff]  ;;  %v10843_v51 = vcombine.high %v967_v44, %v971_v45 }
 0x1f0   :  { %6595 = vmatprep.subr.bf16.mxu0 %v10795_v52  ;;  %6939 = vmatprep.subr.bf16.mxu1 %v10797_v54  ;;  %v10845_v52 = vcombine.high %v968_v47, %v972_v48  ;;  %v975_v54 = vld [vmem:[#allocation2 + $0x19c0] sm:$0xff]  ;;  %v10844_v61 = vcombine.low %v968_v47, %v972_v48  ;;  %v1020_v44 = vld [vmem:[#allocation2 + $0x1b28] sm:$0xff] }
 0x1f1   :  { %v10851_v62 = vcombine.high %v975_v54, %v979_v55  ;;  %v10850_v5 = vcombine.low %v975_v54, %v979_v55  ;;  %v1028_v54 = vld [vmem:[#allocation2 + $0x1b68] sm:$0xff] }
 0x1f2   :  { %6585 = vmatmul.mubr.bf16.vlgmr.msra.gmra.mrb[0].mxu0 %v12371_v59  ;;  %6929 = vmatmul.mubr.bf16.vlgmr.msra.gmra.mrb[0].mxu1 %v12371_v59 }
 0x1f3   :  { %6596 = vmatpush1.bf16.msra.mxu0 %v10794_v63  ;;  %6940 = vmatpush1.bf16.msra.mxu1 %v10796_v1  ;;  %v10853_v63 = vcombine.high %v976_v56, %v980_v57  ;;  %v983_v1 = vld [vmem:[#allocation2 + $0x1a00] sm:$0xff] }
 0x1f4   :  { %6597 = vmatprep.subr.bf16.mxu0 %v10803_v2  ;;  %6941 = vmatprep.subr.bf16.mxu1 %v10805_v3  ;;  %v987_v2 = vld [vmem:[#allocation2 + $0x1a20] sm:$0xff]  ;;  %v984_v3 = vld [vmem:[#allocation2 + $0x1a08] sm:$0xff] }
 0x1f5   :  { %6627 = vmatprep.mubr.bf16.mxu0 %v12379_v6  ;;  %6971 = vmatprep.mubr.bf16.mxu1 %v12379_v6  ;;  %v10859_v8 = vcombine.high %v983_v1, %v987_v2  ;;  %v10858_v16 = vcombine.low %v983_v1, %v987_v2  ;;  %v10860_v17 = vcombine.low %v984_v3, %v988_v4  ;;  %v1036_v1 = vld [vmem:[#allocation2 + $0x1ba8] sm:$0xff] }
 0x1f7   :  { %6598 = vmatpush1.bf16.msra.mxu0 %v10802_v9  ;;  %6942 = vmatpush1.bf16.msra.mxu1 %v10804_v11  ;;  %v10861_v9 = vcombine.high %v984_v3, %v988_v4  ;;  %v991_v11 = vld [vmem:[#allocation2 + $0x1a40] sm:$0xff] }
 0x1f8   :  { %6599 = vmatprep.subr.bf16.mxu0 %v10811_v12  ;;  %6943 = vmatprep.subr.bf16.mxu1 %v10813_v13  ;;  %v995_v12 = vld [vmem:[#allocation2 + $0x1a60] sm:$0xff]  ;;  %v992_v13 = vld [vmem:[#allocation2 + $0x1a48] sm:$0xff] }
 0x1f9   :  { %v10867_v18 = vcombine.high %v991_v11, %v995_v12  ;;  %v10866_v24 = vcombine.low %v991_v11, %v995_v12  ;;  %v10868_v27 = vcombine.low %v992_v13, %v996_v14  ;;  %v1044_v11 = vld [vmem:[#allocation2 + $0x1be8] sm:$0xff] }
 0x1fb   :  { %6600 = vmatpush1.bf16.msra.mxu0 %v10810_v19  ;;  %6944 = vmatpush1.bf16.msra.mxu1 %v10812_v20  ;;  %v10869_v19 = vcombine.high %v992_v13, %v996_v14  ;;  %v999_v20 = vld [vmem:[#allocation2 + $0x1a80] sm:$0xff] }
 0x1fc   :  { %6601 = vmatprep.subr.bf16.mxu0 %v10819_v21  ;;  %6945 = vmatprep.subr.bf16.mxu1 %v10821_v22  ;;  %v1003_v21 = vld [vmem:[#allocation2 + $0x1aa0] sm:$0xff]  ;;  %v1000_v22 = vld [vmem:[#allocation2 + $0x1a88] sm:$0xff] }
 0x1fd   :  { %v10875_v28 = vcombine.high %v999_v20, %v1003_v21  ;;  %v10874_v35 = vcombine.low %v999_v20, %v1003_v21  ;;  %v10876_v36 = vcombine.low %v1000_v22, %v1004_v23  ;;  %v1052_v20 = vld [vmem:[#allocation2 + $0x1c28] sm:$0xff] }
 0x1ff   :  { %6602 = vmatpush1.bf16.msra.mxu0 %v10818_v29  ;;  %6946 = vmatpush1.bf16.msra.mxu1 %v10820_v31  ;;  %v10877_v29 = vcombine.high %v1000_v22, %v1004_v23  ;;  %v1007_v31 = vld [vmem:[#allocation2 + $0x1ac0] sm:$0xff] }
 0x200   :  { %6603 = vmatprep.subr.bf16.mxu0 %v10827_v32  ;;  %6947 = vmatprep.subr.bf16.mxu1 %v10829_v33  ;;  %v1011_v32 = vld [vmem:[#allocation2 + $0x1ae0] sm:$0xff]  ;;  %v1008_v33 = vld [vmem:[#allocation2 + $0x1ac8] sm:$0xff] }
 0x201   :  { %v10883_v39 = vcombine.high %v1007_v31, %v1011_v32  ;;  %v10882_v45 = vcombine.low %v1007_v31, %v1011_v32  ;;  %v10884_v47 = vcombine.low %v1008_v33, %v1012_v34  ;;  %v115_v22 = vld [vmem:[%s12496_s0 + $0x60] sm:$0xff]  ;;  %v1056_v32 = vld [vmem:[#allocation2 + $0x1c48] sm:$0xff] }
 0x202   :  { %v131_v23 = vld [vmem:[%s12496_s0 + $0xe0] sm:$0xff] }
 0x203   :  { %6604 = vmatpush1.bf16.msra.mxu0 %v10826_v40  ;;  %6948 = vmatpush1.bf16.msra.mxu1 %v10828_v41  ;;  %v10885_v40 = vcombine.high %v1008_v33, %v1012_v34  ;;  %v1015_v41 = vld [vmem:[#allocation2 + $0x1b00] sm:$0xff]  ;;  %v12391_v33 = vpack.c.bf16 %v131_v23, %v115_v22  ;;  %v1060_v34 = vld [vmem:[#allocation2 + $0x1c68] sm:$0xff] }
 0x204   :  { %6605 = vmatprep.subr.bf16.mxu0 %v10835_v42  ;;  %6949 = vmatprep.subr.bf16.mxu1 %v10837_v43  ;;  %v1019_v42 = vld [vmem:[#allocation2 + $0x1b20] sm:$0xff]  ;;  %v1016_v43 = vld [vmem:[#allocation2 + $0x1b08] sm:$0xff] }
 0x205   :  { %v10891_v48 = vcombine.high %v1015_v41, %v1019_v42  ;;  %v10890_v55 = vcombine.low %v1015_v41, %v1019_v42  ;;  %v10892_v56 = vcombine.low %v1016_v43, %v1020_v44  ;;  %v1059_v31 = vld [vmem:[#allocation2 + $0x1c60] sm:$0xff]  ;;  %v10933_v42 = vcombine.high %v1056_v32, %v1060_v34  ;;  %v1096_v22 = vld [vmem:[#allocation2 + $0x1d88] sm:$0xff] }
 0x206   :  { %v1100_v23 = vld [vmem:[#allocation2 + $0x1da8] sm:$0xff] }
 0x207   :  { %6606 = vmatpush1.bf16.msra.mxu0 %v10834_v49  ;;  %6950 = vmatpush1.bf16.msra.mxu1 %v10836_v50  ;;  %v10893_v49 = vcombine.high %v1016_v43, %v1020_v44  ;;  %v1023_v50 = vld [vmem:[#allocation2 + $0x1b40] sm:$0xff] }
 0x208   :  { %6607 = vmatprep.subr.bf16.mxu0 %v10843_v51  ;;  %6951 = vmatprep.subr.bf16.mxu1 %v10845_v52  ;;  %v1027_v51 = vld [vmem:[#allocation2 + $0x1b60] sm:$0xff]  ;;  %v1024_v52 = vld [vmem:[#allocation2 + $0x1b48] sm:$0xff] }
 0x209   :  { %v10899_v57 = vcombine.high %v1023_v50, %v1027_v51  ;;  %v10898_v2 = vcombine.low %v1023_v50, %v1027_v51  ;;  %v10900_v3 = vcombine.low %v1024_v52, %v1028_v54  ;;  %v1063_v43 = vld [vmem:[#allocation2 + $0x1c80] sm:$0xff]  ;;  %v10932_v50 = vcombine.low %v1056_v32, %v1060_v34  ;;  %v1104_v34 = vld [vmem:[#allocation2 + $0x1dc8] sm:$0xff] }
 0x20a   :  { %v1067_v44 = vld [vmem:[#allocation2 + $0x1ca0] sm:$0xff] }
 0x20b   :  { %6608 = vmatpush1.bf16.msra.mxu0 %v10842_v60  ;;  %6952 = vmatpush1.bf16.msra.mxu1 %v10844_v61  ;;  %v10901_v60 = vcombine.high %v1024_v52, %v1028_v54  ;;  %v1031_v61 = vld [vmem:[#allocation2 + $0x1b80] sm:$0xff]  ;;  %v10939_v51 = vcombine.high %v1063_v43, %v1067_v44 }
 0x20c   :  { %6609 = vmatprep.subr.bf16.mxu0 %v10851_v62  ;;  %6953 = vmatprep.subr.bf16.mxu1 %v10853_v63  ;;  %v1035_v62 = vld [vmem:[#allocation2 + $0x1ba0] sm:$0xff]  ;;  %v1032_v63 = vld [vmem:[#allocation2 + $0x1b88] sm:$0xff] }
 0x20d   :  { %v10907_v4 = vcombine.high %v1031_v61, %v1035_v62  ;;  %v10906_v12 = vcombine.low %v1031_v61, %v1035_v62  ;;  %v10908_v13 = vcombine.low %v1032_v63, %v1036_v1  ;;  %v1071_v54 = vld [vmem:[#allocation2 + $0x1cc0] sm:$0xff] }
 0x20e   :  { %v1107_v32 = vld [vmem:[#allocation2 + $0x1de0] sm:$0xff] }
 0x20f   :  { %6610 = vmatpush1.bf16.msra.mxu0 %v10850_v5  ;;  %6954 = vmatpush1.bf16.msra.mxu1 %v10852_v7  ;;  %v10909_v5 = vcombine.high %v1032_v63, %v1036_v1  ;;  %v1039_v7 = vld [vmem:[#allocation2 + $0x1bc0] sm:$0xff] }
 0x210   :  { %6611 = vmatprep.subr.bf16.mxu0 %v10859_v8  ;;  %6955 = vmatprep.subr.bf16.mxu1 %v10861_v9  ;;  %v1043_v8 = vld [vmem:[#allocation2 + $0x1be0] sm:$0xff]  ;;  %v1040_v9 = vld [vmem:[#allocation2 + $0x1bc8] sm:$0xff] }
 0x211   :  { %v10915_v14 = vcombine.high %v1039_v7, %v1043_v8  ;;  %v10914_v21 = vcombine.low %v1039_v7, %v1043_v8  ;;  %v1079_v1 = vld [vmem:[#allocation2 + $0x1d00] sm:$0xff] }
 0x213   :  { %6612 = vmatpush1.bf16.msra.mxu0 %v10858_v16  ;;  %6956 = vmatpush1.bf16.msra.mxu1 %v10860_v17  ;;  %v10917_v16 = vcombine.high %v1040_v9, %v1044_v11  ;;  %v1047_v17 = vld [vmem:[#allocation2 + $0x1c00] sm:$0xff] }
 0x214   :  { %6613 = vmatprep.subr.bf16.mxu0 %v10867_v18  ;;  %6957 = vmatprep.subr.bf16.mxu1 %v10869_v19  ;;  %v1051_v18 = vld [vmem:[#allocation2 + $0x1c20] sm:$0xff]  ;;  %v1048_v19 = vld [vmem:[#allocation2 + $0x1c08] sm:$0xff] }
 0x217   :  { %6614 = vmatpush1.bf16.msra.mxu0 %v10866_v24  ;;  %6958 = vmatpush1.bf16.msra.mxu1 %v10868_v27  ;;  %v10916_v24 = vcombine.low %v1040_v9, %v1044_v11  ;;  %v10923_v27 = vcombine.high %v1047_v17, %v1051_v18  ;;  %v1087_v11 = vld [vmem:[#allocation2 + $0x1d40] sm:$0xff] }
 0x218   :  { %6615 = vmatprep.subr.bf16.mxu0 %v10875_v28  ;;  %6959 = vmatprep.subr.bf16.mxu1 %v10877_v29  ;;  %v10925_v28 = vcombine.high %v1048_v19, %v1052_v20  ;;  %v1055_v29 = vld [vmem:[#allocation2 + $0x1c40] sm:$0xff] }
 0x219   :  { %v10931_v41 = vcombine.high %v1055_v29, %v1059_v31 }
 0x21b   :  { %6616 = vmatpush1.bf16.msra.mxu0 %v10874_v35  ;;  %6960 = vmatpush1.bf16.msra.mxu1 %v10876_v36  ;;  %v118_v35 = vld [vmem:[%s12496_s0 + $0x78] sm:$0xff] }
 0x21c   :  { %6617 = vmatprep.subr.bf16.mxu0 %v10883_v39  ;;  %6961 = vmatprep.subr.bf16.mxu1 %v10885_v40  ;;  %v134_v36 = vld [vmem:[%s12496_s0 + $0xf8] sm:$0xff]  ;;  %v10922_v39 = vcombine.low %v1047_v17, %v1051_v18  ;;  %v10924_v40 = vcombine.low %v1048_v19, %v1052_v20  ;;  %v1095_v20 = vld [vmem:[#allocation2 + $0x1d80] sm:$0xff] }
 0x21f   :  { %6618 = vmatpush1.bf16.msra.mxu0 %v10882_v45  ;;  %6962 = vmatpush1.bf16.msra.mxu1 %v10884_v47  ;;  %v12399_v45 = vpack.c.bf16 %v134_v36, %v118_v35  ;;  %v1064_v47 = vld [vmem:[#allocation2 + $0x1c88] sm:$0xff] }
 0x220   :  { %6619 = vmatprep.subr.bf16.mxu0 %v10891_v48  ;;  %6963 = vmatprep.subr.bf16.mxu1 %v10893_v49  ;;  %v1068_v48 = vld [vmem:[#allocation2 + $0x1ca8] sm:$0xff]  ;;  %v10930_v49 = vcombine.low %v1055_v29, %v1059_v31  ;;  %v10973_v29 = vcombine.high %v1096_v22, %v1100_v23  ;;  %v1103_v31 = vld [vmem:[#allocation2 + $0x1dc0] sm:$0xff] }
 0x221   :  { %v10941_v52 = vcombine.high %v1064_v47, %v1068_v48  ;;  %v10940_v61 = vcombine.low %v1064_v47, %v1068_v48  ;;  %v1108_v35 = vld [vmem:[#allocation2 + $0x1de8] sm:$0xff]  ;;  %v10978_v48 = vcombine.low %v1103_v31, %v1107_v32 }
 0x222   :  { %v1116_v47 = vld [vmem:[#allocation2 + $0x1e28] sm:$0xff] }
 0x223   :  { %6620 = vmatpush1.bf16.msra.mxu0 %v10890_v55  ;;  %6964 = vmatpush1.bf16.msra.mxu1 %v10892_v56  ;;  %v1075_v55 = vld [vmem:[#allocation2 + $0x1ce0] sm:$0xff]  ;;  %v1072_v56 = vld [vmem:[#allocation2 + $0x1cc8] sm:$0xff] }
 0x224   :  { %6621 = vmatprep.subr.bf16.mxu0 %v10899_v57  ;;  %6965 = vmatprep.subr.bf16.mxu1 %v10901_v60  ;;  %v1076_v57 = vld [vmem:[#allocation2 + $0x1ce8] sm:$0xff]  ;;  %v10938_v60 = vcombine.low %v1063_v43, %v1067_v44  ;;  %v10947_v62 = vcombine.high %v1071_v54, %v1075_v55  ;;  %v1115_v43 = vld [vmem:[#allocation2 + $0x1e20] sm:$0xff] }
 0x225   :  { %v10949_v63 = vcombine.high %v1072_v56, %v1076_v57  ;;  %v10948_v7 = vcombine.low %v1072_v56, %v1076_v57  ;;  %v1112_v44 = vld [vmem:[#allocation2 + $0x1e08] sm:$0xff] }
 0x226   :  { %v1124_v56 = vld [vmem:[#allocation2 + $0x1e68] sm:$0xff] }
 0x227   :  { %6622 = vmatpush1.bf16.msra.mxu0 %v10898_v2  ;;  %6966 = vmatpush1.bf16.msra.mxu1 %v10900_v3  ;;  %v1083_v2 = vld [vmem:[#allocation2 + $0x1d20] sm:$0xff]  ;;  %v1080_v3 = vld [vmem:[#allocation2 + $0x1d08] sm:$0xff] }
 0x228   :  { %6623 = vmatprep.subr.bf16.mxu0 %v10907_v4  ;;  %6967 = vmatprep.subr.bf16.mxu1 %v10909_v5  ;;  %v1084_v4 = vld [vmem:[#allocation2 + $0x1d28] sm:$0xff]  ;;  %v10946_v5 = vcombine.low %v1071_v54, %v1075_v55  ;;  %v10955_v8 = vcombine.high %v1079_v1, %v1083_v2  ;;  %v1123_v54 = vld [vmem:[#allocation2 + $0x1e60] sm:$0xff] }
 0x229   :  { %v10957_v9 = vcombine.high %v1080_v3, %v1084_v4  ;;  %v10956_v17 = vcombine.low %v1080_v3, %v1084_v4  ;;  %v1120_v55 = vld [vmem:[#allocation2 + $0x1e48] sm:$0xff] }
 0x22a   :  { %v1132_v3 = vld [vmem:[#allocation2 + $0x1ea8] sm:$0xff] }
 0x22b   :  { %6624 = vmatpush1.bf16.msra.mxu0 %v10906_v12  ;;  %6968 = vmatpush1.bf16.msra.mxu1 %v10908_v13  ;;  %v1091_v12 = vld [vmem:[#allocation2 + $0x1d60] sm:$0xff]  ;;  %v1088_v13 = vld [vmem:[#allocation2 + $0x1d48] sm:$0xff] }
 0x22c   :  { %6625 = vmatprep.subr.bf16.mxu0 %v10915_v14  ;;  %6969 = vmatprep.subr.bf16.mxu1 %v10917_v16  ;;  %v1092_v14 = vld [vmem:[#allocation2 + $0x1d68] sm:$0xff]  ;;  %v10954_v16 = vcombine.low %v1079_v1, %v1083_v2  ;;  %v10963_v18 = vcombine.high %v1087_v11, %v1091_v12  ;;  %v1131_v1 = vld [vmem:[#allocation2 + $0x1ea0] sm:$0xff] }
 0x22d   :  { %v10965_v19 = vcombine.high %v1088_v13, %v1092_v14  ;;  %v1128_v2 = vld [vmem:[#allocation2 + $0x1e88] sm:$0xff] }
 0x22f   :  { %6626 = vmatpush1.bf16.msra.mxu0 %v10914_v21  ;;  %6970 = vmatpush1.bf16.msra.mxu1 %v10916_v24  ;;  %v1099_v21 = vld [vmem:[#allocation2 + $0x1da0] sm:$0xff]  ;;  %v10962_v24 = vcombine.low %v1087_v11, %v1091_v12  ;;  %v1136_v12 = vld [vmem:[#allocation2 + $0x1ec8] sm:$0xff] }
 0x230   :  { %6638 = vmatprep.subr.bf16.mxu0 %v10923_v27  ;;  %6982 = vmatprep.subr.bf16.mxu1 %v10925_v28  ;;  %v10964_v27 = vcombine.low %v1088_v13, %v1092_v14  ;;  %v10971_v28 = vcombine.high %v1095_v20, %v1099_v21  ;;  %v10970_v36 = vcombine.low %v1095_v20, %v1099_v21  ;;  %v1139_v11 = vld [vmem:[#allocation2 + $0x1ee0] sm:$0xff]  ;;  %v1140_v13 = vld [vmem:[#allocation2 + $0x1ee8] sm:$0xff] }
 0x231   :  { %v1147_v20 = vld [vmem:[#allocation2 + $0x1f20] sm:$0xff]  ;;  %v1144_v21 = vld [vmem:[#allocation2 + $0x1f08] sm:$0xff] }
 0x232   :  { %6628 = vmatmul.mubr.bf16.vlgmr.msra.gmra.mrb[0].mxu0 %v12391_v33  ;;  %6972 = vmatmul.mubr.bf16.vlgmr.msra.gmra.mrb[0].mxu1 %v12391_v33 }
 0x233   :  { %6639 = vmatpush1.bf16.msra.mxu0 %v10922_v39  ;;  %6983 = vmatpush1.bf16.msra.mxu1 %v10924_v40  ;;  %v10972_v39 = vcombine.low %v1096_v22, %v1100_v23  ;;  %v10979_v40 = vcombine.high %v1103_v31, %v1107_v32  ;;  %v1148_v22 = vld [vmem:[#allocation2 + $0x1f28] sm:$0xff]  ;;  %v1155_v31 = vld [vmem:[#allocation2 + $0x1f60] sm:$0xff] }
 0x234   :  { %6640 = vmatprep.subr.bf16.mxu0 %v10931_v41  ;;  %6984 = vmatprep.subr.bf16.mxu1 %v10933_v42  ;;  %v10981_v41 = vcombine.high %v1104_v34, %v1108_v35  ;;  %v1111_v42 = vld [vmem:[#allocation2 + $0x1e00] sm:$0xff]  ;;  %v1152_v32 = vld [vmem:[#allocation2 + $0x1f48] sm:$0xff] }
 0x235   :  { %6670 = vmatprep.mubr.bf16.mxu0 %v12399_v45  ;;  %7014 = vmatprep.mubr.bf16.mxu1 %v12399_v45  ;;  %v10986_v57 = vcombine.low %v1111_v42, %v1115_v43 }
 0x237   :  { %6641 = vmatpush1.bf16.msra.mxu0 %v10930_v49  ;;  %6985 = vmatpush1.bf16.msra.mxu1 %v10932_v50  ;;  %v10980_v49 = vcombine.low %v1104_v34, %v1108_v35  ;;  %v10987_v50 = vcombine.high %v1111_v42, %v1115_v43  ;;  %v1156_v34 = vld [vmem:[#allocation2 + $0x1f68] sm:$0xff]  ;;  %v1163_v42 = vld [vmem:[#allocation2 + $0x1fa0] sm:$0xff] }
 0x238   :  { %6642 = vmatprep.subr.bf16.mxu0 %v10939_v51  ;;  %6986 = vmatprep.subr.bf16.mxu1 %v10941_v52  ;;  %v10989_v51 = vcombine.high %v1112_v44, %v1116_v47  ;;  %v1119_v52 = vld [vmem:[#allocation2 + $0x1e40] sm:$0xff]  ;;  %v1160_v43 = vld [vmem:[#allocation2 + $0x1f88] sm:$0xff] }
 0x239   :  { %v10994_v4 = vcombine.low %v1119_v52, %v1123_v54 }
 0x23b   :  { %6643 = vmatpush1.bf16.msra.mxu0 %v10938_v60  ;;  %6987 = vmatpush1.bf16.msra.mxu1 %v10940_v61  ;;  %v10988_v60 = vcombine.low %v1112_v44, %v1116_v47  ;;  %v10995_v61 = vcombine.high %v1119_v52, %v1123_v54  ;;  %v1164_v44 = vld [vmem:[#allocation2 + $0x1fa8] sm:$0xff]  ;;  %v1171_v52 = vld [vmem:[#allocation2 + $0x1fe0] sm:$0xff] }
 0x23c   :  { %6644 = vmatprep.subr.bf16.mxu0 %v10947_v62  ;;  %6988 = vmatprep.subr.bf16.mxu1 %v10949_v63  ;;  %v10997_v62 = vcombine.high %v1120_v55, %v1124_v56  ;;  %v1127_v63 = vld [vmem:[#allocation2 + $0x1e80] sm:$0xff]  ;;  %v1168_v54 = vld [vmem:[#allocation2 + $0x1fc8] sm:$0xff] }
 0x23d   :  { %v11002_v14 = vcombine.low %v1127_v63, %v1131_v1 }
 0x23f   :  { %6645 = vmatpush1.bf16.msra.mxu0 %v10946_v5  ;;  %6989 = vmatpush1.bf16.msra.mxu1 %v10948_v7  ;;  %v10996_v5 = vcombine.low %v1120_v55, %v1124_v56  ;;  %v11003_v7 = vcombine.high %v1127_v63, %v1131_v1  ;;  %v1172_v55 = vld [vmem:[#allocation2 + $0x1fe8] sm:$0xff]  ;;  %v157_v63 = vld [vmem:[#allocation2 + $0x30] sm:$0xff]  ;;  %v154_v1 = vld [vmem:[#allocation2 + $0x18] sm:$0xff] }
 0x240   :  { %6646 = vmatprep.subr.bf16.mxu0 %v10955_v8  ;;  %6990 = vmatprep.subr.bf16.mxu1 %v10957_v9  ;;  %v11005_v8 = vcombine.high %v1128_v2, %v1132_v3  ;;  %v1135_v9 = vld [vmem:[#allocation2 + $0x1ec0] sm:$0xff] }
 0x241   :  { %v11010_v23 = vcombine.low %v1135_v9, %v1139_v11 }
 0x243   :  { %6647 = vmatpush1.bf16.msra.mxu0 %v10954_v16  ;;  %6991 = vmatpush1.bf16.msra.mxu1 %v10956_v17  ;;  %v11004_v16 = vcombine.low %v1128_v2, %v1132_v3  ;;  %v11011_v17 = vcombine.high %v1135_v9, %v1139_v11  ;;  %v158_v2 = vld [vmem:[#allocation2 + $0x38] sm:$0xff]  ;;  %v161_v11 = vld [vmem:[#allocation2 + $0x50] sm:$0xff] }
 0x244   :  { %6648 = vmatprep.subr.bf16.mxu0 %v10963_v18  ;;  %6992 = vmatprep.subr.bf16.mxu1 %v10965_v19  ;;  %v11013_v18 = vcombine.high %v1136_v12, %v1140_v13  ;;  %v1143_v19 = vld [vmem:[#allocation2 + $0x1f00] sm:$0xff]  ;;  %v10033_v9 = vcombine.high %v154_v1, %v158_v2 }
 0x245   :  { %v11018_v35 = vcombine.low %v1143_v19, %v1147_v20 }
 0x247   :  { %6649 = vmatpush1.bf16.msra.mxu0 %v10962_v24  ;;  %6993 = vmatpush1.bf16.msra.mxu1 %v10964_v27  ;;  %v11012_v24 = vcombine.low %v1136_v12, %v1140_v13  ;;  %v11019_v27 = vcombine.high %v1143_v19, %v1147_v20  ;;  %v165_v12 = vld [vmem:[#allocation2 + $0x70] sm:$0xff] }
 0x248   :  { %6650 = vmatprep.subr.bf16.mxu0 %v10971_v28  ;;  %6994 = vmatprep.subr.bf16.mxu1 %v10973_v29  ;;  %v11021_v28 = vcombine.high %v1144_v21, %v1148_v22  ;;  %v1151_v29 = vld [vmem:[#allocation2 + $0x1f40] sm:$0xff]  ;;  %v10039_v19 = vcombine.high %v161_v11, %v165_v12 }
 0x249   :  { %v11026_v47 = vcombine.low %v1151_v29, %v1155_v31 }
 0x24b   :  { %6651 = vmatpush1.bf16.msra.mxu0 %v10970_v36  ;;  %6995 = vmatpush1.bf16.msra.mxu1 %v10972_v39  ;;  %v11020_v36 = vcombine.low %v1144_v21, %v1148_v22  ;;  %v11027_v39 = vcombine.high %v1151_v29, %v1155_v31  ;;  %v169_v21 = vld [vmem:[#allocation2 + $0x90] sm:$0xff] }
 0x24c   :  { %6652 = vmatprep.subr.bf16.mxu0 %v10979_v40  ;;  %6996 = vmatprep.subr.bf16.mxu1 %v10981_v41  ;;  %v11029_v40 = vcombine.high %v1152_v32, %v1156_v34  ;;  %v1159_v41 = vld [vmem:[#allocation2 + $0x1f80] sm:$0xff]  ;;  %v173_v22 = vld [vmem:[#allocation2 + $0xb0] sm:$0xff] }
 0x24d   :  { %v11034_v56 = vcombine.low %v1159_v41, %v1163_v42  ;;  %v10047_v29 = vcombine.high %v169_v21, %v173_v22 }
 0x24f   :  { %6653 = vmatpush1.bf16.msra.mxu0 %v10978_v48  ;;  %6997 = vmatpush1.bf16.msra.mxu1 %v10980_v49  ;;  %v11028_v48 = vcombine.low %v1152_v32, %v1156_v34  ;;  %v11035_v49 = vcombine.high %v1159_v41, %v1163_v42  ;;  %v177_v32 = vld [vmem:[#allocation2 + $0xd0] sm:$0xff] }
 0x250   :  { %6654 = vmatprep.subr.bf16.mxu0 %v10987_v50  ;;  %6998 = vmatprep.subr.bf16.mxu1 %v10989_v51  ;;  %v11037_v50 = vcombine.high %v1160_v43, %v1164_v44  ;;  %v1167_v51 = vld [vmem:[#allocation2 + $0x1fc0] sm:$0xff]  ;;  %v181_v34 = vld [vmem:[#allocation2 + $0xf0] sm:$0xff] }
 0x251   :  { %v11042_v3 = vcombine.low %v1167_v51, %v1171_v52  ;;  %v10055_v41 = vcombine.high %v177_v32, %v181_v34 }
 0x253   :  { %6655 = vmatpush1.bf16.msra.mxu0 %v10986_v57  ;;  %6999 = vmatpush1.bf16.msra.mxu1 %v10988_v60  ;;  %v11036_v57 = vcombine.low %v1160_v43, %v1164_v44  ;;  %v11043_v60 = vcombine.high %v1167_v51, %v1171_v52  ;;  %v185_v43 = vld [vmem:[#allocation2 + $0x110] sm:$0xff] }
 0x254   :  { %6656 = vmatprep.subr.bf16.mxu0 %v10995_v61  ;;  %7000 = vmatprep.subr.bf16.mxu1 %v10997_v62  ;;  %v11045_v61 = vcombine.high %v1168_v54, %v1172_v55  ;;  %v153_v62 = vld [vmem:[#allocation2 + $0x10] sm:$0xff] }
 0x255   :  { %v189_v44 = vld [vmem:[#allocation2 + $0x130] sm:$0xff] }
 0x256   :  { %v10063_v51 = vcombine.high %v185_v43, %v189_v44  ;;  %v193_v52 = vld [vmem:[#allocation2 + $0x150] sm:$0xff] }
 0x257   :  { %6657 = vmatpush1.bf16.msra.mxu0 %v10994_v4  ;;  %7001 = vmatpush1.bf16.msra.mxu1 %v10996_v5  ;;  %v117_v4 = vld [vmem:[%s12496_s0 + $0x70] sm:$0xff] }
 0x258   :  { %6658 = vmatprep.subr.bf16.mxu0 %v11003_v7  ;;  %7002 = vmatprep.subr.bf16.mxu1 %v11005_v8  ;;  %v133_v5 = vld [vmem:[%s12496_s0 + $0xf0] sm:$0xff]  ;;  %v11044_v7 = vcombine.low %v1168_v54, %v1172_v55  ;;  %v10031_v8 = vcombine.high %v153_v62, %v157_v63  ;;  %v194_v55 = vld [vmem:[#allocation2 + $0x158] sm:$0xff] }
 0x259   :  { %v12411_v13 = vpack.c.bf16 %v133_v5, %v117_v4  ;;  %v197_v54 = vld [vmem:[#allocation2 + $0x170] sm:$0xff] }
 0x25a   :  { %v10070_v4 = vcombine.low %v193_v52, %v197_v54 }
 0x25b   :  { %6659 = vmatpush1.bf16.msra.mxu0 %v11002_v14  ;;  %7003 = vmatpush1.bf16.msra.mxu1 %v11004_v16  ;;  %v162_v14 = vld [vmem:[#allocation2 + $0x58] sm:$0xff] }
 0x25c   :  { %6660 = vmatprep.subr.bf16.mxu0 %v11011_v17  ;;  %7004 = vmatprep.subr.bf16.mxu1 %v11013_v18  ;;  %v166_v16 = vld [vmem:[#allocation2 + $0x78] sm:$0xff]  ;;  %v10030_v17 = vcombine.low %v153_v62, %v157_v63  ;;  %v10032_v18 = vcombine.low %v154_v1, %v158_v2  ;;  %v201_v63 = vld [vmem:[#allocation2 + $0x190] sm:$0xff] }
 0x25d   :  { %v10041_v20 = vcombine.high %v162_v14, %v166_v16  ;;  %v205_v1 = vld [vmem:[#allocation2 + $0x1b0] sm:$0xff]  ;;  %v202_v2 = vld [vmem:[#allocation2 + $0x198] sm:$0xff] }
 0x25f   :  { %6661 = vmatpush1.bf16.msra.mxu0 %v11010_v23  ;;  %7005 = vmatpush1.bf16.msra.mxu1 %v11012_v24  ;;  %v170_v23 = vld [vmem:[#allocation2 + $0x98] sm:$0xff] }
 0x260   :  { %6662 = vmatprep.subr.bf16.mxu0 %v11019_v27  ;;  %7006 = vmatprep.subr.bf16.mxu1 %v11021_v28  ;;  %v174_v24 = vld [vmem:[#allocation2 + $0xb8] sm:$0xff]  ;;  %v10038_v27 = vcombine.low %v161_v11, %v165_v12  ;;  %v10040_v28 = vcombine.low %v162_v14, %v166_v16  ;;  %v213_v11 = vld [vmem:[#allocation2 + $0x1f0] sm:$0xff]  ;;  %v10078_v16 = vcombine.low %v201_v63, %v205_v1 }
 0x261   :  { %v10049_v31 = vcombine.high %v170_v23, %v174_v24  ;;  %v210_v12 = vld [vmem:[#allocation2 + $0x1d8] sm:$0xff] }
 0x262   :  { %v214_v14 = vld [vmem:[#allocation2 + $0x1f8] sm:$0xff] }
 0x263   :  { %6663 = vmatpush1.bf16.msra.mxu0 %v11018_v35  ;;  %7007 = vmatpush1.bf16.msra.mxu1 %v11020_v36  ;;  %v178_v35 = vld [vmem:[#allocation2 + $0xd8] sm:$0xff] }
 0x264   :  { %6664 = vmatprep.subr.bf16.mxu0 %v11027_v39  ;;  %7008 = vmatprep.subr.bf16.mxu1 %v11029_v40  ;;  %v182_v36 = vld [vmem:[#allocation2 + $0xf8] sm:$0xff]  ;;  %v10046_v39 = vcombine.low %v169_v21, %v173_v22  ;;  %v10048_v40 = vcombine.low %v170_v23, %v174_v24  ;;  %v221_v21 = vld [vmem:[#allocation2 + $0x230] sm:$0xff] }
 0x265   :  { %v10057_v42 = vcombine.high %v178_v35, %v182_v36  ;;  %v218_v22 = vld [vmem:[#allocation2 + $0x218] sm:$0xff] }
 0x266   :  { %v222_v23 = vld [vmem:[#allocation2 + $0x238] sm:$0xff] }
 0x267   :  { %6665 = vmatpush1.bf16.msra.mxu0 %v11026_v47  ;;  %7009 = vmatpush1.bf16.msra.mxu1 %v11028_v48  ;;  %v186_v47 = vld [vmem:[#allocation2 + $0x118] sm:$0xff] }
 0x268   :  { %6666 = vmatprep.subr.bf16.mxu0 %v11035_v49  ;;  %7010 = vmatprep.subr.bf16.mxu1 %v11037_v50  ;;  %v190_v48 = vld [vmem:[#allocation2 + $0x138] sm:$0xff]  ;;  %v10054_v49 = vcombine.low %v177_v32, %v181_v34  ;;  %v10056_v50 = vcombine.low %v178_v35, %v182_v36  ;;  %v229_v32 = vld [vmem:[#allocation2 + $0x270] sm:$0xff] }
 0x269   :  { %v226_v34 = vld [vmem:[#allocation2 + $0x258] sm:$0xff] }
 0x26a   :  { %v230_v35 = vld [vmem:[#allocation2 + $0x278] sm:$0xff] }
 0x26b   :  { %6667 = vmatpush1.bf16.msra.mxu0 %v11034_v56  ;;  %7011 = vmatpush1.bf16.msra.mxu1 %v11036_v57  ;;  %v198_v56 = vld [vmem:[#allocation2 + $0x178] sm:$0xff]  ;;  %v10062_v57 = vcombine.low %v185_v43, %v189_v44  ;;  %v237_v43 = vld [vmem:[#allocation2 + $0x2b0] sm:$0xff] }
 0x26c   :  { %6668 = vmatprep.subr.bf16.mxu0 %v11043_v60  ;;  %7012 = vmatprep.subr.bf16.mxu1 %v11045_v61  ;;  %v10064_v60 = vcombine.low %v186_v47, %v190_v48  ;;  %v10071_v61 = vcombine.high %v193_v52, %v197_v54  ;;  %v10073_v62 = vcombine.high %v194_v55, %v198_v56  ;;  %v234_v44 = vld [vmem:[#allocation2 + $0x298] sm:$0xff]  ;;  %v245_v52 = vld [vmem:[#allocation2 + $0x2f0] sm:$0xff] }
 0x26d   :  { %v10072_v5 = vcombine.low %v194_v55, %v198_v56  ;;  %v242_v54 = vld [vmem:[#allocation2 + $0x2d8] sm:$0xff] }
 0x26e   :  { %v246_v55 = vld [vmem:[#allocation2 + $0x2f8] sm:$0xff] }
 0x26f   :  { %6669 = vmatpush1.bf16.msra.mxu0 %v11042_v3  ;;  %7013 = vmatpush1.bf16.msra.mxu1 %v11044_v7  ;;  %v206_v3 = vld [vmem:[#allocation2 + $0x1b8] sm:$0xff]  ;;  %v10079_v7 = vcombine.high %v201_v63, %v205_v1  ;;  %v253_v63 = vld [vmem:[#allocation2 + $0x330] sm:$0xff] }
 0x270   :  { %7025 = vmatprep.subr.bf16.mxu0 %v10031_v8  ;;  %7369 = vmatprep.subr.bf16.mxu1 %v10033_v9  ;;  %v10081_v8 = vcombine.high %v202_v2, %v206_v3  ;;  %v209_v9 = vld [vmem:[#allocation2 + $0x1d0] sm:$0xff]  ;;  %v250_v1 = vld [vmem:[#allocation2 + $0x318] sm:$0xff] }
 0x271   :  { %v10086_v24 = vcombine.low %v209_v9, %v213_v11 }
 0x272   :  { %6671 = vmatmul.mubr.bf16.vlgmr.msra.gmra.mrb[0].mxu0 %v12411_v13  ;;  %7015 = vmatmul.mubr.bf16.vlgmr.msra.gmra.mrb[0].mxu1 %v12411_v13 }
 0x273   :  { %7026 = vmatpush1.bf16.msra.mxu0 %v10030_v17  ;;  %7370 = vmatpush1.bf16.msra.mxu1 %v10032_v18  ;;  %v10080_v17 = vcombine.low %v202_v2, %v206_v3  ;;  %v10087_v18 = vcombine.high %v209_v9, %v213_v11  ;;  %v254_v2 = vld [vmem:[#allocation2 + $0x338] sm:$0xff]  ;;  %v261_v9 = vld [vmem:[#allocation2 + $0x370] sm:$0xff] }
 0x274   :  { %7027 = vmatprep.subr.bf16.mxu0 %v10039_v19  ;;  %7371 = vmatprep.subr.bf16.mxu1 %v10041_v20  ;;  %v10089_v19 = vcombine.high %v210_v12, %v214_v14  ;;  %v217_v20 = vld [vmem:[#allocation2 + $0x210] sm:$0xff]  ;;  %v258_v11 = vld [vmem:[#allocation2 + $0x358] sm:$0xff] }
 0x275   :  { %7057 = vmatprep.mubr.bf16.mxu0 %v12261_v58  ;;  %7401 = vmatprep.mubr.bf16.mxu1 %v12261_v58  ;;  %v10065_v58 = vcombine.high %v186_v47, %v190_v48  ;;  %v10094_v36 = vcombine.low %v217_v20, %v221_v21  ;;  %v238_v47 = vld [vmem:[#allocation2 + $0x2b8] sm:$0xff] }
 0x277   :  { %7028 = vmatpush1.bf16.msra.mxu0 %v10038_v27  ;;  %7372 = vmatpush1.bf16.msra.mxu1 %v10040_v28  ;;  %v10088_v27 = vcombine.low %v210_v12, %v214_v14  ;;  %v10095_v28 = vcombine.high %v217_v20, %v221_v21  ;;  %v262_v12 = vld [vmem:[#allocation2 + $0x378] sm:$0xff]  ;;  %v269_v20 = vld [vmem:[#allocation2 + $0x3b0] sm:$0xff] }
 0x278   :  { %7029 = vmatprep.subr.bf16.mxu0 %v10047_v29  ;;  %7373 = vmatprep.subr.bf16.mxu1 %v10049_v31  ;;  %v10097_v29 = vcombine.high %v218_v22, %v222_v23  ;;  %v225_v31 = vld [vmem:[#allocation2 + $0x250] sm:$0xff]  ;;  %v266_v21 = vld [vmem:[#allocation2 + $0x398] sm:$0xff] }
 0x279   :  { %v10102_v48 = vcombine.low %v225_v31, %v229_v32 }
 0x27b   :  { %7030 = vmatpush1.bf16.msra.mxu0 %v10046_v39  ;;  %7374 = vmatpush1.bf16.msra.mxu1 %v10048_v40  ;;  %v10096_v39 = vcombine.low %v218_v22, %v222_v23  ;;  %v10103_v40 = vcombine.high %v225_v31, %v229_v32  ;;  %v270_v22 = vld [vmem:[#allocation2 + $0x3b8] sm:$0xff]  ;;  %v277_v31 = vld [vmem:[#allocation2 + $0x3f0] sm:$0xff] }
 0x27c   :  { %7031 = vmatprep.subr.bf16.mxu0 %v10055_v41  ;;  %7375 = vmatprep.subr.bf16.mxu1 %v10057_v42  ;;  %v10105_v41 = vcombine.high %v226_v34, %v230_v35  ;;  %v233_v42 = vld [vmem:[#allocation2 + $0x290] sm:$0xff]  ;;  %v274_v32 = vld [vmem:[#allocation2 + $0x3d8] sm:$0xff] }
 0x27d   :  { %v10110_v56 = vcombine.low %v233_v42, %v237_v43 }
 0x27f   :  { %7032 = vmatpush1.bf16.msra.mxu0 %v10054_v49  ;;  %7376 = vmatpush1.bf16.msra.mxu1 %v10056_v50  ;;  %v10104_v49 = vcombine.low %v226_v34, %v230_v35  ;;  %v10111_v50 = vcombine.high %v233_v42, %v237_v43  ;;  %v278_v34 = vld [vmem:[#allocation2 + $0x3f8] sm:$0xff]  ;;  %v285_v42 = vld [vmem:[#allocation2 + $0x430] sm:$0xff] }
 0x280   :  { %7033 = vmatprep.subr.bf16.mxu0 %v10063_v51  ;;  %7377 = vmatprep.subr.bf16.mxu1 %v10065_v58  ;;  %v10113_v51 = vcombine.high %v234_v44, %v238_v47  ;;  %v241_v58 = vld [vmem:[#allocation2 + $0x2d0] sm:$0xff]  ;;  %v282_v43 = vld [vmem:[#allocation2 + $0x418] sm:$0xff] }
 0x281   :  { %v10118_v3 = vcombine.low %v241_v58, %v245_v52 }
 0x283   :  { %7034 = vmatpush1.bf16.msra.mxu0 %v10062_v57  ;;  %7378 = vmatpush1.bf16.msra.mxu1 %v10064_v60  ;;  %v10112_v57 = vcombine.low %v234_v44, %v238_v47  ;;  %v10119_v60 = vcombine.high %v241_v58, %v245_v52  ;;  %v286_v44 = vld [vmem:[#allocation2 + $0x438] sm:$0xff]  ;;  %v293_v58 = vld [vmem:[#allocation2 + $0x470] sm:$0xff] }
 0x284   :  { %7035 = vmatprep.subr.bf16.mxu0 %v10071_v61  ;;  %7379 = vmatprep.subr.bf16.mxu1 %v10073_v62  ;;  %v10121_v61 = vcombine.high %v242_v54, %v246_v55  ;;  %v249_v62 = vld [vmem:[#allocation2 + $0x310] sm:$0xff]  ;;  %v290_v52 = vld [vmem:[#allocation2 + $0x458] sm:$0xff] }
 0x285   :  { %v10126_v14 = vcombine.low %v249_v62, %v253_v63 }
 0x287   :  { %7036 = vmatpush1.bf16.msra.mxu0 %v10070_v4  ;;  %7380 = vmatpush1.bf16.msra.mxu1 %v10072_v5  ;;  %v10120_v4 = vcombine.low %v242_v54, %v246_v55  ;;  %v10127_v5 = vcombine.high %v249_v62, %v253_v63  ;;  %v294_v54 = vld [vmem:[#allocation2 + $0x478] sm:$0xff]  ;;  %v301_v62 = vld [vmem:[#allocation2 + $0x4b0] sm:$0xff] }
 0x288   :  { %7037 = vmatprep.subr.bf16.mxu0 %v10079_v7  ;;  %7381 = vmatprep.subr.bf16.mxu1 %v10081_v8  ;;  %v10129_v7 = vcombine.high %v250_v1, %v254_v2  ;;  %v257_v8 = vld [vmem:[#allocation2 + $0x350] sm:$0xff]  ;;  %v298_v63 = vld [vmem:[#allocation2 + $0x498] sm:$0xff] }
 0x289   :  { %v10134_v23 = vcombine.low %v257_v8, %v261_v9 }
 0x28b   :  { %7038 = vmatpush1.bf16.msra.mxu0 %v10078_v16  ;;  %7382 = vmatpush1.bf16.msra.mxu1 %v10080_v17  ;;  %v10128_v16 = vcombine.low %v250_v1, %v254_v2  ;;  %v10135_v17 = vcombine.high %v257_v8, %v261_v9  ;;  %v302_v1 = vld [vmem:[#allocation2 + $0x4b8] sm:$0xff]  ;;  %v309_v8 = vld [vmem:[#allocation2 + $0x4f0] sm:$0xff] }
 0x28c   :  { %7039 = vmatprep.subr.bf16.mxu0 %v10087_v18  ;;  %7383 = vmatprep.subr.bf16.mxu1 %v10089_v19  ;;  %v10137_v18 = vcombine.high %v258_v11, %v262_v12  ;;  %v265_v19 = vld [vmem:[#allocation2 + $0x390] sm:$0xff]  ;;  %v306_v9 = vld [vmem:[#allocation2 + $0x4d8] sm:$0xff] }
 0x28d   :  { %v10142_v35 = vcombine.low %v265_v19, %v269_v20 }
 0x28f   :  { %7040 = vmatpush1.bf16.msra.mxu0 %v10086_v24  ;;  %7384 = vmatpush1.bf16.msra.mxu1 %v10088_v27  ;;  %v10136_v24 = vcombine.low %v258_v11, %v262_v12  ;;  %v10143_v27 = vcombine.high %v265_v19, %v269_v20  ;;  %v310_v11 = vld [vmem:[#allocation2 + $0x4f8] sm:$0xff] }
 0x290   :  { %7041 = vmatprep.subr.bf16.mxu0 %v10095_v28  ;;  %7385 = vmatprep.subr.bf16.mxu1 %v10097_v29  ;;  %v10145_v28 = vcombine.high %v266_v21, %v270_v22  ;;  %v273_v29 = vld [vmem:[#allocation2 + $0x3d0] sm:$0xff]  ;;  %v314_v19 = vld [vmem:[#allocation2 + $0x518] sm:$0xff] }
 0x291   :  { %v10150_v47 = vcombine.low %v273_v29, %v277_v31  ;;  %v318_v20 = vld [vmem:[#allocation2 + $0x538] sm:$0xff] }
 0x293   :  { %7042 = vmatpush1.bf16.msra.mxu0 %v10094_v36  ;;  %7386 = vmatpush1.bf16.msra.mxu1 %v10096_v39  ;;  %v10144_v36 = vcombine.low %v266_v21, %v270_v22  ;;  %v10151_v39 = vcombine.high %v273_v29, %v277_v31  ;;  %v10184_v22 = vcombine.low %v306_v9, %v310_v11  ;;  %v326_v29 = vld [vmem:[#allocation2 + $0x578] sm:$0xff] }
 0x294   :  { %7043 = vmatprep.subr.bf16.mxu0 %v10103_v40  ;;  %7387 = vmatprep.subr.bf16.mxu1 %v10105_v41  ;;  %v10153_v40 = vcombine.high %v274_v32, %v278_v34  ;;  %v281_v41 = vld [vmem:[#allocation2 + $0x410] sm:$0xff] }
 0x295   :  { %v10158_v55 = vcombine.low %v281_v41, %v285_v42 }
 0x297   :  { %7044 = vmatpush1.bf16.msra.mxu0 %v10102_v48  ;;  %7388 = vmatpush1.bf16.msra.mxu1 %v10104_v49  ;;  %v10152_v48 = vcombine.low %v274_v32, %v278_v34  ;;  %v10159_v49 = vcombine.high %v281_v41, %v285_v42  ;;  %v10192_v32 = vcombine.low %v314_v19, %v318_v20  ;;  %v334_v41 = vld [vmem:[#allocation2 + $0x5b8] sm:$0xff] }
 0x298   :  { %7045 = vmatprep.subr.bf16.mxu0 %v10111_v50  ;;  %7389 = vmatprep.subr.bf16.mxu1 %v10113_v51  ;;  %v10161_v50 = vcombine.high %v282_v43, %v286_v44  ;;  %v289_v51 = vld [vmem:[#allocation2 + $0x450] sm:$0xff] }
 0x299   :  { %v10166_v2 = vcombine.low %v289_v51, %v293_v58 }
 0x29b   :  { %7046 = vmatpush1.bf16.msra.mxu0 %v10110_v56  ;;  %7390 = vmatpush1.bf16.msra.mxu1 %v10112_v57  ;;  %v10160_v56 = vcombine.low %v282_v43, %v286_v44  ;;  %v10167_v57 = vcombine.high %v289_v51, %v293_v58  ;;  %v342_v51 = vld [vmem:[#allocation2 + $0x5f8] sm:$0xff] }
 0x29c   :  { %7047 = vmatprep.subr.bf16.mxu0 %v10119_v60  ;;  %7391 = vmatprep.subr.bf16.mxu1 %v10121_v61  ;;  %v10169_v60 = vcombine.high %v290_v52, %v294_v54  ;;  %v297_v61 = vld [vmem:[#allocation2 + $0x490] sm:$0xff] }
 0x29d   :  { %v10174_v12 = vcombine.low %v297_v61, %v301_v62 }
 0x29f   :  { %7048 = vmatpush1.bf16.msra.mxu0 %v10118_v3  ;;  %7392 = vmatpush1.bf16.msra.mxu1 %v10120_v4  ;;  %v10168_v3 = vcombine.low %v290_v52, %v294_v54  ;;  %v10175_v4 = vcombine.high %v297_v61, %v301_v62  ;;  %v350_v61 = vld [vmem:[#allocation2 + $0x638] sm:$0xff] }
 0x2a0   :  { %7049 = vmatprep.subr.bf16.mxu0 %v10127_v5  ;;  %7393 = vmatprep.subr.bf16.mxu1 %v10129_v7  ;;  %v10177_v5 = vcombine.high %v298_v63, %v302_v1  ;;  %v305_v7 = vld [vmem:[#allocation2 + $0x4d0] sm:$0xff] }
 0x2a1   :  { %v10182_v21 = vcombine.low %v305_v7, %v309_v8 }
 0x2a3   :  { %7050 = vmatpush1.bf16.msra.mxu0 %v10126_v14  ;;  %7394 = vmatpush1.bf16.msra.mxu1 %v10128_v16  ;;  %v10183_v14 = vcombine.high %v305_v7, %v309_v8  ;;  %v10185_v16 = vcombine.high %v306_v9, %v310_v11  ;;  %v358_v7 = vld [vmem:[#allocation2 + $0x678] sm:$0xff] }
 0x2a4   :  { %7051 = vmatprep.subr.bf16.mxu0 %v10135_v17  ;;  %7395 = vmatprep.subr.bf16.mxu1 %v10137_v18  ;;  %v313_v17 = vld [vmem:[#allocation2 + $0x510] sm:$0xff] }
 0x2a5   :  { %v317_v18 = vld [vmem:[#allocation2 + $0x530] sm:$0xff] }
 0x2a6   :  { %v10190_v31 = vcombine.low %v313_v17, %v317_v18 }
 0x2a7   :  { %7052 = vmatpush1.bf16.msra.mxu0 %v10134_v23  ;;  %7396 = vmatpush1.bf16.msra.mxu1 %v10136_v24  ;;  %v10191_v23 = vcombine.high %v313_v17, %v317_v18  ;;  %v321_v24 = vld [vmem:[#allocation2 + $0x550] sm:$0xff]  ;;  %v366_v17 = vld [vmem:[#allocation2 + $0x6b8] sm:$0xff] }
 0x2a8   :  { %7053 = vmatprep.subr.bf16.mxu0 %v10143_v27  ;;  %7397 = vmatprep.subr.bf16.mxu1 %v10145_v28  ;;  %v325_v27 = vld [vmem:[#allocation2 + $0x570] sm:$0xff]  ;;  %v322_v28 = vld [vmem:[#allocation2 + $0x558] sm:$0xff] }
 0x2a9   :  { %v10199_v34 = vcombine.high %v321_v24, %v325_v27  ;;  %v10198_v42 = vcombine.low %v321_v24, %v325_v27  ;;  %v10200_v43 = vcombine.low %v322_v28, %v326_v29  ;;  %v374_v24 = vld [vmem:[#allocation2 + $0x6f8] sm:$0xff] }
 0x2ab   :  { %7054 = vmatpush1.bf16.msra.mxu0 %v10142_v35  ;;  %7398 = vmatpush1.bf16.msra.mxu1 %v10144_v36  ;;  %v10201_v35 = vcombine.high %v322_v28, %v326_v29  ;;  %v329_v36 = vld [vmem:[#allocation2 + $0x590] sm:$0xff] }
 0x2ac   :  { %7055 = vmatprep.subr.bf16.mxu0 %v10151_v39  ;;  %7399 = vmatprep.subr.bf16.mxu1 %v10153_v40  ;;  %v333_v39 = vld [vmem:[#allocation2 + $0x5b0] sm:$0xff]  ;;  %v330_v40 = vld [vmem:[#allocation2 + $0x598] sm:$0xff] }
 0x2ad   :  { %v10207_v44 = vcombine.high %v329_v36, %v333_v39  ;;  %v10206_v58 = vcombine.low %v329_v36, %v333_v39  ;;  %v10208_v52 = vcombine.low %v330_v40, %v334_v41  ;;  %v382_v36 = vld [vmem:[#allocation2 + $0x738] sm:$0xff] }
 0x2af   :  { %7056 = vmatpush1.bf16.msra.mxu0 %v10150_v47  ;;  %7400 = vmatpush1.bf16.msra.mxu1 %v10152_v48  ;;  %v10209_v47 = vcombine.high %v330_v40, %v334_v41  ;;  %v337_v48 = vld [vmem:[#allocation2 + $0x5d0] sm:$0xff] }
 0x2b0   :  { %7068 = vmatprep.subr.bf16.mxu0 %v10159_v49  ;;  %7412 = vmatprep.subr.bf16.mxu1 %v10161_v50  ;;  %v341_v49 = vld [vmem:[#allocation2 + $0x5f0] sm:$0xff]  ;;  %v338_v50 = vld [vmem:[#allocation2 + $0x5d8] sm:$0xff] }
 0x2b1   :  { %v10215_v54 = vcombine.high %v337_v48, %v341_v49  ;;  %v10214_v62 = vcombine.low %v337_v48, %v341_v49  ;;  %v390_v48 = vld [vmem:[#allocation2 + $0x778] sm:$0xff] }
 0x2b2   :  { %7058 = vmatmul.mubr.bf16.vlgmr.msra.gmra.mrb[4].mxu0 %v12271_v15  ;;  %7402 = vmatmul.mubr.bf16.vlgmr.msra.gmra.mrb[4].mxu1 %v12271_v15  ;;  %v10176_v15 = vcombine.low %v298_v63, %v302_v1  ;;  %v10216_v63 = vcombine.low %v338_v50, %v342_v51 }
 0x2b3   :  { %7069 = vmatpush1.bf16.msra.mxu0 %v10158_v55  ;;  %7413 = vmatpush1.bf16.msra.mxu1 %v10160_v56  ;;  %v10217_v55 = vcombine.high %v338_v50, %v342_v51  ;;  %v345_v56 = vld [vmem:[#allocation2 + $0x610] sm:$0xff] }
 0x2b4   :  { %7070 = vmatprep.subr.bf16.mxu0 %v10167_v57  ;;  %7414 = vmatprep.subr.bf16.mxu1 %v10169_v60  ;;  %v349_v57 = vld [vmem:[#allocation2 + $0x630] sm:$0xff]  ;;  %v346_v60 = vld [vmem:[#allocation2 + $0x618] sm:$0xff] }
 0x2b5   :  { %7100 = vmatprep.mubr.bf16.mxu0 %v12279_v25  ;;  %7444 = vmatprep.mubr.bf16.mxu1 %v12279_v25  ;;  %v10193_v25 = vcombine.high %v314_v19, %v318_v20  ;;  %v10223_v1 = vcombine.high %v345_v56, %v349_v57  ;;  %v10222_v8 = vcombine.low %v345_v56, %v349_v57  ;;  %v398_v56 = vld [vmem:[#allocation2 + $0x7b8] sm:$0xff] }
 0x2b6   :  { %v10224_v9 = vcombine.low %v346_v60, %v350_v61 }
 0x2b7   :  { %7071 = vmatpush1.bf16.msra.mxu0 %v10166_v2  ;;  %7415 = vmatpush1.bf16.msra.mxu1 %v10168_v3  ;;  %v10225_v2 = vcombine.high %v346_v60, %v350_v61  ;;  %v353_v3 = vld [vmem:[#allocation2 + $0x650] sm:$0xff] }
 0x2b8   :  { %7072 = vmatprep.subr.bf16.mxu0 %v10175_v4  ;;  %7416 = vmatprep.subr.bf16.mxu1 %v10177_v5  ;;  %v357_v4 = vld [vmem:[#allocation2 + $0x670] sm:$0xff]  ;;  %v354_v5 = vld [vmem:[#allocation2 + $0x658] sm:$0xff] }
 0x2b9   :  { %v10231_v11 = vcombine.high %v353_v3, %v357_v4  ;;  %v10230_v18 = vcombine.low %v353_v3, %v357_v4  ;;  %v10232_v19 = vcombine.low %v354_v5, %v358_v7  ;;  %v406_v3 = vld [vmem:[#allocation2 + $0x7f8] sm:$0xff] }
 0x2bb   :  { %7073 = vmatpush1.bf16.msra.mxu0 %v10174_v12  ;;  %7417 = vmatpush1.bf16.msra.mxu1 %v10176_v15  ;;  %v10233_v12 = vcombine.high %v354_v5, %v358_v7  ;;  %v361_v15 = vld [vmem:[#allocation2 + $0x690] sm:$0xff] }
 0x2bc   :  { %7074 = vmatprep.subr.bf16.mxu0 %v10183_v14  ;;  %7418 = vmatprep.subr.bf16.mxu1 %v10185_v16  ;;  %v365_v14 = vld [vmem:[#allocation2 + $0x6b0] sm:$0xff]  ;;  %v362_v16 = vld [vmem:[#allocation2 + $0x698] sm:$0xff] }
 0x2bd   :  { %v10239_v20 = vcombine.high %v361_v15, %v365_v14  ;;  %v10238_v27 = vcombine.low %v361_v15, %v365_v14  ;;  %v10240_v28 = vcombine.low %v362_v16, %v366_v17  ;;  %v414_v15 = vld [vmem:[#allocation2 + $0x838] sm:$0xff] }
 0x2bf   :  { %7075 = vmatpush1.bf16.msra.mxu0 %v10182_v21  ;;  %7419 = vmatpush1.bf16.msra.mxu1 %v10184_v22  ;;  %v10241_v21 = vcombine.high %v362_v16, %v366_v17  ;;  %v369_v22 = vld [vmem:[#allocation2 + $0x6d0] sm:$0xff] }
 0x2c0   :  { %7076 = vmatprep.subr.bf16.mxu0 %v10191_v23  ;;  %7420 = vmatprep.subr.bf16.mxu1 %v10193_v25  ;;  %v373_v23 = vld [vmem:[#allocation2 + $0x6f0] sm:$0xff]  ;;  %v370_v25 = vld [vmem:[#allocation2 + $0x6d8] sm:$0xff] }
 0x2c1   :  { %v10247_v29 = vcombine.high %v369_v22, %v373_v23  ;;  %v10246_v39 = vcombine.low %v369_v22, %v373_v23  ;;  %v10248_v40 = vcombine.low %v370_v25, %v374_v24  ;;  %v422_v22 = vld [vmem:[#allocation2 + $0x878] sm:$0xff] }
 0x2c3   :  { %7077 = vmatpush1.bf16.msra.mxu0 %v10190_v31  ;;  %7421 = vmatpush1.bf16.msra.mxu1 %v10192_v32  ;;  %v10249_v31 = vcombine.high %v370_v25, %v374_v24  ;;  %v377_v32 = vld [vmem:[#allocation2 + $0x710] sm:$0xff] }
 0x2c4   :  { %7078 = vmatprep.subr.bf16.mxu0 %v10199_v34  ;;  %7422 = vmatprep.subr.bf16.mxu1 %v10201_v35  ;;  %v381_v34 = vld [vmem:[#allocation2 + $0x730] sm:$0xff]  ;;  %v378_v35 = vld [vmem:[#allocation2 + $0x718] sm:$0xff] }
 0x2c5   :  { %v10255_v41 = vcombine.high %v377_v32, %v381_v34  ;;  %v10254_v49 = vcombine.low %v377_v32, %v381_v34  ;;  %v10256_v50 = vcombine.low %v378_v35, %v382_v36  ;;  %v430_v32 = vld [vmem:[#allocation2 + $0x8b8] sm:$0xff] }
 0x2c7   :  { %7079 = vmatpush1.bf16.msra.mxu0 %v10198_v42  ;;  %7423 = vmatpush1.bf16.msra.mxu1 %v10200_v43  ;;  %v10257_v42 = vcombine.high %v378_v35, %v382_v36  ;;  %v385_v43 = vld [vmem:[#allocation2 + $0x750] sm:$0xff] }
 0x2c8   :  { %7080 = vmatprep.subr.bf16.mxu0 %v10207_v44  ;;  %7424 = vmatprep.subr.bf16.mxu1 %v10209_v47  ;;  %v389_v44 = vld [vmem:[#allocation2 + $0x770] sm:$0xff]  ;;  %v386_v47 = vld [vmem:[#allocation2 + $0x758] sm:$0xff] }
 0x2c9   :  { %v10263_v51 = vcombine.high %v385_v43, %v389_v44  ;;  %v10262_v57 = vcombine.low %v385_v43, %v389_v44  ;;  %v10264_v60 = vcombine.low %v386_v47, %v390_v48  ;;  %v438_v43 = vld [vmem:[#allocation2 + $0x8f8] sm:$0xff] }
 0x2cb   :  { %7081 = vmatpush1.bf16.msra.mxu0 %v10206_v58  ;;  %7425 = vmatpush1.bf16.msra.mxu1 %v10208_v52  ;;  %v10265_v58 = vcombine.high %v386_v47, %v390_v48  ;;  %v393_v52 = vld [vmem:[#allocation2 + $0x790] sm:$0xff] }
 0x2cc   :  { %7082 = vmatprep.subr.bf16.mxu0 %v10215_v54  ;;  %7426 = vmatprep.subr.bf16.mxu1 %v10217_v55  ;;  %v397_v54 = vld [vmem:[#allocation2 + $0x7b0] sm:$0xff]  ;;  %v394_v55 = vld [vmem:[#allocation2 + $0x798] sm:$0xff] }
 0x2cd   :  { %v10271_v61 = vcombine.high %v393_v52, %v397_v54  ;;  %v10270_v4 = vcombine.low %v393_v52, %v397_v54  ;;  %v10272_v5 = vcombine.low %v394_v55, %v398_v56 }
 0x2cf   :  { %7083 = vmatpush1.bf16.msra.mxu0 %v10214_v62  ;;  %7427 = vmatpush1.bf16.msra.mxu1 %v10216_v63  ;;  %v10273_v62 = vcombine.high %v394_v55, %v398_v56  ;;  %v401_v63 = vld [vmem:[#allocation2 + $0x7d0] sm:$0xff] }
 0x2d0   :  { %7084 = vmatprep.subr.bf16.mxu0 %v10223_v1  ;;  %7428 = vmatprep.subr.bf16.mxu1 %v10225_v2  ;;  %v405_v1 = vld [vmem:[#allocation2 + $0x7f0] sm:$0xff]  ;;  %v402_v2 = vld [vmem:[#allocation2 + $0x7d8] sm:$0xff] }
 0x2d1   :  { %v10279_v7 = vcombine.high %v401_v63, %v405_v1  ;;  %v10278_v14 = vcombine.low %v401_v63, %v405_v1  ;;  %v10280_v16 = vcombine.low %v402_v2, %v406_v3  ;;  %v449_v56 = vld [vmem:[#allocation2 + $0x950] sm:$0xff] }
 0x2d3   :  { %7085 = vmatpush1.bf16.msra.mxu0 %v10222_v8  ;;  %7429 = vmatpush1.bf16.msra.mxu1 %v10224_v9  ;;  %v10281_v8 = vcombine.high %v402_v2, %v406_v3  ;;  %v409_v9 = vld [vmem:[#allocation2 + $0x810] sm:$0xff] }
 0x2d4   :  { %7086 = vmatprep.subr.bf16.mxu0 %v10231_v11  ;;  %7430 = vmatprep.subr.bf16.mxu1 %v10233_v12  ;;  %v413_v11 = vld [vmem:[#allocation2 + $0x830] sm:$0xff]  ;;  %v410_v12 = vld [vmem:[#allocation2 + $0x818] sm:$0xff] }
 0x2d5   :  { %v10287_v17 = vcombine.high %v409_v9, %v413_v11  ;;  %v10286_v23 = vcombine.low %v409_v9, %v413_v11  ;;  %v10288_v25 = vcombine.low %v410_v12, %v414_v15  ;;  %v457_v3 = vld [vmem:[#allocation2 + $0x990] sm:$0xff] }
 0x2d7   :  { %7087 = vmatpush1.bf16.msra.mxu0 %v10230_v18  ;;  %7431 = vmatpush1.bf16.msra.mxu1 %v10232_v19  ;;  %v10289_v18 = vcombine.high %v410_v12, %v414_v15  ;;  %v417_v19 = vld [vmem:[#allocation2 + $0x850] sm:$0xff] }
 0x2d8   :  { %7088 = vmatprep.subr.bf16.mxu0 %v10239_v20  ;;  %7432 = vmatprep.subr.bf16.mxu1 %v10241_v21  ;;  %v421_v20 = vld [vmem:[#allocation2 + $0x870] sm:$0xff]  ;;  %v418_v21 = vld [vmem:[#allocation2 + $0x858] sm:$0xff] }
 0x2d9   :  { %v10295_v24 = vcombine.high %v417_v19, %v421_v20  ;;  %v10294_v34 = vcombine.low %v417_v19, %v421_v20  ;;  %v10296_v35 = vcombine.low %v418_v21, %v422_v22  ;;  %v465_v15 = vld [vmem:[#allocation2 + $0x9d0] sm:$0xff] }
 0x2db   :  { %7089 = vmatpush1.bf16.msra.mxu0 %v10238_v27  ;;  %7433 = vmatpush1.bf16.msra.mxu1 %v10240_v28  ;;  %v10297_v27 = vcombine.high %v418_v21, %v422_v22  ;;  %v425_v28 = vld [vmem:[#allocation2 + $0x890] sm:$0xff] }
 0x2dc   :  { %7090 = vmatprep.subr.bf16.mxu0 %v10247_v29  ;;  %7434 = vmatprep.subr.bf16.mxu1 %v10249_v31  ;;  %v429_v29 = vld [vmem:[#allocation2 + $0x8b0] sm:$0xff]  ;;  %v426_v31 = vld [vmem:[#allocation2 + $0x898] sm:$0xff] }
 0x2dd   :  { %v10303_v36 = vcombine.high %v425_v28, %v429_v29  ;;  %v10302_v44 = vcombine.low %v425_v28, %v429_v29  ;;  %v473_v22 = vld [vmem:[#allocation2 + $0xa10] sm:$0xff] }
 0x2df   :  { %7091 = vmatpush1.bf16.msra.mxu0 %v10246_v39  ;;  %7435 = vmatpush1.bf16.msra.mxu1 %v10248_v40  ;;  %v10305_v39 = vcombine.high %v426_v31, %v430_v32  ;;  %v433_v40 = vld [vmem:[#allocation2 + $0x8d0] sm:$0xff] }
 0x2e0   :  { %7092 = vmatprep.subr.bf16.mxu0 %v10255_v41  ;;  %7436 = vmatprep.subr.bf16.mxu1 %v10257_v42  ;;  %v437_v41 = vld [vmem:[#allocation2 + $0x8f0] sm:$0xff]  ;;  %v434_v42 = vld [vmem:[#allocation2 + $0x8d8] sm:$0xff] }
 0x2e1   :  { %v10311_v47 = vcombine.high %v433_v40, %v437_v41  ;;  %v10313_v48 = vcombine.high %v434_v42, %v438_v43  ;;  %v10310_v52 = vcombine.low %v433_v40, %v437_v41  ;;  %v10312_v54 = vcombine.low %v434_v42, %v438_v43  ;;  %v489_v43 = vld [vmem:[#allocation2 + $0xa90] sm:$0xff] }
 0x2e3   :  { %7093 = vmatpush1.bf16.msra.mxu0 %v10254_v49  ;;  %7437 = vmatpush1.bf16.msra.mxu1 %v10256_v50  ;;  %v441_v49 = vld [vmem:[#allocation2 + $0x910] sm:$0xff] }
 0x2e4   :  { %7094 = vmatprep.subr.bf16.mxu0 %v10263_v51  ;;  %7438 = vmatprep.subr.bf16.mxu1 %v10265_v58  ;;  %v445_v50 = vld [vmem:[#allocation2 + $0x930] sm:$0xff]  ;;  %v442_v51 = vld [vmem:[#allocation2 + $0x918] sm:$0xff] }
 0x2e5   :  { %v446_v58 = vld [vmem:[#allocation2 + $0x938] sm:$0xff]  ;;  %v10319_v55 = vcombine.high %v441_v49, %v445_v50 }
 0x2e6   :  { %v10320_v63 = vcombine.low %v442_v51, %v446_v58 }
 0x2e7   :  { %7095 = vmatpush1.bf16.msra.mxu0 %v10262_v57  ;;  %7439 = vmatpush1.bf16.msra.mxu1 %v10264_v60  ;;  %v453_v57 = vld [vmem:[#allocation2 + $0x970] sm:$0xff]  ;;  %v450_v60 = vld [vmem:[#allocation2 + $0x958] sm:$0xff] }
 0x2e8   :  { %7096 = vmatprep.subr.bf16.mxu0 %v10271_v61  ;;  %7440 = vmatprep.subr.bf16.mxu1 %v10273_v62  ;;  %v454_v61 = vld [vmem:[#allocation2 + $0x978] sm:$0xff]  ;;  %v10318_v62 = vcombine.low %v441_v49, %v445_v50  ;;  %v10327_v1 = vcombine.high %v449_v56, %v453_v57 }
 0x2e9   :  { %v10329_v2 = vcombine.high %v450_v60, %v454_v61  ;;  %v10328_v9 = vcombine.low %v450_v60, %v454_v61  ;;  %v505_v61 = vld [vmem:[#allocation2 + $0xb10] sm:$0xff] }
 0x2eb   :  { %7097 = vmatpush1.bf16.msra.mxu0 %v10270_v4  ;;  %7441 = vmatpush1.bf16.msra.mxu1 %v10272_v5  ;;  %v461_v4 = vld [vmem:[#allocation2 + $0x9b0] sm:$0xff]  ;;  %v458_v5 = vld [vmem:[#allocation2 + $0x998] sm:$0xff] }
 0x2ec   :  { %7098 = vmatprep.subr.bf16.mxu0 %v10279_v7  ;;  %7442 = vmatprep.subr.bf16.mxu1 %v10281_v8  ;;  %v462_v7 = vld [vmem:[#allocation2 + $0x9b8] sm:$0xff]  ;;  %v10326_v8 = vcombine.low %v449_v56, %v453_v57  ;;  %v10335_v11 = vcombine.high %v457_v3, %v461_v4 }
 0x2ed   :  { %v10337_v12 = vcombine.high %v458_v5, %v462_v7  ;;  %v10336_v19 = vcombine.low %v458_v5, %v462_v7  ;;  %v513_v7 = vld [vmem:[#allocation2 + $0xb50] sm:$0xff] }
 0x2ef   :  { %7099 = vmatpush1.bf16.msra.mxu0 %v10278_v14  ;;  %7443 = vmatpush1.bf16.msra.mxu1 %v10280_v16  ;;  %v469_v14 = vld [vmem:[#allocation2 + $0x9f0] sm:$0xff]  ;;  %v466_v16 = vld [vmem:[#allocation2 + $0x9d8] sm:$0xff] }
 0x2f0   :  { %7111 = vmatprep.subr.bf16.mxu0 %v10287_v17  ;;  %7455 = vmatprep.subr.bf16.mxu1 %v10289_v18  ;;  %v470_v17 = vld [vmem:[#allocation2 + $0x9f8] sm:$0xff]  ;;  %v10334_v18 = vcombine.low %v457_v3, %v461_v4  ;;  %v10343_v20 = vcombine.high %v465_v15, %v469_v14 }
 0x2f1   :  { %v10345_v21 = vcombine.high %v466_v16, %v470_v17  ;;  %v10344_v28 = vcombine.low %v466_v16, %v470_v17  ;;  %v521_v17 = vld [vmem:[#allocation2 + $0xb90] sm:$0xff] }
 0x2f2   :  { %7101 = vmatmul.mubr.bf16.vlgmr.msra.gmra.mrb[4].mxu0 %v12297_v30  ;;  %7445 = vmatmul.mubr.bf16.vlgmr.msra.gmra.mrb[4].mxu1 %v12297_v30  ;;  %v10304_v30 = vcombine.low %v426_v31, %v430_v32  ;;  %v481_v32 = vld [vmem:[#allocation2 + $0xa50] sm:$0xff] }
 0x2f3   :  { %7112 = vmatpush1.bf16.msra.mxu0 %v10286_v23  ;;  %7456 = vmatpush1.bf16.msra.mxu1 %v10288_v25  ;;  %v477_v23 = vld [vmem:[#allocation2 + $0xa30] sm:$0xff]  ;;  %v474_v25 = vld [vmem:[#allocation2 + $0xa18] sm:$0xff] }
 0x2f4   :  { %7113 = vmatprep.subr.bf16.mxu0 %v10295_v24  ;;  %7457 = vmatprep.subr.bf16.mxu1 %v10297_v27  ;;  %v478_v24 = vld [vmem:[#allocation2 + $0xa38] sm:$0xff]  ;;  %v10342_v27 = vcombine.low %v465_v15, %v469_v14  ;;  %v10351_v29 = vcombine.high %v473_v22, %v477_v23 }
 0x2f5   :  { %7143 = vmatprep.mubr.bf16.mxu0 %v12299_v37  ;;  %7487 = vmatprep.mubr.bf16.mxu1 %v12299_v37  ;;  %v10321_v37 = vcombine.high %v442_v51, %v446_v58  ;;  %v10353_v31 = vcombine.high %v474_v25, %v478_v24  ;;  %v10352_v40 = vcombine.low %v474_v25, %v478_v24  ;;  %v497_v58 = vld [vmem:[#allocation2 + $0xad0] sm:$0xff] }
 0x2f6   :  { %v529_v24 = vld [vmem:[#allocation2 + $0xbd0] sm:$0xff] }
 0x2f7   :  { %7114 = vmatpush1.bf16.msra.mxu0 %v10294_v34  ;;  %7458 = vmatpush1.bf16.msra.mxu1 %v10296_v35  ;;  %v485_v34 = vld [vmem:[#allocation2 + $0xa70] sm:$0xff]  ;;  %v482_v35 = vld [vmem:[#allocation2 + $0xa58] sm:$0xff] }
 0x2f8   :  { %7115 = vmatprep.subr.bf16.mxu0 %v10303_v36  ;;  %7459 = vmatprep.subr.bf16.mxu1 %v10305_v39  ;;  %v486_v36 = vld [vmem:[#allocation2 + $0xa78] sm:$0xff]  ;;  %v10350_v39 = vcombine.low %v473_v22, %v477_v23  ;;  %v10359_v41 = vcombine.high %v481_v32, %v485_v34 }
 0x2f9   :  { %v10361_v42 = vcombine.high %v482_v35, %v486_v36  ;;  %v10360_v49 = vcombine.low %v482_v35, %v486_v36  ;;  %v537_v36 = vld [vmem:[#allocation2 + $0xc10] sm:$0xff] }
 0x2fb   :  { %7116 = vmatpush1.bf16.msra.mxu0 %v10302_v44  ;;  %7460 = vmatpush1.bf16.msra.mxu1 %v10304_v30  ;;  %v493_v44 = vld [vmem:[#allocation2 + $0xab0] sm:$0xff]  ;;  %v490_v30 = vld [vmem:[#allocation2 + $0xa98] sm:$0xff] }
 0x2fc   :  { %7117 = vmatprep.subr.bf16.mxu0 %v10311_v47  ;;  %7461 = vmatprep.subr.bf16.mxu1 %v10313_v48  ;;  %v494_v47 = vld [vmem:[#allocation2 + $0xab8] sm:$0xff]  ;;  %v10358_v48 = vcombine.low %v481_v32, %v485_v34  ;;  %v10367_v50 = vcombine.high %v489_v43, %v493_v44 }
 0x2fd   :  { %v10369_v51 = vcombine.high %v490_v30, %v494_v47  ;;  %v10368_v56 = vcombine.low %v490_v30, %v494_v47  ;;  %v545_v47 = vld [vmem:[#allocation2 + $0xc50] sm:$0xff] }
 0x2ff   :  { %7118 = vmatpush1.bf16.msra.mxu0 %v10310_v52  ;;  %7462 = vmatpush1.bf16.msra.mxu1 %v10312_v54  ;;  %v501_v52 = vld [vmem:[#allocation2 + $0xaf0] sm:$0xff]  ;;  %v498_v54 = vld [vmem:[#allocation2 + $0xad8] sm:$0xff] }
 0x300   :  { %7119 = vmatprep.subr.bf16.mxu0 %v10319_v55  ;;  %7463 = vmatprep.subr.bf16.mxu1 %v10321_v37  ;;  %v502_v55 = vld [vmem:[#allocation2 + $0xaf8] sm:$0xff]  ;;  %v10366_v37 = vcombine.low %v489_v43, %v493_v44  ;;  %v10375_v57 = vcombine.high %v497_v58, %v501_v52 }
 0x301   :  { %v10377_v60 = vcombine.high %v498_v54, %v502_v55  ;;  %v10376_v3 = vcombine.low %v498_v54, %v502_v55  ;;  %v553_v55 = vld [vmem:[#allocation2 + $0xc90] sm:$0xff] }
 0x303   :  { %7120 = vmatpush1.bf16.msra.mxu0 %v10318_v62  ;;  %7464 = vmatpush1.bf16.msra.mxu1 %v10320_v63  ;;  %v509_v62 = vld [vmem:[#allocation2 + $0xb30] sm:$0xff]  ;;  %v506_v63 = vld [vmem:[#allocation2 + $0xb18] sm:$0xff] }
 0x304   :  { %7121 = vmatprep.subr.bf16.mxu0 %v10327_v1  ;;  %7465 = vmatprep.subr.bf16.mxu1 %v10329_v2  ;;  %v510_v1 = vld [vmem:[#allocation2 + $0xb38] sm:$0xff]  ;;  %v10374_v2 = vcombine.low %v497_v58, %v501_v52  ;;  %v10383_v4 = vcombine.high %v505_v61, %v509_v62 }
 0x305   :  { %v10385_v5 = vcombine.high %v506_v63, %v510_v1  ;;  %v10384_v15 = vcombine.low %v506_v63, %v510_v1  ;;  %v561_v1 = vld [vmem:[#allocation2 + $0xcd0] sm:$0xff] }
 0x307   :  { %7122 = vmatpush1.bf16.msra.mxu0 %v10326_v8  ;;  %7466 = vmatpush1.bf16.msra.mxu1 %v10328_v9  ;;  %v517_v8 = vld [vmem:[#allocation2 + $0xb70] sm:$0xff]  ;;  %v514_v9 = vld [vmem:[#allocation2 + $0xb58] sm:$0xff] }
 0x308   :  { %7123 = vmatprep.subr.bf16.mxu0 %v10335_v11  ;;  %7467 = vmatprep.subr.bf16.mxu1 %v10337_v12  ;;  %v518_v11 = vld [vmem:[#allocation2 + $0xb78] sm:$0xff]  ;;  %v10382_v12 = vcombine.low %v505_v61, %v509_v62  ;;  %v10391_v14 = vcombine.high %v513_v7, %v517_v8 }
 0x309   :  { %v10393_v16 = vcombine.high %v514_v9, %v518_v11  ;;  %v10392_v22 = vcombine.low %v514_v9, %v518_v11  ;;  %v569_v11 = vld [vmem:[#allocation2 + $0xd10] sm:$0xff] }
 0x30b   :  { %7124 = vmatpush1.bf16.msra.mxu0 %v10334_v18  ;;  %7468 = vmatpush1.bf16.msra.mxu1 %v10336_v19  ;;  %v525_v18 = vld [vmem:[#allocation2 + $0xbb0] sm:$0xff]  ;;  %v522_v19 = vld [vmem:[#allocation2 + $0xb98] sm:$0xff] }
 0x30c   :  { %7125 = vmatprep.subr.bf16.mxu0 %v10343_v20  ;;  %7469 = vmatprep.subr.bf16.mxu1 %v10345_v21  ;;  %v526_v20 = vld [vmem:[#allocation2 + $0xbb8] sm:$0xff]  ;;  %v10390_v21 = vcombine.low %v513_v7, %v517_v8  ;;  %v10399_v23 = vcombine.high %v521_v17, %v525_v18 }
 0x30d   :  { %v10401_v25 = vcombine.high %v522_v19, %v526_v20  ;;  %v10400_v32 = vcombine.low %v522_v19, %v526_v20  ;;  %v577_v20 = vld [vmem:[#allocation2 + $0xd50] sm:$0xff] }
 0x30f   :  { %7126 = vmatpush1.bf16.msra.mxu0 %v10342_v27  ;;  %7470 = vmatpush1.bf16.msra.mxu1 %v10344_v28  ;;  %v533_v27 = vld [vmem:[#allocation2 + $0xbf0] sm:$0xff]  ;;  %v530_v28 = vld [vmem:[#allocation2 + $0xbd8] sm:$0xff] }
 0x310   :  { %7127 = vmatprep.subr.bf16.mxu0 %v10351_v29  ;;  %7471 = vmatprep.subr.bf16.mxu1 %v10353_v31  ;;  %v534_v29 = vld [vmem:[#allocation2 + $0xbf8] sm:$0xff]  ;;  %v10398_v31 = vcombine.low %v521_v17, %v525_v18  ;;  %v10407_v34 = vcombine.high %v529_v24, %v533_v27 }
 0x311   :  { %v10409_v35 = vcombine.high %v530_v28, %v534_v29  ;;  %v10408_v43 = vcombine.low %v530_v28, %v534_v29 }
 0x313   :  { %7128 = vmatpush1.bf16.msra.mxu0 %v10350_v39  ;;  %7472 = vmatpush1.bf16.msra.mxu1 %v10352_v40  ;;  %v541_v39 = vld [vmem:[#allocation2 + $0xc30] sm:$0xff]  ;;  %v538_v40 = vld [vmem:[#allocation2 + $0xc18] sm:$0xff] }
 0x314   :  { %7129 = vmatprep.subr.bf16.mxu0 %v10359_v41  ;;  %7473 = vmatprep.subr.bf16.mxu1 %v10361_v42  ;;  %v542_v41 = vld [vmem:[#allocation2 + $0xc38] sm:$0xff]  ;;  %v10406_v42 = vcombine.low %v529_v24, %v533_v27  ;;  %v10415_v44 = vcombine.high %v537_v36, %v541_v39  ;;  %v1175_v27 = vld [vmem:[#allocation4] sm:$0xff] }
 0x315   :  { %v10417_v30 = vcombine.high %v538_v40, %v542_v41  ;;  %v10416_v58 = vcombine.low %v538_v40, %v542_v41  ;;  %v586_v41 = vld [vmem:[#allocation2 + $0xd98] sm:$0xff] }
 0x317   :  { %7130 = vmatpush1.bf16.msra.mxu0 %v10358_v48  ;;  %7474 = vmatpush1.bf16.msra.mxu1 %v10360_v49  ;;  %v549_v48 = vld [vmem:[#allocation2 + $0xc70] sm:$0xff]  ;;  %v546_v49 = vld [vmem:[#allocation2 + $0xc58] sm:$0xff] }
 0x318   :  { %7131 = vmatprep.subr.bf16.mxu0 %v10367_v50  ;;  %7475 = vmatprep.subr.bf16.mxu1 %v10369_v51  ;;  %v550_v50 = vld [vmem:[#allocation2 + $0xc78] sm:$0xff]  ;;  %v10414_v51 = vcombine.low %v537_v36, %v541_v39  ;;  %v10423_v52 = vcombine.high %v545_v47, %v549_v48  ;;  %v585_v36 = vld [vmem:[#allocation2 + $0xd90] sm:$0xff] }
 0x319   :  { %v10425_v54 = vcombine.high %v546_v49, %v550_v50  ;;  %v10424_v61 = vcombine.low %v546_v49, %v550_v50  ;;  %v589_v39 = vld [vmem:[#allocation2 + $0xdb0] sm:$0xff] }
 0x31a   :  { %v10463_v49 = vcombine.high %v585_v36, %v589_v39 }
 0x31b   :  { %7132 = vmatpush1.bf16.msra.mxu0 %v10366_v37  ;;  %7476 = vmatpush1.bf16.msra.mxu1 %v10368_v56  ;;  %v557_v37 = vld [vmem:[#allocation2 + $0xcb0] sm:$0xff]  ;;  %v554_v56 = vld [vmem:[#allocation2 + $0xc98] sm:$0xff] }
 0x31c   :  { %7133 = vmatprep.subr.bf16.mxu0 %v10375_v57  ;;  %7477 = vmatprep.subr.bf16.mxu1 %v10377_v60  ;;  %v558_v57 = vld [vmem:[#allocation2 + $0xcb8] sm:$0xff]  ;;  %v10422_v60 = vcombine.low %v545_v47, %v549_v48  ;;  %v10431_v62 = vcombine.high %v553_v55, %v557_v37  ;;  %v10430_v7 = vcombine.low %v553_v55, %v557_v37 }
 0x31d   :  { %v10433_v63 = vcombine.high %v554_v56, %v558_v57 }
 0x31f   :  { %7134 = vmatpush1.bf16.msra.mxu0 %v10374_v2  ;;  %7478 = vmatpush1.bf16.msra.mxu1 %v10376_v3  ;;  %v565_v2 = vld [vmem:[#allocation2 + $0xcf0] sm:$0xff]  ;;  %v562_v3 = vld [vmem:[#allocation2 + $0xcd8] sm:$0xff] }
 0x320   :  { %7135 = vmatprep.subr.bf16.mxu0 %v10383_v4  ;;  %7479 = vmatprep.subr.bf16.mxu1 %v10385_v5  ;;  %v566_v4 = vld [vmem:[#allocation2 + $0xcf8] sm:$0xff]  ;;  %v1177_v5 = vlaneseq  ;;  %v10439_v8 = vcombine.high %v561_v1, %v565_v2  ;;  %v10438_v17 = vcombine.low %v561_v1, %v565_v2  ;;  %v10462_v1 = vcombine.low %v585_v36, %v589_v39 }
 0x321   :  { %v10441_v9 = vcombine.high %v562_v3, %v566_v4  ;;  %v10440_v18 = vcombine.low %v562_v3, %v566_v4 }
 0x323   :  { %7136 = vmatpush1.bf16.msra.mxu0 %v10382_v12  ;;  %7480 = vmatpush1.bf16.msra.mxu1 %v10384_v15  ;;  %v573_v12 = vld [vmem:[#allocation2 + $0xd30] sm:$0xff]  ;;  %v570_v15 = vld [vmem:[#allocation2 + $0xd18] sm:$0xff] }
 0x324   :  { %7137 = vmatprep.subr.bf16.mxu0 %v10391_v14  ;;  %7481 = vmatprep.subr.bf16.mxu1 %v10393_v16  ;;  %v574_v14 = vld [vmem:[#allocation2 + $0xd38] sm:$0xff]  ;;  %v12429_v16 = vshrl.u32 %v1177_v5, 7  ;;  %v10446_v24 = vcombine.low %v569_v11, %v573_v12 }
 0x325   :  { %v10449_v19 = vcombine.high %v570_v15, %v574_v14 }
 0x326   :  { %v1187_v28 = vsub.s32 2, %v12429_v16  ;;  %v1183_v29 = vsub.s32 1, %v12429_v16 }
 0x327   :  { %7138 = vmatpush1.bf16.msra.mxu0 %v10390_v21  ;;  %7482 = vmatpush1.bf16.msra.mxu1 %v10392_v22  ;;  %v581_v21 = vld [vmem:[#allocation2 + $0xd70] sm:$0xff]  ;;  %v1179_v22 = vsub.s32 0, %v12429_v16 }
 0x328   :  { %7139 = vmatprep.subr.bf16.mxu0 %v10399_v23  ;;  %7483 = vmatprep.subr.bf16.mxu1 %v10401_v25  ;;  %v578_v23 = vld [vmem:[#allocation2 + $0xd58] sm:$0xff] }
 0x329   :  { %v582_v25 = vld [vmem:[#allocation2 + $0xd78] sm:$0xff]  ;;  %v1180_v40 = vrot.slane %v1175_v27, %v1179_v22 }
 0x32a   :  { %v10456_v48 = vcombine.low %v578_v23, %v582_v25 }
 0x32b   :  { %7140 = vmatpush1.bf16.msra.mxu0 %v10398_v31  ;;  %7484 = vmatpush1.bf16.msra.mxu1 %v10400_v32  ;;  %v10448_v31 = vcombine.low %v570_v15, %v574_v14  ;;  %v1191_v32 = vsub.s32 3, %v12429_v16  ;;  %v601_v14 = vld [vmem:[#allocation2 + $0xe10] sm:$0xff] }
 0x32c   :  { %7141 = vmatprep.subr.bf16.mxu0 %v10407_v34  ;;  %7485 = vmatprep.subr.bf16.mxu1 %v10409_v35  ;;  %v10455_v34 = vcombine.high %v577_v20, %v581_v21  ;;  %v10457_v35 = vcombine.high %v578_v23, %v582_v25  ;;  %v606_v23 = vld [vmem:[#allocation2 + $0xe38] sm:$0xff] }
 0x32d   :  { %v1192_v47 = vrot.slane %v1175_v27, %v1191_v32 }
 0x32f   :  { %7142 = vmatpush1.bf16.msra.mxu0 %v10406_v42  ;;  %7486 = vmatpush1.bf16.msra.mxu1 %v10408_v43  ;;  %v590_v42 = vld [vmem:[#allocation2 + $0xdb8] sm:$0xff]  ;;  %v1188_v43 = vrot.slane %v1175_v27, %v1187_v28 }
 0x330   :  { %7154 = vmatprep.subr.bf16.mxu0 %v10415_v44  ;;  %7498 = vmatprep.subr.bf16.mxu1 %v10417_v30  ;;  %v1184_v44 = vrot.slane %v1175_v27, %v1183_v29  ;;  %v10454_v30 = vcombine.low %v577_v20, %v581_v21  ;;  %v10464_v2 = vcombine.low %v586_v41, %v590_v42  ;;  %v602_v21 = vld [vmem:[#allocation2 + $0xe18] sm:$0xff] }
 0x332   :  { %7144 = vmatmul.mubr.bf16.vlgmr.msra.gmra.mrb[4].mxu0 %v12317_v46  ;;  %7488 = vmatmul.mubr.bf16.vlgmr.msra.gmra.mrb[4].mxu1 %v12317_v46  ;;  %v10432_v46 = vcombine.low %v554_v56, %v558_v57  ;;  %v594_v56 = vld [vmem:[#allocation2 + $0xdd8] sm:$0xff] }
 0x333   :  { %7155 = vmatpush1.bf16.msra.mxu0 %v10414_v51  ;;  %7499 = vmatpush1.bf16.msra.mxu1 %v10416_v58  ;;  %v10465_v51 = vcombine.high %v586_v41, %v590_v42  ;;  %v593_v58 = vld [vmem:[#allocation2 + $0xdd0] sm:$0xff]  ;;  %v598_v57 = vld [vmem:[#allocation2 + $0xdf8] sm:$0xff]  ;;  %v10481_v42 = vcombine.high %v602_v21, %v606_v23 }
 0x334   :  { %7156 = vmatprep.subr.bf16.mxu0 %v10423_v52  ;;  %7500 = vmatprep.subr.bf16.mxu1 %v10425_v54  ;;  %v597_v52 = vld [vmem:[#allocation2 + $0xdf0] sm:$0xff]  ;;  %v10473_v15 = vcombine.high %v594_v56, %v598_v57  ;;  %v10472_v20 = vcombine.low %v594_v56, %v598_v57 }
 0x335   :  { %7186 = vmatprep.mubr.bf16.mxu0 %v12319_v53  ;;  %7530 = vmatprep.mubr.bf16.mxu1 %v12319_v53  ;;  %v10447_v53 = vcombine.high %v569_v11, %v573_v12  ;;  %v10470_v12 = vcombine.low %v593_v58, %v597_v52 }
 0x337   :  { %7157 = vmatpush1.bf16.msra.mxu0 %v10422_v60  ;;  %7501 = vmatpush1.bf16.msra.mxu1 %v10424_v61 }
 0x338   :  { %7158 = vmatprep.subr.bf16.mxu0 %v10431_v62  ;;  %7502 = vmatprep.subr.bf16.mxu1 %v10433_v63 }
 0x33b   :  { %7159 = vmatpush1.bf16.msra.mxu0 %v10430_v7  ;;  %7503 = vmatpush1.bf16.msra.mxu1 %v10432_v46  ;;  %v10471_v46 = vcombine.high %v593_v58, %v597_v52  ;;  %v617_v52 = vld [vmem:[#allocation2 + $0xe90] sm:$0xff] }
 0x33c   :  { %7160 = vmatprep.subr.bf16.mxu0 %v10439_v8  ;;  %7504 = vmatprep.subr.bf16.mxu1 %v10441_v9 }
 0x33f   :  { %7161 = vmatpush1.bf16.msra.mxu0 %v10438_v17  ;;  %7505 = vmatpush1.bf16.msra.mxu1 %v10440_v18  ;;  %v605_v17 = vld [vmem:[#allocation2 + $0xe30] sm:$0xff] }
 0x340   :  { %7162 = vmatprep.subr.bf16.mxu0 %v10447_v53  ;;  %7506 = vmatprep.subr.bf16.mxu1 %v10449_v19  ;;  %v10479_v39 = vcombine.high %v601_v14, %v605_v17 }
 0x343   :  { %7163 = vmatpush1.bf16.msra.mxu0 %v10446_v24  ;;  %7507 = vmatpush1.bf16.msra.mxu1 %v10448_v31 }
 0x344   :  { %7164 = vmatprep.subr.bf16.mxu0 %v10455_v34  ;;  %7508 = vmatprep.subr.bf16.mxu1 %v10457_v35 }
 0x345   :  { %v6672_v50 = vpop.f32.mrb[0].mxu0  ;;  %v7016_v55 = vpop.f32.mrb[0].mxu1 }
 0x346   :  { %v11394_v54 = vadd.f32 %v6672_v50, %v1180_v40  ;;  %v6674_v37 = vpop.f32.mrb[1].mxu0  ;;  %v11398_v60 = vadd.f32 %v7016_v55, %v1188_v43  ;;  %v7018_v62 = vpop.f32.mrb[1].mxu1  ;;  %v10480_v50 = vcombine.low %v602_v21, %v606_v23  ;;  %v618_v55 = vld [vmem:[#allocation2 + $0xe98] sm:$0xff] }
 0x347   :  { %v11395_v61 = vadd.f32 %v6674_v37, %v1184_v44  ;;  %v6676_v63 = vpop.f32.mrb[2].mxu0  ;;  %7165 = vmatpush1.bf16.msra.mxu0 %v10454_v30  ;;  %v11399_v3 = vadd.f32 %v7018_v62, %v1192_v47  ;;  %v7020_v5 = vpop.f32.mrb[2].mxu1  ;;  %7509 = vmatpush1.bf16.msra.mxu1 %v10456_v48  ;;  %v614_v48 = vld [vmem:[#allocation2 + $0xe78] sm:$0xff]  ;;  %v625_v62 = vld [vmem:[#allocation2 + $0xed0] sm:$0xff] }
 0x348   :  { %v11396_v4 = vadd.f32 %v6676_v63, %v1180_v40  ;;  %v6678_v7 = vpop.f32.mrb[3].mxu0  ;;  %7166 = vmatprep.subr.bf16.mxu0 %v10463_v49  ;;  %v11400_v8 = vadd.f32 %v7020_v5, %v1188_v43  ;;  %v7022_v11 = vpop.f32.mrb[3].mxu1  ;;  %7510 = vmatprep.subr.bf16.mxu1 %v10465_v51  ;;  %v7713_v18 = vmax.f32 %v11394_v54, 0.0  ;;  %v7715_v25 = vmax.f32 %v11398_v60, 0.0  ;;  %v609_v43 = vld [vmem:[#allocation2 + $0xe50] sm:$0xff]  ;;  %v622_v37 = vld [vmem:[#allocation2 + $0xeb8] sm:$0xff] }
 0x349   :  { %v11397_v9 = vadd.f32 %v6678_v7, %v1184_v44  ;;  %v11401_v19 = vadd.f32 %v7022_v11, %v1192_v47  ;;  %v7714_v24 = vmax.f32 %v11395_v61, 0.0  ;;  %v7716_v34 = vmax.f32 %v11399_v3, 0.0  ;;  %v613_v44 = vld [vmem:[#allocation2 + $0xe70] sm:$0xff]  ;;  %v610_v47 = vld [vmem:[#allocation2 + $0xe58] sm:$0xff] }
 0x34a   :  { %v7721_v53 = vmax.f32 %v11396_v4, 0.0  ;;  %v7723_v27 = vmax.f32 %v11400_v8, 0.0  ;;  %v10478_v49 = vcombine.low %v601_v14, %v605_v17  ;;  %v10487_v51 = vcombine.high %v609_v43, %v613_v44  ;;  %v621_v54 = vld [vmem:[#allocation2 + $0xeb0] sm:$0xff]  ;;  %v638_v11 = vld [vmem:[#allocation2 + $0xf38] sm:$0xff] }
 0x34b   :  { %v7722_v31 = vmax.f32 %v11397_v9, 0.0  ;;  %7167 = vmatpush1.bf16.msra.mxu0 %v10462_v1  ;;  %v7724_v36 = vmax.f32 %v11401_v19, 0.0  ;;  %7511 = vmatpush1.bf16.msra.mxu1 %v10464_v2  ;;  %v10489_v58 = vcombine.high %v610_v47, %v614_v48  ;;  %v10486_v56 = vcombine.low %v609_v43, %v613_v44  ;;  %v629_v63 = vld [vmem:[#allocation2 + $0xef0] sm:$0xff]  ;;  %v626_v1 = vld [vmem:[#allocation2 + $0xed8] sm:$0xff] }
 0x34c   :  { %v12443_v35 = vpack.c.bf16 %v7721_v53, %v7713_v18  ;;  %7168 = vmatprep.subr.bf16.mxu0 %v10471_v46  ;;  %v12445_v40 = vpack.c.bf16 %v7723_v27, %v7715_v25  ;;  %7512 = vmatprep.subr.bf16.mxu1 %v10473_v15  ;;  %v10488_v57 = vcombine.low %v610_v47, %v614_v48  ;;  %v630_v2 = vld [vmem:[#allocation2 + $0xef8] sm:$0xff]  ;;  %v633_v46 = vld [vmem:[#allocation2 + $0xf10] sm:$0xff] }
 0x34d   :  { %v12447_v41 = vpack.c.bf16 %v7722_v31, %v7714_v24  ;;  %v12449_v30 = vpack.c.bf16 %v7724_v36, %v7716_v34  ;;  %v10495_v60 = vcombine.high %v617_v52, %v621_v54  ;;  %v10497_v61 = vcombine.high %v618_v55, %v622_v37  ;;  %v637_v8 = vld [vmem:[#allocation2 + $0xf30] sm:$0xff]  ;;  %v634_v9 = vld [vmem:[#allocation2 + $0xf18] sm:$0xff] }
 0x34e   :  { %v10494_v3 = vcombine.low %v617_v52, %v621_v54  ;;  %v10496_v4 = vcombine.low %v618_v55, %v622_v37  ;;  %v10503_v5 = vcombine.high %v625_v62, %v629_v63  ;;  %v10505_v7 = vcombine.high %v626_v1, %v630_v2  ;;  %v641_v18 = vld [vmem:[#allocation2 + $0xf50] sm:$0xff]  ;;  %v642_v19 = vld [vmem:[#allocation2 + $0xf58] sm:$0xff] }
 0x34f   :  { %7169 = vmatpush1.bf16.msra.mxu0 %v10470_v12  ;;  %7513 = vmatpush1.bf16.msra.mxu1 %v10472_v20  ;;  %v10502_v12 = vcombine.low %v625_v62, %v629_v63  ;;  %v10504_v15 = vcombine.low %v626_v1, %v630_v2  ;;  %v10511_v14 = vcombine.high %v633_v46, %v637_v8  ;;  %v645_v53 = vld [vmem:[#allocation2 + $0xf70] sm:$0xff]  ;;  %v646_v20 = vld [vmem:[#allocation2 + $0xf78] sm:$0xff] }
 0x350   :  { %7170 = vmatprep.subr.bf16.mxu0 %v10479_v39  ;;  %7514 = vmatprep.subr.bf16.mxu1 %v10481_v42  ;;  %v10513_v17 = vcombine.high %v634_v9, %v638_v11  ;;  %v10510_v21 = vcombine.low %v633_v46, %v637_v8  ;;  %v10512_v23 = vcombine.low %v634_v9, %v638_v11  ;;  %v649_v27 = vld [vmem:[#allocation2 + $0xf90] sm:$0xff]  ;;  %v650_v34 = vld [vmem:[#allocation2 + $0xf98] sm:$0xff] }
 0x351   :  { %v10519_v25 = vcombine.high %v641_v18, %v645_v53  ;;  %v10521_v24 = vcombine.high %v642_v19, %v646_v20  ;;  %v653_v31 = vld [vmem:[#allocation2 + $0xfb0] sm:$0xff]  ;;  %v654_v36 = vld [vmem:[#allocation2 + $0xfb8] sm:$0xff]  ;;  %v10518_v39 = vcombine.low %v641_v18, %v645_v53  ;;  %v10520_v42 = vcombine.low %v642_v19, %v646_v20 }
 0x352   :  { %v10527_v43 = vcombine.high %v649_v27, %v653_v31  ;;  %v10529_v44 = vcombine.high %v650_v34, %v654_v36  ;;  %v657_v47 = vld [vmem:[#allocation2 + $0xfd0] sm:$0xff] }
 0x353   :  { %7171 = vmatpush1.bf16.msra.mxu0 %v10478_v49  ;;  %7515 = vmatpush1.bf16.msra.mxu1 %v10480_v50  ;;  %v661_v48 = vld [vmem:[#allocation2 + $0xff0] sm:$0xff]  ;;  %v658_v49 = vld [vmem:[#allocation2 + $0xfd8] sm:$0xff] }
 0x354   :  { %7172 = vmatprep.subr.bf16.mxu0 %v10487_v51  ;;  %7516 = vmatprep.subr.bf16.mxu1 %v10489_v58  ;;  %v662_v50 = vld [vmem:[#allocation2 + $0xff8] sm:$0xff]  ;;  %v10526_v51 = vcombine.low %v649_v27, %v653_v31  ;;  %v10528_v58 = vcombine.low %v650_v34, %v654_v36  ;;  %v10535_v52 = vcombine.high %v657_v47, %v661_v48  ;;  %v665_v55 = vld [vmem:[#allocation2 + $0x1010] sm:$0xff] }
 0x355   :  { %v10537_v54 = vcombine.high %v658_v49, %v662_v50  ;;  %v669_v37 = vld [vmem:[#allocation2 + $0x1030] sm:$0xff]  ;;  %v698_v36 = vld [vmem:[#allocation2 + $0x1118] sm:$0xff] }
 0x356   :  { %v10543_v62 = vcombine.high %v665_v55, %v669_v37  ;;  %v673_v1 = vld [vmem:[#allocation2 + $0x1050] sm:$0xff] }
 0x357   :  { %7173 = vmatpush1.bf16.msra.mxu0 %v10486_v56  ;;  %7517 = vmatpush1.bf16.msra.mxu1 %v10488_v57  ;;  %v666_v56 = vld [vmem:[#allocation2 + $0x1018] sm:$0xff]  ;;  %v677_v2 = vld [vmem:[#allocation2 + $0x1070] sm:$0xff] }
 0x358   :  { %7174 = vmatprep.subr.bf16.mxu0 %v10495_v60  ;;  %7518 = vmatprep.subr.bf16.mxu1 %v10497_v61  ;;  %v670_v57 = vld [vmem:[#allocation2 + $0x1038] sm:$0xff]  ;;  %v10534_v60 = vcombine.low %v657_v47, %v661_v48  ;;  %v10536_v61 = vcombine.low %v658_v49, %v662_v50  ;;  %v10551_v46 = vcombine.high %v673_v1, %v677_v2  ;;  %v681_v9 = vld [vmem:[#allocation2 + $0x1090] sm:$0xff] }
 0x359   :  { %v10545_v63 = vcombine.high %v666_v56, %v670_v57  ;;  %v685_v11 = vld [vmem:[#allocation2 + $0x10b0] sm:$0xff]  ;;  %v706_v49 = vld [vmem:[#allocation2 + $0x1158] sm:$0xff] }
 0x35a   :  { %v10559_v18 = vcombine.high %v681_v9, %v685_v11  ;;  %v689_v19 = vld [vmem:[#allocation2 + $0x10d0] sm:$0xff]  ;;  %v710_v50 = vld [vmem:[#allocation2 + $0x1178] sm:$0xff] }
 0x35b   :  { %7175 = vmatpush1.bf16.msra.mxu0 %v10494_v3  ;;  %7519 = vmatpush1.bf16.msra.mxu1 %v10496_v4  ;;  %v674_v3 = vld [vmem:[#allocation2 + $0x1058] sm:$0xff]  ;;  %v693_v20 = vld [vmem:[#allocation2 + $0x10f0] sm:$0xff] }
 0x35c   :  { %7176 = vmatprep.subr.bf16.mxu0 %v10503_v5  ;;  %7520 = vmatprep.subr.bf16.mxu1 %v10505_v7  ;;  %v678_v4 = vld [vmem:[#allocation2 + $0x1078] sm:$0xff]  ;;  %v10542_v5 = vcombine.low %v665_v55, %v669_v37  ;;  %v10544_v7 = vcombine.low %v666_v56, %v670_v57  ;;  %v697_v31 = vld [vmem:[#allocation2 + $0x1110] sm:$0xff] }
 0x35d   :  { %v10553_v8 = vcombine.high %v674_v3, %v678_v4  ;;  %v701_v34 = vld [vmem:[#allocation2 + $0x1130] sm:$0xff]  ;;  %v714_v56 = vld [vmem:[#allocation2 + $0x1198] sm:$0xff] }
 0x35e   :  { %v705_v47 = vld [vmem:[#allocation2 + $0x1150] sm:$0xff]  ;;  %v718_v57 = vld [vmem:[#allocation2 + $0x11b8] sm:$0xff] }
 0x35f   :  { %7177 = vmatpush1.bf16.msra.mxu0 %v10502_v12  ;;  %7521 = vmatpush1.bf16.msra.mxu1 %v10504_v15  ;;  %v682_v12 = vld [vmem:[#allocation2 + $0x1098] sm:$0xff]  ;;  %v709_v48 = vld [vmem:[#allocation2 + $0x1170] sm:$0xff] }
 0x360   :  { %7178 = vmatprep.subr.bf16.mxu0 %v10511_v14  ;;  %7522 = vmatprep.subr.bf16.mxu1 %v10513_v17  ;;  %v686_v15 = vld [vmem:[#allocation2 + $0x10b8] sm:$0xff]  ;;  %v10550_v14 = vcombine.low %v673_v1, %v677_v2  ;;  %v10552_v17 = vcombine.low %v674_v3, %v678_v4  ;;  %v713_v55 = vld [vmem:[#allocation2 + $0x1190] sm:$0xff] }
 0x361   :  { %v10561_v53 = vcombine.high %v682_v12, %v686_v15  ;;  %v717_v37 = vld [vmem:[#allocation2 + $0x11b0] sm:$0xff]  ;;  %v722_v3 = vld [vmem:[#allocation2 + $0x11d8] sm:$0xff] }
 0x362   :  { %v721_v1 = vld [vmem:[#allocation2 + $0x11d0] sm:$0xff]  ;;  %v726_v4 = vld [vmem:[#allocation2 + $0x11f8] sm:$0xff] }
 0x363   :  { %7179 = vmatpush1.bf16.msra.mxu0 %v10510_v21  ;;  %7523 = vmatpush1.bf16.msra.mxu1 %v10512_v23  ;;  %v690_v21 = vld [vmem:[#allocation2 + $0x10d8] sm:$0xff]  ;;  %v725_v2 = vld [vmem:[#allocation2 + $0x11f0] sm:$0xff] }
 0x364   :  { %7180 = vmatprep.subr.bf16.mxu0 %v10519_v25  ;;  %7524 = vmatprep.subr.bf16.mxu1 %v10521_v24  ;;  %v694_v23 = vld [vmem:[#allocation2 + $0x10f8] sm:$0xff]  ;;  %v10558_v25 = vcombine.low %v681_v9, %v685_v11  ;;  %v10567_v24 = vcombine.high %v689_v19, %v693_v20  ;;  %v729_v9 = vld [vmem:[#allocation2 + $0x1210] sm:$0xff] }
 0x365   :  { %v10569_v27 = vcombine.high %v690_v21, %v694_v23  ;;  %v733_v11 = vld [vmem:[#allocation2 + $0x1230] sm:$0xff] }
 0x367   :  { %7181 = vmatpush1.bf16.msra.mxu0 %v10518_v39  ;;  %7525 = vmatpush1.bf16.msra.mxu1 %v10520_v42  ;;  %v702_v39 = vld [vmem:[#allocation2 + $0x1138] sm:$0xff]  ;;  %v10566_v42 = vcombine.low %v689_v19, %v693_v20  ;;  %v737_v19 = vld [vmem:[#allocation2 + $0x1250] sm:$0xff] }
 0x368   :  { %7182 = vmatprep.subr.bf16.mxu0 %v10527_v43  ;;  %7526 = vmatprep.subr.bf16.mxu1 %v10529_v44  ;;  %v10568_v43 = vcombine.low %v690_v21, %v694_v23  ;;  %v10575_v44 = vcombine.high %v697_v31, %v701_v34  ;;  %v741_v20 = vld [vmem:[#allocation2 + $0x1270] sm:$0xff]  ;;  %v738_v21 = vld [vmem:[#allocation2 + $0x1258] sm:$0xff] }
 0x369   :  { %v742_v23 = vld [vmem:[#allocation2 + $0x1278] sm:$0xff] }
 0x36b   :  { %7183 = vmatpush1.bf16.msra.mxu0 %v10526_v51  ;;  %7527 = vmatpush1.bf16.msra.mxu1 %v10528_v58  ;;  %v10574_v51 = vcombine.low %v697_v31, %v701_v34  ;;  %v10576_v58 = vcombine.low %v698_v36, %v702_v39  ;;  %v745_v31 = vld [vmem:[#allocation2 + $0x1290] sm:$0xff] }
 0x36c   :  { %7184 = vmatprep.subr.bf16.mxu0 %v10535_v52  ;;  %7528 = vmatprep.subr.bf16.mxu1 %v10537_v54  ;;  %v10583_v52 = vcombine.high %v705_v47, %v709_v48  ;;  %v10585_v54 = vcombine.high %v706_v49, %v710_v50  ;;  %v749_v34 = vld [vmem:[#allocation2 + $0x12b0] sm:$0xff] }
 0x36f   :  { %7185 = vmatpush1.bf16.msra.mxu0 %v10534_v60  ;;  %7529 = vmatpush1.bf16.msra.mxu1 %v10536_v61  ;;  %v10582_v60 = vcombine.low %v705_v47, %v709_v48  ;;  %v10584_v61 = vcombine.low %v706_v49, %v710_v50  ;;  %v753_v47 = vld [vmem:[#allocation2 + $0x12d0] sm:$0xff]  ;;  %v754_v49 = vld [vmem:[#allocation2 + $0x12d8] sm:$0xff] }
 0x370   :  { %7197 = vmatprep.subr.bf16.mxu0 %v10543_v62  ;;  %7541 = vmatprep.subr.bf16.mxu1 %v10545_v63  ;;  %v10591_v62 = vcombine.high %v713_v55, %v717_v37  ;;  %v10593_v63 = vcombine.high %v714_v56, %v718_v57  ;;  %v757_v48 = vld [vmem:[#allocation2 + $0x12f0] sm:$0xff]  ;;  %v758_v50 = vld [vmem:[#allocation2 + $0x12f8] sm:$0xff] }
 0x372   :  { %7187 = vmatmul.mubr.bf16.vlgmr.msra.gmra.mrb[4].mxu0 %v12331_v0  ;;  %7531 = vmatmul.mubr.bf16.vlgmr.msra.gmra.mrb[4].mxu1 %v12331_v0  ;;  %v10560_v0 = vcombine.low %v682_v12, %v686_v15  ;;  %v730_v12 = vld [vmem:[#allocation2 + $0x1218] sm:$0xff] }
 0x373   :  { %7198 = vmatpush1.bf16.msra.mxu0 %v10542_v5  ;;  %7542 = vmatpush1.bf16.msra.mxu1 %v10544_v7  ;;  %v10590_v5 = vcombine.low %v713_v55, %v717_v37  ;;  %v10592_v7 = vcombine.low %v714_v56, %v718_v57  ;;  %v734_v15 = vld [vmem:[#allocation2 + $0x1238] sm:$0xff]  ;;  %v761_v55 = vld [vmem:[#allocation2 + $0x1310] sm:$0xff] }
 0x374   :  { %7199 = vmatprep.subr.bf16.mxu0 %v10551_v46  ;;  %7543 = vmatprep.subr.bf16.mxu1 %v10553_v8  ;;  %v10599_v46 = vcombine.high %v721_v1, %v725_v2  ;;  %v10601_v8 = vcombine.high %v722_v3, %v726_v4  ;;  %v765_v37 = vld [vmem:[#allocation2 + $0x1330] sm:$0xff]  ;;  %v762_v56 = vld [vmem:[#allocation2 + $0x1318] sm:$0xff] }
 0x375   :  { %7229 = vmatprep.mubr.bf16.mxu0 %v12339_v10  ;;  %7573 = vmatprep.mubr.bf16.mxu1 %v12339_v10  ;;  %v10577_v10 = vcombine.high %v698_v36, %v702_v39  ;;  %v746_v36 = vld [vmem:[#allocation2 + $0x1298] sm:$0xff] }
 0x376   :  { %v750_v39 = vld [vmem:[#allocation2 + $0x12b8] sm:$0xff] }
 0x377   :  { %7200 = vmatpush1.bf16.msra.mxu0 %v10550_v14  ;;  %7544 = vmatpush1.bf16.msra.mxu1 %v10552_v17  ;;  %v10598_v14 = vcombine.low %v721_v1, %v725_v2  ;;  %v10600_v17 = vcombine.low %v722_v3, %v726_v4  ;;  %v766_v57 = vld [vmem:[#allocation2 + $0x1338] sm:$0xff]  ;;  %v769_v1 = vld [vmem:[#allocation2 + $0x1350] sm:$0xff] }
 0x378   :  { %7201 = vmatprep.subr.bf16.mxu0 %v10559_v18  ;;  %7545 = vmatprep.subr.bf16.mxu1 %v10561_v53  ;;  %v10607_v18 = vcombine.high %v729_v9, %v733_v11  ;;  %v10609_v53 = vcombine.high %v730_v12, %v734_v15  ;;  %v773_v2 = vld [vmem:[#allocation2 + $0x1370] sm:$0xff]  ;;  %v770_v3 = vld [vmem:[#allocation2 + $0x1358] sm:$0xff] }
 0x379   :  { %v774_v4 = vld [vmem:[#allocation2 + $0x1378] sm:$0xff] }
 0x37b   :  { %7202 = vmatpush1.bf16.msra.mxu0 %v10558_v25  ;;  %7546 = vmatpush1.bf16.msra.mxu1 %v10560_v0  ;;  %v10606_v25 = vcombine.low %v729_v9, %v733_v11  ;;  %v10608_v0 = vcombine.low %v730_v12, %v734_v15  ;;  %v777_v9 = vld [vmem:[#allocation2 + $0x1390] sm:$0xff]  ;;  %v778_v12 = vld [vmem:[#allocation2 + $0x1398] sm:$0xff] }
 0x37c   :  { %7203 = vmatprep.subr.bf16.mxu0 %v10567_v24  ;;  %7547 = vmatprep.subr.bf16.mxu1 %v10569_v27  ;;  %v10615_v24 = vcombine.high %v737_v19, %v741_v20  ;;  %v10617_v27 = vcombine.high %v738_v21, %v742_v23  ;;  %v781_v11 = vld [vmem:[#allocation2 + $0x13b0] sm:$0xff]  ;;  %v782_v15 = vld [vmem:[#allocation2 + $0x13b8] sm:$0xff] }
 0x37f   :  { %7204 = vmatpush1.bf16.msra.mxu0 %v10566_v42  ;;  %7548 = vmatpush1.bf16.msra.mxu1 %v10568_v43  ;;  %v10614_v42 = vcombine.low %v737_v19, %v741_v20  ;;  %v10616_v43 = vcombine.low %v738_v21, %v742_v23  ;;  %v785_v19 = vld [vmem:[#allocation2 + $0x13d0] sm:$0xff]  ;;  %v786_v21 = vld [vmem:[#allocation2 + $0x13d8] sm:$0xff] }
 0x380   :  { %7205 = vmatprep.subr.bf16.mxu0 %v10575_v44  ;;  %7549 = vmatprep.subr.bf16.mxu1 %v10577_v10  ;;  %v10623_v44 = vcombine.high %v745_v31, %v749_v34  ;;  %v10625_v10 = vcombine.high %v746_v36, %v750_v39  ;;  %v789_v20 = vld [vmem:[#allocation2 + $0x13f0] sm:$0xff]  ;;  %v790_v23 = vld [vmem:[#allocation2 + $0x13f8] sm:$0xff] }
 0x383   :  { %7206 = vmatpush1.bf16.msra.mxu0 %v10574_v51  ;;  %7550 = vmatpush1.bf16.msra.mxu1 %v10576_v58  ;;  %v10622_v51 = vcombine.low %v745_v31, %v749_v34  ;;  %v10624_v58 = vcombine.low %v746_v36, %v750_v39  ;;  %v793_v31 = vld [vmem:[#allocation2 + $0x1410] sm:$0xff]  ;;  %v794_v36 = vld [vmem:[#allocation2 + $0x1418] sm:$0xff] }
 0x384   :  { %7207 = vmatprep.subr.bf16.mxu0 %v10583_v52  ;;  %7551 = vmatprep.subr.bf16.mxu1 %v10585_v54  ;;  %v10631_v52 = vcombine.high %v753_v47, %v757_v48  ;;  %v10633_v54 = vcombine.high %v754_v49, %v758_v50  ;;  %v797_v34 = vld [vmem:[#allocation2 + $0x1430] sm:$0xff]  ;;  %v798_v39 = vld [vmem:[#allocation2 + $0x1438] sm:$0xff] }
 0x387   :  { %7208 = vmatpush1.bf16.msra.mxu0 %v10582_v60  ;;  %7552 = vmatpush1.bf16.msra.mxu1 %v10584_v61  ;;  %v10630_v60 = vcombine.low %v753_v47, %v757_v48  ;;  %v10632_v61 = vcombine.low %v754_v49, %v758_v50  ;;  %v801_v47 = vld [vmem:[#allocation2 + $0x1450] sm:$0xff]  ;;  %v802_v49 = vld [vmem:[#allocation2 + $0x1458] sm:$0xff] }
 0x388   :  { %7209 = vmatprep.subr.bf16.mxu0 %v10591_v62  ;;  %7553 = vmatprep.subr.bf16.mxu1 %v10593_v63  ;;  %v10639_v62 = vcombine.high %v761_v55, %v765_v37  ;;  %v10641_v63 = vcombine.high %v762_v56, %v766_v57  ;;  %v805_v48 = vld [vmem:[#allocation2 + $0x1470] sm:$0xff]  ;;  %v806_v50 = vld [vmem:[#allocation2 + $0x1478] sm:$0xff] }
 0x38b   :  { %7210 = vmatpush1.bf16.msra.mxu0 %v10590_v5  ;;  %7554 = vmatpush1.bf16.msra.mxu1 %v10592_v7  ;;  %v10638_v5 = vcombine.low %v761_v55, %v765_v37  ;;  %v10640_v7 = vcombine.low %v762_v56, %v766_v57  ;;  %v809_v55 = vld [vmem:[#allocation2 + $0x1490] sm:$0xff]  ;;  %v810_v56 = vld [vmem:[#allocation2 + $0x1498] sm:$0xff] }
 0x38c   :  { %7211 = vmatprep.subr.bf16.mxu0 %v10599_v46  ;;  %7555 = vmatprep.subr.bf16.mxu1 %v10601_v8  ;;  %v10647_v46 = vcombine.high %v769_v1, %v773_v2  ;;  %v10649_v8 = vcombine.high %v770_v3, %v774_v4  ;;  %v813_v37 = vld [vmem:[#allocation2 + $0x14b0] sm:$0xff]  ;;  %v814_v57 = vld [vmem:[#allocation2 + $0x14b8] sm:$0xff] }
 0x38f   :  { %7212 = vmatpush1.bf16.msra.mxu0 %v10598_v14  ;;  %7556 = vmatpush1.bf16.msra.mxu1 %v10600_v17  ;;  %v10646_v14 = vcombine.low %v769_v1, %v773_v2  ;;  %v10648_v17 = vcombine.low %v770_v3, %v774_v4  ;;  %v817_v1 = vld [vmem:[#allocation2 + $0x14d0] sm:$0xff]  ;;  %v818_v3 = vld [vmem:[#allocation2 + $0x14d8] sm:$0xff] }
 0x390   :  { %7213 = vmatprep.subr.bf16.mxu0 %v10607_v18  ;;  %7557 = vmatprep.subr.bf16.mxu1 %v10609_v53  ;;  %v10655_v18 = vcombine.high %v777_v9, %v781_v11  ;;  %v10657_v53 = vcombine.high %v778_v12, %v782_v15  ;;  %v821_v2 = vld [vmem:[#allocation2 + $0x14f0] sm:$0xff]  ;;  %v822_v4 = vld [vmem:[#allocation2 + $0x14f8] sm:$0xff] }
 0x393   :  { %7214 = vmatpush1.bf16.msra.mxu0 %v10606_v25  ;;  %7558 = vmatpush1.bf16.msra.mxu1 %v10608_v0  ;;  %v10654_v25 = vcombine.low %v777_v9, %v781_v11  ;;  %v10656_v0 = vcombine.low %v778_v12, %v782_v15  ;;  %v829_v9 = vld [vmem:[#allocation2 + $0x1530] sm:$0xff]  ;;  %v826_v11 = vld [vmem:[#allocation2 + $0x1518] sm:$0xff]  ;;  %v10694_v15 = vcombine.low %v817_v1, %v821_v2 }
 0x394   :  { %7215 = vmatprep.subr.bf16.mxu0 %v10615_v24  ;;  %7559 = vmatprep.subr.bf16.mxu1 %v10617_v27  ;;  %v10663_v24 = vcombine.high %v785_v19, %v789_v20  ;;  %v10665_v27 = vcombine.high %v786_v21, %v790_v23  ;;  %v830_v12 = vld [vmem:[#allocation2 + $0x1538] sm:$0xff] }
 0x397   :  { %7216 = vmatpush1.bf16.msra.mxu0 %v10614_v42  ;;  %7560 = vmatpush1.bf16.msra.mxu1 %v10616_v43  ;;  %v10662_v42 = vcombine.low %v785_v19, %v789_v20  ;;  %v10664_v43 = vcombine.low %v786_v21, %v790_v23  ;;  %v834_v19 = vld [vmem:[#allocation2 + $0x1558] sm:$0xff]  ;;  %v10704_v23 = vcombine.low %v826_v11, %v830_v12 }
 0x398   :  { %7217 = vmatprep.subr.bf16.mxu0 %v10623_v44  ;;  %7561 = vmatprep.subr.bf16.mxu1 %v10625_v10  ;;  %v10671_v44 = vcombine.high %v793_v31, %v797_v34  ;;  %v10673_v10 = vcombine.high %v794_v36, %v798_v39  ;;  %v838_v20 = vld [vmem:[#allocation2 + $0x1578] sm:$0xff] }
 0x39b   :  { %7218 = vmatpush1.bf16.msra.mxu0 %v10622_v51  ;;  %7562 = vmatpush1.bf16.msra.mxu1 %v10624_v58  ;;  %v10670_v51 = vcombine.low %v793_v31, %v797_v34  ;;  %v10672_v58 = vcombine.low %v794_v36, %v798_v39  ;;  %v842_v31 = vld [vmem:[#allocation2 + $0x1598] sm:$0xff]  ;;  %v10712_v39 = vcombine.low %v834_v19, %v838_v20 }
 0x39c   :  { %7219 = vmatprep.subr.bf16.mxu0 %v10631_v52  ;;  %7563 = vmatprep.subr.bf16.mxu1 %v10633_v54  ;;  %v10679_v52 = vcombine.high %v801_v47, %v805_v48  ;;  %v10681_v54 = vcombine.high %v802_v49, %v806_v50  ;;  %v846_v34 = vld [vmem:[#allocation2 + $0x15b8] sm:$0xff] }
 0x39f   :  { %7220 = vmatpush1.bf16.msra.mxu0 %v10630_v60  ;;  %7564 = vmatpush1.bf16.msra.mxu1 %v10632_v61  ;;  %v10678_v60 = vcombine.low %v801_v47, %v805_v48  ;;  %v10680_v61 = vcombine.low %v802_v49, %v806_v50  ;;  %v850_v47 = vld [vmem:[#allocation2 + $0x15d8] sm:$0xff]  ;;  %v10720_v50 = vcombine.low %v842_v31, %v846_v34 }
 0x3a0   :  { %7221 = vmatprep.subr.bf16.mxu0 %v10639_v62  ;;  %7565 = vmatprep.subr.bf16.mxu1 %v10641_v63  ;;  %v10687_v62 = vcombine.high %v809_v55, %v813_v37  ;;  %v10689_v63 = vcombine.high %v810_v56, %v814_v57  ;;  %v854_v48 = vld [vmem:[#allocation2 + $0x15f8] sm:$0xff] }
 0x3a3   :  { %7222 = vmatpush1.bf16.msra.mxu0 %v10638_v5  ;;  %7566 = vmatpush1.bf16.msra.mxu1 %v10640_v7  ;;  %v10686_v5 = vcombine.low %v809_v55, %v813_v37  ;;  %v10695_v7 = vcombine.high %v817_v1, %v821_v2  ;;  %v858_v55 = vld [vmem:[#allocation2 + $0x1618] sm:$0xff] }
 0x3a4   :  { %7223 = vmatprep.subr.bf16.mxu0 %v10647_v46  ;;  %7567 = vmatprep.subr.bf16.mxu1 %v10649_v8  ;;  %v10697_v46 = vcombine.high %v818_v3, %v822_v4  ;;  %v825_v8 = vld [vmem:[#allocation2 + $0x1510] sm:$0xff]  ;;  %v862_v37 = vld [vmem:[#allocation2 + $0x1638] sm:$0xff] }
 0x3a5   :  { %v10702_v21 = vcombine.low %v825_v8, %v829_v9  ;;  %v866_v1 = vld [vmem:[#allocation2 + $0x1658] sm:$0xff] }
 0x3a6   :  { %v870_v2 = vld [vmem:[#allocation2 + $0x1678] sm:$0xff] }
 0x3a7   :  { %7224 = vmatpush1.bf16.msra.mxu0 %v10646_v14  ;;  %7568 = vmatpush1.bf16.msra.mxu1 %v10648_v17  ;;  %v10696_v14 = vcombine.low %v818_v3, %v822_v4  ;;  %v10703_v17 = vcombine.high %v825_v8, %v829_v9  ;;  %v10736_v4 = vcombine.low %v858_v55, %v862_v37  ;;  %v874_v8 = vld [vmem:[#allocation2 + $0x1698] sm:$0xff] }
 0x3a8   :  { %7225 = vmatprep.subr.bf16.mxu0 %v10655_v18  ;;  %7569 = vmatprep.subr.bf16.mxu1 %v10657_v53  ;;  %v833_v18 = vld [vmem:[#allocation2 + $0x1550] sm:$0xff]  ;;  %v878_v9 = vld [vmem:[#allocation2 + $0x16b8] sm:$0xff] }
 0x3a9   :  { %v837_v53 = vld [vmem:[#allocation2 + $0x1570] sm:$0xff] }
 0x3aa   :  { %v10710_v36 = vcombine.low %v833_v18, %v837_v53 }
 0x3ab   :  { %7226 = vmatpush1.bf16.msra.mxu0 %v10654_v25  ;;  %7570 = vmatpush1.bf16.msra.mxu1 %v10656_v0  ;;  %v10711_v25 = vcombine.high %v833_v18, %v837_v53  ;;  %v10713_v0 = vcombine.high %v834_v19, %v838_v20  ;;  %v882_v18 = vld [vmem:[#allocation2 + $0x16d8] sm:$0xff]  ;;  %v10752_v20 = vcombine.low %v874_v8, %v878_v9 }
 0x3ac   :  { %7227 = vmatprep.subr.bf16.mxu0 %v10663_v24  ;;  %7571 = vmatprep.subr.bf16.mxu1 %v10665_v27  ;;  %v841_v24 = vld [vmem:[#allocation2 + $0x1590] sm:$0xff]  ;;  %v886_v53 = vld [vmem:[#allocation2 + $0x16f8] sm:$0xff] }
 0x3ad   :  { %v845_v27 = vld [vmem:[#allocation2 + $0x15b0] sm:$0xff] }
 0x3ae   :  { %v10718_v49 = vcombine.low %v841_v24, %v845_v27 }
 0x3af   :  { %7228 = vmatpush1.bf16.msra.mxu0 %v10662_v42  ;;  %7572 = vmatpush1.bf16.msra.mxu1 %v10664_v43  ;;  %v10719_v42 = vcombine.high %v841_v24, %v845_v27  ;;  %v10721_v43 = vcombine.high %v842_v31, %v846_v34  ;;  %v890_v24 = vld [vmem:[#allocation2 + $0x1718] sm:$0xff]  ;;  %v10760_v34 = vcombine.low %v882_v18, %v886_v53 }
 0x3b0   :  { %7240 = vmatprep.subr.bf16.mxu0 %v10671_v44  ;;  %7584 = vmatprep.subr.bf16.mxu1 %v10673_v10  ;;  %v849_v44 = vld [vmem:[#allocation2 + $0x15d0] sm:$0xff]  ;;  %v894_v27 = vld [vmem:[#allocation2 + $0x1738] sm:$0xff] }
 0x3b1   :  { %v853_v10 = vld [vmem:[#allocation2 + $0x15f0] sm:$0xff] }
 0x3b2   :  { %7230 = vmatmul.mubr.bf16.vlgmr.msra.gmra.mrb[4].mxu0 %v12351_v26  ;;  %7574 = vmatmul.mubr.bf16.vlgmr.msra.gmra.mrb[4].mxu1 %v12351_v26  ;;  %v10688_v26 = vcombine.low %v810_v56, %v814_v57  ;;  %v10726_v56 = vcombine.low %v849_v44, %v853_v10  ;;  %v10728_v57 = vcombine.low %v850_v47, %v854_v48 }
 0x3b3   :  { %7241 = vmatpush1.bf16.msra.mxu0 %v10670_v51  ;;  %7585 = vmatpush1.bf16.msra.mxu1 %v10672_v58  ;;  %v10727_v51 = vcombine.high %v849_v44, %v853_v10  ;;  %v10729_v58 = vcombine.high %v850_v47, %v854_v48  ;;  %v898_v44 = vld [vmem:[#allocation2 + $0x1758] sm:$0xff]  ;;  %v10768_v48 = vcombine.low %v890_v24, %v894_v27 }
 0x3b4   :  { %7242 = vmatprep.subr.bf16.mxu0 %v10679_v52  ;;  %7586 = vmatprep.subr.bf16.mxu1 %v10681_v54  ;;  %v857_v52 = vld [vmem:[#allocation2 + $0x1610] sm:$0xff]  ;;  %v902_v10 = vld [vmem:[#allocation2 + $0x1778] sm:$0xff] }
 0x3b5   :  { %7272 = vmatprep.mubr.bf16.mxu0 %v12359_v38  ;;  %7616 = vmatprep.mubr.bf16.mxu1 %v12359_v38  ;;  %v10705_v38 = vcombine.high %v826_v11, %v830_v12  ;;  %v861_v54 = vld [vmem:[#allocation2 + $0x1630] sm:$0xff]  ;;  %v10744_v12 = vcombine.low %v866_v1, %v870_v2 }
 0x3b6   :  { %v10734_v3 = vcombine.low %v857_v52, %v861_v54 }
 0x3b7   :  { %7243 = vmatpush1.bf16.msra.mxu0 %v10678_v60  ;;  %7587 = vmatpush1.bf16.msra.mxu1 %v10680_v61  ;;  %v10735_v60 = vcombine.high %v857_v52, %v861_v54  ;;  %v10737_v61 = vcombine.high %v858_v55, %v862_v37  ;;  %v906_v52 = vld [vmem:[#allocation2 + $0x1798] sm:$0xff]  ;;  %v10776_v37 = vcombine.low %v898_v44, %v902_v10 }
 0x3b8   :  { %7244 = vmatprep.subr.bf16.mxu0 %v10687_v62  ;;  %7588 = vmatprep.subr.bf16.mxu1 %v10689_v63  ;;  %v865_v62 = vld [vmem:[#allocation2 + $0x1650] sm:$0xff]  ;;  %v910_v54 = vld [vmem:[#allocation2 + $0x17b8] sm:$0xff] }
 0x3b9   :  { %v869_v63 = vld [vmem:[#allocation2 + $0x1670] sm:$0xff] }
 0x3ba   :  { %v10742_v11 = vcombine.low %v865_v62, %v869_v63 }
 0x3bb   :  { %7245 = vmatpush1.bf16.msra.mxu0 %v10686_v5  ;;  %7589 = vmatpush1.bf16.msra.mxu1 %v10688_v26  ;;  %v10743_v5 = vcombine.high %v865_v62, %v869_v63  ;;  %v10745_v26 = vcombine.high %v866_v1, %v870_v2  ;;  %v914_v62 = vld [vmem:[#allocation2 + $0x17d8] sm:$0xff]  ;;  %v10784_v2 = vcombine.low %v906_v52, %v910_v54 }
 0x3bc   :  { %7246 = vmatprep.subr.bf16.mxu0 %v10695_v7  ;;  %7590 = vmatprep.subr.bf16.mxu1 %v10697_v46  ;;  %v873_v7 = vld [vmem:[#allocation2 + $0x1690] sm:$0xff]  ;;  %v918_v63 = vld [vmem:[#allocation2 + $0x17f8] sm:$0xff] }
 0x3bd   :  { %v877_v46 = vld [vmem:[#allocation2 + $0x16b0] sm:$0xff] }
 0x3be   :  { %v10750_v19 = vcombine.low %v873_v7, %v877_v46 }
 0x3bf   :  { %7247 = vmatpush1.bf16.msra.mxu0 %v10694_v15  ;;  %7591 = vmatpush1.bf16.msra.mxu1 %v10696_v14  ;;  %v10751_v15 = vcombine.high %v873_v7, %v877_v46  ;;  %v10753_v14 = vcombine.high %v874_v8, %v878_v9  ;;  %v922_v7 = vld [vmem:[#allocation2 + $0x1818] sm:$0xff]  ;;  %v10792_v9 = vcombine.low %v914_v62, %v918_v63 }
 0x3c0   :  { %7248 = vmatprep.subr.bf16.mxu0 %v10703_v17  ;;  %7592 = vmatprep.subr.bf16.mxu1 %v10705_v38  ;;  %v881_v17 = vld [vmem:[#allocation2 + $0x16d0] sm:$0xff]  ;;  %v926_v46 = vld [vmem:[#allocation2 + $0x1838] sm:$0xff] }
 0x3c1   :  { %v885_v38 = vld [vmem:[#allocation2 + $0x16f0] sm:$0xff] }
 0x3c2   :  { %v10758_v31 = vcombine.low %v881_v17, %v885_v38 }
 0x3c3   :  { %7249 = vmatpush1.bf16.msra.mxu0 %v10702_v21  ;;  %7593 = vmatpush1.bf16.msra.mxu1 %v10704_v23  ;;  %v10759_v21 = vcombine.high %v881_v17, %v885_v38  ;;  %v10761_v23 = vcombine.high %v882_v18, %v886_v53  ;;  %v930_v17 = vld [vmem:[#allocation2 + $0x1858] sm:$0xff]  ;;  %v10800_v53 = vcombine.low %v922_v7, %v926_v46 }
 0x3c4   :  { %7250 = vmatprep.subr.bf16.mxu0 %v10711_v25  ;;  %7594 = vmatprep.subr.bf16.mxu1 %v10713_v0  ;;  %v889_v25 = vld [vmem:[#allocation2 + $0x1710] sm:$0xff]  ;;  %v934_v38 = vld [vmem:[#allocation2 + $0x1878] sm:$0xff] }
 0x3c5   :  { %v893_v0 = vld [vmem:[#allocation2 + $0x1730] sm:$0xff] }
 0x3c6   :  { %v10766_v47 = vcombine.low %v889_v25, %v893_v0 }
 0x3c7   :  { %7251 = vmatpush1.bf16.msra.mxu0 %v10710_v36  ;;  %7595 = vmatpush1.bf16.msra.mxu1 %v10712_v39  ;;  %v10767_v36 = vcombine.high %v889_v25, %v893_v0  ;;  %v10769_v39 = vcombine.high %v890_v24, %v894_v27  ;;  %v938_v25 = vld [vmem:[#allocation2 + $0x1898] sm:$0xff]  ;;  %v10808_v27 = vcombine.low %v930_v17, %v934_v38 }
 0x3c8   :  { %7252 = vmatprep.subr.bf16.mxu0 %v10719_v42  ;;  %7596 = vmatprep.subr.bf16.mxu1 %v10721_v43  ;;  %v897_v42 = vld [vmem:[#allocation2 + $0x1750] sm:$0xff]  ;;  %v942_v0 = vld [vmem:[#allocation2 + $0x18b8] sm:$0xff] }
 0x3c9   :  { %v901_v43 = vld [vmem:[#allocation2 + $0x1770] sm:$0xff] }
 0x3ca   :  { %v10774_v55 = vcombine.low %v897_v42, %v901_v43 }
 0x3cb   :  { %7253 = vmatpush1.bf16.msra.mxu0 %v10718_v49  ;;  %7597 = vmatpush1.bf16.msra.mxu1 %v10720_v50  ;;  %v10775_v49 = vcombine.high %v897_v42, %v901_v43  ;;  %v10777_v50 = vcombine.high %v898_v44, %v902_v10  ;;  %v946_v42 = vld [vmem:[#allocation2 + $0x18d8] sm:$0xff] }
 0x3cc   :  { %7254 = vmatprep.subr.bf16.mxu0 %v10727_v51  ;;  %7598 = vmatprep.subr.bf16.mxu1 %v10729_v58  ;;  %v905_v51 = vld [vmem:[#allocation2 + $0x1790] sm:$0xff]  ;;  %v950_v43 = vld [vmem:[#allocation2 + $0x18f8] sm:$0xff] }
 0x3cd   :  { %v909_v58 = vld [vmem:[#allocation2 + $0x17b0] sm:$0xff] }
 0x3ce   :  { %v10782_v1 = vcombine.low %v905_v51, %v909_v58 }
 0x3cf   :  { %7255 = vmatpush1.bf16.msra.mxu0 %v10726_v56  ;;  %7599 = vmatpush1.bf16.msra.mxu1 %v10728_v57  ;;  %v10783_v56 = vcombine.high %v905_v51, %v909_v58  ;;  %v10785_v57 = vcombine.high %v906_v52, %v910_v54  ;;  %v958_v51 = vld [vmem:[#allocation2 + $0x1938] sm:$0xff]  ;;  %v10824_v52 = vcombine.low %v946_v42, %v950_v43 }
 0x3d0   :  { %7256 = vmatprep.subr.bf16.mxu0 %v10735_v60  ;;  %7600 = vmatprep.subr.bf16.mxu1 %v10737_v61  ;;  %v913_v60 = vld [vmem:[#allocation2 + $0x17d0] sm:$0xff] }
 0x3d1   :  { %v917_v61 = vld [vmem:[#allocation2 + $0x17f0] sm:$0xff] }
 0x3d2   :  { %v10790_v8 = vcombine.low %v913_v60, %v917_v61 }
 0x3d3   :  { %7257 = vmatpush1.bf16.msra.mxu0 %v10734_v3  ;;  %7601 = vmatpush1.bf16.msra.mxu1 %v10736_v4  ;;  %v10791_v3 = vcombine.high %v913_v60, %v917_v61  ;;  %v10793_v4 = vcombine.high %v914_v62, %v918_v63 }
 0x3d4   :  { %7258 = vmatprep.subr.bf16.mxu0 %v10743_v5  ;;  %7602 = vmatprep.subr.bf16.mxu1 %v10745_v26  ;;  %v921_v5 = vld [vmem:[#allocation2 + $0x1810] sm:$0xff] }
 0x3d5   :  { %v925_v26 = vld [vmem:[#allocation2 + $0x1830] sm:$0xff] }
 0x3d6   :  { %v10798_v18 = vcombine.low %v921_v5, %v925_v26 }
 0x3d7   :  { %7259 = vmatpush1.bf16.msra.mxu0 %v10742_v11  ;;  %7603 = vmatpush1.bf16.msra.mxu1 %v10744_v12  ;;  %v10799_v11 = vcombine.high %v921_v5, %v925_v26  ;;  %v10801_v12 = vcombine.high %v922_v7, %v926_v46 }
 0x3d8   :  { %7260 = vmatprep.subr.bf16.mxu0 %v10751_v15  ;;  %7604 = vmatprep.subr.bf16.mxu1 %v10753_v14  ;;  %v929_v15 = vld [vmem:[#allocation2 + $0x1850] sm:$0xff] }
 0x3d9   :  { %v933_v14 = vld [vmem:[#allocation2 + $0x1870] sm:$0xff] }
 0x3da   :  { %v10806_v24 = vcombine.low %v929_v15, %v933_v14 }
 0x3db   :  { %7261 = vmatpush1.bf16.msra.mxu0 %v10750_v19  ;;  %7605 = vmatpush1.bf16.msra.mxu1 %v10752_v20  ;;  %v10807_v19 = vcombine.high %v929_v15, %v933_v14  ;;  %v10809_v20 = vcombine.high %v930_v17, %v934_v38 }
 0x3dc   :  { %7262 = vmatprep.subr.bf16.mxu0 %v10759_v21  ;;  %7606 = vmatprep.subr.bf16.mxu1 %v10761_v23  ;;  %v937_v21 = vld [vmem:[#allocation2 + $0x1890] sm:$0xff] }
 0x3dd   :  { %v941_v23 = vld [vmem:[#allocation2 + $0x18b0] sm:$0xff] }
 0x3de   :  { %v10814_v44 = vcombine.low %v937_v21, %v941_v23 }
 0x3df   :  { %7263 = vmatpush1.bf16.msra.mxu0 %v10758_v31  ;;  %7607 = vmatpush1.bf16.msra.mxu1 %v10760_v34  ;;  %v10815_v31 = vcombine.high %v937_v21, %v941_v23  ;;  %v10817_v34 = vcombine.high %v938_v25, %v942_v0 }
 0x3e0   :  { %7264 = vmatprep.subr.bf16.mxu0 %v10767_v36  ;;  %7608 = vmatprep.subr.bf16.mxu1 %v10769_v39  ;;  %v945_v36 = vld [vmem:[#allocation2 + $0x18d0] sm:$0xff] }
 0x3e1   :  { %v949_v39 = vld [vmem:[#allocation2 + $0x18f0] sm:$0xff] }
 0x3e2   :  { %v10823_v10 = vcombine.high %v945_v36, %v949_v39  ;;  %v10822_v58 = vcombine.low %v945_v36, %v949_v39 }
 0x3e3   :  { %7265 = vmatpush1.bf16.msra.mxu0 %v10766_v47  ;;  %7609 = vmatpush1.bf16.msra.mxu1 %v10768_v48  ;;  %v10825_v47 = vcombine.high %v946_v42, %v950_v43  ;;  %v953_v48 = vld [vmem:[#allocation2 + $0x1910] sm:$0xff] }
 0x3e4   :  { %7266 = vmatprep.subr.bf16.mxu0 %v10775_v49  ;;  %7610 = vmatprep.subr.bf16.mxu1 %v10777_v50  ;;  %v957_v49 = vld [vmem:[#allocation2 + $0x1930] sm:$0xff]  ;;  %v954_v50 = vld [vmem:[#allocation2 + $0x1918] sm:$0xff] }
 0x3e5   :  { %v10831_v54 = vcombine.high %v953_v48, %v957_v49  ;;  %v10830_v60 = vcombine.low %v953_v48, %v957_v49  ;;  %v10832_v61 = vcombine.low %v954_v50, %v958_v51 }
 0x3e7   :  { %7267 = vmatpush1.bf16.msra.mxu0 %v10774_v55  ;;  %7611 = vmatpush1.bf16.msra.mxu1 %v10776_v37  ;;  %v961_v55 = vld [vmem:[#allocation2 + $0x1950] sm:$0xff] }
 0x3e8   :  { %7268 = vmatprep.subr.bf16.mxu0 %v10783_v56  ;;  %7612 = vmatprep.subr.bf16.mxu1 %v10785_v57  ;;  %v965_v37 = vld [vmem:[#allocation2 + $0x1970] sm:$0xff]  ;;  %v962_v56 = vld [vmem:[#allocation2 + $0x1958] sm:$0xff] }
 0x3e9   :  { %v966_v57 = vld [vmem:[#allocation2 + $0x1978] sm:$0xff]  ;;  %v10839_v62 = vcombine.high %v961_v55, %v965_v37  ;;  %v10838_v5 = vcombine.low %v961_v55, %v965_v37 }
 0x3ea   :  { %v10841_v63 = vcombine.high %v962_v56, %v966_v57  ;;  %v10840_v26 = vcombine.low %v962_v56, %v966_v57 }
 0x3eb   :  { %7269 = vmatpush1.bf16.msra.mxu0 %v10782_v1  ;;  %7613 = vmatpush1.bf16.msra.mxu1 %v10784_v2  ;;  %v969_v1 = vld [vmem:[#allocation2 + $0x1990] sm:$0xff] }
 0x3ec   :  { %7270 = vmatprep.subr.bf16.mxu0 %v10791_v3  ;;  %7614 = vmatprep.subr.bf16.mxu1 %v10793_v4  ;;  %v973_v2 = vld [vmem:[#allocation2 + $0x19b0] sm:$0xff]  ;;  %v970_v3 = vld [vmem:[#allocation2 + $0x1998] sm:$0xff] }
 0x3ed   :  { %v974_v4 = vld [vmem:[#allocation2 + $0x19b8] sm:$0xff]  ;;  %v10847_v7 = vcombine.high %v969_v1, %v973_v2  ;;  %v10846_v15 = vcombine.low %v969_v1, %v973_v2 }
 0x3ee   :  { %v10849_v46 = vcombine.high %v970_v3, %v974_v4  ;;  %v10848_v14 = vcombine.low %v970_v3, %v974_v4 }
 0x3ef   :  { %7271 = vmatpush1.bf16.msra.mxu0 %v10790_v8  ;;  %7615 = vmatpush1.bf16.msra.mxu1 %v10792_v9  ;;  %v977_v8 = vld [vmem:[#allocation2 + $0x19d0] sm:$0xff] }
 0x3f0   :  { %7283 = vmatprep.subr.bf16.mxu0 %v10799_v11  ;;  %7627 = vmatprep.subr.bf16.mxu1 %v10801_v12  ;;  %v981_v9 = vld [vmem:[#allocation2 + $0x19f0] sm:$0xff]  ;;  %v978_v11 = vld [vmem:[#allocation2 + $0x19d8] sm:$0xff] }
 0x3f1   :  { %v982_v12 = vld [vmem:[#allocation2 + $0x19f8] sm:$0xff]  ;;  %v10855_v17 = vcombine.high %v977_v8, %v981_v9  ;;  %v10854_v21 = vcombine.low %v977_v8, %v981_v9 }
 0x3f2   :  { %7273 = vmatmul.mubr.bf16.vlgmr.msra.gmra.mrb[4].mxu0 %v12371_v59  ;;  %7617 = vmatmul.mubr.bf16.vlgmr.msra.gmra.mrb[4].mxu1 %v12371_v59  ;;  %v10816_v59 = vcombine.low %v938_v25, %v942_v0  ;;  %v10857_v38 = vcombine.high %v978_v11, %v982_v12  ;;  %v10856_v23 = vcombine.low %v978_v11, %v982_v12 }
 0x3f3   :  { %7284 = vmatpush1.bf16.msra.mxu0 %v10798_v18  ;;  %7628 = vmatpush1.bf16.msra.mxu1 %v10800_v53  ;;  %v985_v18 = vld [vmem:[#allocation2 + $0x1a10] sm:$0xff] }
 0x3f4   :  { %7285 = vmatprep.subr.bf16.mxu0 %v10807_v19  ;;  %7629 = vmatprep.subr.bf16.mxu1 %v10809_v20  ;;  %v989_v53 = vld [vmem:[#allocation2 + $0x1a30] sm:$0xff]  ;;  %v986_v19 = vld [vmem:[#allocation2 + $0x1a18] sm:$0xff] }
 0x3f5   :  { %7315 = vmatprep.mubr.bf16.mxu0 %v12379_v6  ;;  %7659 = vmatprep.mubr.bf16.mxu1 %v12379_v6  ;;  %v10833_v6 = vcombine.high %v954_v50, %v958_v51  ;;  %v990_v20 = vld [vmem:[#allocation2 + $0x1a38] sm:$0xff]  ;;  %v10863_v25 = vcombine.high %v985_v18, %v989_v53  ;;  %v10862_v36 = vcombine.low %v985_v18, %v989_v53 }
 0x3f6   :  { %v10865_v0 = vcombine.high %v986_v19, %v990_v20  ;;  %v10864_v39 = vcombine.low %v986_v19, %v990_v20 }
 0x3f7   :  { %7286 = vmatpush1.bf16.msra.mxu0 %v10806_v24  ;;  %7630 = vmatpush1.bf16.msra.mxu1 %v10808_v27  ;;  %v993_v24 = vld [vmem:[#allocation2 + $0x1a50] sm:$0xff] }
 0x3f8   :  { %7287 = vmatprep.subr.bf16.mxu0 %v10815_v31  ;;  %7631 = vmatprep.subr.bf16.mxu1 %v10817_v34  ;;  %v997_v27 = vld [vmem:[#allocation2 + $0x1a70] sm:$0xff]  ;;  %v994_v31 = vld [vmem:[#allocation2 + $0x1a58] sm:$0xff] }
 0x3f9   :  { %v998_v34 = vld [vmem:[#allocation2 + $0x1a78] sm:$0xff]  ;;  %v10871_v42 = vcombine.high %v993_v24, %v997_v27  ;;  %v10870_v48 = vcombine.low %v993_v24, %v997_v27 }
 0x3fa   :  { %v10873_v43 = vcombine.high %v994_v31, %v998_v34  ;;  %v10872_v49 = vcombine.low %v994_v31, %v998_v34 }
 0x3fb   :  { %7288 = vmatpush1.bf16.msra.mxu0 %v10814_v44  ;;  %7632 = vmatpush1.bf16.msra.mxu1 %v10816_v59  ;;  %v1001_v44 = vld [vmem:[#allocation2 + $0x1a90] sm:$0xff] }
 0x3fc   :  { %7289 = vmatprep.subr.bf16.mxu0 %v10823_v10  ;;  %7633 = vmatprep.subr.bf16.mxu1 %v10825_v47  ;;  %v1005_v59 = vld [vmem:[#allocation2 + $0x1ab0] sm:$0xff]  ;;  %v1002_v10 = vld [vmem:[#allocation2 + $0x1a98] sm:$0xff] }
 0x3fd   :  { %v1006_v47 = vld [vmem:[#allocation2 + $0x1ab8] sm:$0xff]  ;;  %v10879_v50 = vcombine.high %v1001_v44, %v1005_v59  ;;  %v10878_v55 = vcombine.low %v1001_v44, %v1005_v59 }
 0x3fe   :  { %v10881_v51 = vcombine.high %v1002_v10, %v1006_v47  ;;  %v10880_v37 = vcombine.low %v1002_v10, %v1006_v47 }
 0x3ff   :  { %7290 = vmatpush1.bf16.msra.mxu0 %v10822_v58  ;;  %7634 = vmatpush1.bf16.msra.mxu1 %v10824_v52  ;;  %v1009_v58 = vld [vmem:[#allocation2 + $0x1ad0] sm:$0xff] }
 0x400   :  { %7291 = vmatprep.subr.bf16.mxu0 %v10831_v54  ;;  %7635 = vmatprep.subr.bf16.mxu1 %v10833_v6  ;;  %v1013_v52 = vld [vmem:[#allocation2 + $0x1af0] sm:$0xff]  ;;  %v1010_v54 = vld [vmem:[#allocation2 + $0x1ad8] sm:$0xff] }
 0x401   :  { %v1014_v6 = vld [vmem:[#allocation2 + $0x1af8] sm:$0xff]  ;;  %v10887_v56 = vcombine.high %v1009_v58, %v1013_v52  ;;  %v10886_v1 = vcombine.low %v1009_v58, %v1013_v52 }
 0x402   :  { %v10889_v57 = vcombine.high %v1010_v54, %v1014_v6  ;;  %v10888_v2 = vcombine.low %v1010_v54, %v1014_v6 }
 0x403   :  { %7292 = vmatpush1.bf16.msra.mxu0 %v10830_v60  ;;  %7636 = vmatpush1.bf16.msra.mxu1 %v10832_v61  ;;  %v1017_v60 = vld [vmem:[#allocation2 + $0x1b10] sm:$0xff] }
 0x404   :  { %7293 = vmatprep.subr.bf16.mxu0 %v10839_v62  ;;  %7637 = vmatprep.subr.bf16.mxu1 %v10841_v63  ;;  %v1021_v61 = vld [vmem:[#allocation2 + $0x1b30] sm:$0xff]  ;;  %v1018_v62 = vld [vmem:[#allocation2 + $0x1b18] sm:$0xff] }
 0x405   :  { %v1022_v63 = vld [vmem:[#allocation2 + $0x1b38] sm:$0xff]  ;;  %v10895_v3 = vcombine.high %v1017_v60, %v1021_v61  ;;  %v10894_v8 = vcombine.low %v1017_v60, %v1021_v61 }
 0x406   :  { %v10897_v4 = vcombine.high %v1018_v62, %v1022_v63  ;;  %v10896_v9 = vcombine.low %v1018_v62, %v1022_v63 }
 0x407   :  { %7294 = vmatpush1.bf16.msra.mxu0 %v10838_v5  ;;  %7638 = vmatpush1.bf16.msra.mxu1 %v10840_v26  ;;  %v1025_v5 = vld [vmem:[#allocation2 + $0x1b50] sm:$0xff] }
 0x408   :  { %7295 = vmatprep.subr.bf16.mxu0 %v10847_v7  ;;  %7639 = vmatprep.subr.bf16.mxu1 %v10849_v46  ;;  %v1029_v26 = vld [vmem:[#allocation2 + $0x1b70] sm:$0xff]  ;;  %v1026_v7 = vld [vmem:[#allocation2 + $0x1b58] sm:$0xff] }
 0x409   :  { %v1030_v46 = vld [vmem:[#allocation2 + $0x1b78] sm:$0xff]  ;;  %v10903_v11 = vcombine.high %v1025_v5, %v1029_v26  ;;  %v10902_v18 = vcombine.low %v1025_v5, %v1029_v26 }
 0x40a   :  { %v10905_v12 = vcombine.high %v1026_v7, %v1030_v46  ;;  %v10904_v53 = vcombine.low %v1026_v7, %v1030_v46  ;;  %v1081_v46 = vld [vmem:[#allocation2 + $0x1d10] sm:$0xff] }
 0x40b   :  { %7296 = vmatpush1.bf16.msra.mxu0 %v10846_v15  ;;  %7640 = vmatpush1.bf16.msra.mxu1 %v10848_v14  ;;  %v1033_v15 = vld [vmem:[#allocation2 + $0x1b90] sm:$0xff] }
 0x40c   :  { %7297 = vmatprep.subr.bf16.mxu0 %v10855_v17  ;;  %7641 = vmatprep.subr.bf16.mxu1 %v10857_v38  ;;  %v1037_v14 = vld [vmem:[#allocation2 + $0x1bb0] sm:$0xff]  ;;  %v1034_v17 = vld [vmem:[#allocation2 + $0x1b98] sm:$0xff] }
 0x40d   :  { %v1038_v38 = vld [vmem:[#allocation2 + $0x1bb8] sm:$0xff]  ;;  %v10911_v19 = vcombine.high %v1033_v15, %v1037_v14  ;;  %v10910_v24 = vcombine.low %v1033_v15, %v1037_v14 }
 0x40e   :  { %v10913_v20 = vcombine.high %v1034_v17, %v1038_v38  ;;  %v10912_v27 = vcombine.low %v1034_v17, %v1038_v38  ;;  %v1089_v17 = vld [vmem:[#allocation2 + $0x1d50] sm:$0xff] }
 0x40f   :  { %7298 = vmatpush1.bf16.msra.mxu0 %v10854_v21  ;;  %7642 = vmatpush1.bf16.msra.mxu1 %v10856_v23  ;;  %v1041_v21 = vld [vmem:[#allocation2 + $0x1bd0] sm:$0xff] }
 0x410   :  { %7299 = vmatprep.subr.bf16.mxu0 %v10863_v25  ;;  %7643 = vmatprep.subr.bf16.mxu1 %v10865_v0  ;;  %v1045_v23 = vld [vmem:[#allocation2 + $0x1bf0] sm:$0xff]  ;;  %v1042_v25 = vld [vmem:[#allocation2 + $0x1bd8] sm:$0xff] }
 0x411   :  { %v1046_v0 = vld [vmem:[#allocation2 + $0x1bf8] sm:$0xff]  ;;  %v10919_v31 = vcombine.high %v1041_v21, %v1045_v23  ;;  %v10918_v44 = vcombine.low %v1041_v21, %v1045_v23  ;;  %v1093_v38 = vld [vmem:[#allocation2 + $0x1d70] sm:$0xff] }
 0x412   :  { %v10921_v34 = vcombine.high %v1042_v25, %v1046_v0  ;;  %v10920_v59 = vcombine.low %v1042_v25, %v1046_v0  ;;  %v10967_v21 = vcombine.high %v1089_v17, %v1093_v38  ;;  %v1097_v25 = vld [vmem:[#allocation2 + $0x1d90] sm:$0xff] }
 0x413   :  { %7300 = vmatpush1.bf16.msra.mxu0 %v10862_v36  ;;  %7644 = vmatpush1.bf16.msra.mxu1 %v10864_v39  ;;  %v1049_v36 = vld [vmem:[#allocation2 + $0x1c10] sm:$0xff] }
 0x414   :  { %7301 = vmatprep.subr.bf16.mxu0 %v10871_v42  ;;  %7645 = vmatprep.subr.bf16.mxu1 %v10873_v43  ;;  %v1053_v39 = vld [vmem:[#allocation2 + $0x1c30] sm:$0xff]  ;;  %v1050_v42 = vld [vmem:[#allocation2 + $0x1c18] sm:$0xff] }
 0x415   :  { %v1054_v43 = vld [vmem:[#allocation2 + $0x1c38] sm:$0xff]  ;;  %v10927_v10 = vcombine.high %v1049_v36, %v1053_v39  ;;  %v10926_v58 = vcombine.low %v1049_v36, %v1053_v39  ;;  %v1101_v0 = vld [vmem:[#allocation2 + $0x1db0] sm:$0xff] }
 0x416   :  { %v10929_v47 = vcombine.high %v1050_v42, %v1054_v43  ;;  %v10928_v52 = vcombine.low %v1050_v42, %v1054_v43  ;;  %v10975_v36 = vcombine.high %v1097_v25, %v1101_v0  ;;  %v1105_v42 = vld [vmem:[#allocation2 + $0x1dd0] sm:$0xff] }
 0x417   :  { %7302 = vmatpush1.bf16.msra.mxu0 %v10870_v48  ;;  %7646 = vmatpush1.bf16.msra.mxu1 %v10872_v49  ;;  %v1057_v48 = vld [vmem:[#allocation2 + $0x1c50] sm:$0xff] }
 0x418   :  { %7303 = vmatprep.subr.bf16.mxu0 %v10879_v50  ;;  %7647 = vmatprep.subr.bf16.mxu1 %v10881_v51  ;;  %v1061_v49 = vld [vmem:[#allocation2 + $0x1c70] sm:$0xff]  ;;  %v1058_v50 = vld [vmem:[#allocation2 + $0x1c58] sm:$0xff] }
 0x419   :  { %v1062_v51 = vld [vmem:[#allocation2 + $0x1c78] sm:$0xff]  ;;  %v10935_v54 = vcombine.high %v1057_v48, %v1061_v49  ;;  %v10934_v60 = vcombine.low %v1057_v48, %v1061_v49  ;;  %v1109_v43 = vld [vmem:[#allocation2 + $0x1df0] sm:$0xff] }
 0x41a   :  { %v10937_v6 = vcombine.high %v1058_v50, %v1062_v51  ;;  %v10936_v61 = vcombine.low %v1058_v50, %v1062_v51  ;;  %v10983_v48 = vcombine.high %v1105_v42, %v1109_v43  ;;  %v1113_v50 = vld [vmem:[#allocation2 + $0x1e10] sm:$0xff] }
 0x41b   :  { %7304 = vmatpush1.bf16.msra.mxu0 %v10878_v55  ;;  %7648 = vmatpush1.bf16.msra.mxu1 %v10880_v37  ;;  %v1065_v55 = vld [vmem:[#allocation2 + $0x1c90] sm:$0xff] }
 0x41c   :  { %7305 = vmatprep.subr.bf16.mxu0 %v10887_v56  ;;  %7649 = vmatprep.subr.bf16.mxu1 %v10889_v57  ;;  %v1069_v37 = vld [vmem:[#allocation2 + $0x1cb0] sm:$0xff]  ;;  %v1066_v56 = vld [vmem:[#allocation2 + $0x1c98] sm:$0xff] }
 0x41d   :  { %v1070_v57 = vld [vmem:[#allocation2 + $0x1cb8] sm:$0xff]  ;;  %v10943_v62 = vcombine.high %v1065_v55, %v1069_v37  ;;  %v10942_v5 = vcombine.low %v1065_v55, %v1069_v37  ;;  %v1117_v51 = vld [vmem:[#allocation2 + $0x1e30] sm:$0xff] }
 0x41e   :  { %v10945_v63 = vcombine.high %v1066_v56, %v1070_v57  ;;  %v10991_v55 = vcombine.high %v1113_v50, %v1117_v51 }
 0x41f   :  { %7306 = vmatpush1.bf16.msra.mxu0 %v10886_v1  ;;  %7650 = vmatpush1.bf16.msra.mxu1 %v10888_v2  ;;  %v1073_v1 = vld [vmem:[#allocation2 + $0x1cd0] sm:$0xff] }
 0x420   :  { %7307 = vmatprep.subr.bf16.mxu0 %v10895_v3  ;;  %7651 = vmatprep.subr.bf16.mxu1 %v10897_v4  ;;  %v1077_v2 = vld [vmem:[#allocation2 + $0x1cf0] sm:$0xff]  ;;  %v1074_v3 = vld [vmem:[#allocation2 + $0x1cd8] sm:$0xff] }
 0x421   :  { %v1078_v4 = vld [vmem:[#allocation2 + $0x1cf8] sm:$0xff]  ;;  %v10951_v26 = vcombine.high %v1073_v1, %v1077_v2 }
 0x422   :  { %v10953_v7 = vcombine.high %v1074_v3, %v1078_v4  ;;  %v10952_v15 = vcombine.low %v1074_v3, %v1078_v4  ;;  %v1129_v3 = vld [vmem:[#allocation2 + $0x1e90] sm:$0xff] }
 0x423   :  { %7308 = vmatpush1.bf16.msra.mxu0 %v10894_v8  ;;  %7652 = vmatpush1.bf16.msra.mxu1 %v10896_v9  ;;  %v1085_v8 = vld [vmem:[#allocation2 + $0x1d30] sm:$0xff]  ;;  %v1082_v9 = vld [vmem:[#allocation2 + $0x1d18] sm:$0xff] }
 0x424   :  { %7309 = vmatprep.subr.bf16.mxu0 %v10903_v11  ;;  %7653 = vmatprep.subr.bf16.mxu1 %v10905_v12  ;;  %v1086_v11 = vld [vmem:[#allocation2 + $0x1d38] sm:$0xff]  ;;  %v10950_v12 = vcombine.low %v1073_v1, %v1077_v2  ;;  %v10959_v14 = vcombine.high %v1081_v46, %v1085_v8  ;;  %v1133_v4 = vld [vmem:[#allocation2 + $0x1eb0] sm:$0xff] }
 0x427   :  { %7310 = vmatpush1.bf16.msra.mxu0 %v10902_v18  ;;  %7654 = vmatpush1.bf16.msra.mxu1 %v10904_v53  ;;  %v1090_v18 = vld [vmem:[#allocation2 + $0x1d58] sm:$0xff] }
 0x428   :  { %7311 = vmatprep.subr.bf16.mxu0 %v10911_v19  ;;  %7655 = vmatprep.subr.bf16.mxu1 %v10913_v20  ;;  %v1094_v53 = vld [vmem:[#allocation2 + $0x1d78] sm:$0xff]  ;;  %v10958_v19 = vcombine.low %v1081_v46, %v1085_v8  ;;  %v10960_v20 = vcombine.low %v1082_v9, %v1086_v11  ;;  %v11007_v46 = vcombine.high %v1129_v3, %v1133_v4 }
 0x429   :  { %v10969_v23 = vcombine.high %v1090_v18, %v1094_v53 }
 0x42b   :  { %7312 = vmatpush1.bf16.msra.mxu0 %v10910_v24  ;;  %7656 = vmatpush1.bf16.msra.mxu1 %v10912_v27  ;;  %v1098_v24 = vld [vmem:[#allocation2 + $0x1d98] sm:$0xff] }
 0x42c   :  { %7313 = vmatprep.subr.bf16.mxu0 %v10919_v31  ;;  %7657 = vmatprep.subr.bf16.mxu1 %v10921_v34  ;;  %v1102_v27 = vld [vmem:[#allocation2 + $0x1db8] sm:$0xff]  ;;  %v10966_v31 = vcombine.low %v1089_v17, %v1093_v38  ;;  %v10968_v34 = vcombine.low %v1090_v18, %v1094_v53  ;;  %v1145_v18 = vld [vmem:[#allocation2 + $0x1f10] sm:$0xff] }
 0x42d   :  { %v10977_v39 = vcombine.high %v1098_v24, %v1102_v27  ;;  %v1149_v53 = vld [vmem:[#allocation2 + $0x1f30] sm:$0xff] }
 0x42f   :  { %7314 = vmatpush1.bf16.msra.mxu0 %v10918_v44  ;;  %7658 = vmatpush1.bf16.msra.mxu1 %v10920_v59  ;;  %v1106_v44 = vld [vmem:[#allocation2 + $0x1dd8] sm:$0xff] }
 0x430   :  { %7326 = vmatprep.subr.bf16.mxu0 %v10927_v10  ;;  %7670 = vmatprep.subr.bf16.mxu1 %v10929_v47  ;;  %v1110_v59 = vld [vmem:[#allocation2 + $0x1df8] sm:$0xff]  ;;  %v10974_v10 = vcombine.low %v1097_v25, %v1101_v0  ;;  %v10976_v47 = vcombine.low %v1098_v24, %v1102_v27  ;;  %v11023_v25 = vcombine.high %v1145_v18, %v1149_v53  ;;  %v1153_v24 = vld [vmem:[#allocation2 + $0x1f50] sm:$0xff] }
 0x431   :  { %v10985_v49 = vcombine.high %v1106_v44, %v1110_v59  ;;  %v1157_v27 = vld [vmem:[#allocation2 + $0x1f70] sm:$0xff] }
 0x432   :  { %7316 = vmatmul.mubr.bf16.vlgmr.msra.gmra.mrb[4].mxu0 %v12391_v33  ;;  %7660 = vmatmul.mubr.bf16.vlgmr.msra.gmra.mrb[4].mxu1 %v12391_v33  ;;  %v10944_v33 = vcombine.low %v1066_v56, %v1070_v57  ;;  %v1121_v56 = vld [vmem:[#allocation2 + $0x1e50] sm:$0xff] }
 0x433   :  { %7327 = vmatpush1.bf16.msra.mxu0 %v10926_v58  ;;  %7671 = vmatpush1.bf16.msra.mxu1 %v10928_v52  ;;  %v1114_v58 = vld [vmem:[#allocation2 + $0x1e18] sm:$0xff]  ;;  %v1125_v57 = vld [vmem:[#allocation2 + $0x1e70] sm:$0xff] }
 0x434   :  { %7328 = vmatprep.subr.bf16.mxu0 %v10935_v54  ;;  %7672 = vmatprep.subr.bf16.mxu1 %v10937_v6  ;;  %v1118_v52 = vld [vmem:[#allocation2 + $0x1e38] sm:$0xff]  ;;  %v10982_v54 = vcombine.low %v1105_v42, %v1109_v43  ;;  %v10984_v6 = vcombine.low %v1106_v44, %v1110_v59  ;;  %v10999_v1 = vcombine.high %v1121_v56, %v1125_v57  ;;  %v1161_v44 = vld [vmem:[#allocation2 + $0x1f90] sm:$0xff] }
 0x435   :  { %7358 = vmatprep.mubr.bf16.mxu0 %v12399_v45  ;;  %7702 = vmatprep.mubr.bf16.mxu1 %v12399_v45  ;;  %v10961_v45 = vcombine.high %v1082_v9, %v1086_v11  ;;  %v10993_v37 = vcombine.high %v1114_v58, %v1118_v52  ;;  %v1137_v9 = vld [vmem:[#allocation2 + $0x1ed0] sm:$0xff]  ;;  %v11031_v42 = vcombine.high %v1153_v24, %v1157_v27 }
 0x436   :  { %v1141_v11 = vld [vmem:[#allocation2 + $0x1ef0] sm:$0xff] }
 0x437   :  { %7329 = vmatpush1.bf16.msra.mxu0 %v10934_v60  ;;  %7673 = vmatpush1.bf16.msra.mxu1 %v10936_v61  ;;  %v1122_v60 = vld [vmem:[#allocation2 + $0x1e58] sm:$0xff]  ;;  %v11015_v17 = vcombine.high %v1137_v9, %v1141_v11  ;;  %v1165_v59 = vld [vmem:[#allocation2 + $0x1fb0] sm:$0xff] }
 0x438   :  { %7330 = vmatprep.subr.bf16.mxu0 %v10943_v62  ;;  %7674 = vmatprep.subr.bf16.mxu1 %v10945_v63  ;;  %v1126_v61 = vld [vmem:[#allocation2 + $0x1e78] sm:$0xff]  ;;  %v10990_v62 = vcombine.low %v1113_v50, %v1117_v51  ;;  %v10992_v63 = vcombine.low %v1114_v58, %v1118_v52  ;;  %v11039_v50 = vcombine.high %v1161_v44, %v1165_v59  ;;  %v1169_v58 = vld [vmem:[#allocation2 + $0x1fd0] sm:$0xff] }
 0x439   :  { %v11001_v2 = vcombine.high %v1122_v60, %v1126_v61  ;;  %v1173_v52 = vld [vmem:[#allocation2 + $0x1ff0] sm:$0xff] }
 0x43b   :  { %7331 = vmatpush1.bf16.msra.mxu0 %v10942_v5  ;;  %7675 = vmatpush1.bf16.msra.mxu1 %v10944_v33  ;;  %v1130_v5 = vld [vmem:[#allocation2 + $0x1e98] sm:$0xff] }
 0x43c   :  { %7332 = vmatprep.subr.bf16.mxu0 %v10951_v26  ;;  %7676 = vmatprep.subr.bf16.mxu1 %v10953_v7  ;;  %v1134_v33 = vld [vmem:[#allocation2 + $0x1eb8] sm:$0xff]  ;;  %v10998_v26 = vcombine.low %v1121_v56, %v1125_v57  ;;  %v11000_v7 = vcombine.low %v1122_v60, %v1126_v61  ;;  %v11047_v56 = vcombine.high %v1169_v58, %v1173_v52 }
 0x43d   :  { %v11009_v8 = vcombine.high %v1130_v5, %v1134_v33  ;;  %v11046_v60 = vcombine.low %v1169_v58, %v1173_v52  ;;  %v11632_v58 = vld [vmem:[#allocation6 + $0x160] ss:$16 sps:$4 sm:$0xff]   ;;  %v11635_v52 = vld [vmem:[#allocation6 + $0x168] ss:$16 sps:$4 sm:$0xff]  }
 0x43f   :  { %7333 = vmatpush1.bf16.msra.mxu0 %v10950_v12  ;;  %7677 = vmatpush1.bf16.msra.mxu1 %v10952_v15  ;;  %v1138_v12 = vld [vmem:[#allocation2 + $0x1ed8] sm:$0xff] }
 0x440   :  { %7334 = vmatprep.subr.bf16.mxu0 %v10959_v14  ;;  %7678 = vmatprep.subr.bf16.mxu1 %v10961_v45  ;;  %v1142_v15 = vld [vmem:[#allocation2 + $0x1ef8] sm:$0xff]  ;;  %v11006_v14 = vcombine.low %v1129_v3, %v1133_v4  ;;  %v11008_v45 = vcombine.low %v1130_v5, %v1134_v33  ;;  %v11577_v4 = vld [vmem:[#allocation6 + $0x2c] ss:$16 sps:$4 sm:$0xff]   ;;  %v11575_v33 = vld [vmem:[#allocation6 + $0x28] ss:$16 sps:$4 sm:$0xff]  }
 0x441   :  { %v11017_v38 = vcombine.high %v1138_v12, %v1142_v15  ;;  %v11574_v3 = vld [vmem:[#allocation6 + $0x24] ss:$16 sps:$4 sm:$0xff]   ;;  %v11572_v5 = vld [vmem:[#allocation6 + $0x20] ss:$16 sps:$4 sm:$0xff]  }
 0x443   :  { %7335 = vmatpush1.bf16.msra.mxu0 %v10958_v19  ;;  %7679 = vmatpush1.bf16.msra.mxu1 %v10960_v20  ;;  %v1146_v19 = vld [vmem:[#allocation2 + $0x1f18] sm:$0xff] }
 0x444   :  { %7336 = vmatprep.subr.bf16.mxu0 %v10967_v21  ;;  %7680 = vmatprep.subr.bf16.mxu1 %v10969_v23  ;;  %v1150_v20 = vld [vmem:[#allocation2 + $0x1f38] sm:$0xff]  ;;  %v11014_v21 = vcombine.low %v1137_v9, %v1141_v11  ;;  %v11016_v23 = vcombine.low %v1138_v12, %v1142_v15  ;;  %v11587_v12 = vld [vmem:[#allocation6 + $0x68] ss:$16 sps:$4 sm:$0xff]  }
 0x445   :  { %v11025_v0 = vcombine.high %v1146_v19, %v1150_v20  ;;  %v11586_v9 = vld [vmem:[#allocation6 + $0x64] ss:$16 sps:$4 sm:$0xff]   ;;  %v11584_v11 = vld [vmem:[#allocation6 + $0x60] ss:$16 sps:$4 sm:$0xff]  }
 0x446   :  { %v11592_v15 = vld [vmem:[#allocation6 + $0x84] ss:$16 sps:$4 sm:$0xff]  }
 0x447   :  { %7337 = vmatpush1.bf16.msra.mxu0 %v10966_v31  ;;  %7681 = vmatpush1.bf16.msra.mxu1 %v10968_v34  ;;  %v1154_v31 = vld [vmem:[#allocation2 + $0x1f58] sm:$0xff] }
 0x448   :  { %7338 = vmatprep.subr.bf16.mxu0 %v10975_v36  ;;  %7682 = vmatprep.subr.bf16.mxu1 %v10977_v39  ;;  %v1158_v34 = vld [vmem:[#allocation2 + $0x1f78] sm:$0xff]  ;;  %v11022_v36 = vcombine.low %v1145_v18, %v1149_v53  ;;  %v11024_v39 = vcombine.low %v1146_v19, %v1150_v20  ;;  %v11599_v53 = vld [vmem:[#allocation6 + $0xa8] ss:$16 sps:$4 sm:$0xff]   ;;  %v11607_v20 = vld [vmem:[#allocation6 + $0xcc] ss:$16 sps:$4 sm:$0xff]  }
 0x449   :  { %v11033_v43 = vcombine.high %v1154_v31, %v1158_v34  ;;  %v11596_v18 = vld [vmem:[#allocation6 + $0xa0] ss:$16 sps:$4 sm:$0xff]   ;;  %v11604_v19 = vld [vmem:[#allocation6 + $0xc4] ss:$16 sps:$4 sm:$0xff]  }
 0x44b   :  { %7339 = vmatpush1.bf16.msra.mxu0 %v10974_v10  ;;  %7683 = vmatpush1.bf16.msra.mxu1 %v10976_v47  ;;  %v1162_v10 = vld [vmem:[#allocation2 + $0x1f98] sm:$0xff] }
 0x44c   :  { %7340 = vmatprep.subr.bf16.mxu0 %v10983_v48  ;;  %7684 = vmatprep.subr.bf16.mxu1 %v10985_v49  ;;  %v1166_v47 = vld [vmem:[#allocation2 + $0x1fb8] sm:$0xff]  ;;  %v11030_v48 = vcombine.low %v1153_v24, %v1157_v27  ;;  %v11032_v49 = vcombine.low %v1154_v31, %v1158_v34  ;;  %v11611_v27 = vld [vmem:[#allocation6 + $0xe8] ss:$16 sps:$4 sm:$0xff]   ;;  %v11619_v34 = vld [vmem:[#allocation6 + $0x10c] ss:$16 sps:$4 sm:$0xff]  }
 0x44d   :  { %v11041_v51 = vcombine.high %v1162_v10, %v1166_v47  ;;  %v11608_v24 = vld [vmem:[#allocation6 + $0xe0] ss:$16 sps:$4 sm:$0xff]   ;;  %v11616_v31 = vld [vmem:[#allocation6 + $0x104] ss:$16 sps:$4 sm:$0xff]  }
 0x44f   :  { %7341 = vmatpush1.bf16.msra.mxu0 %v10982_v54  ;;  %7685 = vmatpush1.bf16.msra.mxu1 %v10984_v6  ;;  %v1170_v54 = vld [vmem:[#allocation2 + $0x1fd8] sm:$0xff] }
 0x450   :  { %7342 = vmatprep.subr.bf16.mxu0 %v10991_v55  ;;  %7686 = vmatprep.subr.bf16.mxu1 %v10993_v37  ;;  %v1174_v6 = vld [vmem:[#allocation2 + $0x1ff8] sm:$0xff]  ;;  %v11038_v55 = vcombine.low %v1161_v44, %v1165_v59  ;;  %v11040_v37 = vcombine.low %v1162_v10, %v1166_v47  ;;  %v11623_v59 = vld [vmem:[#allocation6 + $0x128] ss:$16 sps:$4 sm:$0xff]   ;;  %v11631_v47 = vld [vmem:[#allocation6 + $0x14c] ss:$16 sps:$4 sm:$0xff]  }
 0x451   :  { %v11049_v57 = vcombine.high %v1170_v54, %v1174_v6  ;;  %v11048_v61 = vcombine.low %v1170_v54, %v1174_v6  ;;  %v11620_v44 = vld [vmem:[#allocation6 + $0x120] ss:$16 sps:$4 sm:$0xff]   ;;  %v11628_v10 = vld [vmem:[#allocation6 + $0x144] ss:$16 sps:$4 sm:$0xff]   ;;  %v11643_v6 = vld [vmem:[#allocation6 + $0x18c] ss:$16 sps:$4 sm:$0xff]  }
 0x452   :  { %v11640_v54 = vld [vmem:[#allocation6 + $0x184] ss:$16 sps:$4 sm:$0xff]  }
 0x453   :  { %7343 = vmatpush1.bf16.msra.mxu0 %v10990_v62  ;;  %7687 = vmatpush1.bf16.msra.mxu1 %v10992_v63  ;;  %v11568_v62 = vld [vmem:[#allocation6 + $0x4] ss:$16 sps:$4 sm:$0xff]   ;;  %v11571_v63 = vld [vmem:[#allocation6 + $0xc] ss:$16 sps:$4 sm:$0xff]  }
 0x454   :  { %7344 = vmatprep.subr.bf16.mxu0 %v10999_v1  ;;  %7688 = vmatprep.subr.bf16.mxu1 %v11001_v2  ;;  %v11566_v1 = vld [vmem:[#allocation6] ss:$16 sps:$4 sm:$0xff]   ;;  %v11569_v2 = vld [vmem:[#allocation6 + $0x8] ss:$16 sps:$4 sm:$0xff]  }
 0x457   :  { %7345 = vmatpush1.bf16.msra.mxu0 %v10998_v26  ;;  %7689 = vmatpush1.bf16.msra.mxu1 %v11000_v7  ;;  %v11580_v26 = vld [vmem:[#allocation6 + $0x44] ss:$16 sps:$4 sm:$0xff]   ;;  %v11583_v7 = vld [vmem:[#allocation6 + $0x4c] ss:$16 sps:$4 sm:$0xff]  }
 0x458   :  { %7346 = vmatprep.subr.bf16.mxu0 %v11007_v46  ;;  %7690 = vmatprep.subr.bf16.mxu1 %v11009_v8  ;;  %v11578_v46 = vld [vmem:[#allocation6 + $0x40] ss:$16 sps:$4 sm:$0xff]   ;;  %v11581_v8 = vld [vmem:[#allocation6 + $0x48] ss:$16 sps:$4 sm:$0xff]  }
 0x45b   :  { %7347 = vmatpush1.bf16.msra.mxu0 %v11006_v14  ;;  %7691 = vmatpush1.bf16.msra.mxu1 %v11008_v45  ;;  %v11595_v14 = vld [vmem:[#allocation6 + $0x8c] ss:$16 sps:$4 sm:$0xff]   ;;  %v11593_v45 = vld [vmem:[#allocation6 + $0x88] ss:$16 sps:$4 sm:$0xff]  }
 0x45c   :  { %7348 = vmatprep.subr.bf16.mxu0 %v11015_v17  ;;  %7692 = vmatprep.subr.bf16.mxu1 %v11017_v38  ;;  %v11598_v17 = vld [vmem:[#allocation6 + $0xa4] ss:$16 sps:$4 sm:$0xff]   ;;  %v11601_v38 = vld [vmem:[#allocation6 + $0xac] ss:$16 sps:$4 sm:$0xff]  }
 0x45f   :  { %7349 = vmatpush1.bf16.msra.mxu0 %v11014_v21  ;;  %7693 = vmatpush1.bf16.msra.mxu1 %v11016_v23  ;;  %v11602_v21 = vld [vmem:[#allocation6 + $0xc0] ss:$16 sps:$4 sm:$0xff]   ;;  %v11605_v23 = vld [vmem:[#allocation6 + $0xc8] ss:$16 sps:$4 sm:$0xff]  }
 0x460   :  { %7350 = vmatprep.subr.bf16.mxu0 %v11023_v25  ;;  %7694 = vmatprep.subr.bf16.mxu1 %v11025_v0  ;;  %v11610_v25 = vld [vmem:[#allocation6 + $0xe4] ss:$16 sps:$4 sm:$0xff]   ;;  %v11613_v0 = vld [vmem:[#allocation6 + $0xec] ss:$16 sps:$4 sm:$0xff]  }
 0x463   :  { %7351 = vmatpush1.bf16.msra.mxu0 %v11022_v36  ;;  %7695 = vmatpush1.bf16.msra.mxu1 %v11024_v39  ;;  %v11614_v36 = vld [vmem:[#allocation6 + $0x100] ss:$16 sps:$4 sm:$0xff]   ;;  %v11617_v39 = vld [vmem:[#allocation6 + $0x108] ss:$16 sps:$4 sm:$0xff]  }
 0x464   :  { %7352 = vmatprep.subr.bf16.mxu0 %v11031_v42  ;;  %7696 = vmatprep.subr.bf16.mxu1 %v11033_v43  ;;  %v11622_v42 = vld [vmem:[#allocation6 + $0x124] ss:$16 sps:$4 sm:$0xff]   ;;  %v11625_v43 = vld [vmem:[#allocation6 + $0x12c] ss:$16 sps:$4 sm:$0xff]  }
 0x467   :  { %7353 = vmatpush1.bf16.msra.mxu0 %v11030_v48  ;;  %7697 = vmatpush1.bf16.msra.mxu1 %v11032_v49  ;;  %v11626_v48 = vld [vmem:[#allocation6 + $0x140] ss:$16 sps:$4 sm:$0xff]   ;;  %v11629_v49 = vld [vmem:[#allocation6 + $0x148] ss:$16 sps:$4 sm:$0xff]  }
 0x468   :  { %7354 = vmatprep.subr.bf16.mxu0 %v11039_v50  ;;  %7698 = vmatprep.subr.bf16.mxu1 %v11041_v51  ;;  %v11634_v50 = vld [vmem:[#allocation6 + $0x164] ss:$16 sps:$4 sm:$0xff]   ;;  %v11637_v51 = vld [vmem:[#allocation6 + $0x16c] ss:$16 sps:$4 sm:$0xff]  }
 0x46b   :  { %7355 = vmatpush1.bf16.msra.mxu0 %v11038_v55  ;;  %7699 = vmatpush1.bf16.msra.mxu1 %v11040_v37  ;;  %v11638_v55 = vld [vmem:[#allocation6 + $0x180] ss:$16 sps:$4 sm:$0xff]   ;;  %v11641_v37 = vld [vmem:[#allocation6 + $0x188] ss:$16 sps:$4 sm:$0xff]  }
 0x46c   :  { %7356 = vmatprep.subr.bf16.mxu0 %v11047_v56  ;;  %7700 = vmatprep.subr.bf16.mxu1 %v11049_v57  ;;  %v11646_v56 = vld [vmem:[#allocation6 + $0x1a4] ss:$16 sps:$4 sm:$0xff]   ;;  %v11649_v57 = vld [vmem:[#allocation6 + $0x1ac] ss:$16 sps:$4 sm:$0xff]  }
 0x46f   :  { %7357 = vmatpush1.bf16.msra.mxu0 %v11046_v60  ;;  %7701 = vmatpush1.bf16.msra.mxu1 %v11048_v61  ;;  %v11644_v60 = vld [vmem:[#allocation6 + $0x1a0] ss:$16 sps:$4 sm:$0xff]   ;;  %v11647_v61 = vld [vmem:[#allocation6 + $0x1a8] ss:$16 sps:$4 sm:$0xff]  }
 0x470   :  { %9295 = vmatprep.subr.bf16.mxu0 %v11568_v62  ;;  %9467 = vmatprep.subr.bf16.mxu1 %v11571_v63  ;;  %v11652_v62 = vld [vmem:[#allocation6 + $0x1c4] ss:$16 sps:$4 sm:$0xff]   ;;  %v11655_v63 = vld [vmem:[#allocation6 + $0x1cc] ss:$16 sps:$4 sm:$0xff]  }
 0x472   :  { %7359 = vmatmul.mubr.bf16.vlgmr.msra.gmra.mrb[4].mxu0 %v12411_v13  ;;  %7703 = vmatmul.mubr.bf16.vlgmr.msra.gmra.mrb[4].mxu1 %v12411_v13  ;;  %v11589_v13 = vld [vmem:[#allocation6 + $0x6c] ss:$16 sps:$4 sm:$0xff]  }
 0x473   :  { %9296 = vmatpush1.bf16.msra.mxu0 %v11566_v1  ;;  %9327 = vmatprep.mubr.bf16.mxu0 %v12447_v41  ;;  %v11650_v1 = vld [vmem:[#allocation6 + $0x1c0] ss:$16 sps:$4 sm:$0xff]  }
 0x474   :  { %9468 = vmatpush1.bf16.msra.mxu1 %v11569_v2  ;;  %9499 = vmatprep.mubr.bf16.mxu1 %v12447_v41  ;;  %v11590_v41 = vld [vmem:[#allocation6 + $0x80] ss:$16 sps:$4 sm:$0xff]   ;;  %v11653_v2 = vld [vmem:[#allocation6 + $0x1c8] ss:$16 sps:$4 sm:$0xff]  }
 0x475   :  { %9297 = vmatprep.subr.bf16.mxu0 %v11574_v3  ;;  %9469 = vmatprep.subr.bf16.mxu1 %v11577_v4  ;;  %v11658_v3 = vld [vmem:[#allocation6 + $0x1e4] ss:$16 sps:$4 sm:$0xff]   ;;  %v11661_v4 = vld [vmem:[#allocation6 + $0x1ec] ss:$16 sps:$4 sm:$0xff]  }
 0x477   :  { %9298 = vmatpush1.bf16.msra.mxu0 %v11572_v5  ;;  %v11656_v5 = vld [vmem:[#allocation6 + $0x1e0] ss:$16 sps:$4 sm:$0xff]  }
 0x478   :  { %9470 = vmatpush1.bf16.msra.mxu1 %v11575_v33  ;;  %9299 = vmatprep.subr.bf16.mxu0 %v11580_v26  ;;  %v11659_v33 = vld [vmem:[#allocation6 + $0x1e8] ss:$16 sps:$4 sm:$0xff]   ;;  %v11664_v26 = vld [vmem:[#allocation6 + $0x204] ss:$16 sps:$4 sm:$0xff]  }
 0x479   :  { %9471 = vmatprep.subr.bf16.mxu1 %v11583_v7  ;;  %v11667_v7 = vld [vmem:[#allocation6 + $0x20c] ss:$16 sps:$4 sm:$0xff]  }
 0x47b   :  { %9300 = vmatpush1.bf16.msra.mxu0 %v11578_v46  ;;  %v11662_v46 = vld [vmem:[#allocation6 + $0x200] ss:$16 sps:$4 sm:$0xff]  }
 0x47c   :  { %9472 = vmatpush1.bf16.msra.mxu1 %v11581_v8  ;;  %9301 = vmatprep.subr.bf16.mxu0 %v11586_v9  ;;  %v11665_v8 = vld [vmem:[#allocation6 + $0x208] ss:$16 sps:$4 sm:$0xff]   ;;  %v11670_v9 = vld [vmem:[#allocation6 + $0x224] ss:$16 sps:$4 sm:$0xff]  }
 0x47d   :  { %9473 = vmatprep.subr.bf16.mxu1 %v11589_v13  ;;  %v11673_v13 = vld [vmem:[#allocation6 + $0x22c] ss:$16 sps:$4 sm:$0xff]  }
 0x47f   :  { %9302 = vmatpush1.bf16.msra.mxu0 %v11584_v11  ;;  %v11668_v11 = vld [vmem:[#allocation6 + $0x220] ss:$16 sps:$4 sm:$0xff]  }
 0x480   :  { %9474 = vmatpush1.bf16.msra.mxu1 %v11587_v12  ;;  %9303 = vmatprep.subr.bf16.mxu0 %v11592_v15  ;;  %v11671_v12 = vld [vmem:[#allocation6 + $0x228] ss:$16 sps:$4 sm:$0xff]   ;;  %v11676_v15 = vld [vmem:[#allocation6 + $0x244] ss:$16 sps:$4 sm:$0xff]  }
 0x481   :  { %9475 = vmatprep.subr.bf16.mxu1 %v11595_v14  ;;  %v11679_v14 = vld [vmem:[#allocation6 + $0x24c] ss:$16 sps:$4 sm:$0xff]  }
 0x483   :  { %9304 = vmatpush1.bf16.msra.mxu0 %v11590_v41  ;;  %v11674_v41 = vld [vmem:[#allocation6 + $0x240] ss:$16 sps:$4 sm:$0xff]  }
 0x484   :  { %9476 = vmatpush1.bf16.msra.mxu1 %v11593_v45  ;;  %9305 = vmatprep.subr.bf16.mxu0 %v11598_v17  ;;  %v11677_v45 = vld [vmem:[#allocation6 + $0x248] ss:$16 sps:$4 sm:$0xff]   ;;  %v11682_v17 = vld [vmem:[#allocation6 + $0x264] ss:$16 sps:$4 sm:$0xff]  }
 0x485   :  { %9477 = vmatprep.subr.bf16.mxu1 %v11601_v38  ;;  %v11680_v38 = vld [vmem:[#allocation6 + $0x260] ss:$16 sps:$4 sm:$0xff]  }
 0x487   :  { %9306 = vmatpush1.bf16.msra.mxu0 %v11596_v18  ;;  %v11683_v18 = vld [vmem:[#allocation6 + $0x268] ss:$16 sps:$4 sm:$0xff]  }
 0x488   :  { %9478 = vmatpush1.bf16.msra.mxu1 %v11599_v53  ;;  %9307 = vmatprep.subr.bf16.mxu0 %v11604_v19  ;;  %v11688_v53 = vld [vmem:[#allocation6 + $0x284] ss:$16 sps:$4 sm:$0xff]   ;;  %v11691_v19 = vld [vmem:[#allocation6 + $0x28c] ss:$16 sps:$4 sm:$0xff]  }
 0x489   :  { %9479 = vmatprep.subr.bf16.mxu1 %v11607_v20  ;;  %v11689_v20 = vld [vmem:[#allocation6 + $0x288] ss:$16 sps:$4 sm:$0xff]  }
 0x48b   :  { %9308 = vmatpush1.bf16.msra.mxu0 %v11602_v21  ;;  %v11694_v21 = vld [vmem:[#allocation6 + $0x2a4] ss:$16 sps:$4 sm:$0xff]  }
 0x48c   :  { %9480 = vmatpush1.bf16.msra.mxu1 %v11605_v23  ;;  %9309 = vmatprep.subr.bf16.mxu0 %v11610_v25  ;;  %v11697_v23 = vld [vmem:[#allocation6 + $0x2ac] ss:$16 sps:$4 sm:$0xff]   ;;  %v11692_v25 = vld [vmem:[#allocation6 + $0x2a0] ss:$16 sps:$4 sm:$0xff]  }
 0x48d   :  { %9481 = vmatprep.subr.bf16.mxu1 %v11613_v0  ;;  %v11695_v0 = vld [vmem:[#allocation6 + $0x2a8] ss:$16 sps:$4 sm:$0xff]  }
 0x48f   :  { %9310 = vmatpush1.bf16.msra.mxu0 %v11608_v24  ;;  %v11700_v24 = vld [vmem:[#allocation6 + $0x2c4] ss:$16 sps:$4 sm:$0xff]  }
 0x490   :  { %9482 = vmatpush1.bf16.msra.mxu1 %v11611_v27  ;;  %9311 = vmatprep.subr.bf16.mxu0 %v11616_v31  ;;  %v11703_v27 = vld [vmem:[#allocation6 + $0x2cc] ss:$16 sps:$4 sm:$0xff]   ;;  %v11698_v31 = vld [vmem:[#allocation6 + $0x2c0] ss:$16 sps:$4 sm:$0xff]  }
 0x491   :  { %9483 = vmatprep.subr.bf16.mxu1 %v11619_v34  ;;  %v11701_v34 = vld [vmem:[#allocation6 + $0x2c8] ss:$16 sps:$4 sm:$0xff]  }
 0x493   :  { %9312 = vmatpush1.bf16.msra.mxu0 %v11614_v36  ;;  %v11706_v36 = vld [vmem:[#allocation6 + $0x2e4] ss:$16 sps:$4 sm:$0xff]  }
 0x494   :  { %9484 = vmatpush1.bf16.msra.mxu1 %v11617_v39  ;;  %9313 = vmatprep.subr.bf16.mxu0 %v11622_v42  ;;  %v11709_v39 = vld [vmem:[#allocation6 + $0x2ec] ss:$16 sps:$4 sm:$0xff]   ;;  %v11704_v42 = vld [vmem:[#allocation6 + $0x2e0] ss:$16 sps:$4 sm:$0xff]  }
 0x495   :  { %9485 = vmatprep.subr.bf16.mxu1 %v11625_v43  ;;  %v11707_v43 = vld [vmem:[#allocation6 + $0x2e8] ss:$16 sps:$4 sm:$0xff]  }
 0x497   :  { %9314 = vmatpush1.bf16.msra.mxu0 %v11620_v44  ;;  %v11712_v44 = vld [vmem:[#allocation6 + $0x304] ss:$16 sps:$4 sm:$0xff]  }
 0x498   :  { %9486 = vmatpush1.bf16.msra.mxu1 %v11623_v59  ;;  %9315 = vmatprep.subr.bf16.mxu0 %v11628_v10  ;;  %v11715_v59 = vld [vmem:[#allocation6 + $0x30c] ss:$16 sps:$4 sm:$0xff]   ;;  %v11710_v10 = vld [vmem:[#allocation6 + $0x300] ss:$16 sps:$4 sm:$0xff]  }
 0x499   :  { %9487 = vmatprep.subr.bf16.mxu1 %v11631_v47  ;;  %v11713_v47 = vld [vmem:[#allocation6 + $0x308] ss:$16 sps:$4 sm:$0xff]  }
 0x49b   :  { %9316 = vmatpush1.bf16.msra.mxu0 %v11626_v48  ;;  %v11718_v48 = vld [vmem:[#allocation6 + $0x324] ss:$16 sps:$4 sm:$0xff]  }
 0x49c   :  { %9488 = vmatpush1.bf16.msra.mxu1 %v11629_v49  ;;  %9317 = vmatprep.subr.bf16.mxu0 %v11634_v50  ;;  %v11721_v49 = vld [vmem:[#allocation6 + $0x32c] ss:$16 sps:$4 sm:$0xff]   ;;  %v11716_v50 = vld [vmem:[#allocation6 + $0x320] ss:$16 sps:$4 sm:$0xff]  }
 0x49d   :  { %9489 = vmatprep.subr.bf16.mxu1 %v11637_v51  ;;  %v11719_v51 = vld [vmem:[#allocation6 + $0x328] ss:$16 sps:$4 sm:$0xff]  }
 0x49f   :  { %9318 = vmatpush1.bf16.msra.mxu0 %v11632_v58  ;;  %v11724_v58 = vld [vmem:[#allocation6 + $0x344] ss:$16 sps:$4 sm:$0xff]  }
 0x4a0   :  { %9490 = vmatpush1.bf16.msra.mxu1 %v11635_v52  ;;  %9319 = vmatprep.subr.bf16.mxu0 %v11640_v54  ;;  %v11727_v52 = vld [vmem:[#allocation6 + $0x34c] ss:$16 sps:$4 sm:$0xff]   ;;  %v11722_v54 = vld [vmem:[#allocation6 + $0x340] ss:$16 sps:$4 sm:$0xff]  }
 0x4a1   :  { %9491 = vmatprep.subr.bf16.mxu1 %v11643_v6  ;;  %v11725_v6 = vld [vmem:[#allocation6 + $0x348] ss:$16 sps:$4 sm:$0xff]  }
 0x4a3   :  { %9320 = vmatpush1.bf16.msra.mxu0 %v11638_v55  ;;  %v11730_v55 = vld [vmem:[#allocation6 + $0x364] ss:$16 sps:$4 sm:$0xff]  }
 0x4a4   :  { %9492 = vmatpush1.bf16.msra.mxu1 %v11641_v37  ;;  %9321 = vmatprep.subr.bf16.mxu0 %v11646_v56  ;;  %v11733_v37 = vld [vmem:[#allocation6 + $0x36c] ss:$16 sps:$4 sm:$0xff]   ;;  %v11728_v56 = vld [vmem:[#allocation6 + $0x360] ss:$16 sps:$4 sm:$0xff]  }
 0x4a5   :  { %9493 = vmatprep.subr.bf16.mxu1 %v11649_v57  ;;  %v11731_v57 = vld [vmem:[#allocation6 + $0x368] ss:$16 sps:$4 sm:$0xff]  }
 0x4a7   :  { %9322 = vmatpush1.bf16.msra.mxu0 %v11644_v60  ;;  %v11736_v60 = vld [vmem:[#allocation6 + $0x384] ss:$16 sps:$4 sm:$0xff]  }
 0x4a8   :  { %9494 = vmatpush1.bf16.msra.mxu1 %v11647_v61  ;;  %9323 = vmatprep.subr.bf16.mxu0 %v11652_v62  ;;  %v11739_v61 = vld [vmem:[#allocation6 + $0x38c] ss:$16 sps:$4 sm:$0xff]   ;;  %v11734_v62 = vld [vmem:[#allocation6 + $0x380] ss:$16 sps:$4 sm:$0xff]  }
 0x4a9   :  { %9495 = vmatprep.subr.bf16.mxu1 %v11655_v63  ;;  %v11737_v63 = vld [vmem:[#allocation6 + $0x388] ss:$16 sps:$4 sm:$0xff]  }
 0x4ab   :  { %9324 = vmatpush1.bf16.msra.mxu0 %v11650_v1  ;;  %v11742_v1 = vld [vmem:[#allocation6 + $0x3a4] ss:$16 sps:$4 sm:$0xff]  }
 0x4ac   :  { %9496 = vmatpush1.bf16.msra.mxu1 %v11653_v2  ;;  %9325 = vmatprep.subr.bf16.mxu0 %v11658_v3  ;;  %v11745_v2 = vld [vmem:[#allocation6 + $0x3ac] ss:$16 sps:$4 sm:$0xff]   ;;  %v11740_v3 = vld [vmem:[#allocation6 + $0x3a0] ss:$16 sps:$4 sm:$0xff]  }
 0x4ad   :  { %9497 = vmatprep.subr.bf16.mxu1 %v11661_v4  ;;  %v11743_v4 = vld [vmem:[#allocation6 + $0x3a8] ss:$16 sps:$4 sm:$0xff]  }
 0x4af   :  { %9326 = vmatpush1.bf16.msra.mxu0 %v11656_v5  ;;  %v11748_v5 = vld [vmem:[#allocation6 + $0x3c4] ss:$16 sps:$4 sm:$0xff]  }
 0x4b0   :  { %9498 = vmatpush1.bf16.msra.mxu1 %v11659_v33  ;;  %9338 = vmatprep.subr.bf16.mxu0 %v11664_v26  ;;  %v11751_v33 = vld [vmem:[#allocation6 + $0x3cc] ss:$16 sps:$4 sm:$0xff]   ;;  %v11746_v26 = vld [vmem:[#allocation6 + $0x3c0] ss:$16 sps:$4 sm:$0xff]  }
 0x4b1   :  { %9510 = vmatprep.subr.bf16.mxu1 %v11667_v7  ;;  %v11749_v7 = vld [vmem:[#allocation6 + $0x3c8] ss:$16 sps:$4 sm:$0xff]  }
 0x4b2   :  { %9328 = vmatmul.mubr.bf16.vlgmr.msra.gmra.mrb[8].mxu0 %v12443_v35 }
 0x4b3   :  { %9500 = vmatmul.mubr.bf16.vlgmr.msra.gmra.mrb[8].mxu1 %v12443_v35  ;;  %9339 = vmatpush1.bf16.msra.mxu0 %v11662_v46  ;;  %v11685_v35 = vld [vmem:[#allocation6 + $0x26c] ss:$16 sps:$4 sm:$0xff]   ;;  %v11754_v46 = vld [vmem:[#allocation6 + $0x3e4] ss:$16 sps:$4 sm:$0xff]  }
 0x4b4   :  { %9370 = vmatprep.mubr.bf16.mxu0 %v12449_v30  ;;  %9511 = vmatpush1.bf16.msra.mxu1 %v11665_v8  ;;  %v11757_v8 = vld [vmem:[#allocation6 + $0x3ec] ss:$16 sps:$4 sm:$0xff]  }
 0x4b5   :  { %9542 = vmatprep.mubr.bf16.mxu1 %v12449_v30  ;;  %9340 = vmatprep.subr.bf16.mxu0 %v11670_v9  ;;  %v11686_v30 = vld [vmem:[#allocation6 + $0x280] ss:$16 sps:$4 sm:$0xff]  }
 0x4b6   :  { %9512 = vmatprep.subr.bf16.mxu1 %v11673_v13  ;;  %v11752_v9 = vld [vmem:[#allocation6 + $0x3e0] ss:$16 sps:$4 sm:$0xff]   ;;  %v11755_v13 = vld [vmem:[#allocation6 + $0x3e8] ss:$16 sps:$4 sm:$0xff]  }
 0x4b7   :  { %9341 = vmatpush1.bf16.msra.mxu0 %v11668_v11  ;;  %v11760_v11 = vld [vmem:[#allocation6 + $0x404] ss:$16 sps:$4 sm:$0xff]  }
 0x4b8   :  { %9513 = vmatpush1.bf16.msra.mxu1 %v11671_v12  ;;  %9342 = vmatprep.subr.bf16.mxu0 %v11676_v15  ;;  %v11763_v12 = vld [vmem:[#allocation6 + $0x40c] ss:$16 sps:$4 sm:$0xff]   ;;  %v11758_v15 = vld [vmem:[#allocation6 + $0x400] ss:$16 sps:$4 sm:$0xff]  }
 0x4b9   :  { %9514 = vmatprep.subr.bf16.mxu1 %v11679_v14  ;;  %v11761_v14 = vld [vmem:[#allocation6 + $0x408] ss:$16 sps:$4 sm:$0xff]  }
 0x4bb   :  { %9343 = vmatpush1.bf16.msra.mxu0 %v11674_v41  ;;  %v11766_v41 = vld [vmem:[#allocation6 + $0x424] ss:$16 sps:$4 sm:$0xff]  }
 0x4bc   :  { %9515 = vmatpush1.bf16.msra.mxu1 %v11677_v45  ;;  %9344 = vmatprep.subr.bf16.mxu0 %v11682_v17  ;;  %v11769_v45 = vld [vmem:[#allocation6 + $0x42c] ss:$16 sps:$4 sm:$0xff]   ;;  %v11764_v17 = vld [vmem:[#allocation6 + $0x420] ss:$16 sps:$4 sm:$0xff]  }
 0x4bd   :  { %9516 = vmatprep.subr.bf16.mxu1 %v11685_v35  ;;  %v11767_v35 = vld [vmem:[#allocation6 + $0x428] ss:$16 sps:$4 sm:$0xff]  }
 0x4bf   :  { %9345 = vmatpush1.bf16.msra.mxu0 %v11680_v38  ;;  %v11772_v38 = vld [vmem:[#allocation6 + $0x444] ss:$16 sps:$4 sm:$0xff]  }
 0x4c0   :  { %9517 = vmatpush1.bf16.msra.mxu1 %v11683_v18  ;;  %9346 = vmatprep.subr.bf16.mxu0 %v11688_v53  ;;  %v11775_v18 = vld [vmem:[#allocation6 + $0x44c] ss:$16 sps:$4 sm:$0xff]   ;;  %v11770_v53 = vld [vmem:[#allocation6 + $0x440] ss:$16 sps:$4 sm:$0xff]  }
 0x4c1   :  { %9518 = vmatprep.subr.bf16.mxu1 %v11691_v19  ;;  %v11773_v19 = vld [vmem:[#allocation6 + $0x448] ss:$16 sps:$4 sm:$0xff]  }
 0x4c3   :  { %9347 = vmatpush1.bf16.msra.mxu0 %v11686_v30  ;;  %v11778_v30 = vld [vmem:[#allocation6 + $0x464] ss:$16 sps:$4 sm:$0xff]  }
 0x4c4   :  { %9519 = vmatpush1.bf16.msra.mxu1 %v11689_v20  ;;  %9348 = vmatprep.subr.bf16.mxu0 %v11694_v21  ;;  %v11781_v20 = vld [vmem:[#allocation6 + $0x46c] ss:$16 sps:$4 sm:$0xff]   ;;  %v11776_v21 = vld [vmem:[#allocation6 + $0x460] ss:$16 sps:$4 sm:$0xff]  }
 0x4c5   :  { %9520 = vmatprep.subr.bf16.mxu1 %v11697_v23  ;;  %v11784_v23 = vld [vmem:[#allocation6 + $0x484] ss:$16 sps:$4 sm:$0xff]  }
 0x4c7   :  { %9349 = vmatpush1.bf16.msra.mxu0 %v11692_v25  ;;  %v11787_v25 = vld [vmem:[#allocation6 + $0x48c] ss:$16 sps:$4 sm:$0xff]  }
 0x4c8   :  { %9521 = vmatpush1.bf16.msra.mxu1 %v11695_v0  ;;  %9350 = vmatprep.subr.bf16.mxu0 %v11700_v24  ;;  %v11782_v0 = vld [vmem:[#allocation6 + $0x480] ss:$16 sps:$4 sm:$0xff]   ;;  %v11785_v24 = vld [vmem:[#allocation6 + $0x488] ss:$16 sps:$4 sm:$0xff]  }
 0x4c9   :  { %9522 = vmatprep.subr.bf16.mxu1 %v11703_v27  ;;  %v11790_v27 = vld [vmem:[#allocation6 + $0x4a4] ss:$16 sps:$4 sm:$0xff]  }
 0x4cb   :  { %9351 = vmatpush1.bf16.msra.mxu0 %v11698_v31  ;;  %v11793_v31 = vld [vmem:[#allocation6 + $0x4ac] ss:$16 sps:$4 sm:$0xff]  }
 0x4cc   :  { %9523 = vmatpush1.bf16.msra.mxu1 %v11701_v34  ;;  %9352 = vmatprep.subr.bf16.mxu0 %v11706_v36  ;;  %v11788_v34 = vld [vmem:[#allocation6 + $0x4a0] ss:$16 sps:$4 sm:$0xff]   ;;  %v11791_v36 = vld [vmem:[#allocation6 + $0x4a8] ss:$16 sps:$4 sm:$0xff]  }
 0x4cd   :  { %9524 = vmatprep.subr.bf16.mxu1 %v11709_v39  ;;  %v11796_v39 = vld [vmem:[#allocation6 + $0x4c4] ss:$16 sps:$4 sm:$0xff]  }
 0x4cf   :  { %9353 = vmatpush1.bf16.msra.mxu0 %v11704_v42  ;;  %v11799_v42 = vld [vmem:[#allocation6 + $0x4cc] ss:$16 sps:$4 sm:$0xff]  }
 0x4d0   :  { %9525 = vmatpush1.bf16.msra.mxu1 %v11707_v43  ;;  %9354 = vmatprep.subr.bf16.mxu0 %v11712_v44  ;;  %v11794_v43 = vld [vmem:[#allocation6 + $0x4c0] ss:$16 sps:$4 sm:$0xff]   ;;  %v11797_v44 = vld [vmem:[#allocation6 + $0x4c8] ss:$16 sps:$4 sm:$0xff]  }
 0x4d1   :  { %9526 = vmatprep.subr.bf16.mxu1 %v11715_v59  ;;  %v11802_v59 = vld [vmem:[#allocation6 + $0x4e4] ss:$16 sps:$4 sm:$0xff]  }
 0x4d3   :  { %9355 = vmatpush1.bf16.msra.mxu0 %v11710_v10  ;;  %v11805_v10 = vld [vmem:[#allocation6 + $0x4ec] ss:$16 sps:$4 sm:$0xff]  }
 0x4d4   :  { %9527 = vmatpush1.bf16.msra.mxu1 %v11713_v47  ;;  %9356 = vmatprep.subr.bf16.mxu0 %v11718_v48  ;;  %v11800_v47 = vld [vmem:[#allocation6 + $0x4e0] ss:$16 sps:$4 sm:$0xff]   ;;  %v11803_v48 = vld [vmem:[#allocation6 + $0x4e8] ss:$16 sps:$4 sm:$0xff]  }
 0x4d5   :  { %9528 = vmatprep.subr.bf16.mxu1 %v11721_v49  ;;  %v11808_v49 = vld [vmem:[#allocation6 + $0x504] ss:$16 sps:$4 sm:$0xff]  }
 0x4d7   :  { %9357 = vmatpush1.bf16.msra.mxu0 %v11716_v50  ;;  %v11811_v50 = vld [vmem:[#allocation6 + $0x50c] ss:$16 sps:$4 sm:$0xff]  }
 0x4d8   :  { %9529 = vmatpush1.bf16.msra.mxu1 %v11719_v51  ;;  %9358 = vmatprep.subr.bf16.mxu0 %v11724_v58  ;;  %v11806_v51 = vld [vmem:[#allocation6 + $0x500] ss:$16 sps:$4 sm:$0xff]   ;;  %v11809_v58 = vld [vmem:[#allocation6 + $0x508] ss:$16 sps:$4 sm:$0xff]  }
 0x4d9   :  { %9530 = vmatprep.subr.bf16.mxu1 %v11727_v52  ;;  %v11814_v52 = vld [vmem:[#allocation6 + $0x524] ss:$16 sps:$4 sm:$0xff]  }
 0x4db   :  { %9359 = vmatpush1.bf16.msra.mxu0 %v11722_v54  ;;  %v11817_v54 = vld [vmem:[#allocation6 + $0x52c] ss:$16 sps:$4 sm:$0xff]  }
 0x4dc   :  { %9531 = vmatpush1.bf16.msra.mxu1 %v11725_v6  ;;  %9360 = vmatprep.subr.bf16.mxu0 %v11730_v55  ;;  %v11812_v6 = vld [vmem:[#allocation6 + $0x520] ss:$16 sps:$4 sm:$0xff]   ;;  %v11815_v55 = vld [vmem:[#allocation6 + $0x528] ss:$16 sps:$4 sm:$0xff]  }
 0x4dd   :  { %9532 = vmatprep.subr.bf16.mxu1 %v11733_v37  ;;  %v11820_v37 = vld [vmem:[#allocation6 + $0x544] ss:$16 sps:$4 sm:$0xff]  }
 0x4df   :  { %9361 = vmatpush1.bf16.msra.mxu0 %v11728_v56  ;;  %v11823_v56 = vld [vmem:[#allocation6 + $0x54c] ss:$16 sps:$4 sm:$0xff]  }
 0x4e0   :  { %9533 = vmatpush1.bf16.msra.mxu1 %v11731_v57  ;;  %9362 = vmatprep.subr.bf16.mxu0 %v11736_v60  ;;  %v11818_v57 = vld [vmem:[#allocation6 + $0x540] ss:$16 sps:$4 sm:$0xff]   ;;  %v11821_v60 = vld [vmem:[#allocation6 + $0x548] ss:$16 sps:$4 sm:$0xff]  }
 0x4e1   :  { %9534 = vmatprep.subr.bf16.mxu1 %v11739_v61  ;;  %v11826_v61 = vld [vmem:[#allocation6 + $0x564] ss:$16 sps:$4 sm:$0xff]  }
 0x4e3   :  { %9363 = vmatpush1.bf16.msra.mxu0 %v11734_v62  ;;  %v11829_v62 = vld [vmem:[#allocation6 + $0x56c] ss:$16 sps:$4 sm:$0xff]  }
 0x4e4   :  { %9535 = vmatpush1.bf16.msra.mxu1 %v11737_v63  ;;  %9364 = vmatprep.subr.bf16.mxu0 %v11742_v1  ;;  %v11824_v63 = vld [vmem:[#allocation6 + $0x560] ss:$16 sps:$4 sm:$0xff]   ;;  %v11827_v1 = vld [vmem:[#allocation6 + $0x568] ss:$16 sps:$4 sm:$0xff]  }
 0x4e5   :  { %9536 = vmatprep.subr.bf16.mxu1 %v11745_v2  ;;  %v11832_v2 = vld [vmem:[#allocation6 + $0x584] ss:$16 sps:$4 sm:$0xff]  }
 0x4e7   :  { %9365 = vmatpush1.bf16.msra.mxu0 %v11740_v3  ;;  %v11835_v3 = vld [vmem:[#allocation6 + $0x58c] ss:$16 sps:$4 sm:$0xff]  }
 0x4e8   :  { %9537 = vmatpush1.bf16.msra.mxu1 %v11743_v4  ;;  %9366 = vmatprep.subr.bf16.mxu0 %v11748_v5  ;;  %v11830_v4 = vld [vmem:[#allocation6 + $0x580] ss:$16 sps:$4 sm:$0xff]   ;;  %v11833_v5 = vld [vmem:[#allocation6 + $0x588] ss:$16 sps:$4 sm:$0xff]  }
 0x4e9   :  { %9538 = vmatprep.subr.bf16.mxu1 %v11751_v33  ;;  %v11838_v33 = vld [vmem:[#allocation6 + $0x5a4] ss:$16 sps:$4 sm:$0xff]  }
 0x4eb   :  { %9367 = vmatpush1.bf16.msra.mxu0 %v11746_v26  ;;  %v11841_v26 = vld [vmem:[#allocation6 + $0x5ac] ss:$16 sps:$4 sm:$0xff]  }
 0x4ec   :  { %9539 = vmatpush1.bf16.msra.mxu1 %v11749_v7  ;;  %9368 = vmatprep.subr.bf16.mxu0 %v11754_v46  ;;  %v11836_v7 = vld [vmem:[#allocation6 + $0x5a0] ss:$16 sps:$4 sm:$0xff]   ;;  %v11839_v46 = vld [vmem:[#allocation6 + $0x5a8] ss:$16 sps:$4 sm:$0xff]  }
 0x4ed   :  { %9540 = vmatprep.subr.bf16.mxu1 %v11757_v8  ;;  %v11844_v8 = vld [vmem:[#allocation6 + $0x5c4] ss:$16 sps:$4 sm:$0xff]  }
 0x4ef   :  { %9369 = vmatpush1.bf16.msra.mxu0 %v11752_v9  ;;  %v11847_v9 = vld [vmem:[#allocation6 + $0x5cc] ss:$16 sps:$4 sm:$0xff]  }
 0x4f0   :  { %9541 = vmatpush1.bf16.msra.mxu1 %v11755_v13  ;;  %9381 = vmatprep.subr.bf16.mxu0 %v11760_v11  ;;  %v11842_v13 = vld [vmem:[#allocation6 + $0x5c0] ss:$16 sps:$4 sm:$0xff]   ;;  %v11845_v11 = vld [vmem:[#allocation6 + $0x5c8] ss:$16 sps:$4 sm:$0xff]  }
 0x4f1   :  { %9553 = vmatprep.subr.bf16.mxu1 %v11763_v12  ;;  %v11850_v12 = vld [vmem:[#allocation6 + $0x5e4] ss:$16 sps:$4 sm:$0xff]  }
 0x4f2   :  { %9371 = vmatmul.mubr.bf16.vlgmr.msra.gmra.mrb[8].mxu0 %v12445_v40 }
 0x4f3   :  { %9543 = vmatmul.mubr.bf16.vlgmr.msra.gmra.mrb[8].mxu1 %v12445_v40  ;;  %9382 = vmatpush1.bf16.msra.mxu0 %v11758_v15  ;;  %v11779_v40 = vld [vmem:[#allocation6 + $0x468] ss:$16 sps:$4 sm:$0xff]   ;;  %v11853_v15 = vld [vmem:[#allocation6 + $0x5ec] ss:$16 sps:$4 sm:$0xff]  }
 0x4f4   :  { %9554 = vmatpush1.bf16.msra.mxu1 %v11761_v14  ;;  %9383 = vmatprep.subr.bf16.mxu0 %v11766_v41  ;;  %v11848_v14 = vld [vmem:[#allocation6 + $0x5e0] ss:$16 sps:$4 sm:$0xff]   ;;  %v11851_v41 = vld [vmem:[#allocation6 + $0x5e8] ss:$16 sps:$4 sm:$0xff]  }
 0x4f5   :  { %9555 = vmatprep.subr.bf16.mxu1 %v11769_v45  ;;  %v11856_v45 = vld [vmem:[#allocation6 + $0x604] ss:$16 sps:$4 sm:$0xff]  }
 0x4f7   :  { %9384 = vmatpush1.bf16.msra.mxu0 %v11764_v17  ;;  %v11859_v17 = vld [vmem:[#allocation6 + $0x60c] ss:$16 sps:$4 sm:$0xff]  }
 0x4f8   :  { %9556 = vmatpush1.bf16.msra.mxu1 %v11767_v35  ;;  %9385 = vmatprep.subr.bf16.mxu0 %v11772_v38  ;;  %v1195_v35 = vsub.s32 4, %v12429_v16  ;;  %v1203_v38 = vsub.s32 6, %v12429_v16 }
 0x4f9   :  { %9557 = vmatprep.subr.bf16.mxu1 %v11775_v18  ;;  %v1199_v18 = vsub.s32 5, %v12429_v16 }
 0x4fb   :  { %9386 = vmatpush1.bf16.msra.mxu0 %v11770_v53  ;;  %v1207_v53 = vsub.s32 7, %v12429_v16 }
 0x4fc   :  { %9558 = vmatpush1.bf16.msra.mxu1 %v11773_v19  ;;  %9387 = vmatprep.subr.bf16.mxu0 %v11778_v30  ;;  %v11990_v19 = vld [vmem:[#allocation4] sm:$0xff] }
 0x4fd   :  { %9559 = vmatprep.subr.bf16.mxu1 %v11781_v20  ;;  %v1196_v30 = vrot.slane %v11990_v19, %v1195_v35  ;;  %v1204_v20 = vrot.slane %v11990_v19, %v1203_v38  ;;  %v11892_v35 = vld [vmem:[#allocation6 + $0x6c4] ss:$16 sps:$4 sm:$0xff]   ;;  %v11895_v38 = vld [vmem:[#allocation6 + $0x6cc] ss:$16 sps:$4 sm:$0xff]  }
 0x4ff   :  { %9388 = vmatpush1.bf16.msra.mxu0 %v11776_v21  ;;  %v1200_v21 = vrot.slane %v11990_v19, %v1199_v18  ;;  %v11890_v18 = vld [vmem:[#allocation6 + $0x6c0] ss:$16 sps:$4 sm:$0xff]  }
 0x500   :  { %9560 = vmatpush1.bf16.msra.mxu1 %v11779_v40  ;;  %9389 = vmatprep.subr.bf16.mxu0 %v11784_v23  ;;  %v1208_v40 = vrot.slane %v11990_v19, %v1207_v53  ;;  %v11893_v53 = vld [vmem:[#allocation6 + $0x6c8] ss:$16 sps:$4 sm:$0xff]   ;;  %v11898_v19 = vld [vmem:[#allocation6 + $0x6e4] ss:$16 sps:$4 sm:$0xff]  }
 0x501   :  { %9561 = vmatprep.subr.bf16.mxu1 %v11787_v25 }
 0x503   :  { %9390 = vmatpush1.bf16.msra.mxu0 %v11782_v0 }
 0x504   :  { %9562 = vmatpush1.bf16.msra.mxu1 %v11785_v24  ;;  %9391 = vmatprep.subr.bf16.mxu0 %v11790_v27 }
 0x505   :  { %9563 = vmatprep.subr.bf16.mxu1 %v11793_v31 }
 0x507   :  { %9392 = vmatpush1.bf16.msra.mxu0 %v11788_v34 }
 0x508   :  { %9564 = vmatpush1.bf16.msra.mxu1 %v11791_v36  ;;  %9393 = vmatprep.subr.bf16.mxu0 %v11796_v39 }
 0x509   :  { %9565 = vmatprep.subr.bf16.mxu1 %v11799_v42 }
 0x50b   :  { %9394 = vmatpush1.bf16.msra.mxu0 %v11794_v43 }
 0x50c   :  { %9566 = vmatpush1.bf16.msra.mxu1 %v11797_v44  ;;  %9395 = vmatprep.subr.bf16.mxu0 %v11802_v59 }
 0x50d   :  { %9567 = vmatprep.subr.bf16.mxu1 %v11805_v10 }
 0x50f   :  { %9396 = vmatpush1.bf16.msra.mxu0 %v11800_v47 }
 0x510   :  { %9568 = vmatpush1.bf16.msra.mxu1 %v11803_v48  ;;  %9397 = vmatprep.subr.bf16.mxu0 %v11808_v49 }
 0x511   :  { %9569 = vmatprep.subr.bf16.mxu1 %v11811_v50 }
 0x513   :  { %9398 = vmatpush1.bf16.msra.mxu0 %v11806_v51 }
 0x514   :  { %9570 = vmatpush1.bf16.msra.mxu1 %v11809_v58  ;;  %9399 = vmatprep.subr.bf16.mxu0 %v11814_v52 }
 0x515   :  { %9571 = vmatprep.subr.bf16.mxu1 %v11817_v54 }
 0x517   :  { %9400 = vmatpush1.bf16.msra.mxu0 %v11812_v6 }
 0x518   :  { %9572 = vmatpush1.bf16.msra.mxu1 %v11815_v55  ;;  %9401 = vmatprep.subr.bf16.mxu0 %v11820_v37 }
 0x519   :  { %9573 = vmatprep.subr.bf16.mxu1 %v11823_v56 }
 0x51b   :  { %9402 = vmatpush1.bf16.msra.mxu0 %v11818_v57 }
 0x51c   :  { %9574 = vmatpush1.bf16.msra.mxu1 %v11821_v60  ;;  %9403 = vmatprep.subr.bf16.mxu0 %v11826_v61  ;;  %v11854_v60 = vld [vmem:[#allocation6 + $0x600] ss:$16 sps:$4 sm:$0xff]   ;;  %v11857_v61 = vld [vmem:[#allocation6 + $0x608] ss:$16 sps:$4 sm:$0xff]  }
 0x51d   :  { %9575 = vmatprep.subr.bf16.mxu1 %v11829_v62 }
 0x51f   :  { %9404 = vmatpush1.bf16.msra.mxu0 %v11824_v63  ;;  %v11862_v63 = vld [vmem:[#allocation6 + $0x624] ss:$16 sps:$4 sm:$0xff]  }
 0x520   :  { %9576 = vmatpush1.bf16.msra.mxu1 %v11827_v1  ;;  %9405 = vmatprep.subr.bf16.mxu0 %v11832_v2  ;;  %v11865_v1 = vld [vmem:[#allocation6 + $0x62c] ss:$16 sps:$4 sm:$0xff]   ;;  %v11860_v2 = vld [vmem:[#allocation6 + $0x620] ss:$16 sps:$4 sm:$0xff]  }
 0x521   :  { %9577 = vmatprep.subr.bf16.mxu1 %v11835_v3  ;;  %v11863_v3 = vld [vmem:[#allocation6 + $0x628] ss:$16 sps:$4 sm:$0xff]  }
 0x523   :  { %9406 = vmatpush1.bf16.msra.mxu0 %v11830_v4  ;;  %v11868_v4 = vld [vmem:[#allocation6 + $0x644] ss:$16 sps:$4 sm:$0xff]  }
 0x524   :  { %9578 = vmatpush1.bf16.msra.mxu1 %v11833_v5  ;;  %9407 = vmatprep.subr.bf16.mxu0 %v11838_v33  ;;  %v11871_v5 = vld [vmem:[#allocation6 + $0x64c] ss:$16 sps:$4 sm:$0xff]   ;;  %v11866_v33 = vld [vmem:[#allocation6 + $0x640] ss:$16 sps:$4 sm:$0xff]  }
 0x525   :  { %9579 = vmatprep.subr.bf16.mxu1 %v11841_v26  ;;  %v11869_v26 = vld [vmem:[#allocation6 + $0x648] ss:$16 sps:$4 sm:$0xff]  }
 0x527   :  { %9408 = vmatpush1.bf16.msra.mxu0 %v11836_v7  ;;  %v11874_v7 = vld [vmem:[#allocation6 + $0x664] ss:$16 sps:$4 sm:$0xff]  }
 0x528   :  { %9580 = vmatpush1.bf16.msra.mxu1 %v11839_v46  ;;  %9409 = vmatprep.subr.bf16.mxu0 %v11844_v8  ;;  %v11877_v46 = vld [vmem:[#allocation6 + $0x66c] ss:$16 sps:$4 sm:$0xff]   ;;  %v11872_v8 = vld [vmem:[#allocation6 + $0x660] ss:$16 sps:$4 sm:$0xff]  }
 0x529   :  { %9581 = vmatprep.subr.bf16.mxu1 %v11847_v9  ;;  %v11875_v9 = vld [vmem:[#allocation6 + $0x668] ss:$16 sps:$4 sm:$0xff]  }
 0x52b   :  { %9410 = vmatpush1.bf16.msra.mxu0 %v11842_v13  ;;  %v11880_v13 = vld [vmem:[#allocation6 + $0x684] ss:$16 sps:$4 sm:$0xff]  }
 0x52c   :  { %9582 = vmatpush1.bf16.msra.mxu1 %v11845_v11  ;;  %9411 = vmatprep.subr.bf16.mxu0 %v11850_v12  ;;  %v11883_v11 = vld [vmem:[#allocation6 + $0x68c] ss:$16 sps:$4 sm:$0xff]   ;;  %v11878_v12 = vld [vmem:[#allocation6 + $0x680] ss:$16 sps:$4 sm:$0xff]  }
 0x52d   :  { %9583 = vmatprep.subr.bf16.mxu1 %v11853_v15  ;;  %v11881_v15 = vld [vmem:[#allocation6 + $0x688] ss:$16 sps:$4 sm:$0xff]  }
 0x52f   :  { %9412 = vmatpush1.bf16.msra.mxu0 %v11848_v14  ;;  %v11886_v14 = vld [vmem:[#allocation6 + $0x6a4] ss:$16 sps:$4 sm:$0xff]  }
 0x530   :  { %9584 = vmatpush1.bf16.msra.mxu1 %v11851_v41  ;;  %9424 = vmatprep.subr.bf16.mxu0 %v11856_v45  ;;  %v11889_v41 = vld [vmem:[#allocation6 + $0x6ac] ss:$16 sps:$4 sm:$0xff]   ;;  %v11884_v45 = vld [vmem:[#allocation6 + $0x6a0] ss:$16 sps:$4 sm:$0xff]  }
 0x531   :  { %9596 = vmatprep.subr.bf16.mxu1 %v11859_v17  ;;  %v11887_v17 = vld [vmem:[#allocation6 + $0x6a8] ss:$16 sps:$4 sm:$0xff]  }
 0x545   :  { %v7360_v23 = vpop.f32.mrb[4].mxu0  ;;  %v7704_v0 = vpop.f32.mrb[4].mxu1 }
 0x546   :  { %v11402_v25 = vadd.f32 %v7360_v23, %v1196_v30  ;;  %v7362_v24 = vpop.f32.mrb[5].mxu0  ;;  %v11406_v27 = vadd.f32 %v7704_v0, %v1204_v20  ;;  %v7706_v34 = vpop.f32.mrb[5].mxu1  ;;  %v11907_v23 = vld [vmem:[#allocation6 + $0x70c] ss:$16 sps:$4 sm:$0xff]   ;;  %v11905_v0 = vld [vmem:[#allocation6 + $0x708] ss:$16 sps:$4 sm:$0xff]  }
 0x547   :  { %v11403_v31 = vadd.f32 %v7362_v24, %v1200_v21  ;;  %v7364_v36 = vpop.f32.mrb[6].mxu0  ;;  %v11407_v39 = vadd.f32 %v7706_v34, %v1208_v40  ;;  %v7708_v43 = vpop.f32.mrb[6].mxu1  ;;  %v11910_v24 = vld [vmem:[#allocation6 + $0x724] ss:$16 sps:$4 sm:$0xff]   ;;  %v11911_v34 = vld [vmem:[#allocation6 + $0x728] ss:$16 sps:$4 sm:$0xff]  }
 0x548   :  { %v11404_v42 = vadd.f32 %v7364_v36, %v1196_v30  ;;  %v7366_v44 = vpop.f32.mrb[7].mxu0  ;;  %v11408_v59 = vadd.f32 %v7708_v43, %v1204_v20  ;;  %v7710_v47 = vpop.f32.mrb[7].mxu1  ;;  %v7717_v48 = vmax.f32 %v11402_v25, 0.0  ;;  %v7719_v51 = vmax.f32 %v11406_v27, 0.0  ;;  %v11901_v30 = vld [vmem:[#allocation6 + $0x6ec] ss:$16 sps:$4 sm:$0xff]  }
 0x549   :  { %v11405_v10 = vadd.f32 %v7366_v44, %v1200_v21  ;;  %v11409_v50 = vadd.f32 %v7710_v47, %v1208_v40  ;;  %v7718_v58 = vmax.f32 %v11403_v31, 0.0  ;;  %v7720_v6 = vmax.f32 %v11407_v39, 0.0  ;;  %v11896_v20 = vld [vmem:[#allocation6 + $0x6e0] ss:$16 sps:$4 sm:$0xff]   ;;  %v11899_v21 = vld [vmem:[#allocation6 + $0x6e8] ss:$16 sps:$4 sm:$0xff]  }
 0x54a   :  { %v7725_v49 = vmax.f32 %v11404_v42, 0.0  ;;  %v7727_v52 = vmax.f32 %v11408_v59, 0.0  ;;  %v11904_v40 = vld [vmem:[#allocation6 + $0x704] ss:$16 sps:$4 sm:$0xff]   ;;  %v11902_v25 = vld [vmem:[#allocation6 + $0x700] ss:$16 sps:$4 sm:$0xff]  }
 0x54b   :  { %v7726_v54 = vmax.f32 %v11405_v10, 0.0  ;;  %v7728_v37 = vmax.f32 %v11409_v50, 0.0  ;;  %v11913_v27 = vld [vmem:[#allocation6 + $0x72c] ss:$16 sps:$4 sm:$0xff]   ;;  %v11908_v31 = vld [vmem:[#allocation6 + $0x720] ss:$16 sps:$4 sm:$0xff]  }
 0x54c   :  { %v7733_v55 = vpack.c.bf16 %v7725_v49, %v7717_v48  ;;  %v12481_v56 = vpack.c.bf16 %v7727_v52, %v7719_v51  ;;  %v11916_v36 = vld [vmem:[#allocation6 + $0x744] ss:$16 sps:$4 sm:$0xff]   ;;  %v11919_v39 = vld [vmem:[#allocation6 + $0x74c] ss:$16 sps:$4 sm:$0xff]   ;;  %v11914_v42 = vld [vmem:[#allocation6 + $0x740] ss:$16 sps:$4 sm:$0xff]  }
 0x54d   :  { %v7734_v57 = vpack.c.bf16 %v7726_v54, %v7718_v58  ;;  %v7736_v62 = vpack.c.bf16 %v7728_v37, %v7720_v6  ;;  %v11917_v43 = vld [vmem:[#allocation6 + $0x748] ss:$16 sps:$4 sm:$0xff]   ;;  %v11922_v44 = vld [vmem:[#allocation6 + $0x764] ss:$16 sps:$4 sm:$0xff]   ;;  %v11925_v59 = vld [vmem:[#allocation6 + $0x76c] ss:$16 sps:$4 sm:$0xff]  }
 0x54e   :  { %v11920_v10 = vld [vmem:[#allocation6 + $0x760] ss:$16 sps:$4 sm:$0xff]   ;;  %v11923_v47 = vld [vmem:[#allocation6 + $0x768] ss:$16 sps:$4 sm:$0xff]   ;;  %v11928_v48 = vld [vmem:[#allocation6 + $0x784] ss:$16 sps:$4 sm:$0xff]  }
 0x54f   :  { %9413 = vmatprep.mubr.bf16.mxu0 %v7734_v57  ;;  %9585 = vmatprep.mubr.bf16.mxu1 %v7734_v57  ;;  %v11931_v49 = vld [vmem:[#allocation6 + $0x78c] ss:$16 sps:$4 sm:$0xff]   ;;  %v11926_v50 = vld [vmem:[#allocation6 + $0x780] ss:$16 sps:$4 sm:$0xff]   ;;  %v11929_v51 = vld [vmem:[#allocation6 + $0x788] ss:$16 sps:$4 sm:$0xff]  }
 0x550   :  { %9414 = vmatmul.mubr.bf16.vlgmr.msra.gmra.mrb[8].mxu0 %v7733_v55  ;;  %9586 = vmatmul.mubr.bf16.vlgmr.msra.gmra.mrb[8].mxu1 %v7733_v55  ;;  %v11934_v58 = vld [vmem:[#allocation6 + $0x7a4] ss:$16 sps:$4 sm:$0xff]   ;;  %v11937_v52 = vld [vmem:[#allocation6 + $0x7ac] ss:$16 sps:$4 sm:$0xff]   ;;  %v11932_v54 = vld [vmem:[#allocation6 + $0x7a0] ss:$16 sps:$4 sm:$0xff]  }
 0x551   :  { %9425 = vmatpush1.bf16.msra.mxu0 %v11854_v60  ;;  %9597 = vmatpush1.bf16.msra.mxu1 %v11857_v61  ;;  %v11935_v6 = vld [vmem:[#allocation6 + $0x7a8] ss:$16 sps:$4 sm:$0xff]   ;;  %v11940_v55 = vld [vmem:[#allocation6 + $0x7c4] ss:$16 sps:$4 sm:$0xff]   ;;  %v11943_v37 = vld [vmem:[#allocation6 + $0x7cc] ss:$16 sps:$4 sm:$0xff]  }
 0x552   :  { %9456 = vmatprep.mubr.bf16.mxu0 %v7736_v62  ;;  %9628 = vmatprep.mubr.bf16.mxu1 %v7736_v62  ;;  %v11938_v57 = vld [vmem:[#allocation6 + $0x7c0] ss:$16 sps:$4 sm:$0xff]   ;;  %v11941_v60 = vld [vmem:[#allocation6 + $0x7c8] ss:$16 sps:$4 sm:$0xff]   ;;  %v11946_v61 = vld [vmem:[#allocation6 + $0x7e4] ss:$16 sps:$4 sm:$0xff]  }
 0x553   :  { %9426 = vmatprep.subr.bf16.mxu0 %v11862_v63  ;;  %9598 = vmatprep.subr.bf16.mxu1 %v11865_v1  ;;  %v11949_v62 = vld [vmem:[#allocation6 + $0x7ec] ss:$16 sps:$4 sm:$0xff]   ;;  %v11944_v63 = vld [vmem:[#allocation6 + $0x7e0] ss:$16 sps:$4 sm:$0xff]   ;;  %v11947_v1 = vld [vmem:[#allocation6 + $0x7e8] ss:$16 sps:$4 sm:$0xff]  }
 0x555   :  { %9427 = vmatpush1.bf16.msra.mxu0 %v11860_v2  ;;  %9599 = vmatpush1.bf16.msra.mxu1 %v11863_v3  ;;  %v11950_v2 = vld [vmem:[#allocation9 + $0x40] sm:$0xff]  }
 0x556   :  { %9428 = vmatprep.subr.bf16.mxu0 %v11868_v4  ;;  %9600 = vmatprep.subr.bf16.mxu1 %v11871_v5  ;;  %v11951_v3 = vld [vmem:[#allocation9 + $0xc0] sm:$0xff]  }
 0x557   :  { %v11952_v4 = vld [vmem:[#allocation9] sm:$0xff]  }
 0x558   :  { %v11953_v5 = vld [vmem:[#allocation9 + $0x80] sm:$0xff]  }
 0x559   :  { %9429 = vmatpush1.bf16.msra.mxu0 %v11866_v33  ;;  %9601 = vmatpush1.bf16.msra.mxu1 %v11869_v26  ;;  %v11954_v33 = vld [vmem:[#allocation9 + $0x48] sm:$0xff]  }
 0x55a   :  { %9430 = vmatprep.subr.bf16.mxu0 %v11874_v7  ;;  %9602 = vmatprep.subr.bf16.mxu1 %v11877_v46  ;;  %v11955_v26 = vld [vmem:[#allocation9 + $0xc8] sm:$0xff]  }
 0x55b   :  { %v11956_v7 = vld [vmem:[#allocation9 + $0x8] sm:$0xff]  }
 0x55c   :  { %v11957_v46 = vld [vmem:[#allocation9 + $0x88] sm:$0xff]  }
 0x55d   :  { %9431 = vmatpush1.bf16.msra.mxu0 %v11872_v8  ;;  %9603 = vmatpush1.bf16.msra.mxu1 %v11875_v9  ;;  %v11958_v8 = vld [vmem:[#allocation9 + $0x50] sm:$0xff]  }
 0x55e   :  { %9432 = vmatprep.subr.bf16.mxu0 %v11880_v13  ;;  %9604 = vmatprep.subr.bf16.mxu1 %v11883_v11  ;;  %v11959_v9 = vld [vmem:[#allocation9 + $0xd0] sm:$0xff]  }
 0x55f   :  { %v11960_v13 = vld [vmem:[#allocation9 + $0x10] sm:$0xff]  }
 0x560   :  { %v11961_v11 = vld [vmem:[#allocation9 + $0x90] sm:$0xff]  }
 0x561   :  { %9433 = vmatpush1.bf16.msra.mxu0 %v11878_v12  ;;  %9605 = vmatpush1.bf16.msra.mxu1 %v11881_v15  ;;  %v11962_v12 = vld [vmem:[#allocation9 + $0x58] sm:$0xff]  }
 0x562   :  { %9434 = vmatprep.subr.bf16.mxu0 %v11886_v14  ;;  %9606 = vmatprep.subr.bf16.mxu1 %v11889_v41  ;;  %v11963_v15 = vld [vmem:[#allocation9 + $0xd8] sm:$0xff]   ;;  %v11966_v41 = vld [vmem:[#allocation9 + $0x60] sm:$0xff]  }
 0x563   :  { %v11964_v14 = vld [vmem:[#allocation9 + $0x18] sm:$0xff]  }
 0x565   :  { %9435 = vmatpush1.bf16.msra.mxu0 %v11884_v45  ;;  %9607 = vmatpush1.bf16.msra.mxu1 %v11887_v17  ;;  %v11967_v45 = vld [vmem:[#allocation9 + $0xe0] sm:$0xff]  }
 0x566   :  { %9436 = vmatprep.subr.bf16.mxu0 %v11892_v35  ;;  %9608 = vmatprep.subr.bf16.mxu1 %v11895_v38  ;;  %v11968_v17 = vld [vmem:[#allocation9 + $0x20] sm:$0xff]   ;;  %v11970_v38 = vld [vmem:[#allocation9 + $0x68] sm:$0xff]  }
 0x567   :  { %v11969_v35 = vld [vmem:[#allocation9 + $0xa0] sm:$0xff]  }
 0x569   :  { %9437 = vmatpush1.bf16.msra.mxu0 %v11890_v18  ;;  %9609 = vmatpush1.bf16.msra.mxu1 %v11893_v53  ;;  %v11971_v18 = vld [vmem:[#allocation9 + $0xe8] sm:$0xff]  }
 0x56a   :  { %9438 = vmatprep.subr.bf16.mxu0 %v11898_v19  ;;  %9610 = vmatprep.subr.bf16.mxu1 %v11901_v30  ;;  %v11972_v53 = vld [vmem:[#allocation9 + $0x28] sm:$0xff]   ;;  %v11974_v30 = vld [vmem:[#allocation9 + $0x70] sm:$0xff]  }
 0x56b   :  { %v11973_v19 = vld [vmem:[#allocation9 + $0xa8] sm:$0xff]  }
 0x56d   :  { %9439 = vmatpush1.bf16.msra.mxu0 %v11896_v20  ;;  %9611 = vmatpush1.bf16.msra.mxu1 %v11899_v21  ;;  %v11975_v20 = vld [vmem:[#allocation9 + $0xf0] sm:$0xff]  }
 0x56e   :  { %9440 = vmatprep.subr.bf16.mxu0 %v11904_v40  ;;  %9612 = vmatprep.subr.bf16.mxu1 %v11907_v23  ;;  %v11976_v21 = vld [vmem:[#allocation9 + $0x30] sm:$0xff]   ;;  %v11978_v23 = vld [vmem:[#allocation9 + $0x78] sm:$0xff]  }
 0x56f   :  { %v11977_v40 = vld [vmem:[#allocation9 + $0xb0] sm:$0xff]  }
 0x571   :  { %9441 = vmatpush1.bf16.msra.mxu0 %v11902_v25  ;;  %9613 = vmatpush1.bf16.msra.mxu1 %v11905_v0  ;;  %v11979_v25 = vld [vmem:[#allocation9 + $0xf8] sm:$0xff]  }
 0x572   :  { %9442 = vmatprep.subr.bf16.mxu0 %v11910_v24  ;;  %9614 = vmatprep.subr.bf16.mxu1 %v11913_v27  ;;  %v11980_v0 = vld [vmem:[#allocation9 + $0x38] sm:$0xff]  }
 0x573   :  { %v11981_v24 = vld [vmem:[#allocation9 + $0xb8] sm:$0xff]  }
 0x574   :  { %v7993_v27 = vld [vmem:[#allocation7] sm:$0xf] }
 0x575   :  { %9443 = vmatpush1.bf16.msra.mxu0 %v11908_v31  ;;  %9615 = vmatpush1.bf16.msra.mxu1 %v11911_v34  ;;  %v7998_v31 = vrot.slane %v7993_v27, %v1179_v22  ;;  %v8006_v34 = vrot.slane %v7993_v27, %v1187_v28 }
 0x576   :  { %9444 = vmatprep.subr.bf16.mxu0 %v11916_v36  ;;  %9616 = vmatprep.subr.bf16.mxu1 %v11919_v39  ;;  %v8002_v36 = vrot.slane %v7993_v27, %v1183_v29  ;;  %v8010_v39 = vrot.slane %v7993_v27, %v1191_v32 }
 0x579   :  { %9445 = vmatpush1.bf16.msra.mxu0 %v11914_v42  ;;  %9617 = vmatpush1.bf16.msra.mxu1 %v11917_v43 }
 0x57a   :  { %9446 = vmatprep.subr.bf16.mxu0 %v11922_v44  ;;  %9618 = vmatprep.subr.bf16.mxu1 %v11925_v59 }
 0x57d   :  { %9447 = vmatpush1.bf16.msra.mxu0 %v11920_v10  ;;  %9619 = vmatpush1.bf16.msra.mxu1 %v11923_v47 }
 0x57e   :  { %9448 = vmatprep.subr.bf16.mxu0 %v11928_v48  ;;  %9620 = vmatprep.subr.bf16.mxu1 %v11931_v49 }
 0x581   :  { %9449 = vmatpush1.bf16.msra.mxu0 %v11926_v50  ;;  %9621 = vmatpush1.bf16.msra.mxu1 %v11929_v51 }
 0x582   :  { %9450 = vmatprep.subr.bf16.mxu0 %v11934_v58  ;;  %9622 = vmatprep.subr.bf16.mxu1 %v11937_v52 }
 0x585   :  { %9451 = vmatpush1.bf16.msra.mxu0 %v11932_v54  ;;  %9623 = vmatpush1.bf16.msra.mxu1 %v11935_v6 }
 0x586   :  { %9452 = vmatprep.subr.bf16.mxu0 %v11940_v55  ;;  %9624 = vmatprep.subr.bf16.mxu1 %v11943_v37 }
 0x589   :  { %9453 = vmatpush1.bf16.msra.mxu0 %v11938_v57  ;;  %9625 = vmatpush1.bf16.msra.mxu1 %v11941_v60 }
 0x58a   :  { %9454 = vmatprep.subr.bf16.mxu0 %v11946_v61  ;;  %9626 = vmatprep.subr.bf16.mxu1 %v11949_v62 }
 0x58d   :  { %9455 = vmatpush1.bf16.msra.mxu0 %v11944_v63  ;;  %9627 = vmatpush1.bf16.msra.mxu1 %v11947_v1 }
 0x58e   :  { %11350 = vmatprep.subr.bf16.mxu0 %v11950_v2  ;;  %11372 = vmatprep.subr.bf16.mxu1 %v11951_v3 }
 0x590   :  { %9457 = vmatmul.mubr.bf16.vlgmr.msra.gmra.mrb[8].mxu0 %v12481_v56  ;;  %9629 = vmatmul.mubr.bf16.vlgmr.msra.gmra.mrb[8].mxu1 %v12481_v56  ;;  %v11965_v56 = vld [vmem:[#allocation9 + $0x98] sm:$0xff]  }
 0x591   :  { %11351 = vmatpush3.bf16.msra.mxu0 %v11952_v4  ;;  %11373 = vmatpush3.bf16.msra.mxu1 %v11953_v5  ;;  %v11306_v5 = vld [vmem:[#allocation10] ss:$0 sm:$0xff] }
 0x592   :  { %11352 = vmatprep.subr.bf16.mxu0 %v11954_v33  ;;  %11374 = vmatprep.subr.bf16.mxu1 %v11955_v26 }
 0x595   :  { %11353 = vmatpush3.bf16.msra.mxu0 %v11956_v7  ;;  %11375 = vmatpush3.bf16.msra.mxu1 %v11957_v46 }
 0x596   :  { %11354 = vmatprep.subr.bf16.mxu0 %v11958_v8  ;;  %11376 = vmatprep.subr.bf16.mxu1 %v11959_v9 }
 0x599   :  { %11355 = vmatpush3.bf16.msra.mxu0 %v11960_v13  ;;  %11377 = vmatpush3.bf16.msra.mxu1 %v11961_v11 }
 0x59a   :  { %11356 = vmatprep.subr.bf16.mxu0 %v11962_v12  ;;  %11378 = vmatprep.subr.bf16.mxu1 %v11963_v15 }
 0x59d   :  { %11357 = vmatpush3.bf16.msra.mxu0 %v11964_v14  ;;  %11379 = vmatpush3.bf16.msra.mxu1 %v11965_v56 }
 0x59e   :  { %11358 = vmatprep.subr.bf16.mxu0 %v11966_v41  ;;  %11380 = vmatprep.subr.bf16.mxu1 %v11967_v45 }
 0x5a1   :  { %11359 = vmatpush3.bf16.msra.mxu0 %v11968_v17  ;;  %11381 = vmatpush3.bf16.msra.mxu1 %v11969_v35 }
 0x5a2   :  { %11360 = vmatprep.subr.bf16.mxu0 %v11970_v38  ;;  %11382 = vmatprep.subr.bf16.mxu1 %v11971_v18 }
 0x5a5   :  { %11361 = vmatpush3.bf16.msra.mxu0 %v11972_v53  ;;  %11383 = vmatpush3.bf16.msra.mxu1 %v11973_v19 }
 0x5a6   :  { %11362 = vmatprep.subr.bf16.mxu0 %v11974_v30  ;;  %11384 = vmatprep.subr.bf16.mxu1 %v11975_v20 }
 0x5a9   :  { %11363 = vmatpush3.bf16.msra.mxu0 %v11976_v21  ;;  %11385 = vmatpush3.bf16.msra.mxu1 %v11977_v40 }
 0x5aa   :  { %11364 = vmatprep.subr.bf16.mxu0 %v11978_v23  ;;  %11386 = vmatprep.subr.bf16.mxu1 %v11979_v25 }
 0x5ad   :  { %11365 = vmatpush3.bf16.msra.mxu0 %v11980_v0  ;;  %11387 = vmatpush3.bf16.msra.mxu1 %v11981_v24 }
 0x663   :  { %v9458_v42 = vpop.f32.mrb[8].mxu0  ;;  %v9630_v43 = vpop.f32.mrb[8].mxu1 }
 0x664   :  { %v11410_v44 = vadd.f32 %v9458_v42, %v7998_v31  ;;  %v11414_v59 = vadd.f32 %v9630_v43, %v8006_v34  ;;  %v9460_v10 = vpop.f32.mrb[9].mxu0  ;;  %v9632_v47 = vpop.f32.mrb[9].mxu1 }
 0x665   :  { %v11411_v48 = vadd.f32 %v9460_v10, %v8002_v36  ;;  %v11415_v49 = vadd.f32 %v9632_v47, %v8010_v39  ;;  %v9462_v50 = vpop.f32.mrb[10].mxu0  ;;  %v9634_v51 = vpop.f32.mrb[10].mxu1 }
 0x666   :  { %v11412_v22 = vadd.f32 %v9462_v50, %v7998_v31  ;;  %v11416_v58 = vadd.f32 %v9634_v51, %v8006_v34  ;;  %v9464_v52 = vpop.f32.mrb[11].mxu0  ;;  %v9636_v28 = vpop.f32.mrb[11].mxu1  ;;  %v9639_v29 = vmax.f32 %v11410_v44, 0.0  ;;  %v9641_v55 = vmax.f32 %v11414_v59, 0.0 }
 0x667   :  { %v11413_v54 = vadd.f32 %v9464_v52, %v8002_v36  ;;  %v11417_v6 = vadd.f32 %v9636_v28, %v8010_v39  ;;  %v9640_v37 = vmax.f32 %v11411_v48, 0.0  ;;  %v9642_v57 = vmax.f32 %v11415_v49, 0.0 }
 0x668   :  { %v9643_v16 = vmax.f32 %v11412_v22, 0.0  ;;  %v9645_v32 = vmax.f32 %v11416_v58, 0.0 }
 0x669   :  { %v9644_v60 = vmax.f32 %v11413_v54, 0.0  ;;  %v9646_v61 = vmax.f32 %v11417_v6, 0.0 }
 0x66a   :  { %v9647_v62 = vpack.c.bf16 %v9643_v16, %v9639_v29  ;;  %v9649_v63 = vpack.c.bf16 %v9645_v32, %v9641_v55 }
 0x66b   :  { %v9648_v1 = vpack.c.bf16 %v9644_v60, %v9640_v37  ;;  %v9650_v2 = vpack.c.bf16 %v9646_v61, %v9642_v57 }
 0x66d   :  { %9946 = vmatprep.mubr.bf16.mxu0 %v9648_v1  ;;  %9987 = vmatprep.mubr.bf16.mxu1 %v9650_v2 }
 0x66e   :  { %9947 = vmatmul.mubr.bf16.vlgmr.msra.gmra.mrb[12].mxu0 %v9647_v62  ;;  %9988 = vmatmul.mubr.bf16.vlgmr.msra.gmra.mrb[12].mxu1 %v9649_v63 }
 0x741   :  { %v11366_v3 = vpop.f32.mrb[12].mxu0  ;;  %v11388_v4 = vpop.f32.mrb[12].mxu1 }
 0x742   :  { %v11367_v33 = vpop.f32.mrb[13].mxu0  ;;  %v11389_v26 = vpop.f32.mrb[13].mxu1 }
 0x743   :  { %v11368_v7 = vadd.f32 %v11367_v33, %v11366_v3  ;;  %v11390_v46 = vadd.f32 %v11389_v26, %v11388_v4  ;;  %v11369_v8 = vpop.f32.mrb[14].mxu0  ;;  %v11391_v9 = vpop.f32.mrb[14].mxu1 }
 0x744   :  { %v11370_v13 = vpop.f32.mrb[15].mxu0  ;;  %v11392_v11 = vpop.f32.mrb[15].mxu1 }
 0x745   :  { %v9949_v12 = vadd.f32 %v11368_v7, %v11306_v5  ;;  %v11371_v15 = vadd.f32 %v11370_v13, %v11369_v8  ;;  %v11393_v14 = vadd.f32 %v11392_v11, %v11391_v9 }
 0x747   :  { %v9990_v56 = vadd.f32 %v11390_v46, %v9949_v12  ;;  %v9952_v41 = vadd.f32 %v11371_v15, %v11306_v5 }
 0x749   :  { %v11339_v45 = vmul.f32 -1.442695, %v9990_v56  ;;  %v9993_v17 = vadd.f32 %v11393_v14, %v9952_v41 }
 0x74b   :  { %11982 = vpow2.f32 %v11339_v45  ;;  %v11340_v35 = vmul.f32 -1.442695, %v9993_v17 }
 0x74d   :  { %11984 = vpow2.f32 %v11340_v35 }
 0x755   :  { %v11983_v38 = vpop.eup %11982 }
 0x756   :  { %v10002_v18 = vadd.f32 1.0, %v11983_v38 }
 0x757   :  { %v11985_v53 = vpop.eup %11984 }
 0x758   :  { %v10003_v19 = vadd.f32 1.0, %v11985_v53  ;;  %11986 = vrcp.f32 %v10002_v18 }
 0x75a   :  { %11988 = vrcp.f32 %v10003_v19 }
 0x762   :  { %v11987_v30 = vpop.eup %11986 }
 0x764   :  { %v11989_v20 = vpop.eup %11988 }
 0x765   :  { %v11348_v21 = vpack.c.bf16 %v11989_v20, %v11987_v30 }
 0x767   :  { %11349 = vst [vmem:[%s12503_s7] sm:$0xff] %v11348_v21  }
 0x768   :  { %10022 = vsyncpa [#allocation3], 1 }
 0x769   :  { %10023 = vsyncpa [#allocation5], 1 }
 0x76a   :  { %10024 = vsyncpa [#allocation8], 1 }
 0x76b   :  { %10025 = vsyncpa [#allocation11], 1 }

</bundles_post_ra>
